<compile_context>
chip_gen: v7x
topology: tpu7x:2x2x1
jax: 0.10.0
libtpu: 0.0.40
codegen_flags: <defaults>
</compile_context>

<pallas_src>
import functools

import jax
import jax.numpy as jnp
from jax.experimental import pallas as pl
from jax.experimental.pallas import tpu as pltpu


# ----------------------------------------------------------------------------
# Pallas kernel
# ----------------------------------------------------------------------------
def _fused_kernel(n_mlp, n_post, tn2, ns, co_mlp, co_post,
                  g_ref, f2_ref, *rest):
    """One tile of query points for one scale.

    g_ref  : (1, tn2*ns, C0) bf16  grouped (xyz | feats1), rows-on-sublane
    f2_ref : (1, C2, tn2)    bf16  features2, channels-on-sublane
    rest   : w_mlp_0..w_mlp_{n_mlp-1} (ci, co) bf16,
             bm (n_mlp, max co_mlp) f32,
             wa_t (co0, c_mlp_last) bf16, wb_t (co0, C2) bf16,
             w_post_t_1.. (co_j, ci_j) bf16,
             bp (max co_post, n_post) f32,
             o_ref (1, c_out, tn2) bf16
    """
    o_ref = rest[-1]
    refs = rest[:-1]
    w_mlp = refs[:n_mlp]
    bm = refs[n_mlp][...]                       # (n_mlp, co_mlp_max) f32
    wa_ref = refs[n_mlp + 1]
    wb_ref = refs[n_mlp + 2]
    w_post = refs[n_mlp + 3:-1]
    bp = refs[-1][...]                          # (co_post_max, n_post) f32

    # Stage 1: per-scale SharedMLP over grouped rows (rows on sublanes,
    # channels on lanes). bf16 MXU matmuls, f32 accumulation / bias / ReLU.
    h = g_ref[0]                                # (tn2*ns, C0) bf16
    for j in range(n_mlp):
        co = co_mlp[j]
        h = jnp.dot(h.astype(jnp.bfloat16), w_mlp[j][...],
                    preferred_element_type=jnp.float32)
        h = jnp.maximum(h + bm[j:j + 1, :co], 0.0)

    # Max-pool over the nsample axis.
    c_last = h.shape[-1]
    pooled = jnp.max(h.reshape(tn2, ns, c_last), axis=1)    # (tn2, c_last) f32

    # Stage 2: post SharedMLP in transposed (channels-on-sublane) form so the
    # final store is lane-dense over the tn2 query points with no padding.
    # Reference concat order is [pooled | features2]; it is expressed here as
    # a split layer-0 weight (wa_t for pooled, wb_t for features2).
    pooled_t = pooled.T.astype(jnp.bfloat16)                 # (c_last, tn2)
    f2_t = f2_ref[0]                                         # (C2, tn2) bf16
    co0 = co_post[0]
    ht = (jnp.dot(wa_ref[...], pooled_t, preferred_element_type=jnp.float32)
          + jnp.dot(wb_ref[...], f2_t, preferred_element_type=jnp.float32)
          + bp[:co0, 0:1])
    ht = jnp.maximum(ht, 0.0)
    for j in range(1, n_post):
        co = co_post[j]
        ht = jnp.dot(w_post[j - 1][...], ht.astype(jnp.bfloat16),
                     preferred_element_type=jnp.float32) + bp[:co, j:j + 1]
        ht = jnp.maximum(ht, 0.0)

    o_ref[0] = ht.astype(o_ref.dtype)                        # (c_out, tn2) bf16


def _choose_tile_n2(n2, nsample, batch, target_rows=8192):
    """Tile of query points per grid step.  Multiple of 128 so the
    channels-on-sublane output store is fully lane-dense; sized so each step
    sees ~8192 grouped rows (amortizes per-step overhead on v5e/v6e); total
    tile count nudged even so v7x's two TensorCores split the grid evenly."""
    lane = 128
    t = max(lane, (target_rows // max(nsample, 1)) // lane * lane)
    n2_up = -(-n2 // lane) * lane
    t = min(t, n2_up)

    def total_tiles(tt):
        return batch * (-(-n2 // tt))

    if total_tiles(t) % 2 == 1 and t > lane:
        t_half = max(lane, (t // 2) // lane * lane)
        if total_tiles(t_half) % 2 == 0:
            t = t_half
    return t


def fused_group_mlp_pool_post(grouped, feats2_cf, mlp_layers, post_layers, *,
                              nsample):
    """grouped: (B, N2, ns, C0) bf16 channels-last grouped features.
    feats2_cf: (B, C2, N2) bf16 channels-first features2 (native layout).
    mlp_layers / post_layers: lists of (weight (ci, co), bias (co,)) with BN
    already folded in.  Returns (B, c_out, N2) bf16 (channels-first)."""
    B, N2, ns, C0 = grouped.shape
    assert ns == nsample
    C2 = feats2_cf.shape[1]
    c_mlp_last = int(mlp_layers[-1][0].shape[1])
    c_out = int(post_layers[-1][0].shape[1])
    # Reference concat order: torch.cat([pooled, features2], dim=1).
    assert int(post_layers[0][0].shape[0]) == c_mlp_last + C2

    tile_n2 = _choose_tile_n2(N2, ns, B)
    n_tiles = -(-N2 // tile_n2)
    n2_pad = n_tiles * tile_n2

    xg = grouped.astype(jnp.bfloat16)
    xf = feats2_cf.astype(jnp.bfloat16)
    if n2_pad != N2:
        xg = jnp.pad(xg, ((0, 0), (0, n2_pad - N2), (0, 0), (0, 0)))
        xf = jnp.pad(xf, ((0, 0), (0, 0), (0, n2_pad - N2)))
    xg = xg.reshape(B, n2_pad * ns, C0)

    co_mlp = tuple(int(w.shape[1]) for w, _ in mlp_layers)
    co_post = tuple(int(w.shape[1]) for w, _ in post_layers)
    n_mlp, n_post = len(mlp_layers), len(post_layers)

    in_specs = [pl.BlockSpec((1, tile_n2 * ns, C0), lambda b, i: (b, i, 0)),
                pl.BlockSpec((1, C2, tile_n2), lambda b, i: (b, 0, i))]
    flat = []

    def add_const(arr):
        in_specs.append(pl.BlockSpec(arr.shape, lambda b, i: (0, 0)))
        flat.append(arr)

    # Stage-1 weights (exact shapes) + one stacked bias array.
    for w, _ in mlp_layers:
        add_const(w.astype(jnp.bfloat16))
    co_mlp_max = max(co_mlp)
    bm = jnp.stack([jnp.pad(b, (0, co_mlp_max - b.shape[0]))
                    for _, b in mlp_layers]).astype(jnp.float32)
    add_const(bm)

    # Stage-2 (post) weights, pre-transposed to (co, ci); layer 0 split into
    # the pooled part and the features2 part (no lane concat in the kernel).
    w0, _ = post_layers[0]
    add_const(jnp.transpose(w0[:c_mlp_last]).astype(jnp.bfloat16))   # wa_t
    add_const(jnp.transpose(w0[c_mlp_last:]).astype(jnp.bfloat16))   # wb_t
    for w, _ in post_layers[1:]:
        add_const(jnp.transpose(w).astype(jnp.bfloat16))
    co_post_max = max(co_post)
    bp = jnp.stack([jnp.pad(b, (0, co_post_max - b.shape[0]))
                    for _, b in post_layers], axis=1).astype(jnp.float32)
    add_const(bp)

    kernel = functools.partial(_fused_kernel, n_mlp, n_post, tile_n2, ns,
                               co_mlp, co_post)

    rows1 = B * n2_pad * ns
    rows2 = B * n2_pad
    flops = 2 * rows1 * sum(int(w.shape[0]) * int(w.shape[1])
                            for w, _ in mlp_layers)
    flops += 2 * rows2 * (int(post_layers[0][0].shape[0])
                          * int(post_layers[0][0].shape[1])
                          + sum(int(w.shape[0]) * int(w.shape[1])
                                for w, _ in post_layers[1:]))
    bytes_accessed = (int(xg.size) * 2 + int(xf.size) * 2
                      + B * c_out * n2_pad * 2
                      + sum(int(a.size) * a.dtype.itemsize for a in flat))

    out = pl.pallas_call(
        kernel,
        out_shape=jax.ShapeDtypeStruct((B, c_out, n2_pad), jnp.bfloat16),
        grid=(B, n_tiles),
        in_specs=in_specs,
        out_specs=pl.BlockSpec((1, c_out, tile_n2), lambda b, i: (b, 0, i)),
        compiler_params=pltpu.CompilerParams(
            dimension_semantics=("parallel", "parallel"),
            vmem_limit_bytes=32 * 1024 * 1024),
        cost_estimate=pl.CostEstimate(flops=int(flops), transcendentals=0,
                                      bytes_accessed=int(bytes_accessed)),
    )(xg, xf, *flat)

    return out[:, :, :N2]


# ----------------------------------------------------------------------------
# Plain-JAX glue (data-dependent neighbor search / gathers)
# ----------------------------------------------------------------------------
def batched_index(x, idx):
    # x: (B, N, C), idx: (B, ...) int -> (B, ..., C)
    return jax.vmap(lambda xb, ib: xb[ib])(x, idx)


def ball_query(radius, nsample, xyz, new_xyz):
    """CUDA ball_query semantics: first nsample in-radius indices (ascending),
    remaining slots filled with the first hit, all zeros if no hit."""
    B, N, _ = xyz.shape
    d2 = jnp.sum((new_xyz[:, :, None, :] - xyz[:, None, :, :]) ** 2, axis=-1)
    within = d2 < radius * radius                          # (B, S, N)
    key = jnp.where(within, jnp.arange(N, dtype=jnp.int32), N)
    neg_top, _ = jax.lax.top_k(-key, nsample)              # k smallest keys
    idx = -neg_top                                         # ascending, N if none
    first = jnp.where(idx[..., :1] < N, idx[..., :1], 0)
    idx = jnp.where(idx < N, idx, first)
    return idx.astype(jnp.int32)


def query_and_group(radius, nsample, xyz, new_xyz, features_nc, *,
                    use_xyz=True):
    """QueryAndGroup: group (xyz, features) around new_xyz.
    features_nc: (B, N, C) bf16 -> (B, S, nsample, 3+C) channels-last bf16
    (produced directly in bf16 so the largest HBM tensor is half-width)."""
    idx = ball_query(radius, nsample, xyz, new_xyz)
    grouped_xyz = (batched_index(xyz, idx)
                   - new_xyz[:, :, None, :]).astype(features_nc.dtype)
    grouped_feats = batched_index(features_nc, idx)
    if use_xyz:
        return jnp.concatenate([grouped_xyz, grouped_feats], axis=-1)
    return grouped_feats


# ----------------------------------------------------------------------------
# Module forward
# ----------------------------------------------------------------------------
def pointnet_lfp_msg_forward(xyz2, xyz1, features2, features1, params, *,
                             radii, nsamples, use_xyz=True):
    """Propagate features from (xyz1, features1) onto the xyz2 points.
    xyz2 (B,N2,3), xyz1 (B,N1,3), features2 (B,C2,N2), features1 (B,C1,N1)
    -> (B, len(radii)*post_mlp[-1], N2), bf16 channels-first."""
    # TODO(synk): features2=None branch of the reference module not implemented.
    # TODO(synk): the per-point gather could be fused into the kernel via
    # PrefetchScalarGridSpec + manual DMA; kept in plain JAX (bf16) for now.
    feats1_nc = jnp.transpose(features1, (0, 2, 1)).astype(jnp.bfloat16)
    feats2_cf = features2.astype(jnp.bfloat16)       # already channels-first
    outs = []
    for i in range(len(radii)):
        grouped = query_and_group(radii[i], nsamples[i], xyz1, xyz2,
                                  feats1_nc, use_xyz=use_xyz)
        outs.append(fused_group_mlp_pool_post(
            grouped, feats2_cf, params["mlps"][i], params["post"],
            nsample=nsamples[i]))
    return jnp.concatenate(outs, axis=1)             # (B, k*c_out, N2)


# ----------------------------------------------------------------------------
# Deterministic parameters (SharedMLP, eval-mode BatchNorm folded)
# ----------------------------------------------------------------------------
def _folded_shared_mlp(spec, key, eps=1e-5):
    layers = []
    for li in range(len(spec) - 1):
        cin, cout = spec[li], spec[li + 1]
        key, k1, k2, k3, k4, k5 = jax.random.split(key, 6)
        w = jax.random.normal(k1, (cin, cout), jnp.float32) / jnp.sqrt(cin)
        gamma = 1.0 + 0.1 * jax.random.normal(k2, (cout,), jnp.float32)
        beta = 0.1 * jax.random.normal(k3, (cout,), jnp.float32)
        mean = 0.1 * jax.random.normal(k4, (cout,), jnp.float32)
        var = jnp.abs(1.0 + 0.1 * jax.random.normal(k5, (cout,), jnp.float32))
        scale = gamma / jnp.sqrt(var + eps)
        # Fold BN scale into weight columns, keep only a per-channel bias.
        layers.append((w * scale[None, :], beta - mean * scale))
    return layers, key


def init_params(mlp_specs, post_mlp_spec, key):
    mlps = []
    for spec in mlp_specs:
        layers, key = _folded_shared_mlp(spec, key)
        mlps.append(layers)
    post, key = _folded_shared_mlp(post_mlp_spec, key)
    return {"mlps": mlps, "post": post}, key


if __name__ == "__main__":
    # Module config (small, consistent with __init__):
    #   mlps=[[6,16,32],[6,16,32]], radii=[0.2,0.4], nsamples=[8,16],
    #   post_mlp=[32+C2, 64, 32], bn=True (eval), use_xyz=True
    B, N1, N2 = 2, 64, 32
    C1, C2 = 6, 8
    radii = [0.2, 0.4]
    nsamples = [8, 16]
    use_xyz = True
    mlps = [[C1, 16, 32], [C1, 16, 32]]
    mlp_specs = [list(m) for m in mlps]
    if use_xyz:
        for m in mlp_specs:
            m[0] += 3                                    # +3 xyz channels
    post_mlp = [mlps[0][-1] + C2, 64, 32]

    key = jax.random.PRNGKey(0)
    key, kx2, kx1, kf2, kf1 = jax.random.split(key, 5)
    xyz2 = jax.random.uniform(kx2, (B, N2, 3), jnp.float32)
    xyz1 = jax.random.uniform(kx1, (B, N1, 3), jnp.float32)
    features2 = jax.random.normal(kf2, (B, C2, N2), jnp.float32)
    features1 = jax.random.normal(kf1, (B, C1, N1), jnp.float32)

    params, key = init_params(mlp_specs, post_mlp, key)

    fwd = jax.jit(functools.partial(
        pointnet_lfp_msg_forward,
        radii=tuple(radii), nsamples=tuple(nsamples), use_xyz=use_xyz))

    out = fwd(xyz2, xyz1, features2, features1, params)
    jax.block_until_ready(out)

    assert out.shape == (B, len(radii) * post_mlp[-1], N2), out.shape
    assert bool(jnp.isfinite(out).all())
    print("KERNEL_OK")
</pallas_src>

<mosaic_0001>
module attributes {stable_mosaic.version = 11 : i64} {
  func.func @_fused_kernel(%arg0: i32, %arg1: i32, %arg2: memref<1x1024x9xbf16, #tpu.memory_space<vmem>>, %arg3: memref<1x8x128xbf16, #tpu.memory_space<vmem>>, %arg4: memref<9x16xbf16, #tpu.memory_space<vmem>>, %arg5: memref<16x32xbf16, #tpu.memory_space<vmem>>, %arg6: memref<2x32xf32, #tpu.memory_space<vmem>>, %arg7: memref<64x32xbf16, #tpu.memory_space<vmem>>, %arg8: memref<64x8xbf16, #tpu.memory_space<vmem>>, %arg9: memref<32x64xbf16, #tpu.memory_space<vmem>>, %arg10: memref<64x2xf32, #tpu.memory_space<vmem>>, %arg11: memref<1x32x128xbf16, #tpu.memory_space<vmem>>) attributes {dimension_semantics = [#tpu.dimension_semantics<parallel>, #tpu.dimension_semantics<parallel>], iteration_bounds = array<i64: 2, 1>, scalar_prefetch = 0 : i64, scratch_operands = 0 : i64, tpu.core_type = #tpu.core_type<tc>, window_params = [{transform_indices = @transform_0, window_bounds = array<i64: 1, 1024, 9>}, {transform_indices = @transform_1, window_bounds = array<i64: 1, 8, 128>}, {pipeline_mode = #tpu.pipeline_mode<synchronous>, transform_indices = @transform_2, window_bounds = array<i64: 9, 16>}, {pipeline_mode = #tpu.pipeline_mode<synchronous>, transform_indices = @transform_3, window_bounds = array<i64: 16, 32>}, {pipeline_mode = #tpu.pipeline_mode<synchronous>, transform_indices = @transform_4, window_bounds = array<i64: 2, 32>}, {pipeline_mode = #tpu.pipeline_mode<synchronous>, transform_indices = @transform_5, window_bounds = array<i64: 64, 32>}, {pipeline_mode = #tpu.pipeline_mode<synchronous>, transform_indices = @transform_6, window_bounds = array<i64: 64, 8>}, {pipeline_mode = #tpu.pipeline_mode<synchronous>, transform_indices = @transform_7, window_bounds = array<i64: 32, 64>}, {pipeline_mode = #tpu.pipeline_mode<synchronous>, transform_indices = @transform_8, window_bounds = array<i64: 64, 2>}, {transform_indices = @transform_9, window_bounds = array<i64: 1, 32, 128>}]} {
    %c0 = arith.constant 0 : index
    %c0_0 = arith.constant 0 : index
    %0 = vector.load %arg6[%c0, %c0_0] : memref<2x32xf32, #tpu.memory_space<vmem>>, vector<2x32xf32>
    %c0_1 = arith.constant 0 : index
    %c0_2 = arith.constant 0 : index
    %1 = vector.load %arg10[%c0_1, %c0_2] : memref<64x2xf32, #tpu.memory_space<vmem>>, vector<64x2xf32>
    %c0_3 = arith.constant 0 : index
    %c0_4 = arith.constant 0 : index
    %c0_5 = arith.constant 0 : index
    %2 = vector.load %arg2[%c0_3, %c0_4, %c0_5] : memref<1x1024x9xbf16, #tpu.memory_space<vmem>>, vector<1x1024x9xbf16>
    %3 = vector.shape_cast %2 : vector<1x1024x9xbf16> to vector<1024x9xbf16>
    %c0_6 = arith.constant 0 : index
    %c0_7 = arith.constant 0 : index
    %4 = vector.load %arg4[%c0_6, %c0_7] : memref<9x16xbf16, #tpu.memory_space<vmem>>, vector<9x16xbf16>
    %cst = arith.constant dense<0.000000e+00> : vector<1024x16xf32>
    %5 = tpu.matmul %3, %4, %cst {dimension_numbers = #tpu.dot_dimension_numbers<[1], [0], [0], [1], [0, 0, 1, 1], [], []>} : vector<1024x9xbf16>, vector<9x16xbf16>, vector<1024x16xf32> -> vector<1024x16xf32>
    %6 = vector.extract_strided_slice %0 {offsets = [0, 0], sizes = [1, 16], strides = [1, 1]} : vector<2x32xf32> to vector<1x16xf32>
    %7 = vector.broadcast %6 : vector<1x16xf32> to vector<1024x16xf32>
    %8 = arith.addf %5, %7 : vector<1024x16xf32>
    %cst_8 = arith.constant 0.000000e+00 : f32
    %9 = vector.broadcast %cst_8 : f32 to vector<1024x16xf32>
    %10 = arith.maximumf %8, %9 : vector<1024x16xf32>
    %11 = arith.truncf %10 : vector<1024x16xf32> to vector<1024x16xbf16>
    %c0_9 = arith.constant 0 : index
    %c0_10 = arith.constant 0 : index
    %12 = vector.load %arg5[%c0_9, %c0_10] : memref<16x32xbf16, #tpu.memory_space<vmem>>, vector<16x32xbf16>
    %cst_11 = arith.constant dense<0.000000e+00> : vector<1024x32xf32>
    %13 = tpu.matmul %11, %12, %cst_11 {dimension_numbers = #tpu.dot_dimension_numbers<[1], [0], [0], [1], [0, 0, 1, 1], [], []>} : vector<1024x16xbf16>, vector<16x32xbf16>, vector<1024x32xf32> -> vector<1024x32xf32>
    %14 = vector.extract_strided_slice %0 {offsets = [1, 0], sizes = [1, 32], strides = [1, 1]} : vector<2x32xf32> to vector<1x32xf32>
    %15 = vector.broadcast %14 : vector<1x32xf32> to vector<1024x32xf32>
    %16 = arith.addf %13, %15 : vector<1024x32xf32>
    %cst_12 = arith.constant 0.000000e+00 : f32
    %17 = vector.broadcast %cst_12 : f32 to vector<1024x32xf32>
    %18 = arith.maximumf %16, %17 : vector<1024x32xf32>
    %19 = vector.shape_cast %18 : vector<1024x32xf32> to vector<128x8x32xf32>
    %cst_13 = arith.constant dense<0xFF800000> : vector<128x32xf32>
    %20 = vector.multi_reduction <maximumf>, %19, %cst_13 [1] : vector<128x8x32xf32> to vector<128x32xf32>
    %21 = tpu.transpose %20, [1, 0] : vector<128x32xf32> -> vector<32x128xf32>
    %22 = arith.truncf %21 : vector<32x128xf32> to vector<32x128xbf16>
    %c0_14 = arith.constant 0 : index
    %c0_15 = arith.constant 0 : index
    %c0_16 = arith.constant 0 : index
    %23 = vector.load %arg3[%c0_14, %c0_15, %c0_16] : memref<1x8x128xbf16, #tpu.memory_space<vmem>>, vector<1x8x128xbf16>
    %24 = vector.shape_cast %23 : vector<1x8x128xbf16> to vector<8x128xbf16>
    %c0_17 = arith.constant 0 : index
    %c0_18 = arith.constant 0 : index
    %25 = vector.load %arg7[%c0_17, %c0_18] : memref<64x32xbf16, #tpu.memory_space<vmem>>, vector<64x32xbf16>
    %cst_19 = arith.constant dense<0.000000e+00> : vector<64x128xf32>
    %26 = tpu.matmul %25, %22, %cst_19 {dimension_numbers = #tpu.dot_dimension_numbers<[1], [0], [0], [1], [0, 0, 1, 1], [], []>} : vector<64x32xbf16>, vector<32x128xbf16>, vector<64x128xf32> -> vector<64x128xf32>
    %c0_20 = arith.constant 0 : index
    %c0_21 = arith.constant 0 : index
    %27 = vector.load %arg8[%c0_20, %c0_21] : memref<64x8xbf16, #tpu.memory_space<vmem>>, vector<64x8xbf16>
    %cst_22 = arith.constant dense<0.000000e+00> : vector<64x128xf32>
    %28 = tpu.matmul %27, %24, %cst_22 {dimension_numbers = #tpu.dot_dimension_numbers<[1], [0], [0], [1], [0, 0, 1, 1], [], []>} : vector<64x8xbf16>, vector<8x128xbf16>, vector<64x128xf32> -> vector<64x128xf32>
    %29 = arith.addf %26, %28 : vector<64x128xf32>
    %30 = vector.extract_strided_slice %1 {offsets = [0, 0], sizes = [64, 1], strides = [1, 1]} : vector<64x2xf32> to vector<64x1xf32>
    %31 = vector.broadcast %30 : vector<64x1xf32> to vector<64x128xf32>
    %32 = arith.addf %29, %31 : vector<64x128xf32>
    %cst_23 = arith.constant 0.000000e+00 : f32
    %33 = vector.broadcast %cst_23 : f32 to vector<64x128xf32>
    %34 = arith.maximumf %32, %33 : vector<64x128xf32>
    %c0_24 = arith.constant 0 : index
    %c0_25 = arith.constant 0 : index
    %35 = vector.load %arg9[%c0_24, %c0_25] : memref<32x64xbf16, #tpu.memory_space<vmem>>, vector<32x64xbf16>
    %36 = arith.truncf %34 : vector<64x128xf32> to vector<64x128xbf16>
    %cst_26 = arith.constant dense<0.000000e+00> : vector<32x128xf32>
    %37 = tpu.matmul %35, %36, %cst_26 {dimension_numbers = #tpu.dot_dimension_numbers<[1], [0], [0], [1], [0, 0, 1, 1], [], []>} : vector<32x64xbf16>, vector<64x128xbf16>, vector<32x128xf32> -> vector<32x128xf32>
    %38 = vector.extract_strided_slice %1 {offsets = [0, 1], sizes = [32, 1], strides = [1, 1]} : vector<64x2xf32> to vector<32x1xf32>
    %39 = vector.broadcast %38 : vector<32x1xf32> to vector<32x128xf32>
    %40 = arith.addf %37, %39 : vector<32x128xf32>
    %cst_27 = arith.constant 0.000000e+00 : f32
    %41 = vector.broadcast %cst_27 : f32 to vector<32x128xf32>
    %42 = arith.maximumf %40, %41 : vector<32x128xf32>
    %43 = arith.truncf %42 : vector<32x128xf32> to vector<32x128xbf16>
    %c0_28 = arith.constant 0 : index
    %c0_29 = arith.constant 0 : index
    %c0_30 = arith.constant 0 : index
    %44 = vector.load %arg11[%c0_28, %c0_29, %c0_30] : memref<1x32x128xbf16, #tpu.memory_space<vmem>>, vector<1x32x128xbf16>
    %45 = vector.shape_cast %44 : vector<1x32x128xbf16> to vector<32x128xbf16>
    %46 = vector.shape_cast %43 : vector<32x128xbf16> to vector<1x32x128xbf16>
    tpu.vector_store %arg11[%c0_28, %c0_29, %c0_30], %46 {strides = array<i32>} : memref<1x32x128xbf16, #tpu.memory_space<vmem>>, vector<1x32x128xbf16>,
    return
  }
  func.func @transform_0(%arg0: i32, %arg1: i32) -> (i32, i32, i32) {
    %c0_i32 = arith.constant 0 : i32
    %c0_i32_0 = arith.constant 0 : i32
    return %arg0, %arg1, %c0_i32 : i32, i32, i32
  }
  func.func @transform_1(%arg0: i32, %arg1: i32) -> (i32, i32, i32) {
    %c0_i32 = arith.constant 0 : i32
    %c0_i32_0 = arith.constant 0 : i32
    return %arg0, %c0_i32, %arg1 : i32, i32, i32
  }
  func.func @transform_2(%arg0: i32, %arg1: i32) -> (i32, i32) {
    %c0_i32 = arith.constant 0 : i32
    %c0_i32_0 = arith.constant 0 : i32
    %c0_i32_1 = arith.constant 0 : i32
    return %c0_i32, %c0_i32_0 : i32, i32
  }
  func.func @transform_3(%arg0: i32, %arg1: i32) -> (i32, i32) {
    %c0_i32 = arith.constant 0 : i32
    %c0_i32_0 = arith.constant 0 : i32
    %c0_i32_1 = arith.constant 0 : i32
    return %c0_i32, %c0_i32_0 : i32, i32
  }
  func.func @transform_4(%arg0: i32, %arg1: i32) -> (i32, i32) {
    %c0_i32 = arith.constant 0 : i32
    %c0_i32_0 = arith.constant 0 : i32
    %c0_i32_1 = arith.constant 0 : i32
    return %c0_i32, %c0_i32_0 : i32, i32
  }
  func.func @transform_5(%arg0: i32, %arg1: i32) -> (i32, i32) {
    %c0_i32 = arith.constant 0 : i32
    %c0_i32_0 = arith.constant 0 : i32
    %c0_i32_1 = arith.constant 0 : i32
    return %c0_i32, %c0_i32_0 : i32, i32
  }
  func.func @transform_6(%arg0: i32, %arg1: i32) -> (i32, i32) {
    %c0_i32 = arith.constant 0 : i32
    %c0_i32_0 = arith.constant 0 : i32
    %c0_i32_1 = arith.constant 0 : i32
    return %c0_i32, %c0_i32_0 : i32, i32
  }
  func.func @transform_7(%arg0: i32, %arg1: i32) -> (i32, i32) {
    %c0_i32 = arith.constant 0 : i32
    %c0_i32_0 = arith.constant 0 : i32
    %c0_i32_1 = arith.constant 0 : i32
    return %c0_i32, %c0_i32_0 : i32, i32
  }
  func.func @transform_8(%arg0: i32, %arg1: i32) -> (i32, i32) {
    %c0_i32 = arith.constant 0 : i32
    %c0_i32_0 = arith.constant 0 : i32
    %c0_i32_1 = arith.constant 0 : i32
    return %c0_i32, %c0_i32_0 : i32, i32
  }
  func.func @transform_9(%arg0: i32, %arg1: i32) -> (i32, i32, i32) {
    %c0_i32 = arith.constant 0 : i32
    %c0_i32_0 = arith.constant 0 : i32
    return %arg0, %c0_i32, %arg1 : i32, i32, i32
  }
}

module attributes {stable_mosaic.version = 11 : i64} {
  func.func @_fused_kernel(%arg0: i32, %arg1: i32, %arg2: memref<1x2048x9xbf16, #tpu.memory_space<vmem>>, %arg3: memref<1x8x128xbf16, #tpu.memory_space<vmem>>, %arg4: memref<9x16xbf16, #tpu.memory_space<vmem>>, %arg5: memref<16x32xbf16, #tpu.memory_space<vmem>>, %arg6: memref<2x32xf32, #tpu.memory_space<vmem>>, %arg7: memref<64x32xbf16, #tpu.memory_space<vmem>>, %arg8: memref<64x8xbf16, #tpu.memory_space<vmem>>, %arg9: memref<32x64xbf16, #tpu.memory_space<vmem>>, %arg10: memref<64x2xf32, #tpu.memory_space<vmem>>, %arg11: memref<1x32x128xbf16, #tpu.memory_space<vmem>>) attributes {dimension_semantics = [#tpu.dimension_semantics<parallel>, #tpu.dimension_semantics<parallel>], iteration_bounds = array<i64: 2, 1>, scalar_prefetch = 0 : i64, scratch_operands = 0 : i64, tpu.core_type = #tpu.core_type<tc>, window_params = [{transform_indices = @transform_0, window_bounds = array<i64: 1, 2048, 9>}, {transform_indices = @transform_1, window_bounds = array<i64: 1, 8, 128>}, {pipeline_mode = #tpu.pipeline_mode<synchronous>, transform_indices = @transform_2, window_bounds = array<i64: 9, 16>}, {pipeline_mode = #tpu.pipeline_mode<synchronous>, transform_indices = @transform_3, window_bounds = array<i64: 16, 32>}, {pipeline_mode = #tpu.pipeline_mode<synchronous>, transform_indices = @transform_4, window_bounds = array<i64: 2, 32>}, {pipeline_mode = #tpu.pipeline_mode<synchronous>, transform_indices = @transform_5, window_bounds = array<i64: 64, 32>}, {pipeline_mode = #tpu.pipeline_mode<synchronous>, transform_indices = @transform_6, window_bounds = array<i64: 64, 8>}, {pipeline_mode = #tpu.pipeline_mode<synchronous>, transform_indices = @transform_7, window_bounds = array<i64: 32, 64>}, {pipeline_mode = #tpu.pipeline_mode<synchronous>, transform_indices = @transform_8, window_bounds = array<i64: 64, 2>}, {transform_indices = @transform_9, window_bounds = array<i64: 1, 32, 128>}]} {
    %c0 = arith.constant 0 : index
    %c0_0 = arith.constant 0 : index
    %0 = vector.load %arg6[%c0, %c0_0] : memref<2x32xf32, #tpu.memory_space<vmem>>, vector<2x32xf32>
    %c0_1 = arith.constant 0 : index
    %c0_2 = arith.constant 0 : index
    %1 = vector.load %arg10[%c0_1, %c0_2] : memref<64x2xf32, #tpu.memory_space<vmem>>, vector<64x2xf32>
    %c0_3 = arith.constant 0 : index
    %c0_4 = arith.constant 0 : index
    %c0_5 = arith.constant 0 : index
    %2 = vector.load %arg2[%c0_3, %c0_4, %c0_5] : memref<1x2048x9xbf16, #tpu.memory_space<vmem>>, vector<1x2048x9xbf16>
    %3 = vector.shape_cast %2 : vector<1x2048x9xbf16> to vector<2048x9xbf16>
    %c0_6 = arith.constant 0 : index
    %c0_7 = arith.constant 0 : index
    %4 = vector.load %arg4[%c0_6, %c0_7] : memref<9x16xbf16, #tpu.memory_space<vmem>>, vector<9x16xbf16>
    %cst = arith.constant dense<0.000000e+00> : vector<2048x16xf32>
    %5 = tpu.matmul %3, %4, %cst {dimension_numbers = #tpu.dot_dimension_numbers<[1], [0], [0], [1], [0, 0, 1, 1], [], []>} : vector<2048x9xbf16>, vector<9x16xbf16>, vector<2048x16xf32> -> vector<2048x16xf32>
    %6 = vector.extract_strided_slice %0 {offsets = [0, 0], sizes = [1, 16], strides = [1, 1]} : vector<2x32xf32> to vector<1x16xf32>
    %7 = vector.broadcast %6 : vector<1x16xf32> to vector<2048x16xf32>
    %8 = arith.addf %5, %7 : vector<2048x16xf32>
    %cst_8 = arith.constant 0.000000e+00 : f32
    %9 = vector.broadcast %cst_8 : f32 to vector<2048x16xf32>
    %10 = arith.maximumf %8, %9 : vector<2048x16xf32>
    %11 = arith.truncf %10 : vector<2048x16xf32> to vector<2048x16xbf16>
    %c0_9 = arith.constant 0 : index
    %c0_10 = arith.constant 0 : index
    %12 = vector.load %arg5[%c0_9, %c0_10] : memref<16x32xbf16, #tpu.memory_space<vmem>>, vector<16x32xbf16>
    %cst_11 = arith.constant dense<0.000000e+00> : vector<2048x32xf32>
    %13 = tpu.matmul %11, %12, %cst_11 {dimension_numbers = #tpu.dot_dimension_numbers<[1], [0], [0], [1], [0, 0, 1, 1], [], []>} : vector<2048x16xbf16>, vector<16x32xbf16>, vector<2048x32xf32> -> vector<2048x32xf32>
    %14 = vector.extract_strided_slice %0 {offsets = [1, 0], sizes = [1, 32], strides = [1, 1]} : vector<2x32xf32> to vector<1x32xf32>
    %15 = vector.broadcast %14 : vector<1x32xf32> to vector<2048x32xf32>
    %16 = arith.addf %13, %15 : vector<2048x32xf32>
    %cst_12 = arith.constant 0.000000e+00 : f32
    %17 = vector.broadcast %cst_12 : f32 to vector<2048x32xf32>
    %18 = arith.maximumf %16, %17 : vector<2048x32xf32>
    %19 = vector.shape_cast %18 : vector<2048x32xf32> to vector<128x16x32xf32>
    %cst_13 = arith.constant dense<0xFF800000> : vector<128x32xf32>
    %20 = vector.multi_reduction <maximumf>, %19, %cst_13 [1] : vector<128x16x32xf32> to vector<128x32xf32>
    %21 = tpu.transpose %20, [1, 0] : vector<128x32xf32> -> vector<32x128xf32>
    %22 = arith.truncf %21 : vector<32x128xf32> to vector<32x128xbf16>
    %c0_14 = arith.constant 0 : index
    %c0_15 = arith.constant 0 : index
    %c0_16 = arith.constant 0 : index
    %23 = vector.load %arg3[%c0_14, %c0_15, %c0_16] : memref<1x8x128xbf16, #tpu.memory_space<vmem>>, vector<1x8x128xbf16>
    %24 = vector.shape_cast %23 : vector<1x8x128xbf16> to vector<8x128xbf16>
    %c0_17 = arith.constant 0 : index
    %c0_18 = arith.constant 0 : index
    %25 = vector.load %arg7[%c0_17, %c0_18] : memref<64x32xbf16, #tpu.memory_space<vmem>>, vector<64x32xbf16>
    %cst_19 = arith.constant dense<0.000000e+00> : vector<64x128xf32>
    %26 = tpu.matmul %25, %22, %cst_19 {dimension_numbers = #tpu.dot_dimension_numbers<[1], [0], [0], [1], [0, 0, 1, 1], [], []>} : vector<64x32xbf16>, vector<32x128xbf16>, vector<64x128xf32> -> vector<64x128xf32>
    %c0_20 = arith.constant 0 : index
    %c0_21 = arith.constant 0 : index
    %27 = vector.load %arg8[%c0_20, %c0_21] : memref<64x8xbf16, #tpu.memory_space<vmem>>, vector<64x8xbf16>
    %cst_22 = arith.constant dense<0.000000e+00> : vector<64x128xf32>
    %28 = tpu.matmul %27, %24, %cst_22 {dimension_numbers = #tpu.dot_dimension_numbers<[1], [0], [0], [1], [0, 0, 1, 1], [], []>} : vector<64x8xbf16>, vector<8x128xbf16>, vector<64x128xf32> -> vector<64x128xf32>
    %29 = arith.addf %26, %28 : vector<64x128xf32>
    %30 = vector.extract_strided_slice %1 {offsets = [0, 0], sizes = [64, 1], strides = [1, 1]} : vector<64x2xf32> to vector<64x1xf32>
    %31 = vector.broadcast %30 : vector<64x1xf32> to vector<64x128xf32>
    %32 = arith.addf %29, %31 : vector<64x128xf32>
    %cst_23 = arith.constant 0.000000e+00 : f32
    %33 = vector.broadcast %cst_23 : f32 to vector<64x128xf32>
    %34 = arith.maximumf %32, %33 : vector<64x128xf32>
    %c0_24 = arith.constant 0 : index
    %c0_25 = arith.constant 0 : index
    %35 = vector.load %arg9[%c0_24, %c0_25] : memref<32x64xbf16, #tpu.memory_space<vmem>>, vector<32x64xbf16>
    %36 = arith.truncf %34 : vector<64x128xf32> to vector<64x128xbf16>
    %cst_26 = arith.constant dense<0.000000e+00> : vector<32x128xf32>
    %37 = tpu.matmul %35, %36, %cst_26 {dimension_numbers = #tpu.dot_dimension_numbers<[1], [0], [0], [1], [0, 0, 1, 1], [], []>} : vector<32x64xbf16>, vector<64x128xbf16>, vector<32x128xf32> -> vector<32x128xf32>
    %38 = vector.extract_strided_slice %1 {offsets = [0, 1], sizes = [32, 1], strides = [1, 1]} : vector<64x2xf32> to vector<32x1xf32>
    %39 = vector.broadcast %38 : vector<32x1xf32> to vector<32x128xf32>
    %40 = arith.addf %37, %39 : vector<32x128xf32>
    %cst_27 = arith.constant 0.000000e+00 : f32
    %41 = vector.broadcast %cst_27 : f32 to vector<32x128xf32>
    %42 = arith.maximumf %40, %41 : vector<32x128xf32>
    %43 = arith.truncf %42 : vector<32x128xf32> to vector<32x128xbf16>
    %c0_28 = arith.constant 0 : index
    %c0_29 = arith.constant 0 : index
    %c0_30 = arith.constant 0 : index
    %44 = vector.load %arg11[%c0_28, %c0_29, %c0_30] : memref<1x32x128xbf16, #tpu.memory_space<vmem>>, vector<1x32x128xbf16>
    %45 = vector.shape_cast %44 : vector<1x32x128xbf16> to vector<32x128xbf16>
    %46 = vector.shape_cast %43 : vector<32x128xbf16> to vector<1x32x128xbf16>
    tpu.vector_store %arg11[%c0_28, %c0_29, %c0_30], %46 {strides = array<i32>} : memref<1x32x128xbf16, #tpu.memory_space<vmem>>, vector<1x32x128xbf16>,
    return
  }
  func.func @transform_0(%arg0: i32, %arg1: i32) -> (i32, i32, i32) {
    %c0_i32 = arith.constant 0 : i32
    %c0_i32_0 = arith.constant 0 : i32
    return %arg0, %arg1, %c0_i32 : i32, i32, i32
  }
  func.func @transform_1(%arg0: i32, %arg1: i32) -> (i32, i32, i32) {
    %c0_i32 = arith.constant 0 : i32
    %c0_i32_0 = arith.constant 0 : i32
    return %arg0, %c0_i32, %arg1 : i32, i32, i32
  }
  func.func @transform_2(%arg0: i32, %arg1: i32) -> (i32, i32) {
    %c0_i32 = arith.constant 0 : i32
    %c0_i32_0 = arith.constant 0 : i32
    %c0_i32_1 = arith.constant 0 : i32
    return %c0_i32, %c0_i32_0 : i32, i32
  }
  func.func @transform_3(%arg0: i32, %arg1: i32) -> (i32, i32) {
    %c0_i32 = arith.constant 0 : i32
    %c0_i32_0 = arith.constant 0 : i32
    %c0_i32_1 = arith.constant 0 : i32
    return %c0_i32, %c0_i32_0 : i32, i32
  }
  func.func @transform_4(%arg0: i32, %arg1: i32) -> (i32, i32) {
    %c0_i32 = arith.constant 0 : i32
    %c0_i32_0 = arith.constant 0 : i32
    %c0_i32_1 = arith.constant 0 : i32
    return %c0_i32, %c0_i32_0 : i32, i32
  }
  func.func @transform_5(%arg0: i32, %arg1: i32) -> (i32, i32) {
    %c0_i32 = arith.constant 0 : i32
    %c0_i32_0 = arith.constant 0 : i32
    %c0_i32_1 = arith.constant 0 : i32
    return %c0_i32, %c0_i32_0 : i32, i32
  }
  func.func @transform_6(%arg0: i32, %arg1: i32) -> (i32, i32) {
    %c0_i32 = arith.constant 0 : i32
    %c0_i32_0 = arith.constant 0 : i32
    %c0_i32_1 = arith.constant 0 : i32
    return %c0_i32, %c0_i32_0 : i32, i32
  }
  func.func @transform_7(%arg0: i32, %arg1: i32) -> (i32, i32) {
    %c0_i32 = arith.constant 0 : i32
    %c0_i32_0 = arith.constant 0 : i32
    %c0_i32_1 = arith.constant 0 : i32
    return %c0_i32, %c0_i32_0 : i32, i32
  }
  func.func @transform_8(%arg0: i32, %arg1: i32) -> (i32, i32) {
    %c0_i32 = arith.constant 0 : i32
    %c0_i32_0 = arith.constant 0 : i32
    %c0_i32_1 = arith.constant 0 : i32
    return %c0_i32, %c0_i32_0 : i32, i32
  }
  func.func @transform_9(%arg0: i32, %arg1: i32) -> (i32, i32, i32) {
    %c0_i32 = arith.constant 0 : i32
    %c0_i32_0 = arith.constant 0 : i32
    return %arg0, %c0_i32, %arg1 : i32, i32, i32
  }
}

</mosaic_0001>

<bundles_post_ra>
// kernel: pointnet_lfp_msg_forward.2
= control target key start
LH: loop header
LB: loop body
LE: loop exit
PB: predicated region body
PF: predicated region fallthrough
CT: control target
= control target key end

     0   :  { %s5240_s30 = smov 0   ;;  %s5242_s10 = smov 0   ;;  %s6813_s0 = inlined_call_operand.vmem [shape: bf16[2,1024,9], index: 0, kind: input, shape index: {}]   ;;  %s6814_s1 = inlined_call_operand.vmem [shape: bf16[2,8,128], index: 1, kind: input, shape index: {}]   ;;  %s6815_s2 = inlined_call_operand.vmem [shape: bf16[9,16], index: 2, kind: input, shape index: {}]   ;;  %s6816_s3 = inlined_call_operand.vmem [shape: bf16[16,32], index: 3, kind: input, shape index: {}]   ;;  %s6817_s4 = inlined_call_operand.vmem [shape: f32[2,32], index: 4, kind: input, shape index: {}]   ;;  %s6818_s5 = inlined_call_operand.vmem [shape: bf16[64,32], index: 5, kind: input, shape index: {}]   ;;  %s6819_s6 = inlined_call_operand.vmem [shape: bf16[64,8], index: 6, kind: input, shape index: {}]   ;;  %s6820_s7 = inlined_call_operand.vmem [shape: bf16[32,64], index: 7, kind: input, shape index: {}]   ;;  %s6821_s8 = inlined_call_operand.vmem [shape: f32[64,2], index: 8, kind: input, shape index: {}]   ;;  %s6822_s9 = inlined_call_operand.vmem [shape: bf16[2,32,128], index: 9, kind: output, shape index: {}]  }
   0x1   :  { %s5244_s11 = smov 0  }
   0x2 LB: > { %s31_s12 = sadd.s32 1, %s5181_s10  ;;  %p4362_p0 = scmp.ge.s32.totalorder %s5185_s11, 1  ;;  %s5185_s11 = sphi %s5244_s11, %s19_s11   ;;  %s5181_s10 = sphi %s5242_s10, %s6824_s10   ;;  %s5177_s30 = sphi %s5240_s30, %s6823_s30  }
   0x3   : > { %p33_p1 = scmp.ge.s32.totalorder %s31_s12, 2  ;;  %p322_p2 = scmp.lt.s32.totalorder %s5185_s11, 3 }
   0x5   : > { %s6826_s12 = smov (%p33_p1, %s31_s12), 0  ;;  %p323_p3 = pnand %p4362_p0, %p322_p2 }
   0x6   : > { %v5087_v0 = vld [vmem:[%s6815_s2] sm:$0x1f] (!%p323_p3)   ;;  %vm1059_vm0 = vcmask (!%p323_p3), 1043456   ;;  %vm1060_vm1 = vcmask (!%p323_p3), 1044480   ;;  %p373_p4 = scmp.lt.s32.totalorder (!%p323_p3), %s5177_s30, 1  ;;  %v5187_v1 = vmov (!%p323_p3), 65535   ;;  %v537_v60 = vlaneseq (!%p323_p3) }
   0x7   : > { %326 = sbr.rel (%p323_p3) target bundleno = 1331 (0x533), region = 56  ;;  %v1061_v2 = vsel (!%p323_p3), %vm1059_vm0, 4294967295, %v5187_v1  ;;  %vm866_vm2 = vcmask (!%p323_p3), 72704   ;;  %v5146_v32 = vld [vmem:[%s6816_s3] sm:$0xff] (!%p323_p3)   ;;  %vm1815_vm3 = vcmask (!%p323_p3), 130048   ;;  %vm2681_vm4 = vcmask (!%p323_p3), 261120  }
   0x8   : > { %v1062_v3 = vsel (!%p323_p3), %vm1060_vm1, %v1061_v2, 0  ;;  %v5382_v62 = vshrl.u32 (!%p323_p3), %v537_v60, 7  ;;  %v5390_v1 = vld [vmem:[%s6817_s4] sm:$0x3] (!%p323_p3)  ;;  %vm3706_vm5 = vcmask (!%p323_p3), 1041409   ;;  %vm3708_vm6 = vcmask (!%p323_p3), 1042434  }
   0x9   : > { %v1064_v4 = vand.u32 (!%p323_p3), %v5087_v0, %v1062_v3  ;;  %vm3710_vm7 = vcmask (!%p323_p3), 1043459   ;;  %vm3712_vm8 = vcmask (!%p323_p3), 1044484   ;;  %vm3714_vm9 = vcmask (!%p323_p3), 1045509  }
   0xa   : > { %v539_v0 = vsub.s32 (!%p323_p3), 0, %v5382_v62  ;;  %vm3716_vm10 = vcmask (!%p323_p3), 1046534   ;;  %vm3718_vm11 = vcmask (!%p323_p3), 1047559   ;;  %vm3912_vm12 = vcmask (!%p323_p3), 64512  }
   0xb   : > { %4752 = vmatprep.subr.bf16.mxu0 (!%p323_p3), %v1064_v4  ;;  %5046 = vmatprep.subr.bf16.mxu1 (!%p323_p3), %v1064_v4  ;;  %vm4180_vm13 = vcmask (!%p323_p3), 523264  }
   0xc   : > { %4753 = vmatpush3.bf16.msra.mxu0 (!%p323_p3), %v1064_v4  ;;  %5047 = vmatpush3.bf16.msra.mxu1 (!%p323_p3), %v1064_v4  ;;  %v5395_v3 = vrot.slane (!%p323_p3), %v5390_v1, %v539_v0 }
   0xd   : > { %4882 = vmatprep.subr.bf16.mxu1 (!%p323_p3), %v5146_v32 }
   0xe   : > { %s6828_s30 = smov (!%p373_p4, %s5177_s30), 1 }
   0xf   : > { %s4588_s15 = sshll.u32 %s6828_s30, 9  ;;  %s4365_s23 = sshll.u32 %s6828_s30, 2 }
  0x10   : > { %s5268_s18 = scalar_lea.vmem %s6813_s0, %s4588_s15  ;;  %s388_s26 = scalar_lea.vmem %s6814_s1, %s4365_s23 }
  0x11   : > { %v5088_v5 = vld [vmem:[%s5268_s18] sm:$0xff]   ;;  %v5089_v6 = vld [vmem:[%s5268_s18 + $0x8] sm:$0xff]   ;;  %v5090_v7 = vld [vmem:[%s5268_s18 + $0x10] sm:$0xff]   ;;  %s4589_s29 = sshll.u32 %s6828_s30, 4 }
  0x12   : > { %4754 = vmatprep.mubr.msk.bf16.mxu0 %vm866_vm2, %v5088_v5  ;;  %v5091_v8 = vld [vmem:[%s5268_s18 + $0x18] sm:$0xff]   ;;  %v5092_v9 = vld [vmem:[%s5268_s18 + $0x20] sm:$0xff]   ;;  %v5093_v10 = vld [vmem:[%s5268_s18 + $0x28] sm:$0xff]   ;;  %s396_s15 = scalar_lea.vmem %s6822_s9, %s4589_s29 }
  0x13   : > { %4755 = vmatmul.mubr.msk.bf16.vlgmr.msra.gmra.mrb[0].mxu0 %vm866_vm2, %v5089_v6  ;;  %v5094_v11 = vld [vmem:[%s5268_s18 + $0x30] sm:$0xff]   ;;  %v5095_v12 = vld [vmem:[%s5268_s18 + $0x38] sm:$0xff]   ;;  %v5096_v13 = vld [vmem:[%s5268_s18 + $0x40] sm:$0xff]  }
  0x14   : > { %4758 = vmatprep.mubr.msk.bf16.mxu0 %vm866_vm2, %v5090_v7  ;;  %v5097_v14 = vld [vmem:[%s5268_s18 + $0x48] sm:$0xff]   ;;  %v5098_v15 = vld [vmem:[%s5268_s18 + $0x50] sm:$0xff]   ;;  %v5099_v16 = vld [vmem:[%s5268_s18 + $0x58] sm:$0xff]  }
  0x15   : > { %v5100_v17 = vld [vmem:[%s5268_s18 + $0x60] sm:$0xff]   ;;  %v5101_v18 = vld [vmem:[%s5268_s18 + $0x68] sm:$0xff]   ;;  %v5102_v19 = vld [vmem:[%s5268_s18 + $0x70] sm:$0xff]  }
  0x16   : > { %v5103_v20 = vld [vmem:[%s5268_s18 + $0x78] sm:$0xff]   ;;  %v5104_v21 = vld [vmem:[%s5268_s18 + $0x80] sm:$0xff]   ;;  %v5105_v22 = vld [vmem:[%s5268_s18 + $0x88] sm:$0xff]  }
  0x17   : > { %v5106_v23 = vld [vmem:[%s5268_s18 + $0x90] sm:$0xff]   ;;  %v5107_v24 = vld [vmem:[%s5268_s18 + $0x98] sm:$0xff]   ;;  %v5108_v25 = vld [vmem:[%s5268_s18 + $0xa0] sm:$0xff]  }
  0x18   : > { %v5109_v26 = vld [vmem:[%s5268_s18 + $0xa8] sm:$0xff]   ;;  %v5110_v27 = vld [vmem:[%s5268_s18 + $0xb0] sm:$0xff]   ;;  %v5143_v29 = vld [vmem:[%s5268_s18 + $0x1f8] sm:$0xff]  }
  0x19   : > { %v5142_v28 = vld [vmem:[%s5268_s18 + $0x1f0] sm:$0xff]   ;;  %v5111_v30 = vld [vmem:[%s5268_s18 + $0xb8] sm:$0xff]   ;;  %v5112_v31 = vld [vmem:[%s5268_s18 + $0xc0] sm:$0xff]  }
  0x1a   : > { %4878 = vmatprep.mubr.msk.bf16.mxu1 %vm866_vm2, %v5142_v28  ;;  %v5113_v33 = vld [vmem:[%s5268_s18 + $0xc8] sm:$0xff]   ;;  %v5114_v34 = vld [vmem:[%s5268_s18 + $0xd0] sm:$0xff]   ;;  %v5115_v35 = vld [vmem:[%s5268_s18 + $0xd8] sm:$0xff]  }
  0x1b   : > { %4759 = vmatmul.mubr.msk.bf16.gmra.mrb[4].mxu0 %vm866_vm2, %v5091_v8  ;;  %4879 = vmatmul.mubr.msk.bf16.vlgmr.msra.gmra.mrb[0].mxu1 %vm866_vm2, %v5143_v29  ;;  %v5116_v36 = vld [vmem:[%s5268_s18 + $0xe0] sm:$0xff]   ;;  %v5117_v37 = vld [vmem:[%s5268_s18 + $0xe8] sm:$0xff]   ;;  %v5118_v38 = vld [vmem:[%s5268_s18 + $0xf0] sm:$0xff]  }
  0x1c   : > { %4762 = vmatprep.mubr.msk.bf16.mxu0 %vm866_vm2, %v5092_v9  ;;  %4883 = vmatpush3.bf16.msra.mxu1 %v5146_v32  ;;  %v5119_v39 = vld [vmem:[%s5268_s18 + $0xf8] sm:$0xff]   ;;  %v5120_v40 = vld [vmem:[%s5268_s18 + $0x100] sm:$0xff]   ;;  %v5121_v41 = vld [vmem:[%s5268_s18 + $0x108] sm:$0xff]  }
  0x1d   : > { %v5122_v42 = vld [vmem:[%s5268_s18 + $0x110] sm:$0xff]   ;;  %v5123_v43 = vld [vmem:[%s5268_s18 + $0x118] sm:$0xff]   ;;  %v5124_v44 = vld [vmem:[%s5268_s18 + $0x120] sm:$0xff]  }
  0x1e   : > { %v5125_v45 = vld [vmem:[%s5268_s18 + $0x128] sm:$0xff]   ;;  %v5126_v46 = vld [vmem:[%s5268_s18 + $0x130] sm:$0xff]   ;;  %v5127_v47 = vld [vmem:[%s5268_s18 + $0x138] sm:$0xff]  }
  0x1f   : > { %v5128_v48 = vld [vmem:[%s5268_s18 + $0x140] sm:$0xff]   ;;  %v5129_v49 = vld [vmem:[%s5268_s18 + $0x148] sm:$0xff]   ;;  %v5130_v50 = vld [vmem:[%s5268_s18 + $0x150] sm:$0xff]  }
  0x20   : > { %v5131_v51 = vld [vmem:[%s5268_s18 + $0x158] sm:$0xff]   ;;  %v5132_v52 = vld [vmem:[%s5268_s18 + $0x160] sm:$0xff]   ;;  %v5133_v53 = vld [vmem:[%s5268_s18 + $0x168] sm:$0xff]  }
  0x21   : > { %v5134_v54 = vld [vmem:[%s5268_s18 + $0x170] sm:$0xff]   ;;  %v5135_v55 = vld [vmem:[%s5268_s18 + $0x178] sm:$0xff]   ;;  %v5136_v56 = vld [vmem:[%s5268_s18 + $0x180] sm:$0xff]  }
  0x22   : > { %v5137_v57 = vld [vmem:[%s5268_s18 + $0x188] sm:$0xff]   ;;  %v5138_v58 = vld [vmem:[%s5268_s18 + $0x190] sm:$0xff]   ;;  %v5139_v59 = vld [vmem:[%s5268_s18 + $0x198] sm:$0xff]  }
  0x23   : > { %4763 = vmatmul.mubr.msk.bf16.gmra.mrb[8].mxu0 %vm866_vm2, %v5093_v10  ;;  %v5140_v61 = vld [vmem:[%s5268_s18 + $0x1a0] sm:$0xff]   ;;  %v5141_v63 = vld [vmem:[%s5268_s18 + $0x1a8] sm:$0xff]   ;;  %v5144_v2 = vld [vmem:[%s5268_s18 + $0x1b0] sm:$0xff]  }
  0x24   : > { %4766 = vmatprep.mubr.msk.bf16.mxu0 %vm866_vm2, %v5094_v11  ;;  %v5145_v7 = vld [vmem:[%s5268_s18 + $0x1b8] sm:$0xff]   ;;  %v5147_v10 = vld [vmem:[%s5268_s18 + $0x1c0] sm:$0xff]  }
  0x2b   : > { %4767 = vmatmul.mubr.msk.bf16.gmra.mrb[12].mxu0 %vm866_vm2, %v5095_v12 }
  0x2c   : > { %4770 = vmatprep.mubr.msk.bf16.mxu0 %vm866_vm2, %v5096_v13 }
  0x33   : > { %4771 = vmatmul.mubr.msk.bf16.gmra.mrb[16].mxu0 %vm866_vm2, %v5097_v14 }
  0x34   : > { %4774 = vmatprep.mubr.msk.bf16.mxu0 %vm866_vm2, %v5098_v15 }
  0x3b   : > { %4775 = vmatmul.mubr.msk.bf16.gmra.mrb[20].mxu0 %vm866_vm2, %v5099_v16 }
  0x3c   : > { %4778 = vmatprep.mubr.msk.bf16.mxu0 %vm866_vm2, %v5100_v17 }
  0x43   : > { %4779 = vmatmul.mubr.msk.bf16.gmra.mrb[24].mxu0 %vm866_vm2, %v5101_v18 }
  0x44   : > { %4782 = vmatprep.mubr.msk.bf16.mxu0 %vm866_vm2, %v5102_v19 }
  0x4b   : > { %4783 = vmatmul.mubr.msk.bf16.gmra.mrb[28].mxu0 %vm866_vm2, %v5103_v20 }
  0x4c   : > { %4786 = vmatprep.mubr.msk.bf16.mxu0 %vm866_vm2, %v5104_v21 }
  0x53   : > { %4787 = vmatmul.mubr.msk.bf16.gmra.mrb[32].mxu0 %vm866_vm2, %v5105_v22 }
  0x54   : > { %4790 = vmatprep.mubr.msk.bf16.mxu0 %vm866_vm2, %v5106_v23  ;;  %v5148_v23 = vld [vmem:[%s5268_s18 + $0x1c8] sm:$0xff]  }
  0x5b   : > { %4791 = vmatmul.mubr.msk.bf16.gmra.mrb[36].mxu0 %vm866_vm2, %v5107_v24 }
  0x5c   : > { %4794 = vmatprep.mubr.msk.bf16.mxu0 %vm866_vm2, %v5108_v25 }
  0x63   : > { %4795 = vmatmul.mubr.msk.bf16.gmra.mrb[40].mxu0 %vm866_vm2, %v5109_v26  ;;  %v5149_v26 = vld [vmem:[%s5268_s18 + $0x1d0] sm:$0xff]  }
  0x64   : > { %4798 = vmatprep.mubr.msk.bf16.mxu0 %vm866_vm2, %v5110_v27 }
  0x6b   : > { %4799 = vmatmul.mubr.msk.bf16.gmra.mrb[44].mxu0 %vm866_vm2, %v5111_v30 }
  0x6c   : > { %4802 = vmatprep.mubr.msk.bf16.mxu0 %vm866_vm2, %v5112_v31 }
  0x73   : > { %4803 = vmatmul.mubr.msk.bf16.gmra.mrb[48].mxu0 %vm866_vm2, %v5113_v33 }
  0x74   : > { %4806 = vmatprep.mubr.msk.bf16.mxu0 %vm866_vm2, %v5114_v34 }
  0x7b   : > { %4807 = vmatmul.mubr.msk.bf16.gmra.mrb[52].mxu0 %vm866_vm2, %v5115_v35 }
  0x7c   : > { %4810 = vmatprep.mubr.msk.bf16.mxu0 %vm866_vm2, %v5116_v36 }
  0x83   : > { %4811 = vmatmul.mubr.msk.bf16.gmra.mrb[56].mxu0 %vm866_vm2, %v5117_v37 }
  0x84   : > { %4814 = vmatprep.mubr.msk.bf16.mxu0 %vm866_vm2, %v5118_v38 }
  0x8b   : > { %4815 = vmatmul.mubr.msk.bf16.gmra.mrb[60].mxu0 %vm866_vm2, %v5119_v39  ;;  %v5150_v39 = vld [vmem:[%s5268_s18 + $0x1d8] sm:$0xff]  }
  0x8c   : > { %4818 = vmatprep.mubr.msk.bf16.mxu0 %vm866_vm2, %v5120_v40 }
  0x93   : > { %4819 = vmatmul.mubr.msk.bf16.gmra.mrb[64].mxu0 %vm866_vm2, %v5121_v41 }
  0x94   : > { %4822 = vmatprep.mubr.msk.bf16.mxu0 %vm866_vm2, %v5122_v42  ;;  %v5151_v42 = vld [vmem:[%s5268_s18 + $0x1e0] sm:$0xff]  }
  0x9b   : > { %4823 = vmatmul.mubr.msk.bf16.gmra.mrb[68].mxu0 %vm866_vm2, %v5123_v43 }
  0x9c   : > { %4826 = vmatprep.mubr.msk.bf16.mxu0 %vm866_vm2, %v5124_v44 }
  0xa3   : > { %4827 = vmatmul.mubr.msk.bf16.gmra.mrb[72].mxu0 %vm866_vm2, %v5125_v45 }
  0xa4   : > { %4830 = vmatprep.mubr.msk.bf16.mxu0 %vm866_vm2, %v5126_v46 }
  0xab   : > { %4831 = vmatmul.mubr.msk.bf16.gmra.mrb[76].mxu0 %vm866_vm2, %v5127_v47 }
  0xac   : > { %4834 = vmatprep.mubr.msk.bf16.mxu0 %vm866_vm2, %v5128_v48 }
  0xb3   : > { %4835 = vmatmul.mubr.msk.bf16.gmra.mrb[80].mxu0 %vm866_vm2, %v5129_v49 }
  0xb4   : > { %4838 = vmatprep.mubr.msk.bf16.mxu0 %vm866_vm2, %v5130_v50 }
  0xbb   : > { %4839 = vmatmul.mubr.msk.bf16.gmra.mrb[84].mxu0 %vm866_vm2, %v5131_v51 }
  0xbc   : > { %4842 = vmatprep.mubr.msk.bf16.mxu0 %vm866_vm2, %v5132_v52 }
  0xc3   : > { %4843 = vmatmul.mubr.msk.bf16.gmra.mrb[88].mxu0 %vm866_vm2, %v5133_v53 }
  0xc4   : > { %4846 = vmatprep.mubr.msk.bf16.mxu0 %vm866_vm2, %v5134_v54 }
  0xcb   : > { %4847 = vmatmul.mubr.msk.bf16.gmra.mrb[92].mxu0 %vm866_vm2, %v5135_v55  ;;  %v5152_v55 = vld [vmem:[%s5268_s18 + $0x1e8] sm:$0xff]  }
  0xcc   : > { %4850 = vmatprep.mubr.msk.bf16.mxu0 %vm866_vm2, %v5136_v56 }
  0xd3   : > { %4851 = vmatmul.mubr.msk.bf16.gmra.mrb[96].mxu0 %vm866_vm2, %v5137_v57 }
  0xd4   : > { %4854 = vmatprep.mubr.msk.bf16.mxu0 %vm866_vm2, %v5138_v58 }
  0xdb   : > { %4855 = vmatmul.mubr.msk.bf16.gmra.mrb[100].mxu0 %vm866_vm2, %v5139_v59 }
  0xdc   : > { %4858 = vmatprep.mubr.msk.bf16.mxu0 %vm866_vm2, %v5140_v61 }
  0xe3   : > { %4859 = vmatmul.mubr.msk.bf16.gmra.mrb[104].mxu0 %vm866_vm2, %v5141_v63 }
  0xe4   : > { %4862 = vmatprep.mubr.msk.bf16.mxu0 %vm866_vm2, %v5144_v2 }
  0xe6   : > { %v4756_v4 = vpop.f32.mrb[0].mxu0 }
  0xe7   : > { %v1109_v5 = vadd.f32 %v4756_v4, %v5395_v3  ;;  %v1100_v6 = vpop.f32.mrb[1].mxu0 }
  0xe8   : > { %v1101_v8 = vadd.f32 %v1100_v6, %v5395_v3  ;;  %v4757_v9 = vpop.f32.mrb[2].mxu0 }
  0xe9   : > { %v1112_v11 = vadd.f32 %v4757_v9, %v5395_v3  ;;  %v1103_v12 = vpop.f32.mrb[3].mxu0  ;;  %v1613_v14 = vmax.f32 %v1109_v5, 0.0 }
  0xea   : > { %v1104_v13 = vadd.f32 %v1103_v12, %v5395_v3  ;;  %v1611_v16 = vmax.f32 %v1101_v8, 0.0 }
  0xeb   : > { %v1614_v15 = vmax.f32 %v1112_v11, 0.0  ;;  %4863 = vmatmul.mubr.msk.bf16.gmra.mrb[108].mxu0 %vm866_vm2, %v5145_v7 }
  0xec   : > { %v1612_v17 = vmax.f32 %v1104_v13, 0.0  ;;  %4866 = vmatprep.mubr.msk.bf16.mxu0 %vm866_vm2, %v5147_v10 }
  0xed   : > { %v1740_v18 = vpack.c.bf16 %v1614_v15, %v1613_v14 }
  0xee   : > { %v1739_v19 = vpack.c.bf16 %v1612_v17, %v1611_v16  ;;  %v4760_v20 = vpop.f32.mrb[4].mxu0 }
  0xef   : > { %v1125_v21 = vadd.f32 %v4760_v20, %v5395_v3  ;;  %v1116_v22 = vpop.f32.mrb[5].mxu0 }
  0xf0   : > { %v1117_v24 = vadd.f32 %v1116_v22, %v5395_v3  ;;  %v4761_v25 = vpop.f32.mrb[6].mxu0  ;;  %4884 = vmatprep.mubr.msk.bf16.mxu1 %vm1815_vm3, %v1739_v19 }
  0xf1   : > { %v1128_v27 = vadd.f32 %v4761_v25, %v5395_v3  ;;  %v1119_v28 = vpop.f32.mrb[7].mxu0  ;;  %4885 = vmatmul.mubr.msk.bf16.vlgmr.msra.gmra.mrb[4].mxu1 %vm1815_vm3, %v1740_v18  ;;  %v1617_v30 = vmax.f32 %v1125_v21, 0.0 }
  0xf2   : > { %v1120_v29 = vadd.f32 %v1119_v28, %v5395_v3  ;;  %v1615_v32 = vmax.f32 %v1117_v24, 0.0 }
  0xf3   : > { %v1618_v31 = vmax.f32 %v1128_v27, 0.0  ;;  %4867 = vmatmul.mubr.msk.bf16.gmra.mrb[112].mxu0 %vm866_vm2, %v5148_v23 }
  0xf4   : > { %v1616_v33 = vmax.f32 %v1120_v29, 0.0  ;;  %4870 = vmatprep.mubr.msk.bf16.mxu0 %vm866_vm2, %v5149_v26 }
  0xf5   : > { %v1742_v34 = vpack.c.bf16 %v1618_v31, %v1617_v30 }
  0xf6   : > { %v1741_v35 = vpack.c.bf16 %v1616_v33, %v1615_v32  ;;  %v4764_v36 = vpop.f32.mrb[8].mxu0 }
  0xf7   : > { %v1141_v37 = vadd.f32 %v4764_v36, %v5395_v3  ;;  %v1132_v38 = vpop.f32.mrb[9].mxu0 }
  0xf8   : > { %v1133_v40 = vadd.f32 %v1132_v38, %v5395_v3  ;;  %v4765_v41 = vpop.f32.mrb[10].mxu0  ;;  %4888 = vmatprep.mubr.msk.bf16.mxu1 %vm1815_vm3, %v1741_v35 }
  0xf9   : > { %v1144_v43 = vadd.f32 %v4765_v41, %v5395_v3  ;;  %v1135_v44 = vpop.f32.mrb[11].mxu0  ;;  %4889 = vmatmul.mubr.msk.bf16.gmra.mrb[8].mxu1 %vm1815_vm3, %v1742_v34  ;;  %v1621_v46 = vmax.f32 %v1141_v37, 0.0 }
  0xfa   : > { %v1136_v45 = vadd.f32 %v1135_v44, %v5395_v3  ;;  %v1619_v48 = vmax.f32 %v1133_v40, 0.0 }
  0xfb   : > { %v1622_v47 = vmax.f32 %v1144_v43, 0.0  ;;  %4871 = vmatmul.mubr.msk.bf16.gmra.mrb[116].mxu0 %vm866_vm2, %v5150_v39 }
  0xfc   : > { %v1620_v49 = vmax.f32 %v1136_v45, 0.0  ;;  %4874 = vmatprep.mubr.msk.bf16.mxu0 %vm866_vm2, %v5151_v42 }
  0xfd   : > { %v1744_v50 = vpack.c.bf16 %v1622_v47, %v1621_v46 }
  0xfe   : > { %v1743_v51 = vpack.c.bf16 %v1620_v49, %v1619_v48  ;;  %v4768_v52 = vpop.f32.mrb[12].mxu0 }
  0xff   : > { %v1157_v53 = vadd.f32 %v4768_v52, %v5395_v3  ;;  %v1148_v54 = vpop.f32.mrb[13].mxu0 }
 0x100   : > { %v1149_v56 = vadd.f32 %v1148_v54, %v5395_v3  ;;  %v4769_v57 = vpop.f32.mrb[14].mxu0  ;;  %4892 = vmatprep.mubr.msk.bf16.mxu1 %vm1815_vm3, %v1743_v51 }
 0x101   : > { %v1160_v58 = vadd.f32 %v4769_v57, %v5395_v3  ;;  %v1151_v59 = vpop.f32.mrb[15].mxu0  ;;  %4893 = vmatmul.mubr.msk.bf16.gmra.mrb[12].mxu1 %vm1815_vm3, %v1744_v50  ;;  %v1625_v61 = vmax.f32 %v1157_v53, 0.0 }
 0x102   : > { %v1152_v60 = vadd.f32 %v1151_v59, %v5395_v3  ;;  %v1623_v0 = vmax.f32 %v1149_v56, 0.0 }
 0x103   : > { %v1626_v63 = vmax.f32 %v1160_v58, 0.0  ;;  %4875 = vmatmul.mubr.msk.bf16.gmra.mrb[120].mxu0 %vm866_vm2, %v5152_v55 }
 0x104   : > { %v1624_v2 = vmax.f32 %v1152_v60, 0.0 }
 0x105   : > { %v1746_v4 = vpack.c.bf16 %v1626_v63, %v1625_v61 }
 0x106   : > { %v1745_v5 = vpack.c.bf16 %v1624_v2, %v1623_v0  ;;  %v4772_v6 = vpop.f32.mrb[16].mxu0 }
 0x107   : > { %v1173_v7 = vadd.f32 %v4772_v6, %v5395_v3  ;;  %v1164_v8 = vpop.f32.mrb[17].mxu0 }
 0x108   : > { %v1165_v9 = vadd.f32 %v1164_v8, %v5395_v3  ;;  %v4773_v10 = vpop.f32.mrb[18].mxu0  ;;  %4896 = vmatprep.mubr.msk.bf16.mxu1 %vm1815_vm3, %v1745_v5 }
 0x109   : > { %v1176_v11 = vadd.f32 %v4773_v10, %v5395_v3  ;;  %v1167_v12 = vpop.f32.mrb[19].mxu0  ;;  %4897 = vmatmul.mubr.msk.bf16.gmra.mrb[16].mxu1 %vm1815_vm3, %v1746_v4  ;;  %v1629_v14 = vmax.f32 %v1173_v7, 0.0 }
 0x10a   : > { %v1168_v13 = vadd.f32 %v1167_v12, %v5395_v3  ;;  %v1627_v16 = vmax.f32 %v1165_v9, 0.0 }
 0x10b   : > { %v1630_v15 = vmax.f32 %v1176_v11, 0.0 }
 0x10c   : > { %v1628_v17 = vmax.f32 %v1168_v13, 0.0 }
 0x10d   : > { %v1748_v18 = vpack.c.bf16 %v1630_v15, %v1629_v14 }
 0x10e   : > { %v1747_v19 = vpack.c.bf16 %v1628_v17, %v1627_v16  ;;  %v4776_v20 = vpop.f32.mrb[20].mxu0 }
 0x10f   : > { %v1189_v21 = vadd.f32 %v4776_v20, %v5395_v3  ;;  %v1180_v22 = vpop.f32.mrb[21].mxu0 }
 0x110   : > { %v1181_v23 = vadd.f32 %v1180_v22, %v5395_v3  ;;  %v4777_v24 = vpop.f32.mrb[22].mxu0  ;;  %4900 = vmatprep.mubr.msk.bf16.mxu1 %vm1815_vm3, %v1747_v19 }
 0x111   : > { %v1192_v25 = vadd.f32 %v4777_v24, %v5395_v3  ;;  %v1183_v26 = vpop.f32.mrb[23].mxu0  ;;  %4901 = vmatmul.mubr.msk.bf16.gmra.mrb[20].mxu1 %vm1815_vm3, %v1748_v18  ;;  %v1633_v28 = vmax.f32 %v1189_v21, 0.0 }
 0x112   : > { %v1184_v27 = vadd.f32 %v1183_v26, %v5395_v3  ;;  %v1631_v30 = vmax.f32 %v1181_v23, 0.0 }
 0x113   : > { %v1634_v29 = vmax.f32 %v1192_v25, 0.0 }
 0x114   : > { %v1632_v31 = vmax.f32 %v1184_v27, 0.0 }
 0x115   : > { %v1750_v32 = vpack.c.bf16 %v1634_v29, %v1633_v28 }
 0x116   : > { %v1749_v33 = vpack.c.bf16 %v1632_v31, %v1631_v30  ;;  %v4780_v34 = vpop.f32.mrb[24].mxu0 }
 0x117   : > { %v1205_v35 = vadd.f32 %v4780_v34, %v5395_v3  ;;  %v1196_v36 = vpop.f32.mrb[25].mxu0 }
 0x118   : > { %v1197_v37 = vadd.f32 %v1196_v36, %v5395_v3  ;;  %v4781_v38 = vpop.f32.mrb[26].mxu0  ;;  %4904 = vmatprep.mubr.msk.bf16.mxu1 %vm1815_vm3, %v1749_v33  ;;  %v4880_v36 = vpop.f32.mrb[0].mxu1 }
 0x119   : > { %v1208_v39 = vadd.f32 %v4781_v38, %v5395_v3  ;;  %v1199_v40 = vpop.f32.mrb[27].mxu0  ;;  %4905 = vmatmul.mubr.msk.bf16.gmra.mrb[24].mxu1 %vm1815_vm3, %v1750_v32  ;;  %v1637_v42 = vmax.f32 %v1205_v35, 0.0  ;;  %v1596_v38 = vpop.f32.mrb[1].mxu1 }
 0x11a   : > { %v1200_v41 = vadd.f32 %v1199_v40, %v5395_v3  ;;  %v1635_v44 = vmax.f32 %v1197_v37, 0.0 }
 0x11b   : > { %v1638_v43 = vmax.f32 %v1208_v39, 0.0 }
 0x11c   : > { %v1636_v45 = vmax.f32 %v1200_v41, 0.0  ;;  %v4881_v41 = vpop.f32.mrb[2].mxu1 }
 0x11d   : > { %v1752_v46 = vpack.c.bf16 %v1638_v43, %v1637_v42 }
 0x11e   : > { %v1751_v47 = vpack.c.bf16 %v1636_v45, %v1635_v44  ;;  %v4784_v48 = vpop.f32.mrb[28].mxu0  ;;  %v1599_v44 = vpop.f32.mrb[3].mxu1 }
 0x11f   : > { %v1221_v49 = vadd.f32 %v4784_v48, %v5395_v3  ;;  %v1212_v50 = vpop.f32.mrb[29].mxu0  ;;  %v1608_v48 = vadd.f32 %v4881_v41, %v5395_v3 }
 0x120   : > { %v1213_v51 = vadd.f32 %v1212_v50, %v5395_v3  ;;  %v4785_v52 = vpop.f32.mrb[30].mxu0  ;;  %4908 = vmatprep.mubr.msk.bf16.mxu1 %vm1815_vm3, %v1751_v47  ;;  %v1597_v47 = vadd.f32 %v1596_v38, %v5395_v3 }
 0x121   : > { %v1224_v53 = vadd.f32 %v4785_v52, %v5395_v3  ;;  %v1215_v54 = vpop.f32.mrb[31].mxu0  ;;  %4909 = vmatmul.mubr.msk.bf16.gmra.mrb[28].mxu1 %vm1815_vm3, %v1752_v46  ;;  %v1641_v56 = vmax.f32 %v1221_v49, 0.0  ;;  %v1605_v46 = vadd.f32 %v4880_v36, %v5395_v3 }
 0x122   : > { %v1216_v55 = vadd.f32 %v1215_v54, %v5395_v3  ;;  %v1639_v58 = vmax.f32 %v1213_v51, 0.0  ;;  %v1600_v51 = vadd.f32 %v1599_v44, %v5395_v3 }
 0x123   : > { %v1642_v57 = vmax.f32 %v1224_v53, 0.0  ;;  %v1737_v54 = vmax.f32 %v1605_v46, 0.0 }
 0x124   : > { %v1640_v59 = vmax.f32 %v1216_v55, 0.0  ;;  %v1735_v55 = vmax.f32 %v1597_v47, 0.0 }
 0x125   : > { %v1754_v60 = vpack.c.bf16 %v1642_v57, %v1641_v56  ;;  %v1738_v56 = vmax.f32 %v1608_v48, 0.0 }
 0x126   : > { %v1753_v61 = vpack.c.bf16 %v1640_v59, %v1639_v58  ;;  %v4788_v63 = vpop.f32.mrb[32].mxu0  ;;  %v1736_v59 = vmax.f32 %v1600_v51, 0.0 }
 0x127   : > { %v1237_v0 = vadd.f32 %v4788_v63, %v5395_v3  ;;  %v1228_v2 = vpop.f32.mrb[33].mxu0  ;;  %v5485_v63 = vpack.c.bf16 %v1738_v56, %v1737_v54 }
 0x128   : > { %v1229_v4 = vadd.f32 %v1228_v2, %v5395_v3  ;;  %v4789_v5 = vpop.f32.mrb[34].mxu0  ;;  %4912 = vmatprep.mubr.msk.bf16.mxu1 %vm1815_vm3, %v1753_v61  ;;  %v5488_v2 = vpack.c.bf16 %v1736_v59, %v1735_v55 }
 0x129   : > { %v1240_v6 = vadd.f32 %v4789_v5, %v5395_v3  ;;  %v1231_v7 = vpop.f32.mrb[35].mxu0  ;;  %4913 = vmatmul.mubr.msk.bf16.gmra.mrb[32].mxu1 %vm1815_vm3, %v1754_v60  ;;  %v1645_v9 = vmax.f32 %v1237_v0, 0.0 }
 0x12a   : > { %v1232_v8 = vadd.f32 %v1231_v7, %v5395_v3  ;;  %v1643_v11 = vmax.f32 %v1229_v4, 0.0 }
 0x12b   : > { %v1646_v10 = vmax.f32 %v1240_v6, 0.0 }
 0x12c   : > { %v1644_v12 = vmax.f32 %v1232_v8, 0.0 }
 0x12d   : > { %v1756_v13 = vpack.c.bf16 %v1646_v10, %v1645_v9 }
 0x12e   : > { %v1755_v14 = vpack.c.bf16 %v1644_v12, %v1643_v11  ;;  %v4792_v15 = vpop.f32.mrb[36].mxu0 }
 0x12f   : > { %v1253_v16 = vadd.f32 %v4792_v15, %v5395_v3  ;;  %v1244_v17 = vpop.f32.mrb[37].mxu0 }
 0x130   : > { %v1245_v18 = vadd.f32 %v1244_v17, %v5395_v3  ;;  %v4793_v19 = vpop.f32.mrb[38].mxu0  ;;  %4916 = vmatprep.mubr.msk.bf16.mxu1 %vm1815_vm3, %v1755_v14 }
 0x131   : > { %v1256_v20 = vadd.f32 %v4793_v19, %v5395_v3  ;;  %v1247_v21 = vpop.f32.mrb[39].mxu0  ;;  %4917 = vmatmul.mubr.msk.bf16.gmra.mrb[36].mxu1 %vm1815_vm3, %v1756_v13  ;;  %v1649_v23 = vmax.f32 %v1253_v16, 0.0 }
 0x132   : > { %v1248_v22 = vadd.f32 %v1247_v21, %v5395_v3  ;;  %v1647_v25 = vmax.f32 %v1245_v18, 0.0 }
 0x133   : > { %v1650_v24 = vmax.f32 %v1256_v20, 0.0 }
 0x134   : > { %v1648_v26 = vmax.f32 %v1248_v22, 0.0 }
 0x135   : > { %v1758_v27 = vpack.c.bf16 %v1650_v24, %v1649_v23 }
 0x136   : > { %v1757_v28 = vpack.c.bf16 %v1648_v26, %v1647_v25  ;;  %v4796_v29 = vpop.f32.mrb[40].mxu0 }
 0x137   : > { %v1269_v30 = vadd.f32 %v4796_v29, %v5395_v3  ;;  %v1260_v31 = vpop.f32.mrb[41].mxu0 }
 0x138   : > { %v1261_v32 = vadd.f32 %v1260_v31, %v5395_v3  ;;  %v4797_v33 = vpop.f32.mrb[42].mxu0  ;;  %4920 = vmatprep.mubr.msk.bf16.mxu1 %vm1815_vm3, %v1757_v28 }
 0x139   : > { %v1272_v34 = vadd.f32 %v4797_v33, %v5395_v3  ;;  %v1263_v35 = vpop.f32.mrb[43].mxu0  ;;  %4921 = vmatmul.mubr.msk.bf16.gmra.mrb[40].mxu1 %vm1815_vm3, %v1758_v27  ;;  %v1653_v39 = vmax.f32 %v1269_v30, 0.0 }
 0x13a   : > { %v1264_v37 = vadd.f32 %v1263_v35, %v5395_v3  ;;  %v1651_v42 = vmax.f32 %v1261_v32, 0.0 }
 0x13b   : > { %v1654_v40 = vmax.f32 %v1272_v34, 0.0 }
 0x13c   : > { %v1652_v43 = vmax.f32 %v1264_v37, 0.0 }
 0x13d   : > { %v1760_v45 = vpack.c.bf16 %v1654_v40, %v1653_v39 }
 0x13e   : > { %v1759_v49 = vpack.c.bf16 %v1652_v43, %v1651_v42  ;;  %v4800_v50 = vpop.f32.mrb[44].mxu0 }
 0x13f   : > { %v1285_v52 = vadd.f32 %v4800_v50, %v5395_v3  ;;  %v1276_v53 = vpop.f32.mrb[45].mxu0 }
 0x140   : > { %v1277_v57 = vadd.f32 %v1276_v53, %v5395_v3  ;;  %v4801_v58 = vpop.f32.mrb[46].mxu0  ;;  %4924 = vmatprep.mubr.msk.bf16.mxu1 %vm1815_vm3, %v1759_v49 }
 0x141   : > { %v1288_v60 = vadd.f32 %v4801_v58, %v5395_v3  ;;  %v1279_v61 = vpop.f32.mrb[47].mxu0  ;;  %4925 = vmatmul.mubr.msk.bf16.gmra.mrb[44].mxu1 %vm1815_vm3, %v1760_v45  ;;  %v1657_v4 = vmax.f32 %v1285_v52, 0.0 }
 0x142   : > { %v1280_v0 = vadd.f32 %v1279_v61, %v5395_v3  ;;  %v1655_v6 = vmax.f32 %v1277_v57, 0.0 }
 0x143   : > { %v1658_v5 = vmax.f32 %v1288_v60, 0.0 }
 0x144   : > { %v1656_v7 = vmax.f32 %v1280_v0, 0.0 }
 0x145   : > { %v1762_v8 = vpack.c.bf16 %v1658_v5, %v1657_v4 }
 0x146   : > { %v1761_v9 = vpack.c.bf16 %v1656_v7, %v1655_v6  ;;  %v4804_v10 = vpop.f32.mrb[48].mxu0 }
 0x147   : > { %v1301_v11 = vadd.f32 %v4804_v10, %v5395_v3  ;;  %v1292_v12 = vpop.f32.mrb[49].mxu0 }
 0x148   : > { %v1293_v13 = vadd.f32 %v1292_v12, %v5395_v3  ;;  %v4805_v14 = vpop.f32.mrb[50].mxu0  ;;  %4928 = vmatprep.mubr.msk.bf16.mxu1 %vm1815_vm3, %v1761_v9 }
 0x149   : > { %v1304_v15 = vadd.f32 %v4805_v14, %v5395_v3  ;;  %v1295_v16 = vpop.f32.mrb[51].mxu0  ;;  %4929 = vmatmul.mubr.msk.bf16.gmra.mrb[48].mxu1 %vm1815_vm3, %v1762_v8  ;;  %v1661_v18 = vmax.f32 %v1301_v11, 0.0 }
 0x14a   : > { %v1296_v17 = vadd.f32 %v1295_v16, %v5395_v3  ;;  %v1659_v20 = vmax.f32 %v1293_v13, 0.0 }
 0x14b   : > { %v1662_v19 = vmax.f32 %v1304_v15, 0.0 }
 0x14c   : > { %v1660_v21 = vmax.f32 %v1296_v17, 0.0 }
 0x14d   : > { %v1764_v22 = vpack.c.bf16 %v1662_v19, %v1661_v18 }
 0x14e   : > { %v1763_v23 = vpack.c.bf16 %v1660_v21, %v1659_v20  ;;  %v4808_v24 = vpop.f32.mrb[52].mxu0 }
 0x14f   : > { %v1317_v25 = vadd.f32 %v4808_v24, %v5395_v3  ;;  %v1308_v26 = vpop.f32.mrb[53].mxu0 }
 0x150   : > { %v1309_v27 = vadd.f32 %v1308_v26, %v5395_v3  ;;  %v4809_v28 = vpop.f32.mrb[54].mxu0  ;;  %4932 = vmatprep.mubr.msk.bf16.mxu1 %vm1815_vm3, %v1763_v23 }
 0x151   : > { %v1320_v29 = vadd.f32 %v4809_v28, %v5395_v3  ;;  %v1311_v30 = vpop.f32.mrb[55].mxu0  ;;  %4933 = vmatmul.mubr.msk.bf16.gmra.mrb[52].mxu1 %vm1815_vm3, %v1764_v22  ;;  %v1665_v32 = vmax.f32 %v1317_v25, 0.0 }
 0x152   : > { %v1312_v31 = vadd.f32 %v1311_v30, %v5395_v3  ;;  %v1663_v34 = vmax.f32 %v1309_v27, 0.0 }
 0x153   : > { %v1666_v33 = vmax.f32 %v1320_v29, 0.0 }
 0x154   : > { %v1664_v35 = vmax.f32 %v1312_v31, 0.0 }
 0x155   : > { %v1766_v36 = vpack.c.bf16 %v1666_v33, %v1665_v32 }
 0x156   : > { %v1765_v37 = vpack.c.bf16 %v1664_v35, %v1663_v34  ;;  %v4812_v38 = vpop.f32.mrb[56].mxu0 }
 0x157   : > { %v1333_v39 = vadd.f32 %v4812_v38, %v5395_v3  ;;  %v1324_v40 = vpop.f32.mrb[57].mxu0 }
 0x158   : > { %v1325_v41 = vadd.f32 %v1324_v40, %v5395_v3  ;;  %v4813_v42 = vpop.f32.mrb[58].mxu0  ;;  %4936 = vmatprep.mubr.msk.bf16.mxu1 %vm1815_vm3, %v1765_v37 }
 0x159   : > { %v1336_v43 = vadd.f32 %v4813_v42, %v5395_v3  ;;  %v1327_v44 = vpop.f32.mrb[59].mxu0  ;;  %4937 = vmatmul.mubr.msk.bf16.gmra.mrb[56].mxu1 %vm1815_vm3, %v1766_v36  ;;  %v1669_v46 = vmax.f32 %v1333_v39, 0.0 }
 0x15a   : > { %v1328_v45 = vadd.f32 %v1327_v44, %v5395_v3  ;;  %v1667_v48 = vmax.f32 %v1325_v41, 0.0 }
 0x15b   : > { %v1670_v47 = vmax.f32 %v1336_v43, 0.0 }
 0x15c   : > { %v1668_v49 = vmax.f32 %v1328_v45, 0.0 }
 0x15d   : > { %v1768_v50 = vpack.c.bf16 %v1670_v47, %v1669_v46 }
 0x15e   : > { %v1767_v51 = vpack.c.bf16 %v1668_v49, %v1667_v48  ;;  %v4816_v52 = vpop.f32.mrb[60].mxu0 }
 0x15f   : > { %v1349_v53 = vadd.f32 %v4816_v52, %v5395_v3  ;;  %v1340_v54 = vpop.f32.mrb[61].mxu0 }
 0x160   : > { %v1341_v55 = vadd.f32 %v1340_v54, %v5395_v3  ;;  %v4817_v56 = vpop.f32.mrb[62].mxu0  ;;  %4940 = vmatprep.mubr.msk.bf16.mxu1 %vm1815_vm3, %v1767_v51 }
 0x161   : > { %v1352_v57 = vadd.f32 %v4817_v56, %v5395_v3  ;;  %v1343_v58 = vpop.f32.mrb[63].mxu0  ;;  %4941 = vmatmul.mubr.msk.bf16.gmra.mrb[60].mxu1 %vm1815_vm3, %v1768_v50  ;;  %v1673_v60 = vmax.f32 %v1349_v53, 0.0 }
 0x162   : > { %v1344_v59 = vadd.f32 %v1343_v58, %v5395_v3  ;;  %v1671_v0 = vmax.f32 %v1341_v55, 0.0 }
 0x163   : > { %v1674_v61 = vmax.f32 %v1352_v57, 0.0 }
 0x164   : > { %v1672_v4 = vmax.f32 %v1344_v59, 0.0 }
 0x165   : > { %v1770_v5 = vpack.c.bf16 %v1674_v61, %v1673_v60 }
 0x166   : > { %v1769_v6 = vpack.c.bf16 %v1672_v4, %v1671_v0  ;;  %v4820_v7 = vpop.f32.mrb[64].mxu0 }
 0x167   : > { %v1365_v8 = vadd.f32 %v4820_v7, %v5395_v3  ;;  %v1356_v9 = vpop.f32.mrb[65].mxu0 }
 0x168   : > { %v1357_v10 = vadd.f32 %v1356_v9, %v5395_v3  ;;  %v4821_v11 = vpop.f32.mrb[66].mxu0  ;;  %4944 = vmatprep.mubr.msk.bf16.mxu1 %vm1815_vm3, %v1769_v6 }
 0x169   : > { %v1368_v12 = vadd.f32 %v4821_v11, %v5395_v3  ;;  %v1359_v13 = vpop.f32.mrb[67].mxu0  ;;  %4945 = vmatmul.mubr.msk.bf16.gmra.mrb[64].mxu1 %vm1815_vm3, %v1770_v5  ;;  %v1677_v15 = vmax.f32 %v1365_v8, 0.0 }
 0x16a   : > { %v1360_v14 = vadd.f32 %v1359_v13, %v5395_v3  ;;  %v1675_v17 = vmax.f32 %v1357_v10, 0.0 }
 0x16b   : > { %v1678_v16 = vmax.f32 %v1368_v12, 0.0 }
 0x16c   : > { %v1676_v18 = vmax.f32 %v1360_v14, 0.0 }
 0x16d   : > { %v1772_v19 = vpack.c.bf16 %v1678_v16, %v1677_v15 }
 0x16e   : > { %v1771_v20 = vpack.c.bf16 %v1676_v18, %v1675_v17  ;;  %v4824_v21 = vpop.f32.mrb[68].mxu0 }
 0x16f   : > { %v1381_v22 = vadd.f32 %v4824_v21, %v5395_v3  ;;  %v1372_v23 = vpop.f32.mrb[69].mxu0 }
 0x170   : > { %v1373_v24 = vadd.f32 %v1372_v23, %v5395_v3  ;;  %v4825_v25 = vpop.f32.mrb[70].mxu0  ;;  %4948 = vmatprep.mubr.msk.bf16.mxu1 %vm1815_vm3, %v1771_v20 }
 0x171   : > { %v1384_v26 = vadd.f32 %v4825_v25, %v5395_v3  ;;  %v1375_v27 = vpop.f32.mrb[71].mxu0  ;;  %4949 = vmatmul.mubr.msk.bf16.gmra.mrb[68].mxu1 %vm1815_vm3, %v1772_v19  ;;  %v1681_v29 = vmax.f32 %v1381_v22, 0.0 }
 0x172   : > { %v1376_v28 = vadd.f32 %v1375_v27, %v5395_v3  ;;  %v1679_v31 = vmax.f32 %v1373_v24, 0.0 }
 0x173   : > { %v1682_v30 = vmax.f32 %v1384_v26, 0.0 }
 0x174   : > { %v1680_v32 = vmax.f32 %v1376_v28, 0.0 }
 0x175   : > { %v1774_v33 = vpack.c.bf16 %v1682_v30, %v1681_v29 }
 0x176   : > { %v1773_v34 = vpack.c.bf16 %v1680_v32, %v1679_v31  ;;  %v4828_v35 = vpop.f32.mrb[72].mxu0 }
 0x177   : > { %v1397_v36 = vadd.f32 %v4828_v35, %v5395_v3  ;;  %v1388_v37 = vpop.f32.mrb[73].mxu0 }
 0x178   : > { %v1389_v38 = vadd.f32 %v1388_v37, %v5395_v3  ;;  %v4829_v39 = vpop.f32.mrb[74].mxu0  ;;  %4952 = vmatprep.mubr.msk.bf16.mxu1 %vm1815_vm3, %v1773_v34 }
 0x179   : > { %v1400_v40 = vadd.f32 %v4829_v39, %v5395_v3  ;;  %v1391_v41 = vpop.f32.mrb[75].mxu0  ;;  %4953 = vmatmul.mubr.msk.bf16.gmra.mrb[72].mxu1 %vm1815_vm3, %v1774_v33  ;;  %v1685_v43 = vmax.f32 %v1397_v36, 0.0 }
 0x17a   : > { %v1392_v42 = vadd.f32 %v1391_v41, %v5395_v3  ;;  %v1683_v45 = vmax.f32 %v1389_v38, 0.0 }
 0x17b   : > { %v1686_v44 = vmax.f32 %v1400_v40, 0.0 }
 0x17c   : > { %v1684_v46 = vmax.f32 %v1392_v42, 0.0 }
 0x17d   : > { %v1776_v47 = vpack.c.bf16 %v1686_v44, %v1685_v43 }
 0x17e   : > { %v1775_v48 = vpack.c.bf16 %v1684_v46, %v1683_v45  ;;  %v4832_v49 = vpop.f32.mrb[76].mxu0 }
 0x17f   : > { %v1413_v50 = vadd.f32 %v4832_v49, %v5395_v3  ;;  %v1404_v51 = vpop.f32.mrb[77].mxu0 }
 0x180   : > { %v1405_v52 = vadd.f32 %v1404_v51, %v5395_v3  ;;  %v4833_v53 = vpop.f32.mrb[78].mxu0  ;;  %4956 = vmatprep.mubr.msk.bf16.mxu1 %vm1815_vm3, %v1775_v48 }
 0x181   : > { %v1416_v54 = vadd.f32 %v4833_v53, %v5395_v3  ;;  %v1407_v55 = vpop.f32.mrb[79].mxu0  ;;  %4957 = vmatmul.mubr.msk.bf16.gmra.mrb[76].mxu1 %vm1815_vm3, %v1776_v47  ;;  %v1689_v57 = vmax.f32 %v1413_v50, 0.0 }
 0x182   : > { %v1408_v56 = vadd.f32 %v1407_v55, %v5395_v3  ;;  %v1687_v59 = vmax.f32 %v1405_v52, 0.0 }
 0x183   : > { %v1690_v58 = vmax.f32 %v1416_v54, 0.0 }
 0x184   : > { %v1688_v60 = vmax.f32 %v1408_v56, 0.0 }
 0x185   : > { %v1778_v61 = vpack.c.bf16 %v1690_v58, %v1689_v57 }
 0x186   : > { %v1777_v0 = vpack.c.bf16 %v1688_v60, %v1687_v59  ;;  %v4836_v4 = vpop.f32.mrb[80].mxu0 }
 0x187   : > { %v1429_v5 = vadd.f32 %v4836_v4, %v5395_v3  ;;  %v1420_v6 = vpop.f32.mrb[81].mxu0 }
 0x188   : > { %v1421_v7 = vadd.f32 %v1420_v6, %v5395_v3  ;;  %v4837_v8 = vpop.f32.mrb[82].mxu0  ;;  %4960 = vmatprep.mubr.msk.bf16.mxu1 %vm1815_vm3, %v1777_v0 }
 0x189   : > { %v1432_v9 = vadd.f32 %v4837_v8, %v5395_v3  ;;  %v1423_v10 = vpop.f32.mrb[83].mxu0  ;;  %4961 = vmatmul.mubr.msk.bf16.gmra.mrb[80].mxu1 %vm1815_vm3, %v1778_v61  ;;  %v1693_v12 = vmax.f32 %v1429_v5, 0.0 }
 0x18a   : > { %v1424_v11 = vadd.f32 %v1423_v10, %v5395_v3  ;;  %v1691_v14 = vmax.f32 %v1421_v7, 0.0 }
 0x18b   : > { %v1694_v13 = vmax.f32 %v1432_v9, 0.0 }
 0x18c   : > { %v1692_v15 = vmax.f32 %v1424_v11, 0.0 }
 0x18d   : > { %v1780_v16 = vpack.c.bf16 %v1694_v13, %v1693_v12 }
 0x18e   : > { %v1779_v17 = vpack.c.bf16 %v1692_v15, %v1691_v14  ;;  %v4840_v18 = vpop.f32.mrb[84].mxu0 }
 0x18f   : > { %v1445_v19 = vadd.f32 %v4840_v18, %v5395_v3  ;;  %v1436_v20 = vpop.f32.mrb[85].mxu0 }
 0x190   : > { %v1437_v21 = vadd.f32 %v1436_v20, %v5395_v3  ;;  %v4841_v22 = vpop.f32.mrb[86].mxu0  ;;  %4964 = vmatprep.mubr.msk.bf16.mxu1 %vm1815_vm3, %v1779_v17 }
 0x191   : > { %v1448_v23 = vadd.f32 %v4841_v22, %v5395_v3  ;;  %v1439_v24 = vpop.f32.mrb[87].mxu0  ;;  %4965 = vmatmul.mubr.msk.bf16.gmra.mrb[84].mxu1 %vm1815_vm3, %v1780_v16  ;;  %v1697_v26 = vmax.f32 %v1445_v19, 0.0 }
 0x192   : > { %v1440_v25 = vadd.f32 %v1439_v24, %v5395_v3  ;;  %v1695_v28 = vmax.f32 %v1437_v21, 0.0 }
 0x193   : > { %v1698_v27 = vmax.f32 %v1448_v23, 0.0 }
 0x194   : > { %v1696_v29 = vmax.f32 %v1440_v25, 0.0 }
 0x195   : > { %v1782_v30 = vpack.c.bf16 %v1698_v27, %v1697_v26 }
 0x196   : > { %v1781_v31 = vpack.c.bf16 %v1696_v29, %v1695_v28  ;;  %v4844_v32 = vpop.f32.mrb[88].mxu0 }
 0x197   : > { %v1461_v33 = vadd.f32 %v4844_v32, %v5395_v3  ;;  %v1452_v34 = vpop.f32.mrb[89].mxu0 }
 0x198   : > { %v1453_v35 = vadd.f32 %v1452_v34, %v5395_v3  ;;  %v4845_v36 = vpop.f32.mrb[90].mxu0  ;;  %4968 = vmatprep.mubr.msk.bf16.mxu1 %vm1815_vm3, %v1781_v31 }
 0x199   : > { %v1464_v37 = vadd.f32 %v4845_v36, %v5395_v3  ;;  %v1455_v38 = vpop.f32.mrb[91].mxu0  ;;  %4969 = vmatmul.mubr.msk.bf16.gmra.mrb[88].mxu1 %vm1815_vm3, %v1782_v30  ;;  %v1701_v40 = vmax.f32 %v1461_v33, 0.0 }
 0x19a   : > { %v1456_v39 = vadd.f32 %v1455_v38, %v5395_v3  ;;  %v1699_v42 = vmax.f32 %v1453_v35, 0.0 }
 0x19b   : > { %v1702_v41 = vmax.f32 %v1464_v37, 0.0 }
 0x19c   : > { %v1700_v43 = vmax.f32 %v1456_v39, 0.0 }
 0x19d   : > { %v1784_v44 = vpack.c.bf16 %v1702_v41, %v1701_v40 }
 0x19e   : > { %v1783_v45 = vpack.c.bf16 %v1700_v43, %v1699_v42  ;;  %v4848_v46 = vpop.f32.mrb[92].mxu0  ;;  %v1807_v42 = vsub.s32 1, %v5382_v62 }
 0x19f   : > { %v1477_v47 = vadd.f32 %v4848_v46, %v5395_v3  ;;  %v1468_v48 = vpop.f32.mrb[93].mxu0 }
 0x1a0   : > { %v1469_v49 = vadd.f32 %v1468_v48, %v5395_v3  ;;  %v4849_v50 = vpop.f32.mrb[94].mxu0  ;;  %4972 = vmatprep.mubr.msk.bf16.mxu1 %vm1815_vm3, %v1783_v45 }
 0x1a1   : > { %v1480_v51 = vadd.f32 %v4849_v50, %v5395_v3  ;;  %v1471_v52 = vpop.f32.mrb[95].mxu0  ;;  %4973 = vmatmul.mubr.msk.bf16.gmra.mrb[92].mxu1 %vm1815_vm3, %v1784_v44  ;;  %v1705_v54 = vmax.f32 %v1477_v47, 0.0 }
 0x1a2   : > { %v1472_v53 = vadd.f32 %v1471_v52, %v5395_v3  ;;  %v1703_v56 = vmax.f32 %v1469_v49, 0.0 }
 0x1a3   : > { %v1706_v55 = vmax.f32 %v1480_v51, 0.0  ;;  %v5587_v51 = vrot.slane %v5390_v1, %v1807_v42 }
 0x1a4   : > { %v1704_v57 = vmax.f32 %v1472_v53, 0.0 }
 0x1a5   : > { %v1786_v58 = vpack.c.bf16 %v1706_v55, %v1705_v54 }
 0x1a6   : > { %v1785_v59 = vpack.c.bf16 %v1704_v57, %v1703_v56  ;;  %v4852_v60 = vpop.f32.mrb[96].mxu0 }
 0x1a7   : > { %v1493_v61 = vadd.f32 %v4852_v60, %v5395_v3  ;;  %v1484_v0 = vpop.f32.mrb[97].mxu0 }
 0x1a8   : > { %v1485_v4 = vadd.f32 %v1484_v0, %v5395_v3  ;;  %v4853_v5 = vpop.f32.mrb[98].mxu0  ;;  %4976 = vmatprep.mubr.msk.bf16.mxu1 %vm1815_vm3, %v1785_v59 }
 0x1a9   : > { %v1496_v6 = vadd.f32 %v4853_v5, %v5395_v3  ;;  %v1487_v7 = vpop.f32.mrb[99].mxu0  ;;  %4977 = vmatmul.mubr.msk.bf16.gmra.mrb[96].mxu1 %vm1815_vm3, %v1786_v58  ;;  %v1709_v9 = vmax.f32 %v1493_v61, 0.0 }
 0x1aa   : > { %v1488_v8 = vadd.f32 %v1487_v7, %v5395_v3  ;;  %v1707_v11 = vmax.f32 %v1485_v4, 0.0 }
 0x1ab   : > { %v1710_v10 = vmax.f32 %v1496_v6, 0.0 }
 0x1ac   : > { %v1708_v12 = vmax.f32 %v1488_v8, 0.0 }
 0x1ad   : > { %v1788_v13 = vpack.c.bf16 %v1710_v10, %v1709_v9 }
 0x1ae   : > { %v1787_v14 = vpack.c.bf16 %v1708_v12, %v1707_v11  ;;  %v4856_v15 = vpop.f32.mrb[100].mxu0 }
 0x1af   : > { %v1509_v16 = vadd.f32 %v4856_v15, %v5395_v3  ;;  %v1500_v17 = vpop.f32.mrb[101].mxu0 }
 0x1b0   : > { %v1501_v18 = vadd.f32 %v1500_v17, %v5395_v3  ;;  %v4857_v19 = vpop.f32.mrb[102].mxu0  ;;  %4980 = vmatprep.mubr.msk.bf16.mxu1 %vm1815_vm3, %v1787_v14 }
 0x1b1   : > { %v1512_v20 = vadd.f32 %v4857_v19, %v5395_v3  ;;  %v1503_v21 = vpop.f32.mrb[103].mxu0  ;;  %4981 = vmatmul.mubr.msk.bf16.gmra.mrb[100].mxu1 %vm1815_vm3, %v1788_v13  ;;  %v1713_v23 = vmax.f32 %v1509_v16, 0.0 }
 0x1b2   : > { %v1504_v22 = vadd.f32 %v1503_v21, %v5395_v3  ;;  %v1711_v25 = vmax.f32 %v1501_v18, 0.0 }
 0x1b3   : > { %v1714_v24 = vmax.f32 %v1512_v20, 0.0 }
 0x1b4   : > { %v1712_v26 = vmax.f32 %v1504_v22, 0.0 }
 0x1b5   : > { %v1790_v27 = vpack.c.bf16 %v1714_v24, %v1713_v23 }
 0x1b6   : > { %v1789_v28 = vpack.c.bf16 %v1712_v26, %v1711_v25  ;;  %v4860_v29 = vpop.f32.mrb[104].mxu0 }
 0x1b7   : > { %v1525_v30 = vadd.f32 %v4860_v29, %v5395_v3  ;;  %v1516_v31 = vpop.f32.mrb[105].mxu0 }
 0x1b8   : > { %v1517_v32 = vadd.f32 %v1516_v31, %v5395_v3  ;;  %v4861_v33 = vpop.f32.mrb[106].mxu0  ;;  %4984 = vmatprep.mubr.msk.bf16.mxu1 %vm1815_vm3, %v1789_v28 }
 0x1b9   : > { %v1528_v34 = vadd.f32 %v4861_v33, %v5395_v3  ;;  %v1519_v35 = vpop.f32.mrb[107].mxu0  ;;  %4985 = vmatmul.mubr.msk.bf16.gmra.mrb[104].mxu1 %vm1815_vm3, %v1790_v27  ;;  %v1717_v37 = vmax.f32 %v1525_v30, 0.0 }
 0x1ba   : > { %v1520_v36 = vadd.f32 %v1519_v35, %v5395_v3  ;;  %v1715_v39 = vmax.f32 %v1517_v32, 0.0 }
 0x1bb   : > { %v1718_v38 = vmax.f32 %v1528_v34, 0.0 }
 0x1bc   : > { %v1716_v40 = vmax.f32 %v1520_v36, 0.0 }
 0x1bd   : > { %v1792_v41 = vpack.c.bf16 %v1718_v38, %v1717_v37 }
 0x1be   : > { %v1791_v43 = vpack.c.bf16 %v1716_v40, %v1715_v39  ;;  %v4864_v44 = vpop.f32.mrb[108].mxu0 }
 0x1bf   : > { %v1541_v45 = vadd.f32 %v4864_v44, %v5395_v3  ;;  %v1532_v46 = vpop.f32.mrb[109].mxu0 }
 0x1c0   : > { %v1533_v47 = vadd.f32 %v1532_v46, %v5395_v3  ;;  %v4865_v48 = vpop.f32.mrb[110].mxu0  ;;  %4988 = vmatprep.mubr.msk.bf16.mxu1 %vm1815_vm3, %v1791_v43 }
 0x1c1   : > { %v1544_v49 = vadd.f32 %v4865_v48, %v5395_v3  ;;  %v1535_v50 = vpop.f32.mrb[111].mxu0  ;;  %4989 = vmatmul.mubr.msk.bf16.gmra.mrb[108].mxu1 %vm1815_vm3, %v1792_v41  ;;  %v1721_v52 = vmax.f32 %v1541_v45, 0.0 }
 0x1c2   : > { %v1536_v62 = vadd.f32 %v1535_v50, %v5395_v3  ;;  %v1719_v54 = vmax.f32 %v1533_v47, 0.0 }
 0x1c3   : > { %v1722_v53 = vmax.f32 %v1544_v49, 0.0 }
 0x1c4   : > { %v1720_v55 = vmax.f32 %v1536_v62, 0.0  ;;  %v4886_v56 = vpop.f32.mrb[4].mxu1 }
 0x1c5   : > { %v1794_v57 = vpack.c.bf16 %v1722_v53, %v1721_v52  ;;  %v2051_v58 = vadd.f32 %v4886_v56, %v5587_v51  ;;  %v2042_v59 = vpop.f32.mrb[5].mxu1 }
 0x1c6   : > { %v1793_v60 = vpack.c.bf16 %v1720_v55, %v1719_v54  ;;  %v2043_v61 = vadd.f32 %v2042_v59, %v5587_v51  ;;  %v4868_v0 = vpop.f32.mrb[112].mxu0  ;;  %v4887_v4 = vpop.f32.mrb[6].mxu1 }
 0x1c7   : > { %v2555_v5 = vmax.f32 %v2051_v58, 0.0  ;;  %v1557_v1 = vadd.f32 %v4868_v0, %v5395_v3  ;;  %v2054_v6 = vadd.f32 %v4887_v4, %v5587_v51  ;;  %v1548_v7 = vpop.f32.mrb[113].mxu0  ;;  %v2045_v8 = vpop.f32.mrb[7].mxu1 }
 0x1c8   : > { %v2553_v9 = vmax.f32 %v2043_v61, 0.0  ;;  %v1549_v10 = vadd.f32 %v1548_v7, %v5395_v3  ;;  %v2046_v11 = vadd.f32 %v2045_v8, %v5587_v51  ;;  %v4869_v12 = vpop.f32.mrb[114].mxu0  ;;  %4992 = vmatprep.mubr.msk.bf16.mxu1 %vm1815_vm3, %v1793_v60 }
 0x1c9   : > { %v2696_v13 = vsel %vm2681_vm4, %v2555_v5, -inf  ;;  %v2556_v14 = vmax.f32 %v2054_v6, 0.0  ;;  %v1560_v15 = vadd.f32 %v4869_v12, %v5395_v3  ;;  %v1551_v16 = vpop.f32.mrb[115].mxu0  ;;  %4993 = vmatmul.mubr.msk.bf16.gmra.mrb[112].mxu1 %vm1815_vm3, %v1794_v57  ;;  %v1725_v19 = vmax.f32 %v1557_v1, 0.0 }
 0x1ca   : > { %v2697_v17 = vrot.slane %v2696_v13, 4  ;;  %v2682_v18 = vsel %vm2681_vm4, %v2553_v9, -inf  ;;  %v2554_v20 = vmax.f32 %v2046_v11, 0.0  ;;  %v1552_v24 = vadd.f32 %v1551_v16, %v5395_v3 }
 0x1cb   : > { %v2683_v21 = vrot.slane %v2682_v18, 4  ;;  %v2703_v22 = vsel %vm2681_vm4, %v2556_v14, -inf  ;;  %v1726_v23 = vmax.f32 %v1560_v15, 0.0  ;;  %v1723_v27 = vmax.f32 %v1549_v10, 0.0 }
 0x1cc   : > { %v2698_v25 = vmax.f32 %v2696_v13, %v2697_v17  ;;  %v2704_v26 = vrot.slane %v2703_v22, 4  ;;  %v2689_v28 = vsel %vm2681_vm4, %v2554_v20, -inf  ;;  %v4890_v29 = vpop.f32.mrb[8].mxu1  ;;  %v1724_v33 = vmax.f32 %v1552_v24, 0.0 }
 0x1cd   : > { %v2684_v30 = vmax.f32 %v2682_v18, %v2683_v21  ;;  %v2690_v31 = vrot.slane %v2689_v28, 4  ;;  %v1796_v32 = vpack.c.bf16 %v1726_v23, %v1725_v19  ;;  %v2058_v34 = vpop.f32.mrb[9].mxu1  ;;  %v2067_v37 = vadd.f32 %v4890_v29, %v5587_v51 }
 0x1ce   : > { %v2699_v35 = vrot.slane %v2698_v25, 2  ;;  %v2705_v36 = vmax.f32 %v2703_v22, %v2704_v26  ;;  %v2059_v38 = vadd.f32 %v2058_v34, %v5587_v51  ;;  %v4872_v39 = vpop.f32.mrb[116].mxu0  ;;  %v4891_v40 = vpop.f32.mrb[10].mxu1  ;;  %v1795_v43 = vpack.c.bf16 %v1724_v33, %v1723_v27 }
 0x1cf   : > { %v2685_v41 = vrot.slane %v2684_v30, 2  ;;  %v2691_v42 = vmax.f32 %v2689_v28, %v2690_v31  ;;  %v1573_v44 = vadd.f32 %v4872_v39, %v5395_v3  ;;  %v1564_v45 = vpop.f32.mrb[117].mxu0  ;;  %v2061_v46 = vpop.f32.mrb[11].mxu1  ;;  %v2559_v49 = vmax.f32 %v2067_v37, 0.0 }
 0x1d0   : > { %v2700_v47 = vmax.f32 %v2698_v25, %v2699_v35  ;;  %v2706_v48 = vrot.slane %v2705_v36, 2  ;;  %v2557_v50 = vmax.f32 %v2059_v38, 0.0  ;;  %v4873_v62 = vpop.f32.mrb[118].mxu0  ;;  %v2070_v54 = vadd.f32 %v4891_v40, %v5587_v51  ;;  %4996 = vmatprep.mubr.msk.bf16.mxu1 %vm1815_vm3, %v1795_v43 }
 0x1d1   : > { %v2686_v52 = vmax.f32 %v2684_v30, %v2685_v41  ;;  %v2692_v53 = vrot.slane %v2691_v42, 2  ;;  %v1567_v55 = vpop.f32.mrb[119].mxu0  ;;  %v2724_v57 = vsel %vm2681_vm4, %v2559_v49, -inf  ;;  %4997 = vmatmul.mubr.msk.bf16.gmra.mrb[116].mxu1 %vm1815_vm3, %v1796_v32  ;;  %v1729_v5 = vmax.f32 %v1573_v44, 0.0 }
 0x1d2   : > { %v2707_v56 = vmax.f32 %v2705_v36, %v2706_v48  ;;  %v2710_v58 = vsel %vm2681_vm4, %v2557_v50, -inf  ;;  %v2725_v61 = vrot.slane %v2724_v57, 4  ;;  %v2701_v4 = vrot.slane %v2700_v47, 1 }
 0x1d3   : > { %v2687_v59 = vrot.slane %v2686_v52, 1  ;;  %v2693_v60 = vmax.f32 %v2691_v42, %v2692_v53  ;;  %v2711_v0 = vrot.slane %v2710_v58, 4  ;;  %v2560_v1 = vmax.f32 %v2070_v54, 0.0 }
 0x1d4   : > { %v4894_v6 = vpop.f32.mrb[12].mxu1  ;;  %v2726_v8 = vmax.f32 %v2724_v57, %v2725_v61  ;;  %v1565_v10 = vadd.f32 %v1564_v45, %v5395_v3  ;;  %v2708_v13 = vrot.slane %v2707_v56, 1  ;;  %v2062_v15 = vadd.f32 %v2061_v46, %v5587_v51 }
 0x1d5   : > { %v2694_v7 = vrot.slane %v2693_v60, 1  ;;  %v2712_v9 = vmax.f32 %v2710_v58, %v2711_v0  ;;  %v2074_v11 = vpop.f32.mrb[13].mxu1  ;;  %v2688_v12 = vmax.f32 %v2686_v52, %v2687_v59  ;;  %v2731_v14 = vsel %vm2681_vm4, %v2560_v1, -inf }
 0x1d6   : > { %v4876_v16 = vpop.f32.mrb[120].mxu0  ;;  %v4895_v17 = vpop.f32.mrb[14].mxu1  ;;  %v2727_v19 = vrot.slane %v2726_v8, 2  ;;  %v2732_v21 = vrot.slane %v2731_v14, 4  ;;  %v2558_v24 = vmax.f32 %v2062_v15, 0.0  ;;  %v1576_v25 = vadd.f32 %v4873_v62, %v5395_v3 }
 0x1d7   : > { %v2695_v18 = vmax.f32 %v2693_v60, %v2694_v7  ;;  %v2713_v20 = vrot.slane %v2712_v9, 2  ;;  %v1580_v22 = vpop.f32.mrb[121].mxu0  ;;  %v2077_v23 = vpop.f32.mrb[15].mxu1  ;;  %v1568_v26 = vadd.f32 %v1567_v55, %v5395_v3  ;;  %v2083_v27 = vadd.f32 %v4894_v6, %v5587_v51 }
 0x1d8   : > { %v4877_v28 = vpop.f32.mrb[122].mxu0  ;;  %v5621_v30 = vmax.f32 %v2726_v8, %v2727_v19  ;;  %v1727_v32 = vmax.f32 %v1565_v10, 0.0  ;;  %v2717_v34 = vsel %vm2681_vm4, %v2558_v24, -inf  ;;  %v1730_v35 = vmax.f32 %v1576_v25, 0.0 }
 0x1d9   : > { %v5619_v29 = vsel %vm3706_vm5, %v2695_v18, %v2688_v12  ;;  %v2714_v31 = vmax.f32 %v2712_v9, %v2713_v20  ;;  %v1583_v33 = vpop.f32.mrb[123].mxu0  ;;  %v1728_v36 = vmax.f32 %v1568_v26, 0.0  ;;  %v2563_v37 = vmax.f32 %v2083_v27, 0.0 }
 0x1da   : > { %v5624_v38 = vmax.f32 %v2700_v47, %v2701_v4  ;;  %v5626_v39 = vmax.f32 %v2707_v56, %v2708_v13  ;;  %v5628_v40 = vmax.f32 %v2731_v14, %v2732_v21  ;;  %v2718_v41 = vrot.slane %v2717_v34, 4 }
 0x1db   : > { %v1798_v42 = vpack.c.bf16 %v1730_v35, %v1729_v5  ;;  %v1797_v43 = vpack.c.bf16 %v1728_v36, %v1727_v32  ;;  %v2752_v44 = vsel %vm2681_vm4, %v2563_v37, -inf  ;;  %v2075_v45 = vadd.f32 %v2074_v11, %v5587_v51 }
 0x1dc   : > { %v4898_v46 = vpop.f32.mrb[16].mxu1  ;;  %v2729_v48 = vrot.slane %v5621_v30, 1  ;;  %v2715_v49 = vrot.slane %v2714_v31, 1  ;;  %v2719_v50 = vmax.f32 %v2717_v34, %v2718_v41  ;;  %v2753_v62 = vrot.slane %v2752_v44, 4 }
 0x1dd   : > { %v2090_v52 = vpop.f32.mrb[17].mxu1  ;;  %v2561_v47 = vmax.f32 %v2075_v45, 0.0  ;;  %v1589_v53 = vadd.f32 %v4876_v16, %v5395_v3  ;;  %v2086_v54 = vadd.f32 %v4895_v17, %v5587_v51  ;;  %v1581_v55 = vadd.f32 %v1580_v22, %v5395_v3  ;;  %5000 = vmatprep.mubr.msk.bf16.mxu1 %vm1815_vm3, %v1797_v43 }
 0x1de   : > { %v4899_v56 = vpop.f32.mrb[18].mxu1  ;;  %v2720_v57 = vrot.slane %v2719_v50, 2  ;;  %v2754_v58 = vmax.f32 %v2752_v44, %v2753_v62  ;;  %v2078_v59 = vadd.f32 %v2077_v23, %v5587_v51  ;;  %v1592_v60 = vadd.f32 %v4877_v28, %v5395_v3  ;;  %5001 = vmatmul.mubr.msk.bf16.gmra.mrb[120].mxu1 %vm1815_vm3, %v1798_v42 }
 0x1df   : > { %v2093_v61 = vpop.f32.mrb[19].mxu1  ;;  %v2734_v0 = vrot.slane %v5628_v40, 2  ;;  %v2738_v4 = vsel %vm2681_vm4, %v2561_v47, -inf  ;;  %v1733_v5 = vmax.f32 %v1589_v53, 0.0  ;;  %v2564_v1 = vmax.f32 %v2086_v54, 0.0 }
 0x1e0   : > { %v2721_v6 = vmax.f32 %v2719_v50, %v2720_v57  ;;  %v2755_v7 = vrot.slane %v2754_v58, 2  ;;  %v2739_v8 = vrot.slane %v2738_v4, 4  ;;  %v2562_v9 = vmax.f32 %v2078_v59, 0.0 }
 0x1e1   : > { %v2759_v10 = vsel %vm2681_vm4, %v2564_v1, -inf  ;;  %v1734_v11 = vmax.f32 %v1592_v60, 0.0  ;;  %v1584_v12 = vadd.f32 %v1583_v33, %v5395_v3  ;;  %v2099_v13 = vadd.f32 %v4898_v46, %v5587_v51 }
 0x1e2   : > { %v2756_v14 = vmax.f32 %v2754_v58, %v2755_v7  ;;  %v2740_v15 = vmax.f32 %v2738_v4, %v2739_v8  ;;  %v2760_v16 = vrot.slane %v2759_v10, 4  ;;  %v1731_v17 = vmax.f32 %v1581_v55, 0.0 }
 0x1e3   : > { %v2745_v18 = vsel %vm2681_vm4, %v2562_v9, -inf  ;;  %v1800_v19 = vpack.c.bf16 %v1734_v11, %v1733_v5  ;;  %v1732_v20 = vmax.f32 %v1584_v12, 0.0  ;;  %v2567_v21 = vmax.f32 %v2099_v13, 0.0 }
 0x1e4   : > { %v4902_v22 = vpop.f32.mrb[20].mxu1  ;;  %v5646_v23 = vmax.f32 %v2714_v31, %v2715_v49  ;;  %v2722_v24 = vrot.slane %v2721_v6, 1  ;;  %v2741_v25 = vrot.slane %v2740_v15, 2  ;;  %v2761_v26 = vmax.f32 %v2759_v10, %v2760_v16 }
 0x1e5   : > { %v5648_v27 = vpop.f32.mrb[21].mxu1  ;;  %v2746_v3 = vrot.slane %v2745_v18, 4  ;;  %v1799_v28 = vpack.c.bf16 %v1732_v20, %v1731_v17  ;;  %v2780_v32 = vsel %vm2681_vm4, %v2567_v21, -inf  ;;  %v2091_v33 = vadd.f32 %v2090_v52, %v5587_v51 }
 0x1e6   : > { %v5652_v34 = vpop.f32.mrb[22].mxu1  ;;  %v2757_v35 = vrot.slane %v2756_v14, 1  ;;  %v2742_v36 = vmax.f32 %v2740_v15, %v2741_v25  ;;  %v2762_v37 = vrot.slane %v2761_v26, 2  ;;  %v2781_v31 = vrot.slane %v2780_v32, 4 }
 0x1e7   : > { %v5654_v41 = vpop.f32.mrb[23].mxu1  ;;  %v2747_v42 = vmax.f32 %v2745_v18, %v2746_v3  ;;  %v2565_v43 = vmax.f32 %v2091_v33, 0.0  ;;  %v2102_v44 = vadd.f32 %v4899_v56, %v5587_v51  ;;  %v2094_v45 = vadd.f32 %v2093_v61, %v5587_v51  ;;  %5004 = vmatprep.mubr.msk.bf16.mxu1 %vm1815_vm3, %v1799_v28 }
 0x1e8   : > { %v2743_v46 = vrot.slane %v2742_v36, 1  ;;  %v2763_v49 = vmax.f32 %v2761_v26, %v2762_v37  ;;  %v2782_v50 = vmax.f32 %v2780_v32, %v2781_v31  ;;  %5005 = vmatmul.mubr.msk.bf16.gmra.mrb[124].mxu1 %vm1815_vm3, %v1800_v19  ;;  %v2115_v62 = vadd.f32 %v4902_v22, %v5587_v51 }
 0x1e9   : > { %v2748_v52 = vrot.slane %v2747_v42, 2  ;;  %v2766_v47 = vsel %vm2681_vm4, %v2565_v43, -inf  ;;  %v2568_v53 = vmax.f32 %v2102_v44, 0.0  ;;  %v2566_v54 = vmax.f32 %v2094_v45, 0.0  ;;  %5008 = vmatprep.mubr.msk.bf16.mxu1 %vm1815_vm3, %v5488_v2 }
 0x1ea   : > { %v2735_v55 = vmax.f32 %v5628_v40, %v2734_v0  ;;  %v2723_v56 = vmax.f32 %v2721_v6, %v2722_v24  ;;  %v2764_v57 = vrot.slane %v2763_v49, 1  ;;  %v2767_v58 = vrot.slane %v2766_v47, 4 }
 0x1eb   : > { %v2749_v59 = vmax.f32 %v2747_v42, %v2748_v52  ;;  %v2787_v60 = vsel %vm2681_vm4, %v2568_v53, -inf  ;;  %v2773_v61 = vsel %vm2681_vm4, %v2566_v54, -inf  ;;  %v2571_v4 = vmax.f32 %v2115_v62, 0.0 }
 0x1ec   : > { %v4906_v5 = vpop.f32.mrb[24].mxu1  ;;  %v5667_v1 = vmax.f32 %v2756_v14, %v2757_v35  ;;  %v2783_v7 = vrot.slane %v2782_v50, 2  ;;  %v2768_v8 = vmax.f32 %v2766_v47, %v2767_v58  ;;  %v2788_v9 = vrot.slane %v2787_v60, 4 }
 0x1ed   : > { %v2122_v10 = vpop.f32.mrb[25].mxu1  ;;  %v2744_v2 = vmax.f32 %v2742_v36, %v2743_v46  ;;  %v2750_v11 = vrot.slane %v2749_v59, 1  ;;  %v2774_v12 = vrot.slane %v2773_v61, 4  ;;  %v2808_v40 = vsel %vm2681_vm4, %v2571_v4, -inf }
 0x1ee   : > { %v4907_v0 = vpop.f32.mrb[26].mxu1  ;;  %v5670_v6 = vmax.f32 %v2763_v49, %v2764_v57  ;;  %v2769_v13 = vrot.slane %v2768_v8, 2  ;;  %v2789_v15 = vmax.f32 %v2787_v60, %v2788_v9  ;;  %v2809_v16 = vrot.slane %v2808_v40, 4 }
 0x1ef   : > { %v2125_v17 = vpop.f32.mrb[27].mxu1  ;;  %v2751_v18 = vmax.f32 %v2749_v59, %v2750_v11  ;;  %v2775_v19 = vmax.f32 %v2773_v61, %v2774_v12  ;;  %v2736_v14 = vrot.slane %v2735_v55, 1  ;;  %v3709_v20 = vsel %vm3708_vm6, %v5624_v38, %v5619_v29 }
 0x1f0   : > { %v5675_v21 = vmax.f32 %v2782_v50, %v2783_v7  ;;  %v2810_v22 = vmax.f32 %v2808_v40, %v2809_v16  ;;  %v2730_v24 = vmax.f32 %v5621_v30, %v2729_v48  ;;  %v3711_v25 = vsel %vm3710_vm7, %v5626_v39, %v3709_v20  ;;  %5009 = vmatmul.mubr.msk.bf16.gmra.mrb[128].mxu1 %vm1815_vm3, %v5485_v63 }
 0x1f1   : > { %v5685_v26 = vsel %vm3706_vm5, %v2751_v18, %v2744_v2  ;;  %v5687_v3 = vmax.f32 %v2768_v8, %v2769_v13  ;;  %v2776_v28 = vrot.slane %v2775_v19, 2  ;;  %v3713_v29 = vsel %vm3712_vm8, %v5646_v23, %v3711_v25 }
 0x1f2   : > { %v2790_v38 = vrot.slane %v2789_v15, 2  ;;  %v2811_v32 = vrot.slane %v2810_v22, 2  ;;  %v2737_v33 = vmax.f32 %v2735_v55, %v2736_v14  ;;  %v3715_v30 = vsel %vm3714_vm9, %v2723_v56, %v3713_v29 }
 0x1f3   : > { %v5692_v48 = vmax.f32 %v2775_v19, %v2776_v28  ;;  %v3717_v39 = vsel %vm3716_vm10, %v2730_v24, %v3715_v30  ;;  %v2107_v63 = vadd.f32 %v5648_v27, %v5587_v51  ;;  %v2118_v35 = vadd.f32 %v5652_v34, %v5587_v51 }
 0x1f4   : > { %v4910_v36 = vpop.f32.mrb[28].mxu1  ;;  %v2785_v37 = vrot.slane %v5675_v21, 1  ;;  %v5700_v31 = vmax.f32 %v2810_v22, %v2811_v32  ;;  %v3719_v23 = vsel %vm3718_vm11, %v2737_v33, %v3717_v39  ;;  %v2110_v42 = vadd.f32 %v5654_v41, %v5587_v51 }
 0x1f5   : > { %v5705_v43 = vpop.f32.mrb[29].mxu1  ;;  %v2771_v44 = vrot.slane %v5687_v3, 1  ;;  %3841 = vxpose.xlu0.b32.start [1/16] (narrow) %v3719_v23, 32  ;;  %v2569_v45 = vmax.f32 %v2107_v63, 0.0  ;;  %v2572_v27 = vmax.f32 %v2118_v35, 0.0  ;;  %v2131_v46 = vadd.f32 %v4906_v5, %v5587_v51 }
 0x1f6   : > { %v5709_v34 = vpop.f32.mrb[30].mxu1  ;;  %v5711_v49 = vmax.f32 %v2789_v15, %v2790_v38  ;;  %v2570_v50 = vmax.f32 %v2110_v42, 0.0  ;;  %v2123_v62 = vadd.f32 %v2122_v10, %v5587_v51  ;;  %v2134_v52 = vadd.f32 %v4907_v0, %v5587_v51 }
 0x1f7   : > { %v5715_v47 = vpop.f32.mrb[31].mxu1  ;;  %v2778_v41 = vrot.slane %v5692_v48, 1  ;;  %v2794_v53 = vsel %vm2681_vm4, %v2569_v45, -inf  ;;  %v2815_v54 = vsel %vm2681_vm4, %v2572_v27, -inf  ;;  %v2575_v55 = vmax.f32 %v2131_v46, 0.0 }
 0x1f8   : > { %v2813_v56 = vrot.slane %v5700_v31, 1  ;;  %v2795_v57 = vrot.slane %v2794_v53, 4  ;;  %v2816_v58 = vrot.slane %v2815_v54, 4  ;;  %v2801_v59 = vsel %vm2681_vm4, %v2570_v50, -inf }
 0x1f9   : > { %v2802_v60 = vrot.slane %v2801_v59, 4  ;;  %v2836_v61 = vsel %vm2681_vm4, %v2575_v55, -inf  ;;  %v2573_v4 = vmax.f32 %v2123_v62, 0.0  ;;  %v2576_v5 = vmax.f32 %v2134_v52, 0.0 }
 0x1fa   : > { %v2796_v7 = vmax.f32 %v2794_v53, %v2795_v57  ;;  %v2817_v8 = vmax.f32 %v2815_v54, %v2816_v58  ;;  %v2837_v9 = vrot.slane %v2836_v61, 4  ;;  %v2126_v10 = vadd.f32 %v2125_v17, %v5587_v51 }
 0x1fb   : > { %v2803_v2 = vmax.f32 %v2801_v59, %v2802_v60  ;;  %v2822_v11 = vsel %vm2681_vm4, %v2573_v4, -inf  ;;  %v2843_v12 = vsel %vm2681_vm4, %v2576_v5, -inf  ;;  %v2147_v40 = vadd.f32 %v4910_v36, %v5587_v51 }
 0x1fc   : > { %v4914_v0 = vpop.f32.mrb[32].mxu1  ;;  %v2797_v13 = vrot.slane %v2796_v7, 2  ;;  %v2818_v15 = vrot.slane %v2817_v8, 2  ;;  %v2838_v16 = vmax.f32 %v2836_v61, %v2837_v9  ;;  %v2823_v18 = vrot.slane %v2822_v11, 4 }
 0x1fd   : > { %v5727_v19 = vpop.f32.mrb[33].mxu1  ;;  %v2804_v14 = vrot.slane %v2803_v2, 2  ;;  %v2844_v20 = vrot.slane %v2843_v12, 4  ;;  %v2574_v22 = vmax.f32 %v2126_v10, 0.0  ;;  %v2579_v24 = vmax.f32 %v2147_v40, 0.0 }
 0x1fe   : > { %v5729_v25 = vpop.f32.mrb[34].mxu1  ;;  %v2798_v17 = vmax.f32 %v2796_v7, %v2797_v13  ;;  %v2819_v28 = vmax.f32 %v2817_v8, %v2818_v15  ;;  %v2839_v29 = vrot.slane %v2838_v16, 2  ;;  %v2824_v38 = vmax.f32 %v2822_v11, %v2823_v18 }
 0x1ff   : > { %v5731_v32 = vpop.f32.mrb[35].mxu1  ;;  %v2805_v33 = vmax.f32 %v2803_v2, %v2804_v14  ;;  %v2845_v30 = vmax.f32 %v2843_v12, %v2844_v20  ;;  %v2829_v39 = vsel %vm2681_vm4, %v2574_v22, -inf  ;;  %v2864_v63 = vsel %vm2681_vm4, %v2579_v24, -inf }
 0x200   : > { %v2799_v35 = vrot.slane %v2798_v17, 1  ;;  %v2820_v36 = vrot.slane %v2819_v28, 1  ;;  %v5735_v23 = vmax.f32 %v2838_v16, %v2839_v29  ;;  %v2825_v42 = vrot.slane %v2824_v38, 2 }
 0x201   : > { %v2772_v45 = vmax.f32 %v5687_v3, %v2771_v44  ;;  %v2806_v27 = vrot.slane %v2805_v33, 1  ;;  %v2830_v46 = vrot.slane %v2829_v39, 4  ;;  %v2865_v50 = vrot.slane %v2864_v63, 4 }
 0x202   : > { %v2779_v62 = vmax.f32 %v5692_v48, %v2778_v41  ;;  %v5740_v52 = vmax.f32 %v5700_v31, %v2813_v56  ;;  %v2800_v53 = vmax.f32 %v2798_v17, %v2799_v35  ;;  %v2846_v54 = vrot.slane %v2845_v30, 2 }
 0x203   : > { %v5742_v55 = vmax.f32 %v2819_v28, %v2820_v36  ;;  %v2807_v57 = vmax.f32 %v2805_v33, %v2806_v27  ;;  %v2831_v58 = vmax.f32 %v2829_v39, %v2830_v46  ;;  %v2866_v59 = vmax.f32 %v2864_v63, %v2865_v50 }
 0x204   : > { %v4918_v60 = vpop.f32.mrb[36].mxu1  ;;  %v2841_v61 = vrot.slane %v5735_v23, 1  ;;  %v5745_v4 = vmax.f32 %v2824_v38, %v2825_v42  ;;  %v2792_v3 = vrot.slane %v5711_v49, 1  ;;  %v3721_v48 = vsel %vm3708_vm6, %v5667_v1, %v5685_v26 }
 0x205   : > { %v5751_v31 = vpop.f32.mrb[37].mxu1  ;;  %v5754_v44 = vsel %vm3706_vm5, %v2807_v57, %v2800_v53  ;;  %v2832_v41 = vrot.slane %v2831_v58, 2  ;;  %v2867_v56 = vrot.slane %v2866_v59, 2  ;;  %v3722_v5 = vsel %vm3710_vm7, %v5670_v6, %v3721_v48 }
 0x206   : > { %v5758_v7 = vpop.f32.mrb[38].mxu1  ;;  %v2786_v8 = vmax.f32 %v5675_v21, %v2785_v37  ;;  %v2793_v9 = vmax.f32 %v5711_v49, %v2792_v3  ;;  %v3723_v1 = vsel %vm3712_vm8, %v2772_v45, %v3722_v5  ;;  %v2139_v26 = vadd.f32 %v5705_v43, %v5587_v51 }
 0x207   : > { %v5767_v10 = vpop.f32.mrb[39].mxu1  ;;  %v5769_v2 = vmax.f32 %v2831_v58, %v2832_v41  ;;  %v5771_v11 = vmax.f32 %v2866_v59, %v2867_v56  ;;  %v3724_v6 = vsel %vm3714_vm9, %v2779_v62, %v3723_v1  ;;  %v2150_v12 = vadd.f32 %v5709_v34, %v5587_v51 }
 0x208   : > { %v3725_v21 = vsel %vm3716_vm10, %v2786_v8, %v3724_v6  ;;  %v2577_v37 = vmax.f32 %v2139_v26, 0.0  ;;  %v2142_v49 = vadd.f32 %v5715_v47, %v5587_v51  ;;  %v2163_v40 = vadd.f32 %v4914_v0, %v5587_v51 }
 0x209   : > { %v2827_v43 = vrot.slane %v5745_v4, 1  ;;  %v5781_v13 = vmax.f32 %v2845_v30, %v2846_v54  ;;  %v3726_v15 = vsel %vm3718_vm11, %v2793_v9, %v3725_v21  ;;  %v2580_v16 = vmax.f32 %v2150_v12, 0.0 }
 0x20a   : > { %3842 = vxpose.xlu0.b32.cont [2/16] (narrow) %v3726_v15, 32  ;;  %v2850_v18 = vsel %vm2681_vm4, %v2577_v37, -inf  ;;  %v2578_v14 = vmax.f32 %v2142_v49, 0.0  ;;  %v2583_v34 = vmax.f32 %v2163_v40, 0.0  ;;  %v2155_v20 = vadd.f32 %v5727_v19, %v5587_v51 }
 0x20b   : > { %v2834_v22 = vrot.slane %v5769_v2, 1  ;;  %v2869_v47 = vrot.slane %v5771_v11, 1  ;;  %v2851_v0 = vrot.slane %v2850_v18, 4  ;;  %v2871_v24 = vsel %vm2681_vm4, %v2580_v16, -inf }
 0x20c   : > { %v5790_v17 = vpop.f32.mrb[40].mxu1  ;;  %v2872_v28 = vrot.slane %v2871_v24, 4  ;;  %v2857_v29 = vsel %vm2681_vm4, %v2578_v14, -inf  ;;  %v2892_v38 = vsel %vm2681_vm4, %v2583_v34, -inf  ;;  %v2581_v33 = vmax.f32 %v2155_v20, 0.0 }
 0x20d   : > { %v5794_v30 = vpop.f32.mrb[41].mxu1  ;;  %v2852_v39 = vmax.f32 %v2850_v18, %v2851_v0  ;;  %v2858_v63 = vrot.slane %v2857_v29, 4  ;;  %v2893_v19 = vrot.slane %v2892_v38, 4  ;;  %v2166_v35 = vadd.f32 %v5729_v25, %v5587_v51 }
 0x20e   : > { %v5798_v36 = vpop.f32.mrb[42].mxu1  ;;  %v2873_v42 = vmax.f32 %v2871_v24, %v2872_v28  ;;  %v2878_v45 = vsel %vm2681_vm4, %v2581_v33, -inf  ;;  %v2158_v27 = vadd.f32 %v5731_v32, %v5587_v51  ;;  %v2179_v46 = vadd.f32 %v4918_v60, %v5587_v51 }
 0x20f   : > { %v5804_v50 = vpop.f32.mrb[43].mxu1  ;;  %v2853_v62 = vrot.slane %v2852_v39, 2  ;;  %v2859_v53 = vmax.f32 %v2857_v29, %v2858_v63  ;;  %v2894_v54 = vmax.f32 %v2892_v38, %v2893_v19  ;;  %v2879_v57 = vrot.slane %v2878_v45, 4 }
 0x210   : > { %v2874_v58 = vrot.slane %v2873_v42, 2  ;;  %v2584_v59 = vmax.f32 %v2166_v35, 0.0  ;;  %v2582_v3 = vmax.f32 %v2158_v27, 0.0  ;;  %v2587_v25 = vmax.f32 %v2179_v46, 0.0 }
 0x211   : > { %v2854_v48 = vmax.f32 %v2852_v39, %v2853_v62  ;;  %v2860_v41 = vrot.slane %v2859_v53, 2  ;;  %v2895_v56 = vrot.slane %v2894_v54, 2  ;;  %v2880_v5 = vmax.f32 %v2878_v45, %v2879_v57 }
 0x212   : > { %v2875_v8 = vmax.f32 %v2873_v42, %v2874_v58  ;;  %v2899_v9 = vsel %vm2681_vm4, %v2584_v59, -inf  ;;  %v2885_v32 = vsel %vm2681_vm4, %v2582_v3, -inf  ;;  %v2920_v60 = vsel %vm2681_vm4, %v2587_v25, -inf }
 0x213   : > { %v2855_v1 = vrot.slane %v2854_v48, 1  ;;  %v2861_v26 = vmax.f32 %v2859_v53, %v2860_v41  ;;  %v5809_v6 = vmax.f32 %v2894_v54, %v2895_v56  ;;  %v2881_v12 = vrot.slane %v2880_v5, 2 }
 0x214   : > { %v5811_v21 = vpop.f32.mrb[44].mxu1  ;;  %v2828_v37 = vmax.f32 %v5745_v4, %v2827_v43  ;;  %v2900_v49 = vrot.slane %v2899_v9, 4  ;;  %v2886_v40 = vrot.slane %v2885_v32, 4  ;;  %v2921_v15 = vrot.slane %v2920_v60, 4 }
 0x215   : > { %v5814_v16 = vpop.f32.mrb[45].mxu1  ;;  %v2835_v18 = vmax.f32 %v5769_v2, %v2834_v22  ;;  %v5818_v14 = vmax.f32 %v5771_v11, %v2869_v47  ;;  %v2876_v34 = vrot.slane %v2875_v8, 1  ;;  %v2862_v20 = vrot.slane %v2861_v26, 1 }
 0x216   : > { %v5820_v0 = vpop.f32.mrb[46].mxu1  ;;  %v2856_v24 = vmax.f32 %v2854_v48, %v2855_v1  ;;  %v2901_v28 = vmax.f32 %v2899_v9, %v2900_v49  ;;  %v2887_v29 = vmax.f32 %v2885_v32, %v2886_v40  ;;  %v2922_v38 = vmax.f32 %v2920_v60, %v2921_v15 }
 0x217   : > { %v5822_v33 = vpop.f32.mrb[47].mxu1  ;;  %v2863_v4 = vmax.f32 %v2861_v26, %v2862_v20  ;;  %v2897_v43 = vrot.slane %v5809_v6, 1  ;;  %v5825_v39 = vmax.f32 %v2880_v5, %v2881_v12  ;;  %v2848_v2 = vrot.slane %v5781_v13, 1 }
 0x218   : > { %v2902_v22 = vrot.slane %v2901_v28, 2  ;;  %v2888_v11 = vrot.slane %v2887_v29, 2  ;;  %v2923_v47 = vrot.slane %v2922_v38, 2  ;;  %v3728_v63 = vsel %vm3708_vm6, %v5740_v52, %v5754_v44 }
 0x219   : > { %v5831_v19 = vmax.f32 %v2875_v8, %v2876_v34  ;;  %v5834_v35 = vsel %vm3706_vm5, %v2863_v4, %v2856_v24  ;;  %v2842_v42 = vmax.f32 %v5735_v23, %v2841_v61  ;;  %v3729_v45 = vsel %vm3710_vm7, %v5742_v55, %v3728_v63 }
 0x21a   : > { %v5841_v27 = vmax.f32 %v2887_v29, %v2888_v11  ;;  %v5843_v46 = vmax.f32 %v2922_v38, %v2923_v47  ;;  %v2849_v62 = vmax.f32 %v5781_v13, %v2848_v2  ;;  %v3730_v52 = vsel %vm3712_vm8, %v2828_v37, %v3729_v45 }
 0x21b   : > { %v3731_v44 = vsel %vm3714_vm9, %v2835_v18, %v3730_v52  ;;  %v2171_v53 = vadd.f32 %v5751_v31, %v5587_v51  ;;  %v2182_v54 = vadd.f32 %v5758_v7, %v5587_v51  ;;  %v2174_v23 = vadd.f32 %v5767_v10, %v5587_v51 }
 0x21c   : > { %v5854_v55 = vpop.f32.mrb[48].mxu1  ;;  %v2883_v61 = vrot.slane %v5825_v39, 1  ;;  %v5857_v57 = vmax.f32 %v2901_v28, %v2902_v22  ;;  %v3732_v13 = vsel %vm3716_vm10, %v2842_v42, %v3731_v44  ;;  %v2195_v58 = vadd.f32 %v5790_v17, %v5587_v51 }
 0x21d   : > { %v5862_v59 = vpop.f32.mrb[49].mxu1  ;;  %v3733_v31 = vsel %vm3718_vm11, %v2849_v62, %v3732_v13  ;;  %v2585_v3 = vmax.f32 %v2171_v53, 0.0  ;;  %v2588_v7 = vmax.f32 %v2182_v54, 0.0  ;;  %v2586_v25 = vmax.f32 %v2174_v23, 0.0 }
 0x21e   : > { %v5865_v48 = vpop.f32.mrb[50].mxu1  ;;  %v2890_v10 = vrot.slane %v5841_v27, 1  ;;  %v2925_v41 = vrot.slane %v5843_v46, 1  ;;  %3843 = vxpose.xlu0.b32.cont [3/16] (narrow) %v3733_v31, 32  ;;  %v2591_v56 = vmax.f32 %v2195_v58, 0.0  ;;  %v2187_v5 = vadd.f32 %v5794_v30, %v5587_v51 }
 0x21f   : > { %v5871_v8 = vpop.f32.mrb[51].mxu1  ;;  %v2906_v17 = vsel %vm2681_vm4, %v2585_v3, -inf  ;;  %v2927_v9 = vsel %vm2681_vm4, %v2588_v7, -inf  ;;  %v2913_v32 = vsel %vm2681_vm4, %v2586_v25, -inf  ;;  %v2198_v60 = vadd.f32 %v5798_v36, %v5587_v51 }
 0x220   : > { %v2907_v1 = vrot.slane %v2906_v17, 4  ;;  %v2928_v26 = vrot.slane %v2927_v9, 4  ;;  %v2914_v12 = vrot.slane %v2913_v32, 4  ;;  %v2948_v37 = vsel %vm2681_vm4, %v2591_v56, -inf }
 0x221   : > { %v2949_v49 = vrot.slane %v2948_v37, 4  ;;  %v2589_v40 = vmax.f32 %v2187_v5, 0.0  ;;  %v2592_v15 = vmax.f32 %v2198_v60, 0.0  ;;  %v2190_v30 = vadd.f32 %v5804_v50, %v5587_v51 }
 0x222   : > { %v2908_v18 = vmax.f32 %v2906_v17, %v2907_v1  ;;  %v2929_v34 = vmax.f32 %v2927_v9, %v2928_v26  ;;  %v2915_v20 = vmax.f32 %v2913_v32, %v2914_v12  ;;  %v2211_v24 = vadd.f32 %v5811_v21, %v5587_v51 }
 0x223   : > { %v2950_v28 = vmax.f32 %v2948_v37, %v2949_v49  ;;  %v2934_v36 = vsel %vm2681_vm4, %v2589_v40, -inf  ;;  %v2955_v29 = vsel %vm2681_vm4, %v2592_v15, -inf  ;;  %v2590_v38 = vmax.f32 %v2190_v30, 0.0 }
 0x224   : > { %v5885_v4 = vpop.f32.mrb[52].mxu1  ;;  %v2909_v2 = vrot.slane %v2908_v18, 2  ;;  %v2930_v22 = vrot.slane %v2929_v34, 2  ;;  %v2916_v11 = vrot.slane %v2915_v20, 2  ;;  %v2935_v47 = vrot.slane %v2934_v36, 4 }
 0x225   : > { %v5887_v63 = vpop.f32.mrb[53].mxu1  ;;  %v2951_v50 = vrot.slane %v2950_v28, 2  ;;  %v2956_v42 = vrot.slane %v2955_v29, 4  ;;  %v2941_v45 = vsel %vm2681_vm4, %v2590_v38, -inf  ;;  %v2595_v62 = vmax.f32 %v2211_v24, 0.0 }
 0x226   : > { %v5890_v21 = vpop.f32.mrb[54].mxu1  ;;  %v2910_v52 = vmax.f32 %v2908_v18, %v2909_v2  ;;  %v2931_v44 = vmax.f32 %v2929_v34, %v2930_v22  ;;  %v2917_v53 = vmax.f32 %v2915_v20, %v2916_v11  ;;  %v2936_v54 = vmax.f32 %v2934_v36, %v2935_v47 }
 0x227   : > { %v5892_v23 = vpop.f32.mrb[55].mxu1  ;;  %v5894_v13 = vmax.f32 %v2950_v28, %v2951_v50  ;;  %v2957_v58 = vmax.f32 %v2955_v29, %v2956_v42  ;;  %v2942_v31 = vrot.slane %v2941_v45, 4  ;;  %v2976_v3 = vsel %vm2681_vm4, %v2595_v62, -inf }
 0x228   : > { %v2911_v7 = vrot.slane %v2910_v52, 1  ;;  %v2932_v25 = vrot.slane %v2931_v44, 1  ;;  %v2918_v56 = vrot.slane %v2917_v53, 1  ;;  %v2937_v5 = vrot.slane %v2936_v54, 2 }
 0x229   : > { %v2884_v17 = vmax.f32 %v5825_v39, %v2883_v61  ;;  %v2891_v9 = vmax.f32 %v5841_v27, %v2890_v10  ;;  %v2943_v32 = vmax.f32 %v2941_v45, %v2942_v31  ;;  %v2977_v60 = vrot.slane %v2976_v3, 4 }
 0x22a   : > { %v5900_v1 = vmax.f32 %v5843_v46, %v2925_v41  ;;  %v2912_v26 = vmax.f32 %v2910_v52, %v2911_v7  ;;  %v2919_v12 = vmax.f32 %v2917_v53, %v2918_v56  ;;  %v2958_v37 = vrot.slane %v2957_v58, 2 }
 0x22b   : > { %v5902_v49 = vmax.f32 %v2931_v44, %v2932_v25  ;;  %v2953_v40 = vrot.slane %v5894_v13, 1  ;;  %v2944_v15 = vrot.slane %v2943_v32, 2  ;;  %v2978_v30 = vmax.f32 %v2976_v3, %v2977_v60 }
 0x22c   : > { %v5905_v18 = vpop.f32.mrb[56].mxu1  ;;  %v5908_v39 = vsel %vm3706_vm5, %v2919_v12, %v2912_v26  ;;  %v5910_v27 = vmax.f32 %v2936_v54, %v2937_v5  ;;  %v2904_v61 = vrot.slane %v5857_v57, 1  ;;  %v3735_v46 = vsel %vm3708_vm6, %v5818_v14, %v5834_v35 }
 0x22d   : > { %v5916_v10 = vpop.f32.mrb[57].mxu1  ;;  %v5918_v41 = vmax.f32 %v2943_v32, %v2944_v15  ;;  %v2979_v34 = vrot.slane %v2978_v30, 2  ;;  %v3736_v20 = vsel %vm3710_vm7, %v5831_v19, %v3735_v46  ;;  %v2203_v24 = vadd.f32 %v5814_v16, %v5587_v51 }
 0x22e   : > { %v5924_v28 = vpop.f32.mrb[58].mxu1  ;;  %v5926_v36 = vmax.f32 %v2957_v58, %v2958_v37  ;;  %v2898_v29 = vmax.f32 %v5809_v6, %v2897_v43  ;;  %v3737_v14 = vsel %vm3712_vm8, %v2884_v17, %v3736_v20  ;;  %v2214_v35 = vadd.f32 %v5820_v0, %v5587_v51 }
 0x22f   : > { %v5934_v38 = vpop.f32.mrb[59].mxu1  ;;  %v5936_v2 = vmax.f32 %v2978_v30, %v2979_v34  ;;  %v2905_v19 = vmax.f32 %v5857_v57, %v2904_v61  ;;  %v3738_v16 = vsel %vm3714_vm9, %v2891_v9, %v3737_v14  ;;  %v2593_v22 = vmax.f32 %v2203_v24, 0.0 }
 0x230   : > { %v3739_v11 = vsel %vm3716_vm10, %v2898_v29, %v3738_v16  ;;  %v2596_v47 = vmax.f32 %v2214_v35, 0.0  ;;  %v2206_v6 = vadd.f32 %v5822_v33, %v5587_v51  ;;  %v2227_v43 = vadd.f32 %v5854_v55, %v5587_v51 }
 0x231   : > { %v2939_v0 = vrot.slane %v5910_v27, 1  ;;  %v2946_v50 = vrot.slane %v5918_v41, 1  ;;  %v3740_v42 = vsel %vm3718_vm11, %v2905_v19, %v3739_v11  ;;  %v2962_v57 = vsel %vm2681_vm4, %v2593_v22, -inf }
 0x232   : > { %3844 = vxpose.xlu0.b32.cont [4/16] (narrow) %v3740_v42, 32  ;;  %v2963_v45 = vrot.slane %v2962_v57, 4  ;;  %v2983_v62 = vsel %vm2681_vm4, %v2596_v47, -inf  ;;  %v2594_v52 = vmax.f32 %v2206_v6, 0.0  ;;  %v2599_v44 = vmax.f32 %v2227_v43, 0.0 }
 0x233   : > { %v2981_v53 = vrot.slane %v5936_v2, 1  ;;  %v2984_v33 = vrot.slane %v2983_v62, 4  ;;  %v2219_v55 = vadd.f32 %v5862_v59, %v5587_v51  ;;  %v2230_v54 = vadd.f32 %v5865_v48, %v5587_v51 }
 0x234   : > { %v5955_v58 = vpop.f32.mrb[60].mxu1  ;;  %v2964_v31 = vmax.f32 %v2962_v57, %v2963_v45  ;;  %v2969_v3 = vsel %vm2681_vm4, %v2594_v52, -inf  ;;  %v3004_v7 = vsel %vm2681_vm4, %v2599_v44, -inf  ;;  %v2222_v25 = vadd.f32 %v5871_v8, %v5587_v51 }
 0x235   : > { %v5961_v56 = vpop.f32.mrb[61].mxu1  ;;  %v2985_v5 = vmax.f32 %v2983_v62, %v2984_v33  ;;  %v2970_v17 = vrot.slane %v2969_v3, 4  ;;  %v3005_v9 = vrot.slane %v3004_v7, 4  ;;  %v2597_v32 = vmax.f32 %v2219_v55, 0.0 }
 0x236   : > { %v5963_v59 = vpop.f32.mrb[62].mxu1  ;;  %v2965_v60 = vrot.slane %v2964_v31, 2  ;;  %v2600_v48 = vmax.f32 %v2230_v54, 0.0  ;;  %v2598_v26 = vmax.f32 %v2222_v25, 0.0  ;;  %v2243_v12 = vadd.f32 %v5885_v4, %v5587_v51 }
 0x237   : > { %v5967_v37 = vpop.f32.mrb[63].mxu1  ;;  %v2986_v15 = vrot.slane %v2985_v5, 2  ;;  %v2971_v30 = vmax.f32 %v2969_v3, %v2970_v17  ;;  %v3006_v61 = vmax.f32 %v3004_v7, %v3005_v9  ;;  %v2990_v8 = vsel %vm2681_vm4, %v2597_v32, -inf }
 0x238   : > { %v2966_v46 = vmax.f32 %v2964_v31, %v2965_v60  ;;  %v2991_v34 = vrot.slane %v2990_v8, 4  ;;  %v3011_v20 = vsel %vm2681_vm4, %v2600_v48, -inf  ;;  %v2997_v24 = vsel %vm2681_vm4, %v2598_v26, -inf }
 0x239   : > { %v2987_v29 = vmax.f32 %v2985_v5, %v2986_v15  ;;  %v2972_v14 = vrot.slane %v2971_v30, 2  ;;  %v3007_v35 = vrot.slane %v3006_v61, 2  ;;  %v3012_v19 = vrot.slane %v3011_v20, 4 }
 0x23a   : > { %v2967_v16 = vrot.slane %v2966_v46, 1  ;;  %v2992_v22 = vmax.f32 %v2990_v8, %v2991_v34  ;;  %v2998_v4 = vrot.slane %v2997_v24, 4  ;;  %v2603_v11 = vmax.f32 %v2243_v12, 0.0 }
 0x23b   : > { %v2988_v47 = vrot.slane %v2987_v29, 1  ;;  %v2973_v6 = vmax.f32 %v2971_v30, %v2972_v14  ;;  %v5972_v43 = vmax.f32 %v3006_v61, %v3007_v35  ;;  %v3013_v42 = vmax.f32 %v3011_v20, %v3012_v19 }
 0x23c   : > { %v5974_v57 = vpop.f32.mrb[64].mxu1  ;;  %v2940_v45 = vmax.f32 %v5910_v27, %v2939_v0  ;;  %v2993_v62 = vrot.slane %v2992_v22, 2  ;;  %v2999_v52 = vmax.f32 %v2997_v24, %v2998_v4  ;;  %v3032_v44 = vsel %vm2681_vm4, %v2603_v11, -inf }
 0x23d   : > { %v5978_v33 = vpop.f32.mrb[65].mxu1  ;;  %v2947_v55 = vmax.f32 %v5918_v41, %v2946_v50  ;;  %v5982_v54 = vmax.f32 %v5936_v2, %v2981_v53  ;;  %v2974_v31 = vrot.slane %v2973_v6, 1  ;;  %v3014_v3 = vrot.slane %v3013_v42, 2 }
 0x23e   : > { %v5984_v7 = vpop.f32.mrb[66].mxu1  ;;  %v2968_v25 = vmax.f32 %v2966_v46, %v2967_v16  ;;  %v5986_v5 = vmax.f32 %v2987_v29, %v2988_v47  ;;  %v3000_v17 = vrot.slane %v2999_v52, 2  ;;  %v3033_v27 = vrot.slane %v3032_v44, 4 }
 0x23f   : > { %v5988_v0 = vpop.f32.mrb[67].mxu1  ;;  %v2975_v9 = vmax.f32 %v2973_v6, %v2974_v31  ;;  %v3009_v32 = vrot.slane %v5972_v43, 1  ;;  %v2960_v60 = vrot.slane %v5926_v36, 1  ;;  %v3742_v41 = vsel %vm3708_vm6, %v5900_v1, %v5908_v39 }
 0x240   : > { %v5995_v2 = vmax.f32 %v2992_v22, %v2993_v62  ;;  %v3034_v50 = vmax.f32 %v3032_v44, %v3033_v27  ;;  %v2954_v53 = vmax.f32 %v5894_v13, %v2953_v40  ;;  %v3743_v48 = vsel %vm3710_vm7, %v5902_v49, %v3742_v41 }
 0x241   : > { %v6003_v26 = vsel %vm3706_vm5, %v2975_v9, %v2968_v25  ;;  %v6005_v12 = vmax.f32 %v3013_v42, %v3014_v3  ;;  %v3744_v15 = vsel %vm3712_vm8, %v2940_v45, %v3743_v48  ;;  %v2235_v1 = vadd.f32 %v5887_v63, %v5587_v51 }
 0x242   : > { %v6010_v39 = vmax.f32 %v2999_v52, %v3000_v17  ;;  %v3035_v30 = vrot.slane %v3034_v50, 2  ;;  %v2961_v61 = vmax.f32 %v5926_v36, %v2960_v60  ;;  %v3745_v13 = vsel %vm3714_vm9, %v2947_v55, %v3744_v15 }
 0x243   : > { %v3746_v40 = vsel %vm3716_vm10, %v2954_v53, %v3745_v13  ;;  %v2601_v49 = vmax.f32 %v2235_v1, 0.0  ;;  %v2246_v8 = vadd.f32 %v5890_v21, %v5587_v51  ;;  %v2238_v46 = vadd.f32 %v5892_v23, %v5587_v51 }
 0x244   : > { %v6019_v34 = vpop.f32.mrb[68].mxu1  ;;  %v2995_v63 = vrot.slane %v5995_v2, 1  ;;  %v6022_v20 = vmax.f32 %v3034_v50, %v3035_v30  ;;  %v3747_v24 = vsel %vm3718_vm11, %v2961_v61, %v3746_v40  ;;  %v2259_v36 = vadd.f32 %v5905_v18, %v5587_v51 }
 0x245   : > { %v6027_v29 = vpop.f32.mrb[69].mxu1  ;;  %3845 = vxpose.xlu0.b32.cont [5/16] (narrow) %v3747_v24, 32  ;;  %v3018_v14 = vsel %vm2681_vm4, %v2601_v49, -inf  ;;  %v2604_v21 = vmax.f32 %v2246_v8, 0.0  ;;  %v2602_v35 = vmax.f32 %v2238_v46, 0.0  ;;  %v2251_v23 = vadd.f32 %v5916_v10, %v5587_v51 }
 0x246   : > { %v6032_v19 = vpop.f32.mrb[70].mxu1  ;;  %v3002_v16 = vrot.slane %v6010_v39, 1  ;;  %v3019_v22 = vrot.slane %v3018_v14, 4  ;;  %v2607_v4 = vmax.f32 %v2259_v36, 0.0  ;;  %v2262_v11 = vadd.f32 %v5924_v28, %v5587_v51 }
 0x247   : > { %v6037_v18 = vpop.f32.mrb[71].mxu1  ;;  %v3039_v47 = vsel %vm2681_vm4, %v2604_v21, -inf  ;;  %v3025_v6 = vsel %vm2681_vm4, %v2602_v35, -inf  ;;  %v2605_v42 = vmax.f32 %v2251_v23, 0.0  ;;  %v2254_v45 = vadd.f32 %v5934_v38, %v5587_v51 }
 0x248   : > { %v3037_v10 = vrot.slane %v6022_v20, 1  ;;  %v3020_v62 = vmax.f32 %v3018_v14, %v3019_v22  ;;  %v3040_v52 = vrot.slane %v3039_v47, 4  ;;  %v3026_v44 = vrot.slane %v3025_v6, 4 }
 0x249   : > { %v3060_v55 = vsel %vm2681_vm4, %v2607_v4, -inf  ;;  %v3046_v31 = vsel %vm2681_vm4, %v2605_v42, -inf  ;;  %v2608_v28 = vmax.f32 %v2262_v11, 0.0  ;;  %v2606_v3 = vmax.f32 %v2254_v45, 0.0 }
 0x24a   : > { %v3021_v25 = vrot.slane %v3020_v62, 2  ;;  %v3041_v17 = vmax.f32 %v3039_v47, %v3040_v52  ;;  %v3027_v27 = vmax.f32 %v3025_v6, %v3026_v44  ;;  %v3061_v9 = vrot.slane %v3060_v55, 4 }
 0x24b   : > { %v3047_v60 = vrot.slane %v3046_v31, 4  ;;  %v3067_v41 = vsel %vm2681_vm4, %v2608_v28, -inf  ;;  %v3053_v38 = vsel %vm2681_vm4, %v2606_v3, -inf  ;;  %v2275_v50 = vadd.f32 %v5955_v58, %v5587_v51 }
 0x24c   : > { %v6050_v53 = vpop.f32.mrb[72].mxu1  ;;  %v3022_v48 = vmax.f32 %v3020_v62, %v3021_v25  ;;  %v3042_v15 = vrot.slane %v3041_v17, 2  ;;  %v3028_v1 = vrot.slane %v3027_v27, 2  ;;  %v3062_v30 = vmax.f32 %v3060_v55, %v3061_v9 }
 0x24d   : > { %v6052_v61 = vpop.f32.mrb[73].mxu1  ;;  %v3048_v13 = vmax.f32 %v3046_v31, %v3047_v60  ;;  %v3068_v40 = vrot.slane %v3067_v41, 4  ;;  %v3054_v49 = vrot.slane %v3053_v38, 4  ;;  %v2611_v8 = vmax.f32 %v2275_v50, 0.0 }
 0x24e   : > { %v6054_v46 = vpop.f32.mrb[74].mxu1  ;;  %v3023_v24 = vrot.slane %v3022_v48, 1  ;;  %v3043_v36 = vmax.f32 %v3041_v17, %v3042_v15  ;;  %v3029_v14 = vmax.f32 %v3027_v27, %v3028_v1  ;;  %v3063_v21 = vrot.slane %v3062_v30, 2 }
 0x24f   : > { %v6056_v35 = vpop.f32.mrb[75].mxu1  ;;  %v3049_v58 = vrot.slane %v3048_v13, 2  ;;  %v3069_v23 = vmax.f32 %v3067_v41, %v3068_v40  ;;  %v3055_v22 = vmax.f32 %v3053_v38, %v3054_v49  ;;  %v3088_v4 = vsel %vm2681_vm4, %v2611_v8, -inf }
 0x250   : > { %v2996_v11 = vmax.f32 %v5995_v2, %v2995_v63  ;;  %v3044_v47 = vrot.slane %v3043_v36, 1  ;;  %v3030_v6 = vrot.slane %v3029_v14, 1  ;;  %v6060_v42 = vmax.f32 %v3062_v30, %v3063_v21 }
 0x251   : > { %v3003_v45 = vmax.f32 %v6010_v39, %v3002_v16  ;;  %v6063_v62 = vmax.f32 %v3048_v13, %v3049_v58  ;;  %v3056_v52 = vrot.slane %v3055_v22, 2  ;;  %v3089_v44 = vrot.slane %v3088_v4, 4 }
 0x252   : > { %v6066_v55 = vmax.f32 %v6022_v20, %v3037_v10  ;;  %v3024_v31 = vmax.f32 %v3022_v48, %v3023_v24  ;;  %v3031_v28 = vmax.f32 %v3029_v14, %v3030_v6  ;;  %v3070_v3 = vrot.slane %v3069_v23, 2 }
 0x253   : > { %v6068_v25 = vmax.f32 %v3043_v36, %v3044_v47  ;;  %v3065_v2 = vrot.slane %v6060_v42, 1  ;;  %v3090_v63 = vmax.f32 %v3088_v4, %v3089_v44  ;;  %v3010_v17 = vmax.f32 %v5972_v43, %v3009_v32 }
 0x254   : > { %v6074_v39 = vpop.f32.mrb[76].mxu1  ;;  %v6077_v16 = vsel %vm3706_vm5, %v3031_v28, %v3024_v31  ;;  %v3016_v20 = vrot.slane %v6005_v12, 1  ;;  %v3749_v10 = vsel %vm3708_vm6, %v5982_v54, %v6003_v26  ;;  %v2267_v27 = vadd.f32 %v5961_v56, %v5587_v51 }
 0x255   : > { %v6085_v9 = vpop.f32.mrb[77].mxu1  ;;  %v3051_v60 = vrot.slane %v6063_v62, 1  ;;  %v6088_v41 = vmax.f32 %v3055_v22, %v3056_v52  ;;  %v3091_v43 = vrot.slane %v3090_v63, 2  ;;  %v3750_v32 = vsel %vm3710_vm7, %v5986_v5, %v3749_v10 }
 0x256   : > { %v6092_v38 = vpop.f32.mrb[78].mxu1  ;;  %v6094_v50 = vmax.f32 %v3069_v23, %v3070_v3  ;;  %v3751_v48 = vsel %vm3712_vm8, %v2996_v11, %v3750_v32  ;;  %v2609_v54 = vmax.f32 %v2267_v27, 0.0  ;;  %v2278_v56 = vadd.f32 %v5963_v59, %v5587_v51 }
 0x257   : > { %v6099_v26 = vpop.f32.mrb[79].mxu1  ;;  %v6101_v15 = vmax.f32 %v3090_v63, %v3091_v43  ;;  %v3017_v1 = vmax.f32 %v6005_v12, %v3016_v20  ;;  %v3752_v30 = vsel %vm3714_vm9, %v3003_v45, %v3751_v48  ;;  %v2270_v5 = vadd.f32 %v5967_v37, %v5587_v51 }
 0x258   : > { %v3753_v13 = vsel %vm3716_vm10, %v3010_v17, %v3752_v30  ;;  %v3074_v40 = vsel %vm2681_vm4, %v2609_v54, -inf  ;;  %v2612_v49 = vmax.f32 %v2278_v56, 0.0  ;;  %v2291_v8 = vadd.f32 %v5974_v57, %v5587_v51 }
 0x259   : > { %v3058_v59 = vrot.slane %v6088_v41, 1  ;;  %v3754_v24 = vsel %vm3718_vm11, %v3017_v1, %v3753_v13  ;;  %v3075_v36 = vrot.slane %v3074_v40, 4  ;;  %v2610_v14 = vmax.f32 %v2270_v5, 0.0 }
 0x25a   : > { %3846 = vxpose.xlu0.b32.cont [6/16] (narrow) %v3754_v24, 32  ;;  %v3095_v12 = vsel %vm2681_vm4, %v2612_v49, -inf  ;;  %v2615_v21 = vmax.f32 %v2291_v8, 0.0  ;;  %v2283_v37 = vadd.f32 %v5978_v33, %v5587_v51  ;;  %v2294_v58 = vadd.f32 %v5984_v7, %v5587_v51 }
 0x25b   : > { %v3093_v23 = vrot.slane %v6101_v15, 1  ;;  %v3076_v22 = vmax.f32 %v3074_v40, %v3075_v36  ;;  %v3096_v57 = vrot.slane %v3095_v12, 4  ;;  %v3081_v4 = vsel %vm2681_vm4, %v2610_v14, -inf }
 0x25c   : > { %v6120_v11 = vpop.f32.mrb[80].mxu1  ;;  %v3082_v47 = vrot.slane %v3081_v4, 4  ;;  %v3116_v6 = vsel %vm2681_vm4, %v2615_v21, -inf  ;;  %v2613_v45 = vmax.f32 %v2283_v37, 0.0  ;;  %v2616_v52 = vmax.f32 %v2294_v58, 0.0 }
 0x25d   : > { %v6123_v44 = vpop.f32.mrb[81].mxu1  ;;  %v3077_v31 = vrot.slane %v3076_v22, 2  ;;  %v3097_v33 = vmax.f32 %v3095_v12, %v3096_v57  ;;  %v3117_v28 = vrot.slane %v3116_v6, 4  ;;  %v2286_v7 = vadd.f32 %v5988_v0, %v5587_v51 }
 0x25e   : > { %v6127_v3 = vpop.f32.mrb[82].mxu1  ;;  %v3083_v63 = vmax.f32 %v3081_v4, %v3082_v47  ;;  %v3102_v17 = vsel %vm2681_vm4, %v2613_v45, -inf  ;;  %v3123_v20 = vsel %vm2681_vm4, %v2616_v52, -inf  ;;  %v2307_v10 = vadd.f32 %v6019_v34, %v5587_v51 }
 0x25f   : > { %v6133_v27 = vpop.f32.mrb[83].mxu1  ;;  %v3078_v43 = vmax.f32 %v3076_v22, %v3077_v31  ;;  %v3098_v32 = vrot.slane %v3097_v33, 2  ;;  %v3118_v48 = vmax.f32 %v3116_v6, %v3117_v28  ;;  %v3103_v54 = vrot.slane %v3102_v17, 4 }
 0x260   : > { %v3084_v56 = vrot.slane %v3083_v63, 2  ;;  %v3124_v1 = vrot.slane %v3123_v20, 4  ;;  %v2614_v30 = vmax.f32 %v2286_v7, 0.0  ;;  %v2619_v0 = vmax.f32 %v2307_v10, 0.0 }
 0x261   : > { %v3079_v5 = vrot.slane %v3078_v43, 1  ;;  %v3099_v13 = vmax.f32 %v3097_v33, %v3098_v32  ;;  %v3119_v40 = vrot.slane %v3118_v48, 2  ;;  %v3104_v49 = vmax.f32 %v3102_v17, %v3103_v54 }
 0x262   : > { %v3085_v8 = vmax.f32 %v3083_v63, %v3084_v56  ;;  %v3125_v24 = vmax.f32 %v3123_v20, %v3124_v1  ;;  %v3109_v36 = vsel %vm2681_vm4, %v2614_v30, -inf  ;;  %v3144_v34 = vsel %vm2681_vm4, %v2619_v0, -inf }
 0x263   : > { %v3052_v14 = vmax.f32 %v6063_v62, %v3051_v60  ;;  %v3100_v12 = vrot.slane %v3099_v13, 1  ;;  %v6140_v21 = vmax.f32 %v3118_v48, %v3119_v40  ;;  %v3105_v37 = vrot.slane %v3104_v49, 2 }
 0x264   : > { %v6142_v58 = vpop.f32.mrb[84].mxu1  ;;  %v3059_v22 = vmax.f32 %v6088_v41, %v3058_v59  ;;  %v3086_v57 = vrot.slane %v3085_v8, 1  ;;  %v3110_v4 = vrot.slane %v3109_v36, 4  ;;  %v3145_v47 = vrot.slane %v3144_v34, 4 }
 0x265   : > { %v6145_v6 = vpop.f32.mrb[85].mxu1  ;;  %v6148_v45 = vmax.f32 %v6101_v15, %v3093_v23  ;;  %v3080_v52 = vmax.f32 %v3078_v43, %v3079_v5  ;;  %v6150_v31 = vmax.f32 %v3099_v13, %v3100_v12  ;;  %v3126_v62 = vrot.slane %v3125_v24, 2 }
 0x266   : > { %v6152_v60 = vpop.f32.mrb[86].mxu1  ;;  %v3087_v33 = vmax.f32 %v3085_v8, %v3086_v57  ;;  %v3121_v28 = vrot.slane %v6140_v21, 1  ;;  %v3111_v7 = vmax.f32 %v3109_v36, %v3110_v4  ;;  %v3146_v63 = vmax.f32 %v3144_v34, %v3145_v47 }
 0x267   : > { %v6155_v41 = vpop.f32.mrb[87].mxu1  ;;  %v6157_v59 = vmax.f32 %v3104_v49, %v3105_v37  ;;  %v3072_v17 = vrot.slane %v6094_v50, 1  ;;  %v3756_v15 = vsel %vm3708_vm6, %v6066_v55, %v6077_v16  ;;  %v2299_v23 = vadd.f32 %v6027_v29, %v5587_v51 }
 0x268   : > { %v6166_v20 = vsel %vm3706_vm5, %v3087_v33, %v3080_v52  ;;  %v3112_v10 = vrot.slane %v3111_v7, 2  ;;  %v3147_v43 = vrot.slane %v3146_v63, 2  ;;  %v3757_v32 = vsel %vm3710_vm7, %v6068_v25, %v3756_v15 }
 0x269   : > { %v3066_v48 = vmax.f32 %v6060_v42, %v3065_v2  ;;  %v3073_v54 = vmax.f32 %v6094_v50, %v3072_v17  ;;  %v3758_v56 = vsel %vm3712_vm8, %v3052_v14, %v3757_v32  ;;  %v2617_v55 = vmax.f32 %v2299_v23, 0.0 }
 0x26a   : > { %v6175_v16 = vmax.f32 %v3111_v7, %v3112_v10  ;;  %v6177_v29 = vmax.f32 %v3146_v63, %v3147_v43  ;;  %v3759_v1 = vsel %vm3714_vm9, %v3059_v22, %v3758_v56  ;;  %v2310_v30 = vadd.f32 %v6032_v19, %v5587_v51 }
 0x26b   : > { %v3760_v25 = vsel %vm3716_vm10, %v3066_v48, %v3759_v1  ;;  %v3130_v0 = vsel %vm2681_vm4, %v2617_v55, -inf  ;;  %v2302_v42 = vadd.f32 %v6037_v18, %v5587_v51  ;;  %v2323_v2 = vadd.f32 %v6050_v53, %v5587_v51 }
 0x26c   : > { %v6188_v50 = vpop.f32.mrb[88].mxu1  ;;  %v3107_v5 = vrot.slane %v6157_v59, 1  ;;  %v6191_v13 = vmax.f32 %v3125_v24, %v3126_v62  ;;  %v3761_v40 = vsel %vm3718_vm11, %v3073_v54, %v3760_v25  ;;  %v3131_v49 = vrot.slane %v3130_v0, 4 }
 0x26d   : > { %v6194_v19 = vpop.f32.mrb[89].mxu1  ;;  %3847 = vxpose.xlu0.b32.cont [7/16] (narrow) %v3761_v40, 32  ;;  %v2620_v8 = vmax.f32 %v2310_v30, 0.0  ;;  %v2618_v36 = vmax.f32 %v2302_v42, 0.0  ;;  %v2623_v34 = vmax.f32 %v2323_v2, 0.0  ;;  %v2315_v18 = vadd.f32 %v6052_v61, %v5587_v51 }
 0x26e   : > { %v6198_v14 = vpop.f32.mrb[90].mxu1  ;;  %v3114_v53 = vrot.slane %v6175_v16, 1  ;;  %v3149_v12 = vrot.slane %v6177_v29, 1  ;;  %v3132_v24 = vmax.f32 %v3130_v0, %v3131_v49  ;;  %v2326_v37 = vadd.f32 %v6054_v46, %v5587_v51 }
 0x26f   : > { %v6204_v22 = vpop.f32.mrb[91].mxu1  ;;  %v3151_v57 = vsel %vm2681_vm4, %v2620_v8, -inf  ;;  %v3137_v4 = vsel %vm2681_vm4, %v2618_v36, -inf  ;;  %v3172_v47 = vsel %vm2681_vm4, %v2623_v34, -inf  ;;  %v2621_v52 = vmax.f32 %v2315_v18, 0.0 }
 0x270   : > { %v3133_v61 = vrot.slane %v3132_v24, 2  ;;  %v3152_v62 = vrot.slane %v3151_v57, 4  ;;  %v3138_v33 = vrot.slane %v3137_v4, 4  ;;  %v3173_v7 = vrot.slane %v3172_v47, 4 }
 0x271   : > { %v3158_v63 = vsel %vm2681_vm4, %v2621_v52, -inf  ;;  %v2624_v17 = vmax.f32 %v2326_v37, 0.0  ;;  %v2318_v15 = vadd.f32 %v6056_v35, %v5587_v51  ;;  %v2339_v46 = vadd.f32 %v6074_v39, %v5587_v51 }
 0x272   : > { %v3134_v23 = vmax.f32 %v3132_v24, %v3133_v61  ;;  %v3153_v10 = vmax.f32 %v3151_v57, %v3152_v62  ;;  %v3139_v43 = vmax.f32 %v3137_v4, %v3138_v33  ;;  %v3174_v32 = vmax.f32 %v3172_v47, %v3173_v7 }
 0x273   : > { %v3159_v48 = vrot.slane %v3158_v63, 4  ;;  %v3179_v54 = vsel %vm2681_vm4, %v2624_v17, -inf  ;;  %v2622_v56 = vmax.f32 %v2318_v15, 0.0  ;;  %v2627_v55 = vmax.f32 %v2339_v46, 0.0 }
 0x274   : > { %v6215_v1 = vpop.f32.mrb[92].mxu1  ;;  %v3135_v30 = vrot.slane %v3134_v23, 1  ;;  %v3154_v25 = vrot.slane %v3153_v10, 2  ;;  %v3140_v0 = vrot.slane %v3139_v43, 2  ;;  %v3175_v42 = vrot.slane %v3174_v32, 2 }
 0x275   : > { %v6217_v2 = vpop.f32.mrb[93].mxu1  ;;  %v3160_v35 = vmax.f32 %v3158_v63, %v3159_v48  ;;  %v3180_v40 = vrot.slane %v3179_v54, 4  ;;  %v3165_v39 = vsel %vm2681_vm4, %v2622_v56, -inf  ;;  %v3200_v49 = vsel %vm2681_vm4, %v2627_v55, -inf }
 0x276   : > { %v6221_v8 = vpop.f32.mrb[94].mxu1  ;;  %v3108_v36 = vmax.f32 %v6157_v59, %v3107_v5  ;;  %v3155_v34 = vmax.f32 %v3153_v10, %v3154_v25  ;;  %v3141_v18 = vmax.f32 %v3139_v43, %v3140_v0  ;;  %v6224_v24 = vmax.f32 %v3174_v32, %v3175_v42 }
 0x277   : > { %v6226_v37 = vpop.f32.mrb[95].mxu1  ;;  %v3161_v57 = vrot.slane %v3160_v35, 2  ;;  %v3181_v4 = vmax.f32 %v3179_v54, %v3180_v40  ;;  %v3166_v47 = vrot.slane %v3165_v39, 4  ;;  %v3201_v52 = vrot.slane %v3200_v49, 4 }
 0x278   : > { %v3115_v61 = vmax.f32 %v6175_v16, %v3114_v53  ;;  %v6230_v62 = vmax.f32 %v6177_v29, %v3149_v12  ;;  %v3156_v33 = vrot.slane %v3155_v34, 1  ;;  %v3142_v7 = vrot.slane %v3141_v18, 1 }
 0x279   : > { %v3136_v63 = vmax.f32 %v3134_v23, %v3135_v30  ;;  %v3177_v59 = vrot.slane %v6224_v24, 1  ;;  %v3167_v5 = vmax.f32 %v3165_v39, %v3166_v47  ;;  %v3202_v17 = vmax.f32 %v3200_v49, %v3201_v52 }
 0x27a   : > { %v3143_v15 = vmax.f32 %v3141_v18, %v3142_v7  ;;  %v3122_v46 = vmax.f32 %v6140_v21, %v3121_v28  ;;  %v3128_v10 = vrot.slane %v6191_v13, 1  ;;  %v3763_v16 = vsel %vm3708_vm6, %v6148_v45, %v6166_v20 }
 0x27b   : > { %v6240_v29 = vmax.f32 %v3160_v35, %v3161_v57  ;;  %v3182_v53 = vrot.slane %v3181_v4, 2  ;;  %v3168_v12 = vrot.slane %v3167_v5, 2  ;;  %v3203_v23 = vrot.slane %v3202_v17, 2 }
 0x27c   : > { %v6242_v43 = vpop.f32.mrb[96].mxu1  ;;  %v6244_v32 = vmax.f32 %v3155_v34, %v3156_v33  ;;  %v6247_v48 = vsel %vm3706_vm5, %v3143_v15, %v3136_v63  ;;  %v3764_v21 = vsel %vm3710_vm7, %v6150_v31, %v3763_v16  ;;  %v2331_v28 = vadd.f32 %v6085_v9, %v5587_v51 }
 0x27d   : > { %v6253_v54 = vpop.f32.mrb[97].mxu1  ;;  %v6255_v45 = vmax.f32 %v3167_v5, %v3168_v12  ;;  %v6257_v20 = vmax.f32 %v3202_v17, %v3203_v23  ;;  %v3129_v56 = vmax.f32 %v6191_v13, %v3128_v10  ;;  %v3765_v55 = vsel %vm3712_vm8, %v3108_v36, %v3764_v21 }
 0x27e   : > { %v6261_v30 = vpop.f32.mrb[98].mxu1  ;;  %v3766_v25 = vsel %vm3714_vm9, %v3115_v61, %v3765_v55  ;;  %v2625_v0 = vmax.f32 %v2331_v28, 0.0  ;;  %v2342_v31 = vadd.f32 %v6092_v38, %v5587_v51  ;;  %v2334_v9 = vadd.f32 %v6099_v26, %v5587_v51 }
 0x27f   : > { %v6268_v42 = vpop.f32.mrb[99].mxu1  ;;  %v3163_v35 = vrot.slane %v6240_v29, 1  ;;  %v6271_v40 = vmax.f32 %v3181_v4, %v3182_v53  ;;  %v3767_v13 = vsel %vm3716_vm10, %v3122_v46, %v3766_v25  ;;  %v2355_v39 = vadd.f32 %v6120_v11, %v5587_v51 }
 0x280   : > { %v3768_v49 = vsel %vm3718_vm11, %v3129_v56, %v3767_v13  ;;  %v3186_v36 = vsel %vm2681_vm4, %v2625_v0, -inf  ;;  %v2628_v34 = vmax.f32 %v2342_v31, 0.0  ;;  %v2626_v38 = vmax.f32 %v2334_v9, 0.0 }
 0x281   : > { %v3170_v18 = vrot.slane %v6255_v45, 1  ;;  %v3205_v26 = vrot.slane %v6257_v20, 1  ;;  %3848 = vxpose.xlu0.b32.cont [8/16] (narrow) %v3768_v49, 32  ;;  %v3187_v57 = vrot.slane %v3186_v36, 4  ;;  %v2631_v47 = vmax.f32 %v2355_v39, 0.0 }
 0x282   : > { %v3207_v4 = vsel %vm2681_vm4, %v2628_v34, -inf  ;;  %v3193_v52 = vsel %vm2681_vm4, %v2626_v38, -inf  ;;  %v2347_v11 = vadd.f32 %v6123_v44, %v5587_v51  ;;  %v2358_v61 = vadd.f32 %v6127_v3, %v5587_v51 }
 0x283   : > { %v3188_v33 = vmax.f32 %v3186_v36, %v3187_v57  ;;  %v3208_v7 = vrot.slane %v3207_v4, 4  ;;  %v3194_v63 = vrot.slane %v3193_v52, 4  ;;  %v3228_v5 = vsel %vm2681_vm4, %v2631_v47, -inf }
 0x284   : > { %v6287_v17 = vpop.f32.mrb[100].mxu1  ;;  %v3229_v15 = vrot.slane %v3228_v5, 4  ;;  %v2629_v46 = vmax.f32 %v2347_v11, 0.0  ;;  %v2632_v10 = vmax.f32 %v2358_v61, 0.0  ;;  %v2350_v16 = vadd.f32 %v6133_v27, %v5587_v51 }
 0x285   : > { %v6291_v53 = vpop.f32.mrb[101].mxu1  ;;  %v3189_v12 = vrot.slane %v3188_v33, 2  ;;  %v3209_v44 = vmax.f32 %v3207_v4, %v3208_v7  ;;  %v3195_v23 = vmax.f32 %v3193_v52, %v3194_v63  ;;  %v2371_v3 = vadd.f32 %v6142_v58, %v5587_v51 }
 0x286   : > { %v6295_v21 = vpop.f32.mrb[102].mxu1  ;;  %v3230_v28 = vmax.f32 %v3228_v5, %v3229_v15  ;;  %v3214_v56 = vsel %vm2681_vm4, %v2629_v46, -inf  ;;  %v3235_v55 = vsel %vm2681_vm4, %v2632_v10, -inf  ;;  %v2630_v25 = vmax.f32 %v2350_v16, 0.0 }
 0x287   : > { %v6299_v0 = vpop.f32.mrb[103].mxu1  ;;  %v3190_v31 = vmax.f32 %v3188_v33, %v3189_v12  ;;  %v3210_v27 = vrot.slane %v3209_v44, 2  ;;  %v3196_v9 = vrot.slane %v3195_v23, 2  ;;  %v3215_v13 = vrot.slane %v3214_v56, 4 }
 0x288   : > { %v3231_v39 = vrot.slane %v3230_v28, 2  ;;  %v3236_v49 = vrot.slane %v3235_v55, 4  ;;  %v3221_v36 = vsel %vm2681_vm4, %v2630_v25, -inf  ;;  %v2635_v34 = vmax.f32 %v2371_v3, 0.0 }
 0x289   : > { %v3191_v58 = vrot.slane %v3190_v31, 1  ;;  %v3211_v38 = vmax.f32 %v3209_v44, %v3210_v27  ;;  %v3197_v57 = vmax.f32 %v3195_v23, %v3196_v9  ;;  %v3216_v47 = vmax.f32 %v3214_v56, %v3215_v13 }
 0x28a   : > { %v6302_v4 = vmax.f32 %v3230_v28, %v3231_v39  ;;  %v3237_v52 = vmax.f32 %v3235_v55, %v3236_v49  ;;  %v3222_v11 = vrot.slane %v3221_v36, 4  ;;  %v3256_v61 = vsel %vm2681_vm4, %v2635_v34, -inf }
 0x28b   : > { %v3164_v33 = vmax.f32 %v6240_v29, %v3163_v35  ;;  %v3212_v7 = vrot.slane %v3211_v38, 1  ;;  %v3198_v63 = vrot.slane %v3197_v57, 1  ;;  %v3217_v5 = vrot.slane %v3216_v47, 2 }
 0x28c   : > { %v6306_v15 = vpop.f32.mrb[104].mxu1  ;;  %v3171_v46 = vmax.f32 %v6255_v45, %v3170_v18  ;;  %v6310_v10 = vmax.f32 %v6257_v20, %v3205_v26  ;;  %v3223_v16 = vmax.f32 %v3221_v36, %v3222_v11  ;;  %v3257_v12 = vrot.slane %v3256_v61, 4 }
 0x28d   : > { %v6312_v44 = vpop.f32.mrb[105].mxu1  ;;  %v3192_v23 = vmax.f32 %v3190_v31, %v3191_v58  ;;  %v3199_v3 = vmax.f32 %v3197_v57, %v3198_v63  ;;  %v3233_v28 = vrot.slane %v6302_v4, 1  ;;  %v3238_v56 = vrot.slane %v3237_v52, 2 }
 0x28e   : > { %v6315_v29 = vpop.f32.mrb[106].mxu1  ;;  %v6317_v35 = vmax.f32 %v3211_v38, %v3212_v7  ;;  %v3224_v55 = vrot.slane %v3223_v16, 2  ;;  %v3258_v25 = vmax.f32 %v3256_v61, %v3257_v12  ;;  %v3184_v45 = vrot.slane %v6271_v40, 1 }
 0x28f   : > { %v6320_v20 = vpop.f32.mrb[107].mxu1  ;;  %v6323_v18 = vsel %vm3706_vm5, %v3199_v3, %v3192_v23  ;;  %v6325_v26 = vmax.f32 %v3216_v47, %v3217_v5  ;;  %v3770_v31 = vsel %vm3708_vm6, %v6230_v62, %v6247_v48  ;;  %v2363_v27 = vadd.f32 %v6145_v6, %v5587_v51 }
 0x290   : > { %v6332_v9 = vmax.f32 %v3223_v16, %v3224_v55  ;;  %v3259_v13 = vrot.slane %v3258_v25, 2  ;;  %v3178_v39 = vmax.f32 %v6224_v24, %v3177_v59  ;;  %v3771_v49 = vsel %vm3710_vm7, %v6244_v32, %v3770_v31 }
 0x291   : > { %v6339_v36 = vmax.f32 %v3237_v52, %v3238_v56  ;;  %v3772_v34 = vsel %vm3712_vm8, %v3164_v33, %v3771_v49  ;;  %v2633_v58 = vmax.f32 %v2363_v27, 0.0  ;;  %v2374_v62 = vadd.f32 %v6152_v60, %v5587_v51 }
 0x292   : > { %v6345_v6 = vmax.f32 %v3258_v25, %v3259_v13  ;;  %v3185_v48 = vmax.f32 %v6271_v40, %v3184_v45  ;;  %v3773_v38 = vsel %vm3714_vm9, %v3171_v46, %v3772_v34  ;;  %v2366_v24 = vadd.f32 %v6155_v41, %v5587_v51  ;;  %v6360_v40 = vld [vmem:[%s388_s26] sm:$0xf] }
 0x293   : > { %v3774_v59 = vsel %vm3716_vm10, %v3178_v39, %v3773_v38  ;;  %v3242_v32 = vsel %vm2681_vm4, %v2633_v58, -inf  ;;  %v2636_v57 = vmax.f32 %v2374_v62, 0.0  ;;  %v2387_v60 = vadd.f32 %v6188_v50, %v5587_v51  ;;  %5056 = vmatprep.subr.msk.bf16.mxu0 %vm1059_vm0, %v6360_v40 }
 0x294   : > { %v6358_v47 = vpop.f32.mrb[108].mxu1  ;;  %v3219_v52 = vrot.slane %v6325_v26, 1  ;;  %v3226_v41 = vrot.slane %v6332_v9, 1  ;;  %v3775_v11 = vsel %vm3718_vm11, %v3185_v48, %v3774_v59  ;;  %v3243_v61 = vrot.slane %v3242_v32, 4 }
 0x295   : > { %v6365_v33 = vpop.f32.mrb[109].mxu1  ;;  %3849 = vxpose.xlu0.b32.cont [9/16] (narrow) %v3775_v11, 32  ;;  %v3263_v7 = vsel %vm2681_vm4, %v2636_v57, -inf  ;;  %v2634_v50 = vmax.f32 %v2366_v24, 0.0  ;;  %v2639_v63 = vmax.f32 %v2387_v60, 0.0  ;;  %v2379_v5 = vadd.f32 %v6194_v19, %v5587_v51 }
 0x296   : > { %v6372_v46 = vpop.f32.mrb[110].mxu1  ;;  %v3261_v16 = vrot.slane %v6345_v6, 1  ;;  %v3244_v12 = vmax.f32 %v3242_v32, %v3243_v61  ;;  %v3264_v23 = vrot.slane %v3263_v7, 4  ;;  %v2390_v3 = vadd.f32 %v6198_v14, %v5587_v51 }
 0x297   : > { %v6377_v56 = vpop.f32.mrb[111].mxu1  ;;  %v3249_v55 = vsel %vm2681_vm4, %v2634_v50, -inf  ;;  %v3284_v25 = vsel %vm2681_vm4, %v2639_v63, -inf  ;;  %v2637_v45 = vmax.f32 %v2379_v5, 0.0  ;;  %v2382_v31 = vadd.f32 %v6204_v22, %v5587_v51 }
 0x298   : > { %v3245_v19 = vrot.slane %v3244_v12, 2  ;;  %v3265_v27 = vmax.f32 %v3263_v7, %v3264_v23  ;;  %v3250_v13 = vrot.slane %v3249_v55, 4  ;;  %v3285_v39 = vrot.slane %v3284_v25, 4 }
 0x299   : > { %v3270_v49 = vsel %vm2681_vm4, %v2637_v45, -inf  ;;  %v2640_v34 = vmax.f32 %v2390_v3, 0.0  ;;  %v2638_v58 = vmax.f32 %v2382_v31, 0.0  ;;  %v2403_v14 = vadd.f32 %v6215_v1, %v5587_v51 }
 0x29a   : > { %v3246_v62 = vmax.f32 %v3244_v12, %v3245_v19  ;;  %v3266_v48 = vrot.slane %v3265_v27, 2  ;;  %v3251_v38 = vmax.f32 %v3249_v55, %v3250_v13  ;;  %v3286_v24 = vmax.f32 %v3284_v25, %v3285_v39 }
 0x29b   : > { %v3271_v59 = vrot.slane %v3270_v49, 4  ;;  %v3291_v32 = vsel %vm2681_vm4, %v2640_v34, -inf  ;;  %v3277_v22 = vsel %vm2681_vm4, %v2638_v58, -inf  ;;  %v2643_v57 = vmax.f32 %v2403_v14, 0.0 }
 0x29c   : > { %v6388_v60 = vpop.f32.mrb[112].mxu1  ;;  %v3247_v11 = vrot.slane %v3246_v62, 1  ;;  %v3267_v61 = vmax.f32 %v3265_v27, %v3266_v48  ;;  %v3252_v7 = vrot.slane %v3251_v38, 2  ;;  %v3287_v50 = vrot.slane %v3286_v24, 2 }
 0x29d   : > { %v6390_v63 = vpop.f32.mrb[113].mxu1  ;;  %v3272_v5 = vmax.f32 %v3270_v49, %v3271_v59  ;;  %v3292_v1 = vrot.slane %v3291_v32, 4  ;;  %v3278_v12 = vrot.slane %v3277_v22, 4  ;;  %v3312_v23 = vsel %vm2681_vm4, %v2643_v57, -inf }
 0x29e   : > { %v6393_v3 = vpop.f32.mrb[114].mxu1  ;;  %v3220_v55 = vmax.f32 %v6325_v26, %v3219_v52  ;;  %v3268_v25 = vrot.slane %v3267_v61, 1  ;;  %v3253_v45 = vmax.f32 %v3251_v38, %v3252_v7  ;;  %v6396_v31 = vmax.f32 %v3286_v24, %v3287_v50 }
 0x29f   : > { %v6398_v19 = vpop.f32.mrb[115].mxu1  ;;  %v3273_v27 = vrot.slane %v3272_v5, 2  ;;  %v3293_v13 = vmax.f32 %v3291_v32, %v3292_v1  ;;  %v3279_v39 = vmax.f32 %v3277_v22, %v3278_v12  ;;  %v3313_v34 = vrot.slane %v3312_v23, 4 }
 0x2a0   : > { %v3227_v49 = vmax.f32 %v6332_v9, %v3226_v41  ;;  %v6402_v58 = vmax.f32 %v6345_v6, %v3261_v16  ;;  %v3248_v14 = vmax.f32 %v3246_v62, %v3247_v11  ;;  %v3254_v48 = vrot.slane %v3253_v45, 1 }
 0x2a1   : > { %v3274_v59 = vmax.f32 %v3272_v5, %v3273_v27  ;;  %v3294_v57 = vrot.slane %v3293_v13, 2  ;;  %v3280_v26 = vrot.slane %v3279_v39, 2  ;;  %v3314_v52 = vmax.f32 %v3312_v23, %v3313_v34 }
 0x2a2   : > { %v3255_v38 = vmax.f32 %v3253_v45, %v3254_v48  ;;  %v3240_v24 = vrot.slane %v6339_v36, 1  ;;  %v3777_v32 = vsel %vm3708_vm6, %v6310_v10, %v6323_v18  ;;  %v2395_v22 = vadd.f32 %v6217_v2, %v5587_v51 }
 0x2a3   : > { %v6410_v9 = vmax.f32 %v3267_v61, %v3268_v25  ;;  %v3289_v6 = vrot.slane %v6396_v31, 1  ;;  %v3275_v41 = vrot.slane %v3274_v59, 1  ;;  %v6413_v16 = vmax.f32 %v3279_v39, %v3280_v26 }
 0x2a4   : > { %v6416_v62 = vsel %vm3706_vm5, %v3255_v38, %v3248_v14  ;;  %v3234_v11 = vmax.f32 %v6302_v4, %v3233_v28  ;;  %v3778_v10 = vsel %vm3710_vm7, %v6317_v35, %v3777_v32  ;;  %v2641_v18 = vmax.f32 %v2395_v22, 0.0  ;;  %v6423_v7 = vpop.f32.mrb[116].mxu1 }
 0x2a5   : > { %v6425_v2 = vmax.f32 %v3293_v13, %v3294_v57  ;;  %v3315_v61 = vrot.slane %v3314_v52, 2  ;;  %v3241_v50 = vmax.f32 %v6339_v36, %v3240_v24  ;;  %v3779_v5 = vsel %vm3712_vm8, %v3220_v55, %v3778_v10  ;;  %v6429_v1 = vpop.f32.mrb[117].mxu1 }
 0x2a6   : > { %v3780_v12 = vsel %vm3714_vm9, %v3227_v49, %v3779_v5  ;;  %v3298_v23 = vsel %vm2681_vm4, %v2641_v18, -inf  ;;  %v2406_v4 = vadd.f32 %v6221_v8, %v5587_v51  ;;  %v2398_v28 = vadd.f32 %v6226_v37, %v5587_v51  ;;  %v6437_v35 = vpop.f32.mrb[118].mxu1 }
 0x2a7   : > { %v6439_v25 = vmax.f32 %v3274_v59, %v3275_v41  ;;  %v3282_v36 = vrot.slane %v6413_v16, 1  ;;  %v3781_v55 = vsel %vm3716_vm10, %v3234_v11, %v3780_v12  ;;  %v3299_v45 = vrot.slane %v3298_v23, 4  ;;  %v6443_v27 = vpop.f32.mrb[119].mxu1 }
 0x2a8   : > { %v3782_v13 = vsel %vm3718_vm11, %v3241_v50, %v3781_v55  ;;  %v2644_v39 = vmax.f32 %v2406_v4, 0.0  ;;  %v2642_v34 = vmax.f32 %v2398_v28, 0.0  ;;  %v2419_v8 = vadd.f32 %v6242_v43, %v5587_v51 }
 0x2a9   : > { %v3316_v49 = vmax.f32 %v3314_v52, %v3315_v61  ;;  %3850 = vxpose.xlu0.b32.cont [10/16] (narrow) %v3782_v13, 32  ;;  %v3300_v37 = vmax.f32 %v3298_v23, %v3299_v45  ;;  %v2411_v14 = vadd.f32 %v6253_v54, %v5587_v51  ;;  %v2422_v48 = vadd.f32 %v6261_v30, %v5587_v51 }
 0x2aa   : > { %v3319_v59 = vsel %vm2681_vm4, %v2644_v39, -inf  ;;  %v3305_v57 = vsel %vm2681_vm4, %v2642_v34, -inf  ;;  %v2647_v26 = vmax.f32 %v2419_v8, 0.0  ;;  %v2414_v38 = vadd.f32 %v6268_v42, %v5587_v51 }
 0x2ab   : > { %v3301_v24 = vrot.slane %v3300_v37, 2  ;;  %v3320_v32 = vrot.slane %v3319_v59, 4  ;;  %v3306_v43 = vrot.slane %v3305_v57, 4  ;;  %v2645_v52 = vmax.f32 %v2411_v14, 0.0 }
 0x2ac   : > { %v3340_v22 = vsel %vm2681_vm4, %v2647_v26, -inf  ;;  %v2648_v41 = vmax.f32 %v2422_v48, 0.0  ;;  %v2646_v11 = vmax.f32 %v2414_v38, 0.0  ;;  %v2435_v54 = vadd.f32 %v6287_v17, %v5587_v51 }
 0x2ad   : > { %v3302_v30 = vmax.f32 %v3300_v37, %v3301_v24  ;;  %v3321_v10 = vmax.f32 %v3319_v59, %v3320_v32  ;;  %v3307_v18 = vmax.f32 %v3305_v57, %v3306_v43  ;;  %v3341_v61 = vrot.slane %v3340_v22, 4 }
 0x2ae   : > { %v3326_v50 = vsel %vm2681_vm4, %v2645_v52, -inf  ;;  %v3347_v5 = vsel %vm2681_vm4, %v2648_v41, -inf  ;;  %v3333_v42 = vsel %vm2681_vm4, %v2646_v11, -inf  ;;  %v2651_v12 = vmax.f32 %v2435_v54, 0.0 }
 0x2af   : > { %v3317_v23 = vrot.slane %v3316_v49, 1  ;;  %v3322_v4 = vrot.slane %v3321_v10, 2  ;;  %v3308_v28 = vrot.slane %v3307_v18, 2  ;;  %v3342_v55 = vmax.f32 %v3340_v22, %v3341_v61 }
 0x2b0   : > { %v3327_v45 = vrot.slane %v3326_v50, 4  ;;  %v3348_v13 = vrot.slane %v3347_v5, 4  ;;  %v3334_v39 = vrot.slane %v3333_v42, 4  ;;  %v3368_v17 = vsel %vm2681_vm4, %v2651_v12, -inf }
 0x2b1   : > { %v3303_v34 = vrot.slane %v3302_v30, 1  ;;  %v3323_v8 = vmax.f32 %v3321_v10, %v3322_v4  ;;  %v3309_v37 = vmax.f32 %v3307_v18, %v3308_v28  ;;  %v3343_v14 = vrot.slane %v3342_v55, 2  ;;  %v6463_v48 = vpop.f32.mrb[120].mxu1 }
 0x2b2   : > { %v3328_v59 = vmax.f32 %v3326_v50, %v3327_v45  ;;  %v3349_v57 = vmax.f32 %v3347_v5, %v3348_v13  ;;  %v3335_v26 = vmax.f32 %v3333_v42, %v3334_v39  ;;  %v3369_v38 = vrot.slane %v3368_v17, 4  ;;  %v6465_v24 = vpop.f32.mrb[121].mxu1 }
 0x2b3   : > { %v3283_v32 = vmax.f32 %v6413_v16, %v3282_v36  ;;  %v3324_v43 = vrot.slane %v3323_v8, 1  ;;  %v3310_v52 = vrot.slane %v3309_v37, 1  ;;  %v6468_v22 = vmax.f32 %v3342_v55, %v3343_v14  ;;  %v6470_v41 = vpop.f32.mrb[122].mxu1 }
 0x2b4   : > { %v3329_v11 = vrot.slane %v3328_v59, 2  ;;  %v3350_v54 = vrot.slane %v3349_v57, 2  ;;  %v3336_v10 = vrot.slane %v3335_v26, 2  ;;  %v3370_v18 = vmax.f32 %v3368_v17, %v3369_v38  ;;  %v6472_v61 = vpop.f32.mrb[123].mxu1 }
 0x2b5   : > { %v6474_v50 = vmax.f32 %v3316_v49, %v3317_v23  ;;  %v3304_v5 = vmax.f32 %v3302_v30, %v3303_v34  ;;  %v3311_v42 = vmax.f32 %v3309_v37, %v3310_v52  ;;  %v3290_v16 = vmax.f32 %v6396_v31, %v3289_v6 }
 0x2b6   : > { %v6479_v36 = vmax.f32 %v3328_v59, %v3329_v11  ;;  %v6481_v12 = vmax.f32 %v3335_v26, %v3336_v10  ;;  %v3371_v4 = vrot.slane %v3370_v18, 2  ;;  %v3296_v28 = vrot.slane %v6425_v2, 1 }
 0x2b7   : > { %v6484_v55 = vmax.f32 %v3323_v8, %v3324_v43  ;;  %v6487_v45 = vsel %vm3706_vm5, %v3311_v42, %v3304_v5  ;;  %v3784_v49 = vsel %vm3708_vm6, %v6402_v58, %v6416_v62  ;;  %v2427_v30 = vadd.f32 %v6291_v53, %v5587_v51 }
 0x2b8   : > { %v3345_v31 = vrot.slane %v6468_v22, 1  ;;  %v6495_v6 = vmax.f32 %v3349_v57, %v3350_v54  ;;  %v6497_v23 = vmax.f32 %v3370_v18, %v3371_v4  ;;  %v3785_v13 = vsel %vm3710_vm7, %v6410_v9, %v3784_v49 }
 0x2b9   : > { %v3786_v39 = vsel %vm3712_vm8, %v6439_v25, %v3785_v13  ;;  %v2649_v17 = vmax.f32 %v2427_v30, 0.0  ;;  %v2438_v34 = vadd.f32 %v6295_v21, %v5587_v51  ;;  %v2430_v58 = vadd.f32 %v6299_v0, %v5587_v51 }
 0x2ba   : > { %v3331_v53 = vrot.slane %v6479_v36, 1  ;;  %v3338_v62 = vrot.slane %v6481_v12, 1  ;;  %v3297_v8 = vmax.f32 %v6425_v2, %v3296_v28  ;;  %v3787_v37 = vsel %vm3714_vm9, %v3283_v32, %v3786_v39 }
 0x2bb   : > { %v3788_v9 = vsel %vm3716_vm10, %v3290_v16, %v3787_v37  ;;  %v3354_v14 = vsel %vm2681_vm4, %v2649_v17, -inf  ;;  %v2652_v25 = vmax.f32 %v2438_v34, 0.0  ;;  %v2650_v59 = vmax.f32 %v2430_v58, 0.0  ;;  %v6513_v57 = vpop.f32.mrb[124].mxu1 }
 0x2bc   : > { %v3373_v21 = vrot.slane %v6497_v23, 1  ;;  %v3789_v0 = vsel %vm3718_vm11, %v3297_v8, %v3788_v9  ;;  %v3355_v26 = vrot.slane %v3354_v14, 4  ;;  %v2451_v38 = vadd.f32 %v6306_v15, %v5587_v51  ;;  %v6519_v43 = vpop.f32.mrb[125].mxu1 }
 0x2bd   : > { %3851 = vxpose.xlu0.b32.cont [11/16] (narrow) %v3789_v0, 32  ;;  %v3375_v2 = vsel %vm2681_vm4, %v2652_v25, -inf  ;;  %v3361_v32 = vsel %vm2681_vm4, %v2650_v59, -inf  ;;  %v2443_v52 = vadd.f32 %v6312_v44, %v5587_v51  ;;  %v2454_v11 = vadd.f32 %v6315_v29, %v5587_v51  ;;  %v6527_v54 = vpop.f32.mrb[126].mxu1 }
 0x2be   : > { %v3356_v10 = vmax.f32 %v3354_v14, %v3355_v26  ;;  %v3376_v18 = vrot.slane %v3375_v2, 4  ;;  %v3362_v5 = vrot.slane %v3361_v32, 4  ;;  %v2655_v42 = vmax.f32 %v2451_v38, 0.0  ;;  %v6529_v15 = vpop.f32.mrb[127].mxu1 }
 0x2bf   : > { %v2653_v16 = vmax.f32 %v2443_v52, 0.0  ;;  %v2656_v4 = vmax.f32 %v2454_v11, 0.0  ;;  %v2446_v28 = vadd.f32 %v6320_v20, %v5587_v51  ;;  %v2467_v49 = vadd.f32 %v6358_v47, %v5587_v51 }
 0x2c0   : > { %v3357_v44 = vrot.slane %v3356_v10, 2  ;;  %v3377_v30 = vmax.f32 %v3375_v2, %v3376_v18  ;;  %v3363_v13 = vmax.f32 %v3361_v32, %v3362_v5  ;;  %v3396_v29 = vsel %vm2681_vm4, %v2655_v42, -inf }
 0x2c1   : > { %v3397_v39 = vrot.slane %v3396_v29, 4  ;;  %v3382_v17 = vsel %vm2681_vm4, %v2653_v16, -inf  ;;  %v3403_v34 = vsel %vm2681_vm4, %v2656_v4, -inf  ;;  %v2654_v58 = vmax.f32 %v2446_v28, 0.0 }
 0x2c2   : > { %v3358_v8 = vmax.f32 %v3356_v10, %v3357_v44  ;;  %v3378_v37 = vrot.slane %v3377_v30, 2  ;;  %v3364_v9 = vrot.slane %v3363_v13, 2  ;;  %v3383_v14 = vrot.slane %v3382_v17, 4 }
 0x2c3   : > { %v3398_v25 = vmax.f32 %v3396_v29, %v3397_v39  ;;  %v3404_v20 = vrot.slane %v3403_v34, 4  ;;  %v3389_v59 = vsel %vm2681_vm4, %v2654_v58, -inf  ;;  %v2659_v47 = vmax.f32 %v2467_v49, 0.0  ;;  %v6539_v0 = vpop.f32.mrb[128].mxu1 }
 0x2c4   : > { %v3359_v26 = vrot.slane %v3358_v8, 1  ;;  %v3379_v38 = vmax.f32 %v3377_v30, %v3378_v37  ;;  %v3365_v2 = vmax.f32 %v3363_v13, %v3364_v9  ;;  %v3384_v32 = vmax.f32 %v3382_v17, %v3383_v14  ;;  %v6541_v52 = vpop.f32.mrb[129].mxu1 }
 0x2c5   : > { %v3399_v11 = vrot.slane %v3398_v25, 2  ;;  %v3405_v18 = vmax.f32 %v3403_v34, %v3404_v20  ;;  %v3390_v5 = vrot.slane %v3389_v59, 4  ;;  %v3424_v10 = vsel %vm2681_vm4, %v2659_v47, -inf  ;;  %v6544_v42 = vpop.f32.mrb[130].mxu1 }
 0x2c6   : > { %v3332_v16 = vmax.f32 %v6479_v36, %v3331_v53  ;;  %v3380_v4 = vrot.slane %v3379_v38, 1  ;;  %v3366_v28 = vrot.slane %v3365_v2, 1  ;;  %v3385_v49 = vrot.slane %v3384_v32, 2  ;;  %v6547_v44 = vpop.f32.mrb[131].mxu1 }
 0x2c7   : > { %v3339_v30 = vmax.f32 %v6481_v12, %v3338_v62  ;;  %v6551_v13 = vmax.f32 %v6497_v23, %v3373_v21  ;;  %v3391_v29 = vmax.f32 %v3389_v59, %v3390_v5  ;;  %v3425_v39 = vrot.slane %v3424_v10, 4 }
 0x2c8   : > { %v3360_v17 = vmax.f32 %v3358_v8, %v3359_v26  ;;  %v3367_v34 = vmax.f32 %v3365_v2, %v3366_v28  ;;  %v6553_v58 = vmax.f32 %v3398_v25, %v3399_v11  ;;  %v3406_v37 = vrot.slane %v3405_v18, 2 }
 0x2c9   : > { %v6555_v9 = vmax.f32 %v3379_v38, %v3380_v4  ;;  %v6557_v36 = vmax.f32 %v3384_v32, %v3385_v49  ;;  %v3392_v53 = vrot.slane %v3391_v29, 2  ;;  %v3426_v14 = vmax.f32 %v3424_v10, %v3425_v39 }
 0x2ca   : > { %v6560_v20 = vsel %vm3706_vm5, %v3367_v34, %v3360_v17  ;;  %v3346_v12 = vmax.f32 %v6468_v22, %v3345_v31  ;;  %v3352_v23 = vrot.slane %v6495_v6, 1  ;;  %v3791_v62 = vsel %vm3708_vm6, %v6474_v50, %v6487_v45 }
 0x2cb   : > { %v6569_v21 = vmax.f32 %v3391_v29, %v3392_v53  ;;  %v3427_v8 = vrot.slane %v3426_v14, 2  ;;  %v3792_v25 = vsel %vm3710_vm7, %v6484_v55, %v3791_v62  ;;  %v2459_v59 = vadd.f32 %v6365_v33, %v5587_v51 }
 0x2cc   : > { %v3401_v47 = vrot.slane %v6553_v58, 1  ;;  %v6576_v26 = vmax.f32 %v3405_v18, %v3406_v37  ;;  %v3793_v22 = vsel %vm3712_vm8, %v3332_v16, %v3792_v25  ;;  %v2470_v31 = vadd.f32 %v6372_v46, %v5587_v51 }
 0x2cd   : > { %v3428_v38 = vmax.f32 %v3426_v14, %v3427_v8  ;;  %v3353_v50 = vmax.f32 %v6495_v6, %v3352_v23  ;;  %v3794_v45 = vsel %vm3714_vm9, %v3339_v30, %v3793_v22  ;;  %v2657_v2 = vmax.f32 %v2459_v59, 0.0 }
 0x2ce   : > { %v3795_v55 = vsel %vm3716_vm10, %v3346_v12, %v3794_v45  ;;  %v2660_v32 = vmax.f32 %v2470_v31, 0.0  ;;  %v2462_v33 = vadd.f32 %v6377_v56, %v5587_v51  ;;  %v2483_v11 = vadd.f32 %v6388_v60, %v5587_v51 }
 0x2cf   : > { %v3387_v18 = vrot.slane %v6557_v36, 1  ;;  %v3394_v5 = vrot.slane %v6569_v21, 1  ;;  %v3796_v46 = vsel %vm3718_vm11, %v3353_v50, %v3795_v55  ;;  %v3410_v6 = vsel %vm2681_vm4, %v2657_v2, -inf }
 0x2d0   : > { %3852 = vxpose.xlu0.b32.cont [12/16] (narrow) %v3796_v46, 32  ;;  %v3411_v10 = vrot.slane %v3410_v6, 4  ;;  %v3431_v16 = vsel %vm2681_vm4, %v2660_v32, -inf  ;;  %v2658_v4 = vmax.f32 %v2462_v33, 0.0  ;;  %v2663_v28 = vmax.f32 %v2483_v11, 0.0 }
 0x2d1   : > { %v3429_v49 = vrot.slane %v3428_v38, 1  ;;  %v3432_v30 = vrot.slane %v3431_v16, 4  ;;  %v2475_v56 = vadd.f32 %v6390_v63, %v5587_v51  ;;  %v2486_v60 = vadd.f32 %v6393_v3, %v5587_v51 }
 0x2d2   : > { %v3412_v29 = vmax.f32 %v3410_v6, %v3411_v10  ;;  %v3417_v39 = vsel %vm2681_vm4, %v2658_v4, -inf  ;;  %v3452_v17 = vsel %vm2681_vm4, %v2663_v28, -inf  ;;  %v2478_v34 = vadd.f32 %v6398_v19, %v5587_v51 }
 0x2d3   : > { %v3433_v37 = vmax.f32 %v3431_v16, %v3432_v30  ;;  %v3418_v53 = vrot.slane %v3417_v39, 4  ;;  %v3453_v14 = vrot.slane %v3452_v17, 4  ;;  %v2661_v12 = vmax.f32 %v2475_v56, 0.0 }
 0x2d4   : > { %v3413_v23 = vrot.slane %v3412_v29, 2  ;;  %v2664_v62 = vmax.f32 %v2486_v60, 0.0  ;;  %v2662_v8 = vmax.f32 %v2478_v34, 0.0  ;;  %v2499_v63 = vadd.f32 %v6423_v7, %v5587_v51 }
 0x2d5   : > { %v3434_v25 = vrot.slane %v3433_v37, 2  ;;  %v3419_v3 = vmax.f32 %v3417_v39, %v3418_v53  ;;  %v3454_v59 = vmax.f32 %v3452_v17, %v3453_v14  ;;  %v3438_v22 = vsel %vm2681_vm4, %v2661_v12, -inf }
 0x2d6   : > { %v3414_v31 = vmax.f32 %v3412_v29, %v3413_v23  ;;  %v3439_v50 = vrot.slane %v3438_v22, 4  ;;  %v3459_v45 = vsel %vm2681_vm4, %v2664_v62, -inf  ;;  %v3445_v19 = vsel %vm2681_vm4, %v2662_v8, -inf }
 0x2d7   : > { %v3435_v2 = vmax.f32 %v3433_v37, %v3434_v25  ;;  %v3420_v55 = vrot.slane %v3419_v3, 2  ;;  %v3455_v32 = vrot.slane %v3454_v59, 2  ;;  %v3460_v33 = vrot.slane %v3459_v45, 4 }
 0x2d8   : > { %v3415_v11 = vrot.slane %v3414_v31, 1  ;;  %v3440_v46 = vmax.f32 %v3438_v22, %v3439_v50  ;;  %v3446_v6 = vrot.slane %v3445_v19, 4  ;;  %v2667_v10 = vmax.f32 %v2499_v63, 0.0 }
 0x2d9   : > { %v3436_v7 = vrot.slane %v3435_v2, 1  ;;  %v3421_v16 = vmax.f32 %v3419_v3, %v3420_v55  ;;  %v6606_v4 = vmax.f32 %v3454_v59, %v3455_v32  ;;  %v3461_v28 = vmax.f32 %v3459_v45, %v3460_v33 }
 0x2da   : > { %v3388_v30 = vmax.f32 %v6557_v36, %v3387_v18  ;;  %v3441_v56 = vrot.slane %v3440_v46, 2  ;;  %v3447_v60 = vmax.f32 %v3445_v19, %v3446_v6  ;;  %v3480_v29 = vsel %vm2681_vm4, %v2667_v10, -inf }
 0x2db   : > { %v3395_v39 = vmax.f32 %v6569_v21, %v3394_v5  ;;  %v6611_v17 = vmax.f32 %v3428_v38, %v3429_v49  ;;  %v3422_v34 = vrot.slane %v3421_v16, 1  ;;  %v3462_v37 = vrot.slane %v3461_v28, 2 }
 0x2dc   : > { %v3416_v53 = vmax.f32 %v3414_v31, %v3415_v11  ;;  %v6613_v14 = vmax.f32 %v3435_v2, %v3436_v7  ;;  %v3448_v12 = vrot.slane %v3447_v60, 2  ;;  %v3481_v23 = vrot.slane %v3480_v29, 4 }
 0x2dd   : > { %v3423_v62 = vmax.f32 %v3421_v16, %v3422_v34  ;;  %v3457_v8 = vrot.slane %v6606_v4, 1  ;;  %v3408_v36 = vrot.slane %v6576_v26, 1  ;;  %v3798_v18 = vsel %vm3708_vm6, %v6551_v13, %v6560_v20 }
 0x2de   : > { %v6620_v63 = vmax.f32 %v3440_v46, %v3441_v56  ;;  %v3482_v21 = vmax.f32 %v3480_v29, %v3481_v23  ;;  %v3402_v38 = vmax.f32 %v6553_v58, %v3401_v47  ;;  %v3799_v5 = vsel %vm3710_vm7, %v6555_v9, %v3798_v18 }
 0x2df   : > { %v6628_v49 = vsel %vm3706_vm5, %v3423_v62, %v3416_v53  ;;  %v6630_v25 = vmax.f32 %v3461_v28, %v3462_v37  ;;  %v3800_v3 = vsel %vm3712_vm8, %v3388_v30, %v3799_v5  ;;  %v2491_v13 = vadd.f32 %v6429_v1, %v5587_v51 }
 0x2e0   : > { %v3449_v20 = vmax.f32 %v3447_v60, %v3448_v12  ;;  %v3483_v59 = vrot.slane %v3482_v21, 2  ;;  %v3409_v22 = vmax.f32 %v6576_v26, %v3408_v36  ;;  %v3801_v31 = vsel %vm3714_vm9, %v3395_v39, %v3800_v3 }
 0x2e1   : > { %v3802_v58 = vsel %vm3716_vm10, %v3402_v38, %v3801_v31  ;;  %v2665_v47 = vmax.f32 %v2491_v13, 0.0  ;;  %v2502_v9 = vadd.f32 %v6437_v35, %v5587_v51  ;;  %v2494_v50 = vadd.f32 %v6443_v27, %v5587_v51 }
 0x2e2   : > { %v3443_v45 = vrot.slane %v6620_v63, 1  ;;  %v3484_v19 = vmax.f32 %v3482_v21, %v3483_v59  ;;  %v3803_v1 = vsel %vm3718_vm11, %v3409_v22, %v3802_v58  ;;  %v2515_v2 = vadd.f32 %v6463_v48, %v5587_v51 }
 0x2e3   : > { %3853 = vxpose.xlu0.b32.cont [13/16] (narrow) %v3803_v1, 32  ;;  %v3466_v26 = vsel %vm2681_vm4, %v2665_v47, -inf  ;;  %v2668_v55 = vmax.f32 %v2502_v9, 0.0  ;;  %v2666_v32 = vmax.f32 %v2494_v50, 0.0  ;;  %v2507_v33 = vadd.f32 %v6465_v24, %v5587_v51 }
 0x2e4   : > { %v3450_v35 = vrot.slane %v3449_v20, 1  ;;  %v3467_v11 = vrot.slane %v3466_v26, 4  ;;  %v2671_v46 = vmax.f32 %v2515_v2, 0.0  ;;  %v2518_v27 = vadd.f32 %v6470_v41, %v5587_v51 }
 0x2e5   : > { %v3487_v6 = vsel %vm2681_vm4, %v2668_v55, -inf  ;;  %v3473_v10 = vsel %vm2681_vm4, %v2666_v32, -inf  ;;  %v2669_v7 = vmax.f32 %v2507_v33, 0.0  ;;  %v2510_v48 = vadd.f32 %v6472_v61, %v5587_v51 }
 0x2e6   : > { %v3485_v16 = vrot.slane %v3484_v19, 1  ;;  %v3468_v28 = vmax.f32 %v3466_v26, %v3467_v11  ;;  %v3488_v30 = vrot.slane %v3487_v6, 4  ;;  %v3474_v56 = vrot.slane %v3473_v10, 4 }
 0x2e7   : > { %v3508_v24 = vsel %vm2681_vm4, %v2671_v46, -inf  ;;  %v3494_v60 = vsel %vm2681_vm4, %v2669_v7, -inf  ;;  %v2672_v29 = vmax.f32 %v2518_v27, 0.0  ;;  %v2670_v39 = vmax.f32 %v2510_v48, 0.0 }
 0x2e8   : > { %v3469_v34 = vrot.slane %v3468_v28, 2  ;;  %v3489_v41 = vmax.f32 %v3487_v6, %v3488_v30  ;;  %v3475_v37 = vmax.f32 %v3473_v10, %v3474_v56  ;;  %v3509_v53 = vrot.slane %v3508_v24, 4 }
 0x2e9   : > { %v3495_v12 = vrot.slane %v3494_v60, 4  ;;  %v3515_v23 = vsel %vm2681_vm4, %v2672_v29, -inf  ;;  %v3501_v62 = vsel %vm2681_vm4, %v2670_v39, -inf  ;;  %v2531_v61 = vadd.f32 %v6513_v57, %v5587_v51 }
 0x2ea   : > { %v3470_v36 = vmax.f32 %v3468_v28, %v3469_v34  ;;  %v3490_v18 = vrot.slane %v3489_v41, 2  ;;  %v3476_v21 = vrot.slane %v3475_v37, 2  ;;  %v3510_v38 = vmax.f32 %v3508_v24, %v3509_v53 }
 0x2eb   : > { %v3496_v5 = vmax.f32 %v3494_v60, %v3495_v12  ;;  %v3516_v3 = vrot.slane %v3515_v23, 4  ;;  %v3502_v13 = vrot.slane %v3501_v62, 4  ;;  %v2675_v59 = vmax.f32 %v2531_v61, 0.0 }
 0x2ec   : > { %v3471_v22 = vrot.slane %v3470_v36, 1  ;;  %v3491_v31 = vmax.f32 %v3489_v41, %v3490_v18  ;;  %v3477_v58 = vmax.f32 %v3475_v37, %v3476_v21  ;;  %v3511_v47 = vrot.slane %v3510_v38, 2 }
 0x2ed   : > { %v3497_v9 = vrot.slane %v3496_v5, 2  ;;  %v3517_v50 = vmax.f32 %v3515_v23, %v3516_v3  ;;  %v3503_v1 = vmax.f32 %v3501_v62, %v3502_v13  ;;  %v3536_v2 = vsel %vm2681_vm4, %v2675_v59, -inf }
 0x2ee   : > { %v3444_v26 = vmax.f32 %v6620_v63, %v3443_v45  ;;  %v3492_v57 = vrot.slane %v3491_v31, 1  ;;  %v3478_v55 = vrot.slane %v3477_v58, 1  ;;  %v6663_v32 = vmax.f32 %v3510_v38, %v3511_v47 }
 0x2ef   : > { %v3451_v33 = vmax.f32 %v3449_v20, %v3450_v35  ;;  %v3498_v11 = vmax.f32 %v3496_v5, %v3497_v9  ;;  %v3518_v46 = vrot.slane %v3517_v50, 2  ;;  %v3537_v27 = vrot.slane %v3536_v2, 4 }
 0x2f0   : > { %v6665_v6 = vmax.f32 %v3484_v19, %v3485_v16  ;;  %v3472_v10 = vmax.f32 %v3470_v36, %v3471_v22  ;;  %v3479_v7 = vmax.f32 %v3477_v58, %v3478_v55  ;;  %v3504_v48 = vrot.slane %v3503_v1, 2 }
 0x2f1   : > { %v6667_v28 = vmax.f32 %v3491_v31, %v3492_v57  ;;  %v3513_v30 = vrot.slane %v6663_v32, 1  ;;  %v3499_v56 = vrot.slane %v3498_v11, 1  ;;  %v3538_v24 = vmax.f32 %v3536_v2, %v3537_v27 }
 0x2f2   : > { %v6671_v63 = vsel %vm3706_vm5, %v3479_v7, %v3472_v10  ;;  %v3464_v45 = vrot.slane %v6630_v25, 1  ;;  %v3805_v20 = vsel %vm3708_vm6, %v6611_v17, %v6628_v49  ;;  %v2523_v19 = vadd.f32 %v6519_v43, %v5587_v51 }
 0x2f3   : > { %v6679_v35 = vmax.f32 %v3517_v50, %v3518_v46  ;;  %v3539_v16 = vrot.slane %v3538_v24, 2  ;;  %v3458_v60 = vmax.f32 %v6606_v4, %v3457_v8  ;;  %v3806_v29 = vsel %vm3710_vm7, %v6613_v14, %v3805_v20 }
 0x2f4   : > { %v3505_v39 = vmax.f32 %v3503_v1, %v3504_v48  ;;  %v3807_v34 = vsel %vm3712_vm8, %v3444_v26, %v3806_v29  ;;  %v2673_v41 = vmax.f32 %v2523_v19, 0.0  ;;  %v2534_v17 = vadd.f32 %v6527_v54, %v5587_v51 }
 0x2f5   : > { %v6689_v49 = vmax.f32 %v3498_v11, %v3499_v56  ;;  %v3465_v43 = vmax.f32 %v6630_v25, %v3464_v45  ;;  %v3808_v37 = vsel %vm3714_vm9, %v3451_v33, %v3807_v34  ;;  %v2526_v53 = vadd.f32 %v6529_v15, %v5587_v51 }
 0x2f6   : > { %v3809_v4 = vsel %vm3716_vm10, %v3458_v60, %v3808_v37  ;;  %v3522_v14 = vsel %vm2681_vm4, %v2673_v41, -inf  ;;  %v2676_v8 = vmax.f32 %v2534_v17, 0.0  ;;  %v2547_v12 = vadd.f32 %v6539_v0, %v5587_v51 }
 0x2f7   : > { %v3540_v23 = vmax.f32 %v3538_v24, %v3539_v16  ;;  %v3810_v54 = vsel %vm3718_vm11, %v3465_v43, %v3809_v4  ;;  %v3523_v62 = vrot.slane %v3522_v14, 4  ;;  %v2674_v61 = vmax.f32 %v2526_v53, 0.0 }
 0x2f8   : > { %3854 = vxpose.xlu0.b32.cont [14/16] (narrow) %v3810_v54, 32  ;;  %v3543_v25 = vsel %vm2681_vm4, %v2676_v8, -inf  ;;  %v2679_v36 = vmax.f32 %v2547_v12, 0.0  ;;  %v2539_v15 = vadd.f32 %v6541_v52, %v5587_v51  ;;  %v2550_v18 = vadd.f32 %v6544_v42, %v5587_v51 }
 0x2f9   : > { %v3506_v21 = vrot.slane %v3505_v39, 1  ;;  %v3524_v38 = vmax.f32 %v3522_v14, %v3523_v62  ;;  %v3544_v5 = vrot.slane %v3543_v25, 4  ;;  %v3529_v0 = vsel %vm2681_vm4, %v2674_v61, -inf  ;;  %v5155_v61 = vld [vmem:[%s6819_s6 + $0x10] sm:$0xff]  }
 0x2fa   : > { %v3530_v3 = vrot.slane %v3529_v0, 4  ;;  %v3564_v13 = vsel %vm2681_vm4, %v2679_v36, -inf  ;;  %v2677_v59 = vmax.f32 %v2539_v15, 0.0  ;;  %v2680_v22 = vmax.f32 %v2550_v18, 0.0  ;;  %v399_v15 = vld [vmem:[%s6821_s8] sm:$0xff] }
 0x2fb   : > { %v3525_v31 = vrot.slane %v3524_v38, 2  ;;  %v3545_v58 = vmax.f32 %v3543_v25, %v3544_v5  ;;  %v3565_v47 = vrot.slane %v3564_v13, 4  ;;  %v2542_v9 = vadd.f32 %v6547_v44, %v5587_v51 }
 0x2fc   : > { %v3541_v52 = vrot.slane %v3540_v23, 1  ;;  %v3531_v50 = vmax.f32 %v3529_v0, %v3530_v3  ;;  %v3550_v42 = vsel %vm2681_vm4, %v2677_v59, -inf  ;;  %v3571_v1 = vsel %vm2681_vm4, %v2680_v22, -inf  ;;  %v400_v59 = vld [vmem:[%s6821_s8 + $0x8] sm:$0xff] }
 0x2fd   : > { %v3526_v2 = vmax.f32 %v3524_v38, %v3525_v31  ;;  %v3546_v26 = vrot.slane %v3545_v58, 2  ;;  %v3566_v57 = vmax.f32 %v3564_v13, %v3565_v47  ;;  %v3551_v55 = vrot.slane %v3550_v42, 4 }
 0x2fe   : > { %v3507_v33 = vmax.f32 %v3505_v39, %v3506_v21  ;;  %v3532_v11 = vrot.slane %v3531_v50, 2  ;;  %v3572_v46 = vrot.slane %v3571_v1, 4  ;;  %v2678_v27 = vmax.f32 %v2542_v9, 0.0 }
 0x2ff   : > { %v3527_v10 = vrot.slane %v3526_v2, 1  ;;  %v3547_v7 = vmax.f32 %v3545_v58, %v3546_v26  ;;  %v3552_v48 = vmax.f32 %v3550_v42, %v3551_v55  ;;  %v3520_v56 = vrot.slane %v6679_v35, 1  ;;  %v5156_v58 = vld [vmem:[%s6819_s6 + $0x18] sm:$0xff]   ;;  %v401_v42 = vld [vmem:[%s6821_s8 + $0x10] sm:$0xff]  ;;  %v403_v26 = vld [vmem:[%s6821_s8 + $0x20] sm:$0xff] }
 0x300   : > { %v3533_v51 = vmax.f32 %v3531_v50, %v3532_v11  ;;  %v3567_v44 = vrot.slane %v3566_v57, 2  ;;  %v3573_v24 = vmax.f32 %v3571_v1, %v3572_v46  ;;  %v3557_v45 = vsel %vm2681_vm4, %v2678_v27, -inf  ;;  %v405_v55 = vld [vmem:[%s6821_s8 + $0x30] sm:$0xff] }
 0x301   : > { %v3542_v20 = vmax.f32 %v3540_v23, %v3541_v52  ;;  %v3548_v19 = vrot.slane %v3547_v7, 1  ;;  %v3553_v16 = vrot.slane %v3552_v48, 2  ;;  %v3514_v60 = vmax.f32 %v6663_v32, %v3513_v30  ;;  %v5153_v30 = vld [vmem:[%s6819_s6] sm:$0xff]  }
 0x302   : > { %v3534_v29 = vrot.slane %v3533_v51, 1  ;;  %v3574_v39 = vrot.slane %v3573_v24, 2  ;;  %v3558_v34 = vrot.slane %v3557_v45, 4  ;;  %v3812_v41 = vsel %vm3708_vm6, %v6665_v6, %v6671_v63  ;;  %5014 = vmatprep.mubr.msk.bf16.mxu0 %vm3912_vm12, %v5153_v30  ;;  %v5157_v52 = vld [vmem:[%s6818_s5] sm:$0xff]  }
 0x303   : > { %v3528_v17 = vmax.f32 %v3526_v2, %v3527_v10  ;;  %v3554_v43 = vmax.f32 %v3552_v48, %v3553_v16  ;;  %v3521_v37 = vmax.f32 %v6679_v35, %v3520_v56  ;;  %v3813_v53 = vsel %vm3710_vm7, %v6667_v28, %v3812_v41  ;;  %v5154_v28 = vld [vmem:[%s6819_s6 + $0x8] sm:$0xff]   ;;  %v402_v2 = vld [vmem:[%s6821_s8 + $0x18] sm:$0xff] }
 0x304   : > { %v3535_v4 = vmax.f32 %v3533_v51, %v3534_v29  ;;  %v3568_v14 = vmax.f32 %v3566_v57, %v3567_v44  ;;  %v3559_v8 = vmax.f32 %v3557_v45, %v3558_v34  ;;  %v3814_v32 = vsel %vm3712_vm8, %v6689_v49, %v3813_v53  ;;  %v404_v57 = vld [vmem:[%s6821_s8 + $0x28] sm:$0xff]  ;;  %v5159_v51 = vld [vmem:[%s6818_s5 + $0x10] sm:$0xff]   ;;  %v5160_v44 = vld [vmem:[%s6818_s5 + $0x18] sm:$0xff]  }
 0x305   : > { %v3549_v12 = vmax.f32 %v3547_v7, %v3548_v19  ;;  %v3555_v23 = vrot.slane %v3554_v43, 1  ;;  %v3815_v6 = vsel %vm3714_vm9, %v3507_v33, %v3814_v32  ;;  %v3926_v63 = vsel %vm1059_vm0, %v6360_v40, 0  ;;  %v406_v33 = vld [vmem:[%s6821_s8 + $0x38] sm:$0xff]  ;;  %v5158_v56 = vld [vmem:[%s6818_s5 + $0x8] sm:$0xff]  }
 0x306   : > { %v3818_v35 = vsel %vm3706_vm5, %v3535_v4, %v3528_v17  ;;  %v3575_v54 = vmax.f32 %v3573_v24, %v3574_v39  ;;  %v3560_v62 = vrot.slane %v3559_v8, 2  ;;  %v3816_v49 = vsel %vm3716_vm10, %v3514_v60, %v3815_v6  ;;  %5013 = vmatpush3.bf16.msra.mxu0 %v3926_v63  ;;  %v5161_v24 = vld [vmem:[%s6820_s7] sm:$0xff]  }
 0x307   : > { %v3556_v25 = vmax.f32 %v3554_v43, %v3555_v23  ;;  %v3817_v36 = vsel %vm3718_vm11, %v3521_v37, %v3816_v49  ;;  %v3819_v40 = vsel %vm3708_vm6, %v3542_v20, %v3818_v35  ;;  %v3569_v38 = vrot.slane %v3568_v14, 1  ;;  %5042 = vmatprep.mubr.msk.bf16.mxu1 %vm4180_vm13, %v5161_v24 }
 0x308   : > { %v3561_v18 = vmax.f32 %v3559_v8, %v3560_v62  ;;  %3855 = vxpose.xlu0.b32.cont [15/16] (narrow) %v3817_v36, 32  ;;  %v3820_v21 = vsel %vm3710_vm7, %v3549_v12, %v3819_v40  ;;  %v5188_v0 = vmov 0   ;;  %v3576_v13 = vrot.slane %v3575_v54, 1 }
 0x309   : > { %v3821_v5 = vsel %vm3712_vm8, %v3556_v25, %v3820_v21  ;;  %5015 = vmatmul.mubr.msk.bf16.vlgmr.msra.gmra.mrb[124].mxu0 %vm3912_vm12, %v5154_v28  ;;  %5084 = vset.pattern.permute.xlu1 %v5188_v0  ;;  %v3570_v31 = vmax.f32 %v3568_v14, %v3569_v38  ;;  %v5189_v45 = vmov 1  }
 0x30a   : > { %v3562_v3 = vrot.slane %v3561_v18, 1  ;;  %5018 = vmatprep.mubr.msk.bf16.mxu0 %vm3912_vm12, %v5155_v61  ;;  %4092 = vperm.xlu1 %5084, %v399_v15   ;;  %v3577_v47 = vmax.f32 %v3575_v54, %v3576_v13 }
 0x30c   : > { %v3563_v22 = vmax.f32 %v3561_v18, %v3562_v3  ;;  %v5162_v3 = vld [vmem:[%s6820_s7 + $0x8] sm:$0xff]  }
 0x30e   : > { %v3822_v9 = vsel %vm3714_vm9, %v3563_v22, %v3821_v5  ;;  %4097 = vperm.xlu1 %5084, %v400_v59  }
 0x30f   : > { %v3823_v50 = vsel %vm3716_vm10, %v3570_v31, %v3822_v9 }
 0x310   : > { %v3824_v1 = vsel %vm3718_vm11, %v3577_v47, %v3823_v50 }
 0x311   : > { %3856 = vxpose.xlu0.b32.end [16/16] (narrow) %v3824_v1, 32  ;;  %5019 = vmatmul.mubr.msk.bf16.gmra.mrb[128].mxu0 %vm3912_vm12, %v5156_v58 }
 0x312   : > { %5026 = vmatprep.mubr.msk.bf16.mxu0 %vm2681_vm4, %v5157_v52  ;;  %4102 = vperm.xlu1 %5084, %v401_v42  }
 0x316   : > { %4107 = vperm.xlu1 %5084, %v402_v2  }
 0x31a   : > { %4112 = vperm.xlu1 %5084, %v403_v26  }
 0x31e   : > { %4117 = vperm.xlu1 %5084, %v404_v57  }
 0x322   : > { %4122 = vperm.xlu1 %5084, %v405_v55  }
 0x326   : > { %4127 = vperm.xlu1 %5084, %v406_v33  }
 0x32a   : > { %5085 = vset.pattern.permute.xlu1 %v5189_v45 }
 0x32b   : > { %4155 = vperm.xlu1 %5085, %v399_v15  }
 0x32f   : > { %4159 = vperm.xlu1 %5085, %v400_v59  }
 0x333   : > { %4163 = vperm.xlu1 %5085, %v401_v42  }
 0x337   : > { %4167 = vperm.xlu1 %5085, %v402_v2  }
 0x33a   : > { %5086 = vset.pattern.permute.xlu0 %v5189_v45 }
 0x355   : > { %v3857_v11 = vpop.trf.xlu0 }
 0x359   : > { %v3858_v46 = vpop.trf.xlu0 }
 0x35a   : > { %v3873_v27 = vpack.c.bf16 %v3858_v46, %v3857_v11 }
 0x35c   : > { %5022 = vmatprep.subr.bf16.mxu0 %v3873_v27 }
 0x35d   : > { %5023 = vmatpush3.bf16.msra.mxu0 %v3873_v27  ;;  %v3859_v10 = vpop.trf.xlu0 }
 0x361   : > { %v3860_v7 = vpop.trf.xlu0 }
 0x362   : > { %v3874_v48 = vpack.c.bf16 %v3860_v7, %v3859_v10 }
 0x364   : > { %5024 = vmatprep.subr.bf16.mxu0 %v3874_v48 }
 0x365   : > { %5025 = vmatpush3.bf16.msra.mxu0 %v3874_v48 }
 0x368   : > { %5027 = vmatmul.mubr.msk.bf16.vlgmr.msra.gmra.mrb[124].mxu0 %vm2681_vm4, %v5158_v56 }
 0x369   : > { %5030 = vmatprep.mubr.msk.bf16.mxu0 %vm2681_vm4, %v5159_v51 }
 0x370   : > { %5031 = vmatmul.mubr.msk.bf16.gmra.mrb[128].mxu0 %vm2681_vm4, %v5160_v44 }
 0x389   : > { %v4093_v20 = vpop.permute.xlu1 %4092 }
 0x38d   : > { %v4098_v19 = vpop.permute.xlu1 %4097 }
 0x391   : > { %v4103_v16 = vpop.permute.xlu1 %4102 }
 0x395   : > { %v4108_v60 = vpop.permute.xlu1 %4107 }
 0x399   : > { %v4113_v29 = vpop.permute.xlu1 %4112 }
 0x39d   : > { %v4118_v39 = vpop.permute.xlu1 %4117 }
 0x3a1   : > { %v4123_v14 = vpop.permute.xlu1 %4122 }
 0x3a5   : > { %v4128_v62 = vpop.permute.xlu1 %4127 }
 0x3aa   : > { %v4156_v13 = vpop.permute.xlu1 %4155 }
 0x3ae   : > { %v4160_v59 = vpop.permute.xlu1 %4159 }
 0x3b2   : > { %v4164_v22 = vpop.permute.xlu1 %4163 }
 0x3b6   : > { %v4168_v50 = vpop.permute.xlu1 %4167 }
 0x43b   : > { %v5028_v34 = vpop.f32.mrb[124].mxu0 }
 0x43c   : > { %v4132_v41 = vadd.f32 %v5028_v34, %v4103_v16  ;;  %v4059_v17 = vpop.f32.mrb[125].mxu0 }
 0x43d   : > { %v4130_v43 = vadd.f32 %v4093_v20, %v4059_v17  ;;  %v5029_v37 = vpop.f32.mrb[126].mxu0 }
 0x43e   : > { %v4133_v53 = vadd.f32 %v5029_v37, %v4108_v60  ;;  %v4062_v4 = vpop.f32.mrb[127].mxu0  ;;  %v4140_v32 = vmax.f32 %v4132_v41, 0.0 }
 0x43f   : > { %v4131_v8 = vadd.f32 %v4098_v19, %v4062_v4  ;;  %v4138_v12 = vmax.f32 %v4130_v43, 0.0 }
 0x440   : > { %v4141_v30 = vmax.f32 %v4133_v53, 0.0 }
 0x441   : > { %v4139_v23 = vmax.f32 %v4131_v8, 0.0 }
 0x442   : > { %v4151_v6 = vpack.c.bf16 %v4141_v30, %v4140_v32 }
 0x443   : > { %v4150_v63 = vpack.c.bf16 %v4139_v23, %v4138_v12  ;;  %v5032_v28 = vpop.f32.mrb[128].mxu0 }
 0x444   : > { %v4136_v35 = vadd.f32 %v5032_v28, %v4123_v14  ;;  %v4075_v54 = vpop.f32.mrb[129].mxu0 }
 0x445   : > { %v4134_v49 = vadd.f32 %v4113_v29, %v4075_v54  ;;  %v5033_v61 = vpop.f32.mrb[130].mxu0  ;;  %5034 = vmatprep.subr.bf16.mxu1 %v4150_v63 }
 0x446   : > { %v4137_v25 = vadd.f32 %v5033_v61, %v4128_v62  ;;  %v4078_v36 = vpop.f32.mrb[131].mxu0  ;;  %5035 = vmatpush3.bf16.msra.mxu1 %v4150_v63  ;;  %v4144_v15 = vmax.f32 %v4136_v35, 0.0 }
 0x447   : > { %v4135_v40 = vadd.f32 %v4118_v39, %v4078_v36  ;;  %5036 = vmatprep.subr.bf16.mxu1 %v4151_v6  ;;  %v4142_v21 = vmax.f32 %v4134_v49, 0.0 }
 0x448   : > { %v4145_v18 = vmax.f32 %v4137_v25, 0.0 }
 0x449   : > { %v4143_v38 = vmax.f32 %v4135_v40, 0.0 }
 0x44a   : > { %v4153_v5 = vpack.c.bf16 %v4145_v18, %v4144_v15  ;;  %5037 = vmatpush3.bf16.msra.mxu1 %v4151_v6 }
 0x44b   : > { %v4152_v0 = vpack.c.bf16 %v4143_v38, %v4142_v21 }
 0x44d   : > { %5038 = vmatprep.subr.bf16.mxu1 %v4152_v0 }
 0x44e   : > { %5039 = vmatpush3.bf16.msra.mxu1 %v4152_v0 }
 0x44f   : > { %5040 = vmatprep.subr.bf16.mxu1 %v4153_v5 }
 0x452   : > { %5041 = vmatpush3.bf16.msra.mxu1 %v4153_v5 }
 0x455   : > { %5043 = vmatmul.mubr.msk.bf16.vlgmr.msra.gmra.mrb[132].mxu1 %vm4180_vm13, %v5162_v3 }
 0x528   : > { %v5044_v31 = vpop.f32.mrb[132].mxu1 }
 0x529   : > { %v4230_v58 = vadd.f32 %v5044_v31, %v4164_v22  ;;  %v4221_v47 = vpop.f32.mrb[133].mxu1 }
 0x52a   : > { %v4222_v9 = vadd.f32 %v4221_v47, %v4156_v13  ;;  %v5045_v52 = vpop.f32.mrb[134].mxu1 }
 0x52b   : > { %v4233_v42 = vadd.f32 %v5045_v52, %v4168_v50  ;;  %v4224_v1 = vpop.f32.mrb[135].mxu1  ;;  %v4238_v26 = vmax.f32 %v4230_v58, 0.0 }
 0x52c   : > { %v4225_v2 = vadd.f32 %v4224_v1, %v4160_v59  ;;  %v4236_v55 = vmax.f32 %v4222_v9, 0.0 }
 0x52d   : > { %v4239_v57 = vmax.f32 %v4233_v42, 0.0 }
 0x52e   : > { %v4237_v33 = vmax.f32 %v4225_v2, 0.0 }
 0x52f   : > { %v4602_v11 = vpack.c.bf16 %v4239_v57, %v4238_v26 }
 0x530   : > { %v4597_v46 = vpack.c.bf16 %v4237_v33, %v4236_v55 }
 0x531   : > { %4604 = vst [vmem:[%s396_s15 + $0x8] sm:$0xff] %v4602_v11  }
 0x532   : > { %4598 = vst [vmem:[%s396_s15] sm:$0xff] %v4597_v46  }
 0x533 PF: > { %s19_s11 = sadd.s32 1, %s5185_s11   ;;  %s6823_s30 = smov %s5181_s10 }
 0x534   : > { %p16_p5 = scmp.ge.s32.totalorder %s19_s11, 4   ;;  %s6824_s10 = smov %s6826_s12 }
 0x536   :  { %18 = sbr.rel (!%p16_p5) target bundleno = 2 (0x2), region = 89 }

// kernel: pointnet_lfp_msg_forward.3
= control target key start
LH: loop header
LB: loop body
LE: loop exit
PB: predicated region body
PF: predicated region fallthrough
CT: control target
= control target key end

     0   :  { %s8313_s30 = smov 0   ;;  %s8315_s10 = smov 0   ;;  %s10788_s0 = inlined_call_operand.vmem [shape: bf16[2,2048,9], index: 0, kind: input, shape index: {}]   ;;  %s10789_s1 = inlined_call_operand.vmem [shape: bf16[2,8,128], index: 1, kind: input, shape index: {}]   ;;  %s10790_s2 = inlined_call_operand.vmem [shape: bf16[9,16], index: 2, kind: input, shape index: {}]   ;;  %s10791_s3 = inlined_call_operand.vmem [shape: bf16[16,32], index: 3, kind: input, shape index: {}]   ;;  %s10792_s4 = inlined_call_operand.vmem [shape: f32[2,32], index: 4, kind: input, shape index: {}]   ;;  %s10793_s5 = inlined_call_operand.vmem [shape: bf16[64,32], index: 5, kind: input, shape index: {}]   ;;  %s10794_s6 = inlined_call_operand.vmem [shape: bf16[64,8], index: 6, kind: input, shape index: {}]   ;;  %s10795_s7 = inlined_call_operand.vmem [shape: bf16[32,64], index: 7, kind: input, shape index: {}]   ;;  %s10796_s8 = inlined_call_operand.vmem [shape: f32[64,2], index: 8, kind: input, shape index: {}]   ;;  %s10797_s9 = inlined_call_operand.vmem [shape: bf16[2,32,128], index: 9, kind: output, shape index: {}]  }
   0x1   :  { %s8317_s11 = smov 0  }
   0x2 LB: > { %s31_s12 = sadd.s32 1, %s8254_s10  ;;  %p6794_p0 = scmp.ge.s32.totalorder %s8258_s11, 1  ;;  %s8258_s11 = sphi %s8317_s11, %s19_s11   ;;  %s8254_s10 = sphi %s8315_s10, %s10841_s10   ;;  %s8250_s30 = sphi %s8313_s30, %s10840_s30  }
   0x3   : > { %p33_p1 = scmp.ge.s32.totalorder %s31_s12, 2  ;;  %p322_p2 = scmp.lt.s32.totalorder %s8258_s11, 3 }
   0x5   : > { %s10843_s12 = smov (%p33_p1, %s31_s12), 0  ;;  %p323_p3 = pnand %p6794_p0, %p322_p2 }
   0x7   : > { %326 = sbr.rel (%p323_p3) target bundleno = 1580 (0x62c), region = 56 }
   0xe   : > { %v8095_v0 = vld [vmem:[%s10790_s2] sm:$0x1f]   ;;  %vm1699_vm0 = vcmask 1043456   ;;  %vm1700_vm1 = vcmask 1044480   ;;  %p373_p4 = scmp.lt.s32.totalorder %s8250_s30, 1  ;;  %v8260_v1 = vmov 65535   ;;  %v665_v60 = vlaneseq }
   0xf   : > { %v1701_v2 = vsel %vm1699_vm0, 4294967295, %v8260_v1  ;;  %vm1314_vm2 = vcmask 72704   ;;  %v8154_v32 = vld [vmem:[%s10791_s3] sm:$0xff]   ;;  %vm3159_vm3 = vcmask 130048   ;;  %vm4857_vm4 = vcmask 261120  }
  0x10   : > { %v1702_v3 = vsel %vm1700_vm1, %v1701_v2, 0  ;;  %s10845_s30 = smov (!%p373_p4, %s8250_s30), 1  ;;  %v8455_v62 = vshrl.u32 %v665_v60, 7  ;;  %v398_v1 = vld [vmem:[%s10792_s4] sm:$0x3]  ;;  %vm6138_vm5 = vcmask 1041409  }
  0x11   : > { %v1704_v4 = vand.u32 %v8095_v0, %v1702_v3  ;;  %s7212_s15 = sshll.u32 %s10845_s30, 10  ;;  %vm6140_vm6 = vcmask 1042434   ;;  %vm6142_vm7 = vcmask 1043459   ;;  %vm6144_vm8 = vcmask 1044484   ;;  %s6797_s25 = sshll.u32 %s10845_s30, 2 }
  0x12   : > { %s8341_s18 = scalar_lea.vmem %s10788_s0, %s7212_s15  ;;  %v667_v0 = vsub.s32 0, %v8455_v62  ;;  %vm6146_vm9 = vcmask 1045509   ;;  %vm6148_vm10 = vcmask 1046534   ;;  %vm6150_vm11 = vcmask 1047559   ;;  %s388_s28 = scalar_lea.vmem %s10789_s1, %s6797_s25 }
  0x13   : > { %7504 = vmatprep.subr.bf16.mxu0 %v1704_v4  ;;  %8054 = vmatprep.subr.bf16.mxu1 %v1704_v4  ;;  %v8096_v5 = vld [vmem:[%s8341_s18] sm:$0xff]   ;;  %v8097_v6 = vld [vmem:[%s8341_s18 + $0x8] sm:$0xff]   ;;  %v8098_v7 = vld [vmem:[%s8341_s18 + $0x10] sm:$0xff]   ;;  %vm6344_vm12 = vcmask 64512   ;;  %vm6612_vm13 = vcmask 523264   ;;  %s7213_s14 = sshll.u32 %s10845_s30, 4 }
  0x14   : > { %7505 = vmatpush3.bf16.msra.mxu0 %v1704_v4  ;;  %8055 = vmatpush3.bf16.msra.mxu1 %v1704_v4  ;;  %v8099_v8 = vld [vmem:[%s8341_s18 + $0x18] sm:$0xff]   ;;  %v8100_v9 = vld [vmem:[%s8341_s18 + $0x20] sm:$0xff]   ;;  %v8101_v10 = vld [vmem:[%s8341_s18 + $0x28] sm:$0xff]   ;;  %v8465_v3 = vrot.slane %v398_v1, %v667_v0  ;;  %s396_s17 = scalar_lea.vmem %s10797_s9, %s7213_s14 }
  0x15   : > { %7506 = vmatprep.mubr.msk.bf16.mxu0 %vm1314_vm2, %v8096_v5  ;;  %v8102_v11 = vld [vmem:[%s8341_s18 + $0x30] sm:$0xff]   ;;  %v8103_v12 = vld [vmem:[%s8341_s18 + $0x38] sm:$0xff]   ;;  %v8104_v13 = vld [vmem:[%s8341_s18 + $0x40] sm:$0xff]   ;;  %7762 = vmatprep.subr.bf16.mxu1 %v8154_v32 }
  0x16   : > { %v8105_v14 = vld [vmem:[%s8341_s18 + $0x48] sm:$0xff]   ;;  %v8106_v15 = vld [vmem:[%s8341_s18 + $0x50] sm:$0xff]   ;;  %v8107_v16 = vld [vmem:[%s8341_s18 + $0x58] sm:$0xff]  }
  0x17   : > { %7507 = vmatmul.mubr.msk.bf16.vlgmr.msra.gmra.mrb[0].mxu0 %vm1314_vm2, %v8097_v6  ;;  %v8108_v17 = vld [vmem:[%s8341_s18 + $0x60] sm:$0xff]   ;;  %v8109_v18 = vld [vmem:[%s8341_s18 + $0x68] sm:$0xff]   ;;  %v8110_v19 = vld [vmem:[%s8341_s18 + $0x70] sm:$0xff]  }
  0x18   : > { %7510 = vmatprep.mubr.msk.bf16.mxu0 %vm1314_vm2, %v8098_v7  ;;  %v8111_v20 = vld [vmem:[%s8341_s18 + $0x78] sm:$0xff]   ;;  %v8112_v21 = vld [vmem:[%s8341_s18 + $0x80] sm:$0xff]   ;;  %v8113_v22 = vld [vmem:[%s8341_s18 + $0x88] sm:$0xff]  }
  0x19   : > { %v8114_v23 = vld [vmem:[%s8341_s18 + $0x90] sm:$0xff]   ;;  %v8115_v24 = vld [vmem:[%s8341_s18 + $0x98] sm:$0xff]   ;;  %v8116_v25 = vld [vmem:[%s8341_s18 + $0xa0] sm:$0xff]  }
  0x1a   : > { %v8117_v26 = vld [vmem:[%s8341_s18 + $0xa8] sm:$0xff]   ;;  %v8118_v27 = vld [vmem:[%s8341_s18 + $0xb0] sm:$0xff]   ;;  %v8151_v29 = vld [vmem:[%s8341_s18 + $0x3f8] sm:$0xff]  }
  0x1b   : > { %v8150_v28 = vld [vmem:[%s8341_s18 + $0x3f0] sm:$0xff]   ;;  %v8119_v30 = vld [vmem:[%s8341_s18 + $0xb8] sm:$0xff]   ;;  %v8120_v31 = vld [vmem:[%s8341_s18 + $0xc0] sm:$0xff]  }
  0x1c   : > { %7758 = vmatprep.mubr.msk.bf16.mxu1 %vm1314_vm2, %v8150_v28  ;;  %v8121_v33 = vld [vmem:[%s8341_s18 + $0xc8] sm:$0xff]   ;;  %v8122_v34 = vld [vmem:[%s8341_s18 + $0xd0] sm:$0xff]   ;;  %v8123_v35 = vld [vmem:[%s8341_s18 + $0xd8] sm:$0xff]  }
  0x1d   : > { %7759 = vmatmul.mubr.msk.bf16.vlgmr.msra.gmra.mrb[0].mxu1 %vm1314_vm2, %v8151_v29  ;;  %v8124_v36 = vld [vmem:[%s8341_s18 + $0xe0] sm:$0xff]   ;;  %v8125_v37 = vld [vmem:[%s8341_s18 + $0xe8] sm:$0xff]   ;;  %v8126_v38 = vld [vmem:[%s8341_s18 + $0xf0] sm:$0xff]  }
  0x1e   : > { %7763 = vmatpush3.bf16.msra.mxu1 %v8154_v32  ;;  %v8127_v39 = vld [vmem:[%s8341_s18 + $0xf8] sm:$0xff]   ;;  %v8128_v40 = vld [vmem:[%s8341_s18 + $0x100] sm:$0xff]   ;;  %v8129_v41 = vld [vmem:[%s8341_s18 + $0x108] sm:$0xff]  }
  0x1f   : > { %7511 = vmatmul.mubr.msk.bf16.gmra.mrb[4].mxu0 %vm1314_vm2, %v8099_v8  ;;  %v8130_v42 = vld [vmem:[%s8341_s18 + $0x110] sm:$0xff]   ;;  %v8131_v43 = vld [vmem:[%s8341_s18 + $0x118] sm:$0xff]   ;;  %v8132_v44 = vld [vmem:[%s8341_s18 + $0x120] sm:$0xff]  }
  0x20   : > { %7514 = vmatprep.mubr.msk.bf16.mxu0 %vm1314_vm2, %v8100_v9  ;;  %v8133_v45 = vld [vmem:[%s8341_s18 + $0x128] sm:$0xff]   ;;  %v8134_v46 = vld [vmem:[%s8341_s18 + $0x130] sm:$0xff]   ;;  %v8135_v47 = vld [vmem:[%s8341_s18 + $0x138] sm:$0xff]  }
  0x21   : > { %v8136_v48 = vld [vmem:[%s8341_s18 + $0x140] sm:$0xff]   ;;  %v8137_v49 = vld [vmem:[%s8341_s18 + $0x148] sm:$0xff]   ;;  %v8138_v50 = vld [vmem:[%s8341_s18 + $0x150] sm:$0xff]  }
  0x22   : > { %v8139_v51 = vld [vmem:[%s8341_s18 + $0x158] sm:$0xff]   ;;  %v8140_v52 = vld [vmem:[%s8341_s18 + $0x160] sm:$0xff]   ;;  %v8141_v53 = vld [vmem:[%s8341_s18 + $0x168] sm:$0xff]  }
  0x23   : > { %v8142_v54 = vld [vmem:[%s8341_s18 + $0x170] sm:$0xff]   ;;  %v8143_v55 = vld [vmem:[%s8341_s18 + $0x178] sm:$0xff]   ;;  %v8144_v56 = vld [vmem:[%s8341_s18 + $0x180] sm:$0xff]  }
  0x24   : > { %v8145_v57 = vld [vmem:[%s8341_s18 + $0x188] sm:$0xff]   ;;  %v8146_v58 = vld [vmem:[%s8341_s18 + $0x190] sm:$0xff]   ;;  %v8147_v59 = vld [vmem:[%s8341_s18 + $0x198] sm:$0xff]  }
  0x25   : > { %v8148_v61 = vld [vmem:[%s8341_s18 + $0x1a0] sm:$0xff]   ;;  %v8149_v63 = vld [vmem:[%s8341_s18 + $0x1a8] sm:$0xff]   ;;  %v8152_v2 = vld [vmem:[%s8341_s18 + $0x1b0] sm:$0xff]  }
  0x26   : > { %v8153_v7 = vld [vmem:[%s8341_s18 + $0x1b8] sm:$0xff]  }
  0x27   : > { %7515 = vmatmul.mubr.msk.bf16.gmra.mrb[8].mxu0 %vm1314_vm2, %v8101_v10  ;;  %v8155_v10 = vld [vmem:[%s8341_s18 + $0x1c0] sm:$0xff]  }
  0x28   : > { %7518 = vmatprep.mubr.msk.bf16.mxu0 %vm1314_vm2, %v8102_v11 }
  0x2f   : > { %7519 = vmatmul.mubr.msk.bf16.gmra.mrb[12].mxu0 %vm1314_vm2, %v8103_v12 }
  0x30   : > { %7522 = vmatprep.mubr.msk.bf16.mxu0 %vm1314_vm2, %v8104_v13 }
  0x37   : > { %7523 = vmatmul.mubr.msk.bf16.gmra.mrb[16].mxu0 %vm1314_vm2, %v8105_v14 }
  0x38   : > { %7526 = vmatprep.mubr.msk.bf16.mxu0 %vm1314_vm2, %v8106_v15 }
  0x3f   : > { %7527 = vmatmul.mubr.msk.bf16.gmra.mrb[20].mxu0 %vm1314_vm2, %v8107_v16 }
  0x40   : > { %7530 = vmatprep.mubr.msk.bf16.mxu0 %vm1314_vm2, %v8108_v17 }
  0x47   : > { %7531 = vmatmul.mubr.msk.bf16.gmra.mrb[24].mxu0 %vm1314_vm2, %v8109_v18 }
  0x48   : > { %7534 = vmatprep.mubr.msk.bf16.mxu0 %vm1314_vm2, %v8110_v19 }
  0x4f   : > { %7535 = vmatmul.mubr.msk.bf16.gmra.mrb[28].mxu0 %vm1314_vm2, %v8111_v20 }
  0x50   : > { %7538 = vmatprep.mubr.msk.bf16.mxu0 %vm1314_vm2, %v8112_v21 }
  0x57   : > { %7539 = vmatmul.mubr.msk.bf16.gmra.mrb[32].mxu0 %vm1314_vm2, %v8113_v22 }
  0x58   : > { %7542 = vmatprep.mubr.msk.bf16.mxu0 %vm1314_vm2, %v8114_v23  ;;  %v8156_v23 = vld [vmem:[%s8341_s18 + $0x1c8] sm:$0xff]  }
  0x5f   : > { %7543 = vmatmul.mubr.msk.bf16.gmra.mrb[36].mxu0 %vm1314_vm2, %v8115_v24 }
  0x60   : > { %7546 = vmatprep.mubr.msk.bf16.mxu0 %vm1314_vm2, %v8116_v25 }
  0x67   : > { %7547 = vmatmul.mubr.msk.bf16.gmra.mrb[40].mxu0 %vm1314_vm2, %v8117_v26  ;;  %v8157_v26 = vld [vmem:[%s8341_s18 + $0x1d0] sm:$0xff]  }
  0x68   : > { %7550 = vmatprep.mubr.msk.bf16.mxu0 %vm1314_vm2, %v8118_v27 }
  0x6f   : > { %7551 = vmatmul.mubr.msk.bf16.gmra.mrb[44].mxu0 %vm1314_vm2, %v8119_v30 }
  0x70   : > { %7554 = vmatprep.mubr.msk.bf16.mxu0 %vm1314_vm2, %v8120_v31 }
  0x77   : > { %7555 = vmatmul.mubr.msk.bf16.gmra.mrb[48].mxu0 %vm1314_vm2, %v8121_v33 }
  0x78   : > { %7558 = vmatprep.mubr.msk.bf16.mxu0 %vm1314_vm2, %v8122_v34 }
  0x7f   : > { %7559 = vmatmul.mubr.msk.bf16.gmra.mrb[52].mxu0 %vm1314_vm2, %v8123_v35 }
  0x80   : > { %7562 = vmatprep.mubr.msk.bf16.mxu0 %vm1314_vm2, %v8124_v36 }
  0x87   : > { %7563 = vmatmul.mubr.msk.bf16.gmra.mrb[56].mxu0 %vm1314_vm2, %v8125_v37 }
  0x88   : > { %7566 = vmatprep.mubr.msk.bf16.mxu0 %vm1314_vm2, %v8126_v38 }
  0x8f   : > { %7567 = vmatmul.mubr.msk.bf16.gmra.mrb[60].mxu0 %vm1314_vm2, %v8127_v39  ;;  %v8158_v39 = vld [vmem:[%s8341_s18 + $0x1d8] sm:$0xff]  }
  0x90   : > { %7570 = vmatprep.mubr.msk.bf16.mxu0 %vm1314_vm2, %v8128_v40 }
  0x97   : > { %7571 = vmatmul.mubr.msk.bf16.gmra.mrb[64].mxu0 %vm1314_vm2, %v8129_v41 }
  0x98   : > { %7574 = vmatprep.mubr.msk.bf16.mxu0 %vm1314_vm2, %v8130_v42  ;;  %v8159_v42 = vld [vmem:[%s8341_s18 + $0x1e0] sm:$0xff]  }
  0x9f   : > { %7575 = vmatmul.mubr.msk.bf16.gmra.mrb[68].mxu0 %vm1314_vm2, %v8131_v43 }
  0xa0   : > { %7578 = vmatprep.mubr.msk.bf16.mxu0 %vm1314_vm2, %v8132_v44 }
  0xa7   : > { %7579 = vmatmul.mubr.msk.bf16.gmra.mrb[72].mxu0 %vm1314_vm2, %v8133_v45 }
  0xa8   : > { %7582 = vmatprep.mubr.msk.bf16.mxu0 %vm1314_vm2, %v8134_v46 }
  0xaf   : > { %7583 = vmatmul.mubr.msk.bf16.gmra.mrb[76].mxu0 %vm1314_vm2, %v8135_v47 }
  0xb0   : > { %7586 = vmatprep.mubr.msk.bf16.mxu0 %vm1314_vm2, %v8136_v48 }
  0xb7   : > { %7587 = vmatmul.mubr.msk.bf16.gmra.mrb[80].mxu0 %vm1314_vm2, %v8137_v49 }
  0xb8   : > { %7590 = vmatprep.mubr.msk.bf16.mxu0 %vm1314_vm2, %v8138_v50 }
  0xbf   : > { %7591 = vmatmul.mubr.msk.bf16.gmra.mrb[84].mxu0 %vm1314_vm2, %v8139_v51 }
  0xc0   : > { %7594 = vmatprep.mubr.msk.bf16.mxu0 %vm1314_vm2, %v8140_v52 }
  0xc7   : > { %7595 = vmatmul.mubr.msk.bf16.gmra.mrb[88].mxu0 %vm1314_vm2, %v8141_v53 }
  0xc8   : > { %7598 = vmatprep.mubr.msk.bf16.mxu0 %vm1314_vm2, %v8142_v54 }
  0xcf   : > { %7599 = vmatmul.mubr.msk.bf16.gmra.mrb[92].mxu0 %vm1314_vm2, %v8143_v55  ;;  %v8160_v55 = vld [vmem:[%s8341_s18 + $0x1e8] sm:$0xff]  }
  0xd0   : > { %7602 = vmatprep.mubr.msk.bf16.mxu0 %vm1314_vm2, %v8144_v56 }
  0xd7   : > { %7603 = vmatmul.mubr.msk.bf16.gmra.mrb[96].mxu0 %vm1314_vm2, %v8145_v57 }
  0xd8   : > { %7606 = vmatprep.mubr.msk.bf16.mxu0 %vm1314_vm2, %v8146_v58  ;;  %v8161_v58 = vld [vmem:[%s8341_s18 + $0x1f0] sm:$0xff]  }
  0xdf   : > { %7607 = vmatmul.mubr.msk.bf16.gmra.mrb[100].mxu0 %vm1314_vm2, %v8147_v59 }
  0xe0   : > { %7610 = vmatprep.mubr.msk.bf16.mxu0 %vm1314_vm2, %v8148_v61 }
  0xe7   : > { %7611 = vmatmul.mubr.msk.bf16.gmra.mrb[104].mxu0 %vm1314_vm2, %v8149_v63 }
  0xe8   : > { %7614 = vmatprep.mubr.msk.bf16.mxu0 %vm1314_vm2, %v8152_v2 }
  0xea   : > { %v7508_v4 = vpop.f32.mrb[0].mxu0 }
  0xeb   : > { %v1749_v5 = vadd.f32 %v7508_v4, %v8465_v3  ;;  %v1740_v6 = vpop.f32.mrb[1].mxu0 }
  0xec   : > { %v1741_v8 = vadd.f32 %v1740_v6, %v8465_v3  ;;  %v7509_v9 = vpop.f32.mrb[2].mxu0 }
  0xed   : > { %v1752_v11 = vadd.f32 %v7509_v9, %v8465_v3  ;;  %v1743_v12 = vpop.f32.mrb[3].mxu0  ;;  %v2765_v14 = vmax.f32 %v1749_v5, 0.0  ;;  %v8162_v9 = vld [vmem:[%s8341_s18 + $0x1f8] sm:$0xff]  }
  0xee   : > { %v1744_v13 = vadd.f32 %v1743_v12, %v8465_v3  ;;  %v2763_v16 = vmax.f32 %v1741_v8, 0.0  ;;  %v8163_v12 = vld [vmem:[%s8341_s18 + $0x200] sm:$0xff]  }
  0xef   : > { %v2766_v15 = vmax.f32 %v1752_v11, 0.0  ;;  %7615 = vmatmul.mubr.msk.bf16.gmra.mrb[108].mxu0 %vm1314_vm2, %v8153_v7 }
  0xf0   : > { %v2764_v17 = vmax.f32 %v1744_v13, 0.0  ;;  %7618 = vmatprep.mubr.msk.bf16.mxu0 %vm1314_vm2, %v8155_v10 }
  0xf1   : > { %v3020_v18 = vpack.c.bf16 %v2766_v15, %v2765_v14 }
  0xf2   : > { %v7512_v19 = vpop.f32.mrb[4].mxu0  ;;  %v3019_v20 = vpack.c.bf16 %v2764_v17, %v2763_v16 }
  0xf3   : > { %v1765_v21 = vadd.f32 %v7512_v19, %v8465_v3  ;;  %v1756_v22 = vpop.f32.mrb[5].mxu0 }
  0xf4   : > { %v1757_v24 = vadd.f32 %v1756_v22, %v8465_v3  ;;  %v7513_v25 = vpop.f32.mrb[6].mxu0  ;;  %7764 = vmatprep.mubr.msk.bf16.mxu1 %vm3159_vm3, %v3019_v20 }
  0xf5   : > { %v1768_v27 = vadd.f32 %v7513_v25, %v8465_v3  ;;  %v1759_v28 = vpop.f32.mrb[7].mxu0  ;;  %7765 = vmatmul.mubr.msk.bf16.vlgmr.msra.gmra.mrb[4].mxu1 %vm3159_vm3, %v3020_v18  ;;  %v2769_v30 = vmax.f32 %v1765_v21, 0.0  ;;  %v8164_v25 = vld [vmem:[%s8341_s18 + $0x208] sm:$0xff]  }
  0xf6   : > { %v1760_v29 = vadd.f32 %v1759_v28, %v8465_v3  ;;  %v2767_v32 = vmax.f32 %v1757_v24, 0.0  ;;  %v8165_v28 = vld [vmem:[%s8341_s18 + $0x210] sm:$0xff]  }
  0xf7   : > { %v2770_v31 = vmax.f32 %v1768_v27, 0.0  ;;  %7619 = vmatmul.mubr.msk.bf16.gmra.mrb[112].mxu0 %vm1314_vm2, %v8156_v23 }
  0xf8   : > { %v2768_v33 = vmax.f32 %v1760_v29, 0.0  ;;  %7622 = vmatprep.mubr.msk.bf16.mxu0 %vm1314_vm2, %v8157_v26 }
  0xf9   : > { %v3022_v34 = vpack.c.bf16 %v2770_v31, %v2769_v30 }
  0xfa   : > { %v3021_v35 = vpack.c.bf16 %v2768_v33, %v2767_v32  ;;  %v7516_v36 = vpop.f32.mrb[8].mxu0 }
  0xfb   : > { %v1781_v37 = vadd.f32 %v7516_v36, %v8465_v3  ;;  %v1772_v38 = vpop.f32.mrb[9].mxu0 }
  0xfc   : > { %v1773_v40 = vadd.f32 %v1772_v38, %v8465_v3  ;;  %v7517_v41 = vpop.f32.mrb[10].mxu0  ;;  %7768 = vmatprep.mubr.msk.bf16.mxu1 %vm3159_vm3, %v3021_v35 }
  0xfd   : > { %v1784_v43 = vadd.f32 %v7517_v41, %v8465_v3  ;;  %v1775_v44 = vpop.f32.mrb[11].mxu0  ;;  %7769 = vmatmul.mubr.msk.bf16.gmra.mrb[8].mxu1 %vm3159_vm3, %v3022_v34  ;;  %v2773_v46 = vmax.f32 %v1781_v37, 0.0  ;;  %v8166_v41 = vld [vmem:[%s8341_s18 + $0x218] sm:$0xff]  }
  0xfe   : > { %v1776_v45 = vadd.f32 %v1775_v44, %v8465_v3  ;;  %v2771_v48 = vmax.f32 %v1773_v40, 0.0  ;;  %v8167_v44 = vld [vmem:[%s8341_s18 + $0x220] sm:$0xff]  }
  0xff   : > { %v2774_v47 = vmax.f32 %v1784_v43, 0.0  ;;  %7623 = vmatmul.mubr.msk.bf16.gmra.mrb[116].mxu0 %vm1314_vm2, %v8158_v39 }
 0x100   : > { %v2772_v49 = vmax.f32 %v1776_v45, 0.0  ;;  %7626 = vmatprep.mubr.msk.bf16.mxu0 %vm1314_vm2, %v8159_v42 }
 0x101   : > { %v3024_v50 = vpack.c.bf16 %v2774_v47, %v2773_v46 }
 0x102   : > { %v3023_v51 = vpack.c.bf16 %v2772_v49, %v2771_v48  ;;  %v7520_v52 = vpop.f32.mrb[12].mxu0 }
 0x103   : > { %v1797_v53 = vadd.f32 %v7520_v52, %v8465_v3  ;;  %v1788_v54 = vpop.f32.mrb[13].mxu0 }
 0x104   : > { %v1789_v56 = vadd.f32 %v1788_v54, %v8465_v3  ;;  %v7521_v57 = vpop.f32.mrb[14].mxu0  ;;  %7772 = vmatprep.mubr.msk.bf16.mxu1 %vm3159_vm3, %v3023_v51 }
 0x105   : > { %v1800_v59 = vadd.f32 %v7521_v57, %v8465_v3  ;;  %v1791_v60 = vpop.f32.mrb[15].mxu0  ;;  %7773 = vmatmul.mubr.msk.bf16.gmra.mrb[12].mxu1 %vm3159_vm3, %v3024_v50  ;;  %v2777_v63 = vmax.f32 %v1797_v53, 0.0  ;;  %v8168_v57 = vld [vmem:[%s8341_s18 + $0x228] sm:$0xff]  }
 0x106   : > { %v1792_v61 = vadd.f32 %v1791_v60, %v8465_v3  ;;  %v2775_v1 = vmax.f32 %v1789_v56, 0.0  ;;  %v8169_v60 = vld [vmem:[%s8341_s18 + $0x230] sm:$0xff]  }
 0x107   : > { %v2778_v0 = vmax.f32 %v1800_v59, 0.0  ;;  %7627 = vmatmul.mubr.msk.bf16.gmra.mrb[120].mxu0 %vm1314_vm2, %v8160_v55 }
 0x108   : > { %v2776_v2 = vmax.f32 %v1792_v61, 0.0  ;;  %7630 = vmatprep.mubr.msk.bf16.mxu0 %vm1314_vm2, %v8161_v58 }
 0x109   : > { %v3026_v4 = vpack.c.bf16 %v2778_v0, %v2777_v63 }
 0x10a   : > { %v3025_v5 = vpack.c.bf16 %v2776_v2, %v2775_v1  ;;  %v7524_v6 = vpop.f32.mrb[16].mxu0 }
 0x10b   : > { %v1813_v7 = vadd.f32 %v7524_v6, %v8465_v3  ;;  %v1804_v8 = vpop.f32.mrb[17].mxu0 }
 0x10c   : > { %v1805_v10 = vadd.f32 %v1804_v8, %v8465_v3  ;;  %v7525_v11 = vpop.f32.mrb[18].mxu0  ;;  %7776 = vmatprep.mubr.msk.bf16.mxu1 %vm3159_vm3, %v3025_v5 }
 0x10d   : > { %v1816_v13 = vadd.f32 %v7525_v11, %v8465_v3  ;;  %v1807_v14 = vpop.f32.mrb[19].mxu0  ;;  %7777 = vmatmul.mubr.msk.bf16.gmra.mrb[16].mxu1 %vm3159_vm3, %v3026_v4  ;;  %v2781_v16 = vmax.f32 %v1813_v7, 0.0  ;;  %v8170_v11 = vld [vmem:[%s8341_s18 + $0x238] sm:$0xff]  }
 0x10e   : > { %v1808_v15 = vadd.f32 %v1807_v14, %v8465_v3  ;;  %v2779_v18 = vmax.f32 %v1805_v10, 0.0  ;;  %v8171_v14 = vld [vmem:[%s8341_s18 + $0x240] sm:$0xff]  }
 0x10f   : > { %v2782_v17 = vmax.f32 %v1816_v13, 0.0  ;;  %7631 = vmatmul.mubr.msk.bf16.gmra.mrb[124].mxu0 %vm1314_vm2, %v8162_v9 }
 0x110   : > { %v2780_v19 = vmax.f32 %v1808_v15, 0.0  ;;  %7634 = vmatprep.mubr.msk.bf16.mxu0 %vm1314_vm2, %v8163_v12 }
 0x111   : > { %v3028_v20 = vpack.c.bf16 %v2782_v17, %v2781_v16 }
 0x112   : > { %v3027_v21 = vpack.c.bf16 %v2780_v19, %v2779_v18  ;;  %v7528_v22 = vpop.f32.mrb[20].mxu0 }
 0x113   : > { %v1829_v23 = vadd.f32 %v7528_v22, %v8465_v3  ;;  %v1820_v24 = vpop.f32.mrb[21].mxu0 }
 0x114   : > { %v1821_v26 = vadd.f32 %v1820_v24, %v8465_v3  ;;  %v7529_v27 = vpop.f32.mrb[22].mxu0  ;;  %7780 = vmatprep.mubr.msk.bf16.mxu1 %vm3159_vm3, %v3027_v21 }
 0x115   : > { %v1832_v29 = vadd.f32 %v7529_v27, %v8465_v3  ;;  %v1823_v30 = vpop.f32.mrb[23].mxu0  ;;  %7781 = vmatmul.mubr.msk.bf16.gmra.mrb[20].mxu1 %vm3159_vm3, %v3028_v20  ;;  %v2785_v32 = vmax.f32 %v1829_v23, 0.0  ;;  %v8172_v27 = vld [vmem:[%s8341_s18 + $0x248] sm:$0xff]  }
 0x116   : > { %v1824_v31 = vadd.f32 %v1823_v30, %v8465_v3  ;;  %v2783_v34 = vmax.f32 %v1821_v26, 0.0  ;;  %v8173_v30 = vld [vmem:[%s8341_s18 + $0x250] sm:$0xff]  }
 0x117   : > { %v2786_v33 = vmax.f32 %v1832_v29, 0.0  ;;  %7635 = vmatmul.mubr.msk.bf16.gmra.mrb[128].mxu0 %vm1314_vm2, %v8164_v25 }
 0x118   : > { %v2784_v35 = vmax.f32 %v1824_v31, 0.0  ;;  %7638 = vmatprep.mubr.msk.bf16.mxu0 %vm1314_vm2, %v8165_v28 }
 0x119   : > { %v3030_v36 = vpack.c.bf16 %v2786_v33, %v2785_v32 }
 0x11a   : > { %v3029_v37 = vpack.c.bf16 %v2784_v35, %v2783_v34  ;;  %v7532_v38 = vpop.f32.mrb[24].mxu0 }
 0x11b   : > { %v1845_v39 = vadd.f32 %v7532_v38, %v8465_v3  ;;  %v1836_v40 = vpop.f32.mrb[25].mxu0 }
 0x11c   : > { %v1837_v42 = vadd.f32 %v1836_v40, %v8465_v3  ;;  %v7533_v43 = vpop.f32.mrb[26].mxu0  ;;  %7784 = vmatprep.mubr.msk.bf16.mxu1 %vm3159_vm3, %v3029_v37 }
 0x11d   : > { %v1848_v45 = vadd.f32 %v7533_v43, %v8465_v3  ;;  %v1839_v46 = vpop.f32.mrb[27].mxu0  ;;  %7785 = vmatmul.mubr.msk.bf16.gmra.mrb[24].mxu1 %vm3159_vm3, %v3030_v36  ;;  %v2789_v48 = vmax.f32 %v1845_v39, 0.0  ;;  %v8174_v43 = vld [vmem:[%s8341_s18 + $0x258] sm:$0xff]  }
 0x11e   : > { %v1840_v47 = vadd.f32 %v1839_v46, %v8465_v3  ;;  %v2787_v50 = vmax.f32 %v1837_v42, 0.0  ;;  %v8175_v46 = vld [vmem:[%s8341_s18 + $0x260] sm:$0xff]  }
 0x11f   : > { %v2790_v49 = vmax.f32 %v1848_v45, 0.0  ;;  %7639 = vmatmul.mubr.msk.bf16.gmra.mrb[132].mxu0 %vm1314_vm2, %v8166_v41 }
 0x120   : > { %v2788_v51 = vmax.f32 %v1840_v47, 0.0  ;;  %7642 = vmatprep.mubr.msk.bf16.mxu0 %vm1314_vm2, %v8167_v44 }
 0x121   : > { %v3032_v52 = vpack.c.bf16 %v2790_v49, %v2789_v48  ;;  %v7760_v49 = vpop.f32.mrb[0].mxu1 }
 0x122   : > { %v3031_v53 = vpack.c.bf16 %v2788_v51, %v2787_v50  ;;  %v7536_v54 = vpop.f32.mrb[28].mxu0  ;;  %v2748_v51 = vpop.f32.mrb[1].mxu1 }
 0x123   : > { %v1861_v55 = vadd.f32 %v7536_v54, %v8465_v3  ;;  %v1852_v56 = vpop.f32.mrb[29].mxu0  ;;  %v7761_v54 = vpop.f32.mrb[2].mxu1 }
 0x124   : > { %v1853_v58 = vadd.f32 %v1852_v56, %v8465_v3  ;;  %v7537_v59 = vpop.f32.mrb[30].mxu0  ;;  %7788 = vmatprep.mubr.msk.bf16.mxu1 %vm3159_vm3, %v3031_v53 }
 0x125   : > { %v1864_v61 = vadd.f32 %v7537_v59, %v8465_v3  ;;  %v1855_v63 = vpop.f32.mrb[31].mxu0  ;;  %7789 = vmatmul.mubr.msk.bf16.gmra.mrb[28].mxu1 %vm3159_vm3, %v3032_v52  ;;  %v2793_v1 = vmax.f32 %v1861_v55, 0.0  ;;  %v2757_v59 = vadd.f32 %v7760_v49, %v8465_v3 }
 0x126   : > { %v1856_v0 = vadd.f32 %v1855_v63, %v8465_v3  ;;  %v2791_v4 = vmax.f32 %v1853_v58, 0.0 }
 0x127   : > { %v2794_v2 = vmax.f32 %v1864_v61, 0.0  ;;  %7643 = vmatmul.mubr.msk.bf16.gmra.mrb[136].mxu0 %vm1314_vm2, %v8168_v57  ;;  %v2751_v57 = vpop.f32.mrb[3].mxu1  ;;  %v2760_v61 = vadd.f32 %v7761_v54, %v8465_v3 }
 0x128   : > { %v2792_v5 = vmax.f32 %v1856_v0, 0.0  ;;  %7646 = vmatprep.mubr.msk.bf16.mxu0 %vm1314_vm2, %v8169_v60  ;;  %v2749_v60 = vadd.f32 %v2748_v51, %v8465_v3 }
 0x129   : > { %v3034_v6 = vpack.c.bf16 %v2794_v2, %v2793_v1  ;;  %v2752_v1 = vadd.f32 %v2751_v57, %v8465_v3 }
 0x12a   : > { %v3033_v7 = vpack.c.bf16 %v2792_v5, %v2791_v4  ;;  %v7540_v8 = vpop.f32.mrb[32].mxu0  ;;  %v8176_v5 = vld [vmem:[%s8341_s18 + $0x268] sm:$0xff]  }
 0x12b   : > { %v1877_v9 = vadd.f32 %v7540_v8, %v8465_v3  ;;  %v1868_v10 = vpop.f32.mrb[33].mxu0  ;;  %v3018_v8 = vmax.f32 %v2760_v61, 0.0 }
 0x12c   : > { %v1869_v12 = vadd.f32 %v1868_v10, %v8465_v3  ;;  %v7541_v13 = vpop.f32.mrb[34].mxu0  ;;  %7792 = vmatprep.mubr.msk.bf16.mxu1 %vm3159_vm3, %v3033_v7  ;;  %v3015_v7 = vmax.f32 %v2749_v60, 0.0 }
 0x12d   : > { %v1880_v15 = vadd.f32 %v7541_v13, %v8465_v3  ;;  %v1871_v16 = vpop.f32.mrb[35].mxu0  ;;  %7793 = vmatmul.mubr.msk.bf16.gmra.mrb[32].mxu1 %vm3159_vm3, %v3034_v6  ;;  %v2797_v18 = vmax.f32 %v1877_v9, 0.0  ;;  %v3017_v6 = vmax.f32 %v2757_v59, 0.0  ;;  %v8182_v59 = vld [vmem:[%s8341_s18 + $0x298] sm:$0xff]  }
 0x12e   : > { %v1872_v17 = vadd.f32 %v1871_v16, %v8465_v3  ;;  %v2795_v20 = vmax.f32 %v1869_v12, 0.0  ;;  %v3016_v12 = vmax.f32 %v2752_v1, 0.0 }
 0x12f   : > { %v2798_v19 = vmax.f32 %v1880_v15, 0.0  ;;  %7647 = vmatmul.mubr.msk.bf16.gmra.mrb[140].mxu0 %vm1314_vm2, %v8170_v11  ;;  %v8177_v11 = vld [vmem:[%s8341_s18 + $0x270] sm:$0xff]   ;;  %v8587_v15 = vpack.c.bf16 %v3018_v8, %v3017_v6 }
 0x130   : > { %v2796_v21 = vmax.f32 %v1872_v17, 0.0  ;;  %7650 = vmatprep.mubr.msk.bf16.mxu0 %vm1314_vm2, %v8171_v14  ;;  %v8590_v17 = vpack.c.bf16 %v3016_v12, %v3015_v7 }
 0x131   : > { %v3036_v22 = vpack.c.bf16 %v2798_v19, %v2797_v18  ;;  %10798 = vst [vmem:[#allocation2_spill] sm:$0xff] %v8587_v15 }
 0x132   : > { %v3035_v23 = vpack.c.bf16 %v2796_v21, %v2795_v20  ;;  %v7544_v24 = vpop.f32.mrb[36].mxu0  ;;  %10799 = vst [vmem:[#allocation3_spill] sm:$0xff] %v8590_v17 }
 0x133   : > { %v1893_v25 = vadd.f32 %v7544_v24, %v8465_v3  ;;  %v1884_v26 = vpop.f32.mrb[37].mxu0 }
 0x134   : > { %v1885_v28 = vadd.f32 %v1884_v26, %v8465_v3  ;;  %v7545_v29 = vpop.f32.mrb[38].mxu0  ;;  %7796 = vmatprep.mubr.msk.bf16.mxu1 %vm3159_vm3, %v3035_v23 }
 0x135   : > { %v1896_v31 = vadd.f32 %v7545_v29, %v8465_v3  ;;  %v1887_v32 = vpop.f32.mrb[39].mxu0  ;;  %7797 = vmatmul.mubr.msk.bf16.gmra.mrb[36].mxu1 %vm3159_vm3, %v3036_v22  ;;  %v2801_v34 = vmax.f32 %v1893_v25, 0.0 }
 0x136   : > { %v1888_v33 = vadd.f32 %v1887_v32, %v8465_v3  ;;  %v2799_v36 = vmax.f32 %v1885_v28, 0.0 }
 0x137   : > { %v2802_v35 = vmax.f32 %v1896_v31, 0.0  ;;  %7651 = vmatmul.mubr.msk.bf16.gmra.mrb[144].mxu0 %vm1314_vm2, %v8172_v27  ;;  %v8178_v27 = vld [vmem:[%s8341_s18 + $0x278] sm:$0xff]  }
 0x138   : > { %v2800_v37 = vmax.f32 %v1888_v33, 0.0  ;;  %7654 = vmatprep.mubr.msk.bf16.mxu0 %vm1314_vm2, %v8173_v30  ;;  %v8179_v30 = vld [vmem:[%s8341_s18 + $0x280] sm:$0xff]  }
 0x139   : > { %v3038_v38 = vpack.c.bf16 %v2802_v35, %v2801_v34 }
 0x13a   : > { %v3037_v39 = vpack.c.bf16 %v2800_v37, %v2799_v36  ;;  %v7548_v40 = vpop.f32.mrb[40].mxu0 }
 0x13b   : > { %v1909_v41 = vadd.f32 %v7548_v40, %v8465_v3  ;;  %v1900_v42 = vpop.f32.mrb[41].mxu0 }
 0x13c   : > { %v1901_v44 = vadd.f32 %v1900_v42, %v8465_v3  ;;  %v7549_v45 = vpop.f32.mrb[42].mxu0  ;;  %7800 = vmatprep.mubr.msk.bf16.mxu1 %vm3159_vm3, %v3037_v39 }
 0x13d   : > { %v1912_v47 = vadd.f32 %v7549_v45, %v8465_v3  ;;  %v1903_v48 = vpop.f32.mrb[43].mxu0  ;;  %7801 = vmatmul.mubr.msk.bf16.gmra.mrb[40].mxu1 %vm3159_vm3, %v3038_v38  ;;  %v2805_v52 = vmax.f32 %v1909_v41, 0.0 }
 0x13e   : > { %v1904_v50 = vadd.f32 %v1903_v48, %v8465_v3  ;;  %v2803_v55 = vmax.f32 %v1901_v44, 0.0 }
 0x13f   : > { %v2806_v53 = vmax.f32 %v1912_v47, 0.0  ;;  %7655 = vmatmul.mubr.msk.bf16.gmra.mrb[148].mxu0 %vm1314_vm2, %v8174_v43  ;;  %v8180_v43 = vld [vmem:[%s8341_s18 + $0x288] sm:$0xff]  }
 0x140   : > { %v2804_v56 = vmax.f32 %v1904_v50, 0.0  ;;  %7658 = vmatprep.mubr.msk.bf16.mxu0 %vm1314_vm2, %v8175_v46  ;;  %v8181_v46 = vld [vmem:[%s8341_s18 + $0x290] sm:$0xff]  }
 0x141   : > { %v3040_v58 = vpack.c.bf16 %v2806_v53, %v2805_v52 }
 0x142   : > { %v3039_v63 = vpack.c.bf16 %v2804_v56, %v2803_v55  ;;  %v7552_v0 = vpop.f32.mrb[44].mxu0 }
 0x143   : > { %v1925_v2 = vadd.f32 %v7552_v0, %v8465_v3  ;;  %v1916_v4 = vpop.f32.mrb[45].mxu0 }
 0x144   : > { %v1917_v9 = vadd.f32 %v1916_v4, %v8465_v3  ;;  %v7553_v10 = vpop.f32.mrb[46].mxu0  ;;  %7804 = vmatprep.mubr.msk.bf16.mxu1 %vm3159_vm3, %v3039_v63  ;;  %v8183_v63 = vld [vmem:[%s8341_s18 + $0x2a0] sm:$0xff]  }
 0x145   : > { %v1928_v13 = vadd.f32 %v7553_v10, %v8465_v3  ;;  %v1919_v14 = vpop.f32.mrb[47].mxu0  ;;  %7805 = vmatmul.mubr.msk.bf16.gmra.mrb[44].mxu1 %vm3159_vm3, %v3040_v58  ;;  %v2809_v18 = vmax.f32 %v1925_v2, 0.0 }
 0x146   : > { %v1920_v16 = vadd.f32 %v1919_v14, %v8465_v3  ;;  %v2807_v20 = vmax.f32 %v1917_v9, 0.0 }
 0x147   : > { %v2810_v19 = vmax.f32 %v1928_v13, 0.0  ;;  %7659 = vmatmul.mubr.msk.bf16.gmra.mrb[152].mxu0 %vm1314_vm2, %v8176_v5  ;;  %v8184_v13 = vld [vmem:[%s8341_s18 + $0x2a8] sm:$0xff]  }
 0x148   : > { %v2808_v21 = vmax.f32 %v1920_v16, 0.0  ;;  %7662 = vmatprep.mubr.msk.bf16.mxu0 %vm1314_vm2, %v8177_v11 }
 0x149   : > { %v3042_v22 = vpack.c.bf16 %v2810_v19, %v2809_v18  ;;  %v8185_v18 = vld [vmem:[%s8341_s18 + $0x2b0] sm:$0xff]  }
 0x14a   : > { %v3041_v23 = vpack.c.bf16 %v2808_v21, %v2807_v20  ;;  %v7556_v24 = vpop.f32.mrb[48].mxu0 }
 0x14b   : > { %v1941_v25 = vadd.f32 %v7556_v24, %v8465_v3  ;;  %v1932_v26 = vpop.f32.mrb[49].mxu0 }
 0x14c   : > { %v1933_v28 = vadd.f32 %v1932_v26, %v8465_v3  ;;  %v7557_v29 = vpop.f32.mrb[50].mxu0  ;;  %7808 = vmatprep.mubr.msk.bf16.mxu1 %vm3159_vm3, %v3041_v23 }
 0x14d   : > { %v1944_v31 = vadd.f32 %v7557_v29, %v8465_v3  ;;  %v1935_v32 = vpop.f32.mrb[51].mxu0  ;;  %7809 = vmatmul.mubr.msk.bf16.gmra.mrb[48].mxu1 %vm3159_vm3, %v3042_v22  ;;  %v2813_v34 = vmax.f32 %v1941_v25, 0.0 }
 0x14e   : > { %v1936_v33 = vadd.f32 %v1935_v32, %v8465_v3  ;;  %v2811_v36 = vmax.f32 %v1933_v28, 0.0 }
 0x14f   : > { %v2814_v35 = vmax.f32 %v1944_v31, 0.0  ;;  %7663 = vmatmul.mubr.msk.bf16.gmra.mrb[156].mxu0 %vm1314_vm2, %v8178_v27  ;;  %v8186_v31 = vld [vmem:[%s8341_s18 + $0x2b8] sm:$0xff]  }
 0x150   : > { %v2812_v37 = vmax.f32 %v1936_v33, 0.0  ;;  %7666 = vmatprep.mubr.msk.bf16.mxu0 %vm1314_vm2, %v8179_v30 }
 0x151   : > { %v3044_v38 = vpack.c.bf16 %v2814_v35, %v2813_v34  ;;  %v8187_v34 = vld [vmem:[%s8341_s18 + $0x2c0] sm:$0xff]  }
 0x152   : > { %v3043_v39 = vpack.c.bf16 %v2812_v37, %v2811_v36  ;;  %v7560_v40 = vpop.f32.mrb[52].mxu0 }
 0x153   : > { %v1957_v41 = vadd.f32 %v7560_v40, %v8465_v3  ;;  %v1948_v42 = vpop.f32.mrb[53].mxu0 }
 0x154   : > { %v1949_v44 = vadd.f32 %v1948_v42, %v8465_v3  ;;  %v7561_v45 = vpop.f32.mrb[54].mxu0  ;;  %7812 = vmatprep.mubr.msk.bf16.mxu1 %vm3159_vm3, %v3043_v39 }
 0x155   : > { %v1960_v47 = vadd.f32 %v7561_v45, %v8465_v3  ;;  %v1951_v48 = vpop.f32.mrb[55].mxu0  ;;  %7813 = vmatmul.mubr.msk.bf16.gmra.mrb[52].mxu1 %vm3159_vm3, %v3044_v38  ;;  %v2817_v50 = vmax.f32 %v1957_v41, 0.0 }
 0x156   : > { %v1952_v49 = vadd.f32 %v1951_v48, %v8465_v3  ;;  %v2815_v52 = vmax.f32 %v1949_v44, 0.0 }
 0x157   : > { %v2818_v51 = vmax.f32 %v1960_v47, 0.0  ;;  %7667 = vmatmul.mubr.msk.bf16.gmra.mrb[160].mxu0 %vm1314_vm2, %v8180_v43  ;;  %v8188_v47 = vld [vmem:[%s8341_s18 + $0x2c8] sm:$0xff]  }
 0x158   : > { %v2816_v53 = vmax.f32 %v1952_v49, 0.0  ;;  %7670 = vmatprep.mubr.msk.bf16.mxu0 %vm1314_vm2, %v8181_v46 }
 0x159   : > { %v3046_v54 = vpack.c.bf16 %v2818_v51, %v2817_v50  ;;  %v8189_v50 = vld [vmem:[%s8341_s18 + $0x2d0] sm:$0xff]  }
 0x15a   : > { %v3045_v55 = vpack.c.bf16 %v2816_v53, %v2815_v52  ;;  %v7564_v56 = vpop.f32.mrb[56].mxu0 }
 0x15b   : > { %v1973_v57 = vadd.f32 %v7564_v56, %v8465_v3  ;;  %v1964_v58 = vpop.f32.mrb[57].mxu0 }
 0x15c   : > { %v1965_v60 = vadd.f32 %v1964_v58, %v8465_v3  ;;  %v7565_v61 = vpop.f32.mrb[58].mxu0  ;;  %7816 = vmatprep.mubr.msk.bf16.mxu1 %vm3159_vm3, %v3045_v55 }
 0x15d   : > { %v1976_v0 = vadd.f32 %v7565_v61, %v8465_v3  ;;  %v1967_v1 = vpop.f32.mrb[59].mxu0  ;;  %7817 = vmatmul.mubr.msk.bf16.gmra.mrb[56].mxu1 %vm3159_vm3, %v3046_v54  ;;  %v2821_v4 = vmax.f32 %v1973_v57, 0.0 }
 0x15e   : > { %v1968_v2 = vadd.f32 %v1967_v1, %v8465_v3  ;;  %v2819_v6 = vmax.f32 %v1965_v60, 0.0 }
 0x15f   : > { %v2822_v5 = vmax.f32 %v1976_v0, 0.0  ;;  %7671 = vmatmul.mubr.msk.bf16.gmra.mrb[164].mxu0 %vm1314_vm2, %v8182_v59  ;;  %v8190_v0 = vld [vmem:[%s8341_s18 + $0x2d8] sm:$0xff]  }
 0x160   : > { %v2820_v7 = vmax.f32 %v1968_v2, 0.0  ;;  %7674 = vmatprep.mubr.msk.bf16.mxu0 %vm1314_vm2, %v8183_v63 }
 0x161   : > { %v3048_v8 = vpack.c.bf16 %v2822_v5, %v2821_v4  ;;  %v8191_v4 = vld [vmem:[%s8341_s18 + $0x2e0] sm:$0xff]  }
 0x162   : > { %v3047_v9 = vpack.c.bf16 %v2820_v7, %v2819_v6  ;;  %v7568_v10 = vpop.f32.mrb[60].mxu0 }
 0x163   : > { %v1989_v11 = vadd.f32 %v7568_v10, %v8465_v3  ;;  %v1980_v12 = vpop.f32.mrb[61].mxu0 }
 0x164   : > { %v1981_v14 = vadd.f32 %v1980_v12, %v8465_v3  ;;  %v7569_v16 = vpop.f32.mrb[62].mxu0  ;;  %7820 = vmatprep.mubr.msk.bf16.mxu1 %vm3159_vm3, %v3047_v9 }
 0x165   : > { %v1992_v19 = vadd.f32 %v7569_v16, %v8465_v3  ;;  %v1983_v20 = vpop.f32.mrb[63].mxu0  ;;  %7821 = vmatmul.mubr.msk.bf16.gmra.mrb[60].mxu1 %vm3159_vm3, %v3048_v8  ;;  %v2825_v22 = vmax.f32 %v1989_v11, 0.0 }
 0x166   : > { %v1984_v21 = vadd.f32 %v1983_v20, %v8465_v3  ;;  %v2823_v24 = vmax.f32 %v1981_v14, 0.0 }
 0x167   : > { %v2826_v23 = vmax.f32 %v1992_v19, 0.0  ;;  %7675 = vmatmul.mubr.msk.bf16.gmra.mrb[168].mxu0 %vm1314_vm2, %v8184_v13  ;;  %v8192_v19 = vld [vmem:[%s8341_s18 + $0x2e8] sm:$0xff]  }
 0x168   : > { %v2824_v25 = vmax.f32 %v1984_v21, 0.0  ;;  %7678 = vmatprep.mubr.msk.bf16.mxu0 %vm1314_vm2, %v8185_v18 }
 0x169   : > { %v3050_v26 = vpack.c.bf16 %v2826_v23, %v2825_v22  ;;  %v8193_v22 = vld [vmem:[%s8341_s18 + $0x2f0] sm:$0xff]  }
 0x16a   : > { %v3049_v27 = vpack.c.bf16 %v2824_v25, %v2823_v24  ;;  %v7572_v28 = vpop.f32.mrb[64].mxu0 }
 0x16b   : > { %v2005_v29 = vadd.f32 %v7572_v28, %v8465_v3  ;;  %v1996_v30 = vpop.f32.mrb[65].mxu0 }
 0x16c   : > { %v1997_v32 = vadd.f32 %v1996_v30, %v8465_v3  ;;  %v7573_v33 = vpop.f32.mrb[66].mxu0  ;;  %7824 = vmatprep.mubr.msk.bf16.mxu1 %vm3159_vm3, %v3049_v27 }
 0x16d   : > { %v2008_v35 = vadd.f32 %v7573_v33, %v8465_v3  ;;  %v1999_v36 = vpop.f32.mrb[67].mxu0  ;;  %7825 = vmatmul.mubr.msk.bf16.gmra.mrb[64].mxu1 %vm3159_vm3, %v3050_v26  ;;  %v2829_v38 = vmax.f32 %v2005_v29, 0.0 }
 0x16e   : > { %v2000_v37 = vadd.f32 %v1999_v36, %v8465_v3  ;;  %v2827_v40 = vmax.f32 %v1997_v32, 0.0 }
 0x16f   : > { %v2830_v39 = vmax.f32 %v2008_v35, 0.0  ;;  %7679 = vmatmul.mubr.msk.bf16.gmra.mrb[172].mxu0 %vm1314_vm2, %v8186_v31  ;;  %v8194_v35 = vld [vmem:[%s8341_s18 + $0x2f8] sm:$0xff]  }
 0x170   : > { %v2828_v41 = vmax.f32 %v2000_v37, 0.0  ;;  %7682 = vmatprep.mubr.msk.bf16.mxu0 %vm1314_vm2, %v8187_v34 }
 0x171   : > { %v3052_v42 = vpack.c.bf16 %v2830_v39, %v2829_v38  ;;  %v8195_v38 = vld [vmem:[%s8341_s18 + $0x300] sm:$0xff]  }
 0x172   : > { %v3051_v43 = vpack.c.bf16 %v2828_v41, %v2827_v40  ;;  %v7576_v44 = vpop.f32.mrb[68].mxu0 }
 0x173   : > { %v2021_v45 = vadd.f32 %v7576_v44, %v8465_v3  ;;  %v2012_v46 = vpop.f32.mrb[69].mxu0 }
 0x174   : > { %v2013_v48 = vadd.f32 %v2012_v46, %v8465_v3  ;;  %v7577_v49 = vpop.f32.mrb[70].mxu0  ;;  %7828 = vmatprep.mubr.msk.bf16.mxu1 %vm3159_vm3, %v3051_v43 }
 0x175   : > { %v2024_v51 = vadd.f32 %v7577_v49, %v8465_v3  ;;  %v2015_v52 = vpop.f32.mrb[71].mxu0  ;;  %7829 = vmatmul.mubr.msk.bf16.gmra.mrb[68].mxu1 %vm3159_vm3, %v3052_v42  ;;  %v2833_v54 = vmax.f32 %v2021_v45, 0.0 }
 0x176   : > { %v2016_v53 = vadd.f32 %v2015_v52, %v8465_v3  ;;  %v2831_v56 = vmax.f32 %v2013_v48, 0.0 }
 0x177   : > { %v2834_v55 = vmax.f32 %v2024_v51, 0.0  ;;  %7683 = vmatmul.mubr.msk.bf16.gmra.mrb[176].mxu0 %vm1314_vm2, %v8188_v47  ;;  %v8196_v51 = vld [vmem:[%s8341_s18 + $0x308] sm:$0xff]  }
 0x178   : > { %v2832_v57 = vmax.f32 %v2016_v53, 0.0  ;;  %7686 = vmatprep.mubr.msk.bf16.mxu0 %vm1314_vm2, %v8189_v50 }
 0x179   : > { %v3054_v58 = vpack.c.bf16 %v2834_v55, %v2833_v54  ;;  %v8197_v54 = vld [vmem:[%s8341_s18 + $0x310] sm:$0xff]  }
 0x17a   : > { %v3053_v59 = vpack.c.bf16 %v2832_v57, %v2831_v56  ;;  %v7580_v60 = vpop.f32.mrb[72].mxu0 }
 0x17b   : > { %v2037_v61 = vadd.f32 %v7580_v60, %v8465_v3  ;;  %v2028_v63 = vpop.f32.mrb[73].mxu0 }
 0x17c   : > { %v2029_v1 = vadd.f32 %v2028_v63, %v8465_v3  ;;  %v7581_v2 = vpop.f32.mrb[74].mxu0  ;;  %7832 = vmatprep.mubr.msk.bf16.mxu1 %vm3159_vm3, %v3053_v59 }
 0x17d   : > { %v2040_v5 = vadd.f32 %v7581_v2, %v8465_v3  ;;  %v2031_v6 = vpop.f32.mrb[75].mxu0  ;;  %7833 = vmatmul.mubr.msk.bf16.gmra.mrb[72].mxu1 %vm3159_vm3, %v3054_v58  ;;  %v2837_v8 = vmax.f32 %v2037_v61, 0.0 }
 0x17e   : > { %v2032_v7 = vadd.f32 %v2031_v6, %v8465_v3  ;;  %v2835_v10 = vmax.f32 %v2029_v1, 0.0 }
 0x17f   : > { %v2838_v9 = vmax.f32 %v2040_v5, 0.0  ;;  %7687 = vmatmul.mubr.msk.bf16.gmra.mrb[180].mxu0 %vm1314_vm2, %v8190_v0  ;;  %v8198_v5 = vld [vmem:[%s8341_s18 + $0x318] sm:$0xff]  }
 0x180   : > { %v2836_v11 = vmax.f32 %v2032_v7, 0.0  ;;  %7690 = vmatprep.mubr.msk.bf16.mxu0 %vm1314_vm2, %v8191_v4 }
 0x181   : > { %v3056_v12 = vpack.c.bf16 %v2838_v9, %v2837_v8  ;;  %v8199_v8 = vld [vmem:[%s8341_s18 + $0x320] sm:$0xff]  }
 0x182   : > { %v3055_v13 = vpack.c.bf16 %v2836_v11, %v2835_v10  ;;  %v7584_v14 = vpop.f32.mrb[76].mxu0 }
 0x183   : > { %v2053_v16 = vadd.f32 %v7584_v14, %v8465_v3  ;;  %v2044_v18 = vpop.f32.mrb[77].mxu0 }
 0x184   : > { %v2045_v20 = vadd.f32 %v2044_v18, %v8465_v3  ;;  %v7585_v21 = vpop.f32.mrb[78].mxu0  ;;  %7836 = vmatprep.mubr.msk.bf16.mxu1 %vm3159_vm3, %v3055_v13 }
 0x185   : > { %v2056_v23 = vadd.f32 %v7585_v21, %v8465_v3  ;;  %v2047_v24 = vpop.f32.mrb[79].mxu0  ;;  %7837 = vmatmul.mubr.msk.bf16.gmra.mrb[76].mxu1 %vm3159_vm3, %v3056_v12  ;;  %v2841_v26 = vmax.f32 %v2053_v16, 0.0 }
 0x186   : > { %v2048_v25 = vadd.f32 %v2047_v24, %v8465_v3  ;;  %v2839_v28 = vmax.f32 %v2045_v20, 0.0 }
 0x187   : > { %v2842_v27 = vmax.f32 %v2056_v23, 0.0  ;;  %7691 = vmatmul.mubr.msk.bf16.gmra.mrb[184].mxu0 %vm1314_vm2, %v8192_v19  ;;  %v8200_v23 = vld [vmem:[%s8341_s18 + $0x328] sm:$0xff]  }
 0x188   : > { %v2840_v29 = vmax.f32 %v2048_v25, 0.0  ;;  %7694 = vmatprep.mubr.msk.bf16.mxu0 %vm1314_vm2, %v8193_v22 }
 0x189   : > { %v3058_v30 = vpack.c.bf16 %v2842_v27, %v2841_v26  ;;  %v8201_v26 = vld [vmem:[%s8341_s18 + $0x330] sm:$0xff]  }
 0x18a   : > { %v3057_v31 = vpack.c.bf16 %v2840_v29, %v2839_v28  ;;  %v7588_v32 = vpop.f32.mrb[80].mxu0 }
 0x18b   : > { %v2069_v33 = vadd.f32 %v7588_v32, %v8465_v3  ;;  %v2060_v34 = vpop.f32.mrb[81].mxu0 }
 0x18c   : > { %v2061_v36 = vadd.f32 %v2060_v34, %v8465_v3  ;;  %v7589_v37 = vpop.f32.mrb[82].mxu0  ;;  %7840 = vmatprep.mubr.msk.bf16.mxu1 %vm3159_vm3, %v3057_v31 }
 0x18d   : > { %v2072_v39 = vadd.f32 %v7589_v37, %v8465_v3  ;;  %v2063_v40 = vpop.f32.mrb[83].mxu0  ;;  %7841 = vmatmul.mubr.msk.bf16.gmra.mrb[80].mxu1 %vm3159_vm3, %v3058_v30  ;;  %v2845_v42 = vmax.f32 %v2069_v33, 0.0 }
 0x18e   : > { %v2064_v41 = vadd.f32 %v2063_v40, %v8465_v3  ;;  %v2843_v44 = vmax.f32 %v2061_v36, 0.0 }
 0x18f   : > { %v2846_v43 = vmax.f32 %v2072_v39, 0.0  ;;  %7695 = vmatmul.mubr.msk.bf16.gmra.mrb[188].mxu0 %vm1314_vm2, %v8194_v35  ;;  %v8202_v39 = vld [vmem:[%s8341_s18 + $0x338] sm:$0xff]  }
 0x190   : > { %v2844_v45 = vmax.f32 %v2064_v41, 0.0  ;;  %7698 = vmatprep.mubr.msk.bf16.mxu0 %vm1314_vm2, %v8195_v38 }
 0x191   : > { %v3060_v46 = vpack.c.bf16 %v2846_v43, %v2845_v42  ;;  %v8203_v42 = vld [vmem:[%s8341_s18 + $0x340] sm:$0xff]  }
 0x192   : > { %v3059_v47 = vpack.c.bf16 %v2844_v45, %v2843_v44  ;;  %v7592_v48 = vpop.f32.mrb[84].mxu0 }
 0x193   : > { %v2085_v49 = vadd.f32 %v7592_v48, %v8465_v3  ;;  %v2076_v50 = vpop.f32.mrb[85].mxu0 }
 0x194   : > { %v2077_v52 = vadd.f32 %v2076_v50, %v8465_v3  ;;  %v7593_v53 = vpop.f32.mrb[86].mxu0  ;;  %7844 = vmatprep.mubr.msk.bf16.mxu1 %vm3159_vm3, %v3059_v47 }
 0x195   : > { %v2088_v55 = vadd.f32 %v7593_v53, %v8465_v3  ;;  %v2079_v56 = vpop.f32.mrb[87].mxu0  ;;  %7845 = vmatmul.mubr.msk.bf16.gmra.mrb[84].mxu1 %vm3159_vm3, %v3060_v46  ;;  %v2849_v58 = vmax.f32 %v2085_v49, 0.0 }
 0x196   : > { %v2080_v57 = vadd.f32 %v2079_v56, %v8465_v3  ;;  %v2847_v60 = vmax.f32 %v2077_v52, 0.0 }
 0x197   : > { %v2850_v59 = vmax.f32 %v2088_v55, 0.0  ;;  %7699 = vmatmul.mubr.msk.bf16.gmra.mrb[192].mxu0 %vm1314_vm2, %v8196_v51  ;;  %v8204_v55 = vld [vmem:[%s8341_s18 + $0x348] sm:$0xff]  }
 0x198   : > { %v2848_v61 = vmax.f32 %v2080_v57, 0.0  ;;  %7702 = vmatprep.mubr.msk.bf16.mxu0 %vm1314_vm2, %v8197_v54 }
 0x199   : > { %v3062_v63 = vpack.c.bf16 %v2850_v59, %v2849_v58  ;;  %v8205_v58 = vld [vmem:[%s8341_s18 + $0x350] sm:$0xff]  }
 0x19a   : > { %v3061_v0 = vpack.c.bf16 %v2848_v61, %v2847_v60  ;;  %v7596_v1 = vpop.f32.mrb[88].mxu0 }
 0x19b   : > { %v2101_v2 = vadd.f32 %v7596_v1, %v8465_v3  ;;  %v2092_v4 = vpop.f32.mrb[89].mxu0 }
 0x19c   : > { %v2093_v6 = vadd.f32 %v2092_v4, %v8465_v3  ;;  %v7597_v7 = vpop.f32.mrb[90].mxu0  ;;  %7848 = vmatprep.mubr.msk.bf16.mxu1 %vm3159_vm3, %v3061_v0 }
 0x19d   : > { %v2104_v9 = vadd.f32 %v7597_v7, %v8465_v3  ;;  %v2095_v10 = vpop.f32.mrb[91].mxu0  ;;  %7849 = vmatmul.mubr.msk.bf16.gmra.mrb[88].mxu1 %vm3159_vm3, %v3062_v63  ;;  %v2853_v12 = vmax.f32 %v2101_v2, 0.0 }
 0x19e   : > { %v2096_v11 = vadd.f32 %v2095_v10, %v8465_v3  ;;  %v2851_v14 = vmax.f32 %v2093_v6, 0.0 }
 0x19f   : > { %v2854_v13 = vmax.f32 %v2104_v9, 0.0  ;;  %7703 = vmatmul.mubr.msk.bf16.gmra.mrb[196].mxu0 %vm1314_vm2, %v8198_v5  ;;  %v8206_v9 = vld [vmem:[%s8341_s18 + $0x358] sm:$0xff]  }
 0x1a0   : > { %v2852_v16 = vmax.f32 %v2096_v11, 0.0  ;;  %7706 = vmatprep.mubr.msk.bf16.mxu0 %vm1314_vm2, %v8199_v8 }
 0x1a1   : > { %v3064_v18 = vpack.c.bf16 %v2854_v13, %v2853_v12  ;;  %v8207_v12 = vld [vmem:[%s8341_s18 + $0x360] sm:$0xff]  }
 0x1a2   : > { %v3063_v19 = vpack.c.bf16 %v2852_v16, %v2851_v14  ;;  %v7600_v20 = vpop.f32.mrb[92].mxu0 }
 0x1a3   : > { %v2117_v21 = vadd.f32 %v7600_v20, %v8465_v3  ;;  %v2108_v22 = vpop.f32.mrb[93].mxu0 }
 0x1a4   : > { %v2109_v24 = vadd.f32 %v2108_v22, %v8465_v3  ;;  %v7601_v25 = vpop.f32.mrb[94].mxu0  ;;  %7852 = vmatprep.mubr.msk.bf16.mxu1 %vm3159_vm3, %v3063_v19 }
 0x1a5   : > { %v2120_v27 = vadd.f32 %v7601_v25, %v8465_v3  ;;  %v2111_v28 = vpop.f32.mrb[95].mxu0  ;;  %7853 = vmatmul.mubr.msk.bf16.gmra.mrb[92].mxu1 %vm3159_vm3, %v3064_v18  ;;  %v2857_v30 = vmax.f32 %v2117_v21, 0.0 }
 0x1a6   : > { %v2112_v29 = vadd.f32 %v2111_v28, %v8465_v3  ;;  %v2855_v32 = vmax.f32 %v2109_v24, 0.0  ;;  %v8208_v28 = vld [vmem:[%s8341_s18 + $0x368] sm:$0xff]  }
 0x1a7   : > { %v2858_v31 = vmax.f32 %v2120_v27, 0.0  ;;  %7707 = vmatmul.mubr.msk.bf16.gmra.mrb[200].mxu0 %vm1314_vm2, %v8200_v23  ;;  %v3151_v23 = vsub.s32 1, %v8455_v62  ;;  %v8235_v62 = vld [vmem:[%s10792_s4] sm:$0x3] }
 0x1a8   : > { %v2856_v33 = vmax.f32 %v2112_v29, 0.0  ;;  %7710 = vmatprep.mubr.msk.bf16.mxu0 %vm1314_vm2, %v8201_v26 }
 0x1a9   : > { %v3066_v34 = vpack.c.bf16 %v2858_v31, %v2857_v30  ;;  %v8209_v31 = vld [vmem:[%s8341_s18 + $0x370] sm:$0xff]  }
 0x1aa   : > { %v3065_v35 = vpack.c.bf16 %v2856_v33, %v2855_v32  ;;  %v7604_v36 = vpop.f32.mrb[96].mxu0 }
 0x1ab   : > { %v2133_v37 = vadd.f32 %v7604_v36, %v8465_v3  ;;  %v2124_v38 = vpop.f32.mrb[97].mxu0 }
 0x1ac   : > { %v2125_v40 = vadd.f32 %v2124_v38, %v8465_v3  ;;  %v7605_v41 = vpop.f32.mrb[98].mxu0  ;;  %7856 = vmatprep.mubr.msk.bf16.mxu1 %vm3159_vm3, %v3065_v35 }
 0x1ad   : > { %v2136_v43 = vadd.f32 %v7605_v41, %v8465_v3  ;;  %v2127_v44 = vpop.f32.mrb[99].mxu0  ;;  %7857 = vmatmul.mubr.msk.bf16.gmra.mrb[96].mxu1 %vm3159_vm3, %v3066_v34  ;;  %v2861_v46 = vmax.f32 %v2133_v37, 0.0  ;;  %v8755_v34 = vrot.slane %v8235_v62, %v3151_v23 }
 0x1ae   : > { %v2128_v45 = vadd.f32 %v2127_v44, %v8465_v3  ;;  %v2859_v48 = vmax.f32 %v2125_v40, 0.0 }
 0x1af   : > { %v2862_v47 = vmax.f32 %v2136_v43, 0.0  ;;  %7711 = vmatmul.mubr.msk.bf16.gmra.mrb[204].mxu0 %vm1314_vm2, %v8202_v39 }
 0x1b0   : > { %v2860_v49 = vmax.f32 %v2128_v45, 0.0  ;;  %7714 = vmatprep.mubr.msk.bf16.mxu0 %vm1314_vm2, %v8203_v42 }
 0x1b1   : > { %v3068_v50 = vpack.c.bf16 %v2862_v47, %v2861_v46 }
 0x1b2   : > { %v3067_v51 = vpack.c.bf16 %v2860_v49, %v2859_v48  ;;  %v7608_v52 = vpop.f32.mrb[100].mxu0 }
 0x1b3   : > { %v2149_v53 = vadd.f32 %v7608_v52, %v8465_v3  ;;  %v2140_v54 = vpop.f32.mrb[101].mxu0 }
 0x1b4   : > { %v2141_v56 = vadd.f32 %v2140_v54, %v8465_v3  ;;  %v7609_v57 = vpop.f32.mrb[102].mxu0  ;;  %7860 = vmatprep.mubr.msk.bf16.mxu1 %vm3159_vm3, %v3067_v51 }
 0x1b5   : > { %v2152_v59 = vadd.f32 %v7609_v57, %v8465_v3  ;;  %v2143_v60 = vpop.f32.mrb[103].mxu0  ;;  %7861 = vmatmul.mubr.msk.bf16.gmra.mrb[100].mxu1 %vm3159_vm3, %v3068_v50  ;;  %v2865_v63 = vmax.f32 %v2149_v53, 0.0  ;;  %v8210_v53 = vld [vmem:[%s8341_s18 + $0x378] sm:$0xff]  }
 0x1b6   : > { %v2144_v61 = vadd.f32 %v2143_v60, %v8465_v3  ;;  %v2863_v1 = vmax.f32 %v2141_v56, 0.0 }
 0x1b7   : > { %v2866_v0 = vmax.f32 %v2152_v59, 0.0  ;;  %7715 = vmatmul.mubr.msk.bf16.gmra.mrb[208].mxu0 %vm1314_vm2, %v8204_v55 }
 0x1b8   : > { %v2864_v2 = vmax.f32 %v2144_v61, 0.0  ;;  %7718 = vmatprep.mubr.msk.bf16.mxu0 %vm1314_vm2, %v8205_v58  ;;  %v8211_v58 = vld [vmem:[%s8341_s18 + $0x380] sm:$0xff]  }
 0x1b9   : > { %v3070_v4 = vpack.c.bf16 %v2866_v0, %v2865_v63 }
 0x1ba   : > { %v3069_v5 = vpack.c.bf16 %v2864_v2, %v2863_v1  ;;  %v7612_v6 = vpop.f32.mrb[104].mxu0 }
 0x1bb   : > { %v2165_v7 = vadd.f32 %v7612_v6, %v8465_v3  ;;  %v2156_v8 = vpop.f32.mrb[105].mxu0 }
 0x1bc   : > { %v2157_v10 = vadd.f32 %v2156_v8, %v8465_v3  ;;  %v7613_v11 = vpop.f32.mrb[106].mxu0  ;;  %7864 = vmatprep.mubr.msk.bf16.mxu1 %vm3159_vm3, %v3069_v5 }
 0x1bd   : > { %v2168_v13 = vadd.f32 %v7613_v11, %v8465_v3  ;;  %v2159_v14 = vpop.f32.mrb[107].mxu0  ;;  %7865 = vmatmul.mubr.msk.bf16.gmra.mrb[104].mxu1 %vm3159_vm3, %v3070_v4  ;;  %v2869_v18 = vmax.f32 %v2165_v7, 0.0 }
 0x1be   : > { %v2160_v16 = vadd.f32 %v2159_v14, %v8465_v3  ;;  %v2867_v20 = vmax.f32 %v2157_v10, 0.0 }
 0x1bf   : > { %v2870_v19 = vmax.f32 %v2168_v13, 0.0  ;;  %7719 = vmatmul.mubr.msk.bf16.gmra.mrb[212].mxu0 %vm1314_vm2, %v8206_v9 }
 0x1c0   : > { %v2868_v21 = vmax.f32 %v2160_v16, 0.0  ;;  %7722 = vmatprep.mubr.msk.bf16.mxu0 %vm1314_vm2, %v8207_v12 }
 0x1c1   : > { %v3072_v22 = vpack.c.bf16 %v2870_v19, %v2869_v18 }
 0x1c2   : > { %v3071_v24 = vpack.c.bf16 %v2868_v21, %v2867_v20  ;;  %v7616_v25 = vpop.f32.mrb[108].mxu0 }
 0x1c3   : > { %v2181_v26 = vadd.f32 %v7616_v25, %v8465_v3  ;;  %v2172_v27 = vpop.f32.mrb[109].mxu0 }
 0x1c4   : > { %v2173_v29 = vadd.f32 %v2172_v27, %v8465_v3  ;;  %v7617_v30 = vpop.f32.mrb[110].mxu0  ;;  %7868 = vmatprep.mubr.msk.bf16.mxu1 %vm3159_vm3, %v3071_v24 }
 0x1c5   : > { %v2184_v32 = vadd.f32 %v7617_v30, %v8465_v3  ;;  %v2175_v33 = vpop.f32.mrb[111].mxu0  ;;  %7869 = vmatmul.mubr.msk.bf16.gmra.mrb[108].mxu1 %vm3159_vm3, %v3072_v22  ;;  %v2873_v36 = vmax.f32 %v2181_v26, 0.0 }
 0x1c6   : > { %v2176_v35 = vadd.f32 %v2175_v33, %v8465_v3  ;;  %v2871_v38 = vmax.f32 %v2173_v29, 0.0  ;;  %v8212_v29 = vld [vmem:[%s8341_s18 + $0x388] sm:$0xff]  }
 0x1c7   : > { %v2874_v37 = vmax.f32 %v2184_v32, 0.0  ;;  %7723 = vmatmul.mubr.msk.bf16.gmra.mrb[216].mxu0 %vm1314_vm2, %v8208_v28 }
 0x1c8   : > { %v2872_v39 = vmax.f32 %v2176_v35, 0.0  ;;  %v7766_v40 = vpop.f32.mrb[4].mxu1  ;;  %7726 = vmatprep.mubr.msk.bf16.mxu0 %vm1314_vm2, %v8209_v31  ;;  %v8213_v35 = vld [vmem:[%s8341_s18 + $0x390] sm:$0xff]  }
 0x1c9   : > { %v3074_v41 = vpack.c.bf16 %v2874_v37, %v2873_v36  ;;  %v3587_v42 = vadd.f32 %v7766_v40, %v8755_v34  ;;  %v3578_v43 = vpop.f32.mrb[5].mxu1 }
 0x1ca   : > { %v3073_v44 = vpack.c.bf16 %v2872_v39, %v2871_v38  ;;  %v3579_v45 = vadd.f32 %v3578_v43, %v8755_v34  ;;  %v7620_v46 = vpop.f32.mrb[112].mxu0  ;;  %v7767_v47 = vpop.f32.mrb[6].mxu1 }
 0x1cb   : > { %v4603_v48 = vmax.f32 %v3587_v42, 0.0  ;;  %v2197_v49 = vadd.f32 %v7620_v46, %v8465_v3  ;;  %v3590_v50 = vadd.f32 %v7767_v47, %v8755_v34  ;;  %v2188_v51 = vpop.f32.mrb[113].mxu0  ;;  %v3581_v52 = vpop.f32.mrb[7].mxu1 }
 0x1cc   : > { %v4601_v54 = vmax.f32 %v3579_v45, 0.0  ;;  %v2189_v55 = vadd.f32 %v2188_v51, %v8465_v3  ;;  %v3582_v56 = vadd.f32 %v3581_v52, %v8755_v34  ;;  %v7621_v57 = vpop.f32.mrb[114].mxu0  ;;  %7872 = vmatprep.mubr.msk.bf16.mxu1 %vm3159_vm3, %v3073_v44 }
 0x1cd   : > { %v4604_v59 = vmax.f32 %v3590_v50, 0.0  ;;  %v2200_v60 = vadd.f32 %v7621_v57, %v8465_v3  ;;  %v2191_v61 = vpop.f32.mrb[115].mxu0  ;;  %7873 = vmatmul.mubr.msk.bf16.gmra.mrb[112].mxu1 %vm3159_vm3, %v3074_v41  ;;  %v4867_v63 = vsel %vm4857_vm4, %v4603_v48, -inf  ;;  %v2877_v4 = vmax.f32 %v2197_v49, 0.0 }
 0x1ce   : > { %v4602_v0 = vmax.f32 %v3582_v56, 0.0  ;;  %v2192_v1 = vadd.f32 %v2191_v61, %v8465_v3  ;;  %v4858_v2 = vsel %vm4857_vm4, %v4601_v54, -inf  ;;  %v2875_v8 = vmax.f32 %v2189_v55, 0.0 }
 0x1cf   : > { %v4868_v5 = vsel %vm4857_vm4, %v4604_v59, -inf  ;;  %v2878_v6 = vmax.f32 %v2200_v60, 0.0  ;;  %7727 = vmatmul.mubr.msk.bf16.gmra.mrb[220].mxu0 %vm1314_vm2, %v8210_v53 }
 0x1d0   : > { %v4869_v7 = vmax.f32 %v4867_v63, %v4868_v5  ;;  %v4859_v9 = vsel %vm4857_vm4, %v4602_v0, -inf  ;;  %v2876_v10 = vmax.f32 %v2192_v1, 0.0  ;;  %v7770_v11 = vpop.f32.mrb[8].mxu1  ;;  %7730 = vmatprep.mubr.msk.bf16.mxu0 %vm1314_vm2, %v8211_v58 }
 0x1d1   : > { %v4860_v12 = vmax.f32 %v4858_v2, %v4859_v9  ;;  %v3076_v13 = vpack.c.bf16 %v2878_v6, %v2877_v4  ;;  %v3603_v14 = vadd.f32 %v7770_v11, %v8755_v34  ;;  %v3594_v16 = vpop.f32.mrb[9].mxu1 }
 0x1d2   : > { %v4870_v18 = vrot.slane %v4869_v7, 4  ;;  %v3075_v19 = vpack.c.bf16 %v2876_v10, %v2875_v8  ;;  %v3595_v20 = vadd.f32 %v3594_v16, %v8755_v34  ;;  %v7624_v21 = vpop.f32.mrb[116].mxu0  ;;  %v7771_v22 = vpop.f32.mrb[10].mxu1  ;;  %v8214_v8 = vld [vmem:[%s8341_s18 + $0x398] sm:$0xff]  }
 0x1d3   : > { %v4861_v23 = vrot.slane %v4860_v12, 4  ;;  %v4607_v24 = vmax.f32 %v3603_v14, 0.0  ;;  %v2213_v25 = vadd.f32 %v7624_v21, %v8465_v3  ;;  %v3606_v26 = vadd.f32 %v7771_v22, %v8755_v34  ;;  %v2204_v27 = vpop.f32.mrb[117].mxu0  ;;  %v3597_v28 = vpop.f32.mrb[11].mxu1 }
 0x1d4   : > { %v4871_v30 = vmax.f32 %v4869_v7, %v4870_v18  ;;  %v4605_v31 = vmax.f32 %v3595_v20, 0.0  ;;  %v2205_v32 = vadd.f32 %v2204_v27, %v8465_v3  ;;  %v3598_v33 = vadd.f32 %v3597_v28, %v8755_v34  ;;  %v7625_v62 = vpop.f32.mrb[118].mxu0  ;;  %7876 = vmatprep.mubr.msk.bf16.mxu1 %vm3159_vm3, %v3075_v19 }
 0x1d5   : > { %v4862_v36 = vmax.f32 %v4860_v12, %v4861_v23  ;;  %v4885_v37 = vsel %vm4857_vm4, %v4607_v24, -inf  ;;  %v4608_v38 = vmax.f32 %v3606_v26, 0.0  ;;  %v2207_v39 = vpop.f32.mrb[119].mxu0  ;;  %7877 = vmatmul.mubr.msk.bf16.gmra.mrb[116].mxu1 %vm3159_vm3, %v3076_v13  ;;  %v2881_v42 = vmax.f32 %v2213_v25, 0.0  ;;  %v8215_v13 = vld [vmem:[%s8341_s18 + $0x3a0] sm:$0xff]  }
 0x1d6   : > { %v4872_v40 = vrot.slane %v4871_v30, 2  ;;  %v4876_v41 = vsel %vm4857_vm4, %v4605_v31, -inf  ;;  %v4606_v43 = vmax.f32 %v3598_v33, 0.0  ;;  %v2216_v46 = vadd.f32 %v7625_v62, %v8465_v3 }
 0x1d7   : > { %v4863_v44 = vrot.slane %v4862_v36, 2  ;;  %v4886_v45 = vsel %vm4857_vm4, %v4608_v38, -inf  ;;  %v2208_v47 = vadd.f32 %v2207_v39, %v8465_v3  ;;  %7731 = vmatmul.mubr.msk.bf16.gmra.mrb[224].mxu0 %vm1314_vm2, %v8212_v29  ;;  %v2879_v50 = vmax.f32 %v2205_v32, 0.0 }
 0x1d8   : > { %v4873_v48 = vmax.f32 %v4871_v30, %v4872_v40  ;;  %v4887_v49 = vmax.f32 %v4885_v37, %v4886_v45  ;;  %v4877_v51 = vsel %vm4857_vm4, %v4606_v43, -inf  ;;  %v7774_v52 = vpop.f32.mrb[12].mxu1  ;;  %7734 = vmatprep.mubr.msk.bf16.mxu0 %vm1314_vm2, %v8213_v35  ;;  %v2882_v55 = vmax.f32 %v2216_v46, 0.0 }
 0x1d9   : > { %v4864_v53 = vmax.f32 %v4862_v36, %v4863_v44  ;;  %v4878_v54 = vmax.f32 %v4876_v41, %v4877_v51  ;;  %v2880_v56 = vmax.f32 %v2208_v47, 0.0  ;;  %v3610_v57 = vpop.f32.mrb[13].mxu1  ;;  %v3619_v60 = vadd.f32 %v7774_v52, %v8755_v34 }
 0x1da   : > { %v4874_v58 = vrot.slane %v4873_v48, 1  ;;  %v4888_v59 = vrot.slane %v4887_v49, 4  ;;  %v3611_v61 = vadd.f32 %v3610_v57, %v8755_v34  ;;  %v7628_v63 = vpop.f32.mrb[120].mxu0  ;;  %v7775_v0 = vpop.f32.mrb[14].mxu1  ;;  %v3078_v4 = vpack.c.bf16 %v2882_v55, %v2881_v42 }
 0x1db   : > { %v4865_v1 = vrot.slane %v4864_v53, 1  ;;  %v4879_v2 = vrot.slane %v4878_v54, 4  ;;  %v3077_v5 = vpack.c.bf16 %v2880_v56, %v2879_v50  ;;  %v2220_v6 = vpop.f32.mrb[121].mxu0  ;;  %v3613_v7 = vpop.f32.mrb[15].mxu1  ;;  %v4611_v10 = vmax.f32 %v3619_v60, 0.0  ;;  %v8216_v50 = vld [vmem:[%s8341_s18 + $0x3a8] sm:$0xff]  }
 0x1dc   : > { %v4889_v9 = vmax.f32 %v4887_v49, %v4888_v59  ;;  %v4609_v11 = vmax.f32 %v3611_v61, 0.0  ;;  %v7629_v12 = vpop.f32.mrb[122].mxu0  ;;  %v8800_v14 = vmax.f32 %v4873_v48, %v4874_v58  ;;  %v3622_v18 = vadd.f32 %v7775_v0, %v8755_v34  ;;  %v8217_v56 = vld [vmem:[%s8341_s18 + $0x3b0] sm:$0xff]  }
 0x1dd   : > { %v4880_v16 = vmax.f32 %v4878_v54, %v4879_v2  ;;  %7880 = vmatprep.mubr.msk.bf16.mxu1 %vm3159_vm3, %v3077_v5  ;;  %v2223_v19 = vpop.f32.mrb[123].mxu0  ;;  %v8804_v20 = vmax.f32 %v4864_v53, %v4865_v1  ;;  %v4903_v22 = vsel %vm4857_vm4, %v4611_v10, -inf  ;;  %v2229_v23 = vadd.f32 %v7628_v63, %v8465_v3 }
 0x1de   : > { %v4890_v21 = vrot.slane %v4889_v9, 2  ;;  %7881 = vmatmul.mubr.msk.bf16.gmra.mrb[120].mxu1 %vm3159_vm3, %v3078_v4  ;;  %v4612_v25 = vmax.f32 %v3622_v18, 0.0  ;;  %v2221_v26 = vadd.f32 %v2220_v6, %v8465_v3  ;;  %v3614_v27 = vadd.f32 %v3613_v7, %v8755_v34 }
 0x1df   : > { %v4881_v24 = vrot.slane %v4880_v16, 2  ;;  %7735 = vmatmul.mubr.msk.bf16.gmra.mrb[228].mxu0 %vm1314_vm2, %v8214_v8  ;;  %v4894_v29 = vsel %vm4857_vm4, %v4609_v11, -inf  ;;  %v2232_v30 = vadd.f32 %v7629_v12, %v8465_v3  ;;  %v2224_v31 = vadd.f32 %v2223_v19, %v8465_v3 }
 0x1e0   : > { %v8812_v28 = vmax.f32 %v4889_v9, %v4890_v21  ;;  %v7778_v32 = vpop.f32.mrb[16].mxu1  ;;  %7738 = vmatprep.mubr.msk.bf16.mxu0 %vm1314_vm2, %v8215_v13  ;;  %v4904_v62 = vsel %vm4857_vm4, %v4612_v25, -inf  ;;  %v4610_v35 = vmax.f32 %v3614_v27, 0.0  ;;  %v2885_v38 = vmax.f32 %v2229_v23, 0.0 }
 0x1e1   : > { %v8818_v33 = vmax.f32 %v4880_v16, %v4881_v24  ;;  %v3635_v36 = vadd.f32 %v7778_v32, %v8755_v34  ;;  %v3626_v37 = vpop.f32.mrb[17].mxu1  ;;  %v4905_v39 = vmax.f32 %v4903_v22, %v4904_v62  ;;  %v2886_v40 = vmax.f32 %v2232_v30, 0.0 }
 0x1e2   : > { %v2884_v41 = vmax.f32 %v2224_v31, 0.0  ;;  %v7632_v42 = vpop.f32.mrb[124].mxu0  ;;  %v7779_v43 = vpop.f32.mrb[18].mxu1  ;;  %v2883_v44 = vmax.f32 %v2221_v26, 0.0  ;;  %v4895_v45 = vsel %vm4857_vm4, %v4610_v35, -inf  ;;  %v3627_v47 = vadd.f32 %v3626_v37, %v8755_v34 }
 0x1e3   : > { %v4615_v46 = vmax.f32 %v3635_v36, 0.0  ;;  %v2236_v48 = vpop.f32.mrb[125].mxu0  ;;  %v3629_v49 = vpop.f32.mrb[19].mxu1  ;;  %v4892_v51 = vrot.slane %v8812_v28, 1  ;;  %v4906_v52 = vrot.slane %v4905_v39, 4  ;;  %v4896_v53 = vmax.f32 %v4894_v29, %v4895_v45  ;;  %v8218_v36 = vld [vmem:[%s8341_s18 + $0x3b8] sm:$0xff]  }
 0x1e4   : > { %v3080_v54 = vpack.c.bf16 %v2886_v40, %v2885_v38  ;;  %v7633_v55 = vpop.f32.mrb[126].mxu0  ;;  %v4883_v57 = vrot.slane %v8818_v33, 1  ;;  %v3079_v58 = vpack.c.bf16 %v2884_v41, %v2883_v44  ;;  %v4613_v60 = vmax.f32 %v3627_v47, 0.0 }
 0x1e5   : > { %v4921_v59 = vsel %vm4857_vm4, %v4615_v46, -inf  ;;  %v2239_v61 = vpop.f32.mrb[127].mxu0  ;;  %v4907_v63 = vmax.f32 %v4905_v39, %v4906_v52  ;;  %v4897_v0 = vrot.slane %v4896_v53, 4  ;;  %v2245_v1 = vadd.f32 %v7632_v42, %v8465_v3  ;;  %v8219_v42 = vld [vmem:[%s8341_s18 + $0x3c0] sm:$0xff]  }
 0x1e6   : > { %v3638_v2 = vadd.f32 %v7779_v43, %v8755_v34  ;;  %v4912_v4 = vsel %vm4857_vm4, %v4613_v60, -inf  ;;  %v2237_v5 = vadd.f32 %v2236_v48, %v8465_v3  ;;  %v3630_v6 = vadd.f32 %v3629_v49, %v8755_v34  ;;  %7884 = vmatprep.mubr.msk.bf16.mxu1 %vm3159_vm3, %v3079_v58 }
 0x1e7   : > { %v2248_v7 = vadd.f32 %v7633_v55, %v8465_v3  ;;  %7739 = vmatmul.mubr.msk.bf16.gmra.mrb[232].mxu0 %vm1314_vm2, %v8216_v50  ;;  %v4908_v8 = vrot.slane %v4907_v63, 2  ;;  %v4898_v9 = vmax.f32 %v4896_v53, %v4897_v0  ;;  %v2889_v10 = vmax.f32 %v2245_v1, 0.0  ;;  %7885 = vmatmul.mubr.msk.bf16.gmra.mrb[124].mxu1 %vm3159_vm3, %v3080_v54 }
 0x1e8   : > { %v4616_v11 = vmax.f32 %v3638_v2, 0.0  ;;  %v7782_v12 = vpop.f32.mrb[20].mxu1  ;;  %7742 = vmatprep.mubr.msk.bf16.mxu0 %vm1314_vm2, %v8217_v56  ;;  %v2887_v13 = vmax.f32 %v2237_v5, 0.0  ;;  %v4614_v16 = vmax.f32 %v3630_v6, 0.0  ;;  %v2240_v19 = vadd.f32 %v2239_v61, %v8465_v3 }
 0x1e9   : > { %v2890_v18 = vmax.f32 %v2248_v7, 0.0  ;;  %v3642_v21 = vpop.f32.mrb[21].mxu1  ;;  %v8840_v22 = vmax.f32 %v4907_v63, %v4908_v8  ;;  %v4899_v23 = vrot.slane %v4898_v9, 2  ;;  %v3651_v25 = vadd.f32 %v7782_v12, %v8755_v34 }
 0x1ea   : > { %v4922_v24 = vsel %vm4857_vm4, %v4616_v11, -inf  ;;  %v7636_v26 = vpop.f32.mrb[128].mxu0  ;;  %v7783_v27 = vpop.f32.mrb[22].mxu1  ;;  %v4913_v30 = vsel %vm4857_vm4, %v4614_v16, -inf  ;;  %v2888_v32 = vmax.f32 %v2240_v19, 0.0  ;;  %v8847_v37 = vmax.f32 %v8818_v33, %v4883_v57  ;;  %v8220_v19 = vld [vmem:[%s8341_s18 + $0x3c8] sm:$0xff]  }
 0x1eb   : > { %v4923_v29 = vmax.f32 %v4921_v59, %v4922_v24  ;;  %v3082_v31 = vpack.c.bf16 %v2890_v18, %v2889_v10  ;;  %v2252_v62 = vpop.f32.mrb[129].mxu0  ;;  %v3645_v35 = vpop.f32.mrb[23].mxu1  ;;  %v8849_v38 = vmax.f32 %v4898_v9, %v4899_v23  ;;  %v4914_v39 = vmax.f32 %v4912_v4, %v4913_v30 }
 0x1ec   : > { %v4619_v40 = vmax.f32 %v3651_v25, 0.0  ;;  %v7637_v41 = vpop.f32.mrb[130].mxu0  ;;  %v3081_v44 = vpack.c.bf16 %v2888_v32, %v2887_v13  ;;  %v3643_v45 = vadd.f32 %v3642_v21, %v8755_v34  ;;  %v2261_v46 = vadd.f32 %v7636_v26, %v8465_v3 }
 0x1ed   : > { %v4924_v43 = vrot.slane %v4923_v29, 4  ;;  %v2255_v47 = vpop.f32.mrb[131].mxu0  ;;  %v4910_v48 = vrot.slane %v8840_v22, 1  ;;  %v4901_v49 = vrot.slane %v8849_v38, 1  ;;  %v4915_v50 = vrot.slane %v4914_v39, 4 }
 0x1ee   : > { %v3654_v33 = vadd.f32 %v7783_v27, %v8755_v34  ;;  %v4939_v53 = vsel %vm4857_vm4, %v4619_v40, -inf  ;;  %v4617_v54 = vmax.f32 %v3643_v45, 0.0  ;;  %v2253_v55 = vadd.f32 %v2252_v62, %v8465_v3  ;;  %7888 = vmatprep.mubr.msk.bf16.mxu1 %vm3159_vm3, %v3081_v44  ;;  %v8221_v27 = vld [vmem:[%s8341_s18 + $0x3d0] sm:$0xff]  }
 0x1ef   : > { %v8857_v52 = vmax.f32 %v4923_v29, %v4924_v43  ;;  %7743 = vmatmul.mubr.msk.bf16.gmra.mrb[236].mxu0 %vm1314_vm2, %v8218_v36  ;;  %v4916_v56 = vmax.f32 %v4914_v39, %v4915_v50  ;;  %v2893_v57 = vmax.f32 %v2261_v46, 0.0  ;;  %v3646_v59 = vadd.f32 %v3645_v35, %v8755_v34  ;;  %7889 = vmatmul.mubr.msk.bf16.gmra.mrb[128].mxu1 %vm3159_vm3, %v3082_v31 }
 0x1f0   : > { %v4620_v58 = vmax.f32 %v3654_v33, 0.0  ;;  %v7786_v60 = vpop.f32.mrb[24].mxu1  ;;  %7746 = vmatprep.mubr.msk.bf16.mxu0 %vm1314_vm2, %v8219_v42  ;;  %v4930_v63 = vsel %vm4857_vm4, %v4617_v54, -inf  ;;  %v2891_v0 = vmax.f32 %v2253_v55, 0.0  ;;  %v2264_v1 = vadd.f32 %v7637_v41, %v8465_v3 }
 0x1f1   : > { %v4926_v61 = vrot.slane %v8857_v52, 2  ;;  %v3658_v2 = vpop.f32.mrb[25].mxu1  ;;  %v4917_v4 = vrot.slane %v4916_v56, 2  ;;  %v4618_v6 = vmax.f32 %v3646_v59, 0.0  ;;  %v2256_v7 = vadd.f32 %v2255_v47, %v8465_v3 }
 0x1f2   : > { %v4940_v5 = vsel %vm4857_vm4, %v4620_v58, -inf  ;;  %v7640_v8 = vpop.f32.mrb[132].mxu0  ;;  %v7787_v9 = vpop.f32.mrb[26].mxu1  ;;  %v2894_v11 = vmax.f32 %v2264_v1, 0.0  ;;  %v3667_v12 = vadd.f32 %v7786_v60, %v8755_v34  ;;  %v3659_v13 = vadd.f32 %v3658_v2, %v8755_v34 }
 0x1f3   : > { %v4941_v10 = vmax.f32 %v4939_v53, %v4940_v5  ;;  %v2268_v16 = vpop.f32.mrb[133].mxu0  ;;  %v3661_v18 = vpop.f32.mrb[27].mxu1  ;;  %v8874_v21 = vmax.f32 %v4916_v56, %v4917_v4  ;;  %v4931_v23 = vsel %vm4857_vm4, %v4618_v6, -inf  ;;  %v2892_v24 = vmax.f32 %v2256_v7, 0.0 }
 0x1f4   : > { %v2277_v25 = vadd.f32 %v7640_v8, %v8465_v3  ;;  %v7641_v26 = vpop.f32.mrb[134].mxu0  ;;  %v4932_v30 = vmax.f32 %v4930_v63, %v4931_v23  ;;  %v3084_v31 = vpack.c.bf16 %v2894_v11, %v2893_v57  ;;  %v4623_v32 = vmax.f32 %v3667_v12, 0.0 }
 0x1f5   : > { %v4942_v29 = vrot.slane %v4941_v10, 4  ;;  %v2271_v62 = vpop.f32.mrb[135].mxu0  ;;  %v3083_v35 = vpack.c.bf16 %v2892_v24, %v2891_v0  ;;  %v4621_v36 = vmax.f32 %v3659_v13, 0.0  ;;  %v3670_v40 = vadd.f32 %v7787_v9, %v8755_v34  ;;  %v8222_v9 = vld [vmem:[%s8341_s18 + $0x3d8] sm:$0xff]  }
 0x1f6   : > { %v2897_v39 = vmax.f32 %v2277_v25, 0.0  ;;  %v4933_v42 = vrot.slane %v4932_v30, 4  ;;  %v4957_v43 = vsel %vm4857_vm4, %v4623_v32, -inf  ;;  %v2269_v44 = vadd.f32 %v2268_v16, %v8465_v3 }
 0x1f7   : > { %v4943_v41 = vmax.f32 %v4941_v10, %v4942_v29  ;;  %7747 = vmatmul.mubr.msk.bf16.gmra.mrb[240].mxu0 %vm1314_vm2, %v8220_v19  ;;  %v4948_v45 = vsel %vm4857_vm4, %v4621_v36, -inf  ;;  %v4624_v46 = vmax.f32 %v3670_v40, 0.0  ;;  %v3662_v47 = vadd.f32 %v3661_v18, %v8755_v34  ;;  %7892 = vmatprep.mubr.msk.bf16.mxu1 %vm3159_vm3, %v3083_v35  ;;  %v8223_v18 = vld [vmem:[%s8341_s18 + $0x3e0] sm:$0xff]  }
 0x1f8   : > { %v2280_v50 = vadd.f32 %v7641_v26, %v8465_v3  ;;  %v7790_v33 = vpop.f32.mrb[28].mxu1  ;;  %7750 = vmatprep.mubr.msk.bf16.mxu0 %vm1314_vm2, %v8221_v27  ;;  %v4934_v54 = vmax.f32 %v4932_v30, %v4933_v42  ;;  %v2895_v55 = vmax.f32 %v2269_v44, 0.0  ;;  %v2272_v56 = vadd.f32 %v2271_v62, %v8465_v3  ;;  %7893 = vmatmul.mubr.msk.bf16.gmra.mrb[132].mxu1 %vm3159_vm3, %v3084_v31 }
 0x1f9   : > { %v4944_v53 = vrot.slane %v4943_v41, 2  ;;  %v3674_v57 = vpop.f32.mrb[29].mxu1  ;;  %v4958_v58 = vsel %vm4857_vm4, %v4624_v46, -inf  ;;  %v4622_v59 = vmax.f32 %v3662_v47, 0.0  ;;  %v3683_v63 = vadd.f32 %v7790_v33, %v8755_v34 }
 0x1fa   : > { %v2898_v60 = vmax.f32 %v2280_v50, 0.0  ;;  %v7644_v0 = vpop.f32.mrb[136].mxu0  ;;  %v7791_v1 = vpop.f32.mrb[30].mxu1  ;;  %v4935_v4 = vrot.slane %v4934_v54, 2  ;;  %v4959_v5 = vmax.f32 %v4957_v43, %v4958_v58  ;;  %v2896_v6 = vmax.f32 %v2272_v56, 0.0 }
 0x1fb   : > { %v4945_v2 = vmax.f32 %v4943_v41, %v4944_v53  ;;  %v2284_v7 = vpop.f32.mrb[137].mxu0  ;;  %v3677_v8 = vpop.f32.mrb[31].mxu1  ;;  %v4949_v10 = vsel %vm4857_vm4, %v4622_v59, -inf  ;;  %v4627_v12 = vmax.f32 %v3683_v63, 0.0  ;;  %v3675_v13 = vadd.f32 %v3674_v57, %v8755_v34  ;;  %v8224_v53 = vld [vmem:[%s8341_s18 + $0x3e8] sm:$0xff]  }
 0x1fc   : > { %v3086_v11 = vpack.c.bf16 %v2898_v60, %v2897_v39  ;;  %v7645_v16 = vpop.f32.mrb[138].mxu0  ;;  %v4936_v23 = vmax.f32 %v4934_v54, %v4935_v4  ;;  %v4960_v24 = vrot.slane %v4959_v5, 4  ;;  %v4950_v25 = vmax.f32 %v4948_v45, %v4949_v10 }
 0x1fd   : > { %v4946_v19 = vrot.slane %v4945_v2, 1  ;;  %v2287_v26 = vpop.f32.mrb[139].mxu0  ;;  %v4893_v27 = vmax.f32 %v8812_v28, %v4892_v51  ;;  %v4902_v29 = vmax.f32 %v8849_v38, %v4901_v49  ;;  %v3085_v30 = vpack.c.bf16 %v2896_v6, %v2895_v55 }
 0x1fe   : > { %v4975_v31 = vsel %vm4857_vm4, %v4627_v12, -inf  ;;  %v4961_v32 = vmax.f32 %v4959_v5, %v4960_v24  ;;  %v4951_v62 = vrot.slane %v4950_v25, 4  ;;  %v4625_v35 = vmax.f32 %v3675_v13, 0.0 }
 0x1ff   : > { %v4911_v36 = vmax.f32 %v8840_v22, %v4910_v48  ;;  %7751 = vmatmul.mubr.msk.bf16.gmra.mrb[244].mxu0 %vm1314_vm2, %v8222_v9  ;;  %v8907_v39 = vmax.f32 %v4945_v2, %v4946_v19  ;;  %v4919_v28 = vrot.slane %v8874_v21, 1  ;;  %v4927_v51 = vmax.f32 %v8857_v52, %v4926_v61  ;;  %7896 = vmatprep.mubr.msk.bf16.mxu1 %vm3159_vm3, %v3085_v30 }
 0x200   : > { %v6139_v38 = vsel %vm6138_vm5, %v8800_v14, %v8804_v20  ;;  %v7794_v49 = vpop.f32.mrb[32].mxu1  ;;  %7754 = vmatprep.mubr.msk.bf16.mxu0 %vm1314_vm2, %v8223_v18  ;;  %v4937_v22 = vrot.slane %v4936_v23, 1  ;;  %v4962_v48 = vrot.slane %v4961_v32, 2  ;;  %v4952_v40 = vmax.f32 %v4950_v25, %v4951_v62  ;;  %7897 = vmatmul.mubr.msk.bf16.gmra.mrb[136].mxu1 %vm3159_vm3, %v3086_v11 }
 0x201   : > { %v6141_v41 = vsel %vm6140_vm6, %v8847_v37, %v6139_v38  ;;  %v3690_v42 = vpop.f32.mrb[33].mxu1  ;;  %v4920_v52 = vmax.f32 %v8874_v21, %v4919_v28  ;;  %v4928_v61 = vrot.slane %v4927_v51, 1  ;;  %v2293_v20 = vadd.f32 %v7644_v0, %v8465_v3 }
 0x202   : > { %v6143_v14 = vsel %vm6142_vm7, %v4893_v27, %v6141_v41  ;;  %v7648_v43 = vpop.f32.mrb[140].mxu0  ;;  %v7795_v44 = vpop.f32.mrb[34].mxu1  ;;  %v8924_v45 = vmax.f32 %v4961_v32, %v4962_v48  ;;  %v4953_v46 = vrot.slane %v4952_v40, 2  ;;  %v3686_v50 = vadd.f32 %v7791_v1, %v8755_v34 }
 0x203   : > { %v6145_v47 = vsel %vm6144_vm8, %v4902_v29, %v6143_v14  ;;  %v2300_v37 = vpop.f32.mrb[141].mxu0  ;;  %v3693_v33 = vpop.f32.mrb[35].mxu1  ;;  %v4966_v54 = vsel %vm4857_vm4, %v4625_v35, -inf  ;;  %v4929_v21 = vmax.f32 %v4927_v51, %v4928_v61  ;;  %v2285_v56 = vadd.f32 %v2284_v7, %v8465_v3 }
 0x204   : > { %v6147_v55 = vsel %vm6146_vm9, %v4911_v36, %v6145_v47  ;;  %v7649_v57 = vpop.f32.mrb[142].mxu0  ;;  %v8932_v58 = vmax.f32 %v4936_v23, %v4937_v22  ;;  %v8934_v59 = vmax.f32 %v4952_v40, %v4953_v46  ;;  %v4628_v63 = vmax.f32 %v3686_v50, 0.0 }
 0x205   : > { %v6149_v60 = vsel %vm6148_vm10, %v4920_v52, %v6147_v55  ;;  %v2303_v0 = vpop.f32.mrb[143].mxu0  ;;  %v2901_v2 = vmax.f32 %v2293_v20, 0.0  ;;  %v3678_v4 = vadd.f32 %v3677_v8, %v8755_v34  ;;  %v2296_v5 = vadd.f32 %v7645_v16, %v8465_v3 }
 0x206   : > { %v6151_v1 = vsel %vm6150_vm11, %v4929_v21, %v6149_v60  ;;  %v4964_v6 = vrot.slane %v8924_v45, 1  ;;  %v4976_v7 = vsel %vm4857_vm4, %v4628_v63, -inf  ;;  %v2899_v9 = vmax.f32 %v2285_v56, 0.0 }
 0x207   : > { %6273 = vxpose.xlu0.b32.start [1/16] (narrow) %v6151_v1, 32  ;;  %v2288_v10 = vadd.f32 %v2287_v26, %v8465_v3  ;;  %7755 = vmatmul.mubr.msk.bf16.gmra.mrb[248].mxu0 %vm1314_vm2, %v8224_v53  ;;  %v4977_v11 = vmax.f32 %v4975_v31, %v4976_v7  ;;  %v4626_v12 = vmax.f32 %v3678_v4, 0.0  ;;  %v2902_v13 = vmax.f32 %v2296_v5, 0.0 }
 0x208   : > { %v3699_v18 = vadd.f32 %v7794_v49, %v8755_v34  ;;  %v7798_v19 = vpop.f32.mrb[36].mxu1  ;;  %v4955_v8 = vrot.slane %v8934_v59, 1  ;;  %v3691_v16 = vadd.f32 %v3690_v42, %v8755_v34  ;;  %v2309_v24 = vadd.f32 %v7648_v43, %v8465_v3 }
 0x209   : > { %v2900_v23 = vmax.f32 %v2288_v10, 0.0  ;;  %v3706_v25 = vpop.f32.mrb[37].mxu1  ;;  %v4978_v27 = vrot.slane %v4977_v11, 4  ;;  %v4967_v29 = vsel %vm4857_vm4, %v4626_v12, -inf  ;;  %v3088_v26 = vpack.c.bf16 %v2902_v13, %v2901_v2 }
 0x20a   : > { %v4631_v30 = vmax.f32 %v3699_v18, 0.0  ;;  %v7652_v32 = vpop.f32.mrb[144].mxu0  ;;  %v7799_v31 = vpop.f32.mrb[38].mxu1  ;;  %v4968_v62 = vmax.f32 %v4966_v54, %v4967_v29  ;;  %v4629_v36 = vmax.f32 %v3691_v16, 0.0  ;;  %v2905_v28 = vmax.f32 %v2309_v24, 0.0 }
 0x20b   : > { %v3087_v35 = vpack.c.bf16 %v2900_v23, %v2899_v9  ;;  %v2316_v51 = vpop.f32.mrb[145].mxu0  ;;  %v3709_v38 = vpop.f32.mrb[39].mxu1  ;;  %v4979_v49 = vmax.f32 %v4977_v11, %v4978_v27  ;;  %v3702_v48 = vadd.f32 %v7795_v44, %v8755_v34  ;;  %v2301_v40 = vadd.f32 %v2300_v37, %v8465_v3 }
 0x20c   : > { %v4993_v22 = vsel %vm4857_vm4, %v4631_v30, -inf  ;;  %v7653_v41 = vpop.f32.mrb[146].mxu0  ;;  %v4969_v42 = vrot.slane %v4968_v62, 4  ;;  %v4984_v52 = vsel %vm4857_vm4, %v4629_v36, -inf  ;;  %v3694_v61 = vadd.f32 %v3693_v33, %v8755_v34 }
 0x20d   : > { %v2312_v14 = vadd.f32 %v7649_v57, %v8465_v3  ;;  %7900 = vmatprep.mubr.msk.bf16.mxu1 %vm3159_vm3, %v3087_v35  ;;  %v2319_v20 = vpop.f32.mrb[147].mxu0  ;;  %v4980_v43 = vrot.slane %v4979_v49, 2  ;;  %v4632_v46 = vmax.f32 %v3702_v48, 0.0  ;;  %v2903_v47 = vmax.f32 %v2301_v40, 0.0 }
 0x20e   : > { %v2304_v50 = vadd.f32 %v2303_v0, %v8465_v3  ;;  %7901 = vmatmul.mubr.msk.bf16.gmra.mrb[140].mxu1 %vm3159_vm3, %v3088_v26  ;;  %v4970_v44 = vmax.f32 %v4968_v62, %v4969_v42  ;;  %v4630_v37 = vmax.f32 %v3694_v61, 0.0  ;;  %v3715_v54 = vadd.f32 %v7798_v19, %v8755_v34 }
 0x20f   : > { %v2906_v53 = vmax.f32 %v2312_v14, 0.0  ;;  %v8959_v21 = vmax.f32 %v4979_v49, %v4980_v43  ;;  %v4994_v33 = vsel %vm4857_vm4, %v4632_v46, -inf  ;;  %v3707_v56 = vadd.f32 %v3706_v25, %v8755_v34 }
 0x210   : > { %v2904_v55 = vmax.f32 %v2304_v50, 0.0  ;;  %v7802_v57 = vpop.f32.mrb[40].mxu1  ;;  %v4971_v60 = vrot.slane %v4970_v44, 2  ;;  %v4995_v63 = vmax.f32 %v4993_v22, %v4994_v33  ;;  %v4985_v1 = vsel %vm4857_vm4, %v4630_v37, -inf }
 0x211   : > { %v3090_v0 = vpack.c.bf16 %v2906_v53, %v2905_v28  ;;  %v3722_v2 = vpop.f32.mrb[41].mxu1  ;;  %v8965_v4 = vmax.f32 %v8934_v59, %v4955_v8  ;;  %v4986_v5 = vmax.f32 %v4984_v52, %v4985_v1  ;;  %v4635_v9 = vmax.f32 %v3715_v54, 0.0 }
 0x212   : > { %v3089_v7 = vpack.c.bf16 %v2904_v55, %v2903_v47  ;;  %v7656_v10 = vpop.f32.mrb[148].mxu0  ;;  %v7803_v11 = vpop.f32.mrb[42].mxu1  ;;  %v8967_v12 = vmax.f32 %v4970_v44, %v4971_v60  ;;  %v4996_v13 = vrot.slane %v4995_v63, 4  ;;  %v4633_v18 = vmax.f32 %v3707_v56, 0.0 }
 0x213   : > { %v2325_v19 = vadd.f32 %v7652_v32, %v8465_v3  ;;  %v2332_v23 = vpop.f32.mrb[149].mxu0  ;;  %v3725_v16 = vpop.f32.mrb[43].mxu1  ;;  %v4982_v24 = vrot.slane %v8959_v21, 1  ;;  %v4987_v25 = vrot.slane %v4986_v5, 4  ;;  %v3718_v27 = vadd.f32 %v7799_v31, %v8755_v34 }
 0x214   : > { %v2317_v59 = vadd.f32 %v2316_v51, %v8465_v3  ;;  %7904 = vmatprep.mubr.msk.bf16.mxu1 %vm3159_vm3, %v3089_v7  ;;  %v7657_v8 = vpop.f32.mrb[150].mxu0  ;;  %v4973_v29 = vrot.slane %v8967_v12, 1  ;;  %v8975_v26 = vmax.f32 %v4995_v63, %v4996_v13  ;;  %v5011_v30 = vsel %vm4857_vm4, %v4635_v9, -inf }
 0x215   : > { %v5002_v32 = vsel %vm4857_vm4, %v4633_v18, -inf  ;;  %v2335_v62 = vpop.f32.mrb[151].mxu0  ;;  %v4988_v35 = vmax.f32 %v4986_v5, %v4987_v25  ;;  %v2909_v36 = vmax.f32 %v2325_v19, 0.0  ;;  %v4636_v28 = vmax.f32 %v3718_v27, 0.0 }
 0x216   : > { %v3710_v49 = vadd.f32 %v3709_v38, %v8755_v34  ;;  %7905 = vmatmul.mubr.msk.bf16.gmra.mrb[144].mxu1 %vm3159_vm3, %v3090_v0  ;;  %v4998_v31 = vrot.slane %v8975_v26, 2  ;;  %v2907_v51 = vmax.f32 %v2317_v59, 0.0  ;;  %v2328_v22 = vadd.f32 %v7653_v41, %v8465_v3 }
 0x217   : > { %v2320_v48 = vadd.f32 %v2319_v20, %v8465_v3  ;;  %v4989_v40 = vrot.slane %v4988_v35, 2  ;;  %v5012_v42 = vsel %vm4857_vm4, %v4636_v28, -inf  ;;  %v3731_v61 = vadd.f32 %v7802_v57, %v8755_v34 }
 0x218   : > { %v4634_v52 = vmax.f32 %v3710_v49, 0.0  ;;  %v7806_v14 = vpop.f32.mrb[44].mxu1  ;;  %v5013_v43 = vmax.f32 %v5011_v30, %v5012_v42  ;;  %v2910_v46 = vmax.f32 %v2328_v22, 0.0  ;;  %v3723_v38 = vadd.f32 %v3722_v2, %v8755_v34 }
 0x219   : > { %v2908_v47 = vmax.f32 %v2320_v48, 0.0  ;;  %v3738_v50 = vpop.f32.mrb[45].mxu1  ;;  %v8987_v44 = vmax.f32 %v4988_v35, %v4989_v40  ;;  %v4639_v41 = vmax.f32 %v3731_v61, 0.0  ;;  %v2341_v20 = vadd.f32 %v7656_v10, %v8465_v3 }
 0x21a   : > { %v5003_v37 = vsel %vm4857_vm4, %v4634_v52, -inf  ;;  %v8991_v53 = vpop.f32.mrb[152].mxu0  ;;  %v8993_v54 = vpop.f32.mrb[46].mxu1  ;;  %v5014_v33 = vrot.slane %v5013_v43, 4  ;;  %v3092_v56 = vpack.c.bf16 %v2910_v46, %v2909_v36  ;;  %v4637_v0 = vmax.f32 %v3723_v38, 0.0 }
 0x21b   : > { %v5004_v55 = vmax.f32 %v5002_v32, %v5003_v37  ;;  %v3091_v57 = vpack.c.bf16 %v2908_v47, %v2907_v51  ;;  %v8995_v60 = vpop.f32.mrb[153].mxu0  ;;  %v8997_v63 = vpop.f32.mrb[47].mxu1  ;;  %v5029_v1 = vsel %vm4857_vm4, %v4639_v41, -inf  ;;  %v2913_v2 = vmax.f32 %v2341_v20, 0.0 }
 0x21c   : > { %v3734_v5 = vadd.f32 %v7803_v11, %v8755_v34  ;;  %v9001_v7 = vpop.f32.mrb[154].mxu0  ;;  %v5015_v9 = vmax.f32 %v5013_v43, %v5014_v33  ;;  %v2333_v13 = vadd.f32 %v2332_v23, %v8465_v3  ;;  %v3726_v18 = vadd.f32 %v3725_v16, %v8755_v34 }
 0x21d   : > { %v5005_v10 = vrot.slane %v5004_v55, 4  ;;  %7908 = vmatprep.mubr.msk.bf16.mxu1 %vm3159_vm3, %v3091_v57  ;;  %v9006_v19 = vpop.f32.mrb[155].mxu0  ;;  %v5020_v25 = vsel %vm4857_vm4, %v4637_v0, -inf  ;;  %v2344_v59 = vadd.f32 %v7657_v8, %v8465_v3  ;;  %v2336_v30 = vadd.f32 %v2335_v62, %v8465_v3 }
 0x21e   : > { %v4640_v27 = vmax.f32 %v3734_v5, 0.0  ;;  %7909 = vmatmul.mubr.msk.bf16.gmra.mrb[148].mxu1 %vm3159_vm3, %v3092_v56  ;;  %v5016_v11 = vrot.slane %v5015_v9, 2  ;;  %v2911_v35 = vmax.f32 %v2333_v13, 0.0  ;;  %v4638_v36 = vmax.f32 %v3726_v18, 0.0 }
 0x21f   : > { %v5006_v32 = vmax.f32 %v5004_v55, %v5005_v10  ;;  %v2914_v16 = vmax.f32 %v2344_v59, 0.0  ;;  %v2912_v28 = vmax.f32 %v2336_v30, 0.0  ;;  %v3747_v49 = vadd.f32 %v7806_v14, %v8755_v34 }
 0x220   : > { %v5030_v23 = vsel %vm4857_vm4, %v4640_v27, -inf  ;;  %v9014_v51 = vpop.f32.mrb[48].mxu1  ;;  %v5017_v22 = vmax.f32 %v5015_v9, %v5016_v11  ;;  %v5021_v8 = vsel %vm4857_vm4, %v4638_v36, -inf  ;;  %v3739_v41 = vadd.f32 %v3738_v50, %v8755_v34 }
 0x221   : > { %v5007_v48 = vrot.slane %v5006_v32, 2  ;;  %v5031_v40 = vmax.f32 %v5029_v1, %v5030_v23  ;;  %v9017_v62 = vpop.f32.mrb[49].mxu1  ;;  %v5022_v42 = vmax.f32 %v5020_v25, %v5021_v8  ;;  %v3094_v52 = vpack.c.bf16 %v2914_v16, %v2913_v2 }
 0x222   : > { %v3093_v61 = vpack.c.bf16 %v2912_v28, %v2911_v35  ;;  %v4643_v43 = vmax.f32 %v3747_v49, 0.0  ;;  %v9019_v46 = vpop.f32.mrb[156].mxu0  ;;  %v9021_v47 = vpop.f32.mrb[50].mxu1  ;;  %v5018_v38 = vrot.slane %v5017_v22, 1  ;;  %v4965_v55 = vmax.f32 %v8924_v45, %v4964_v6 }
 0x223   : > { %v5008_v37 = vmax.f32 %v5006_v32, %v5007_v48  ;;  %v5032_v14 = vrot.slane %v5031_v40, 4  ;;  %v9024_v20 = vpop.f32.mrb[157].mxu0  ;;  %v9026_v33 = vpop.f32.mrb[51].mxu1  ;;  %v4974_v56 = vmax.f32 %v8967_v12, %v4973_v29  ;;  %v5023_v57 = vrot.slane %v5022_v42, 4 }
 0x224   : > { %v4991_v1 = vrot.slane %v8987_v44, 1  ;;  %7912 = vmatprep.mubr.msk.bf16.mxu1 %vm3159_vm3, %v3093_v61  ;;  %v9036_v0 = vpop.f32.mrb[158].mxu0  ;;  %v9038_v50 = vmax.f32 %v5017_v22, %v5018_v38  ;;  %v5047_v5 = vsel %vm4857_vm4, %v4643_v43, -inf  ;;  %v4983_v45 = vmax.f32 %v8959_v21, %v4982_v24 }
 0x225   : > { %v5033_v2 = vmax.f32 %v5031_v40, %v5032_v14  ;;  %v9044_v6 = vpop.f32.mrb[159].mxu0  ;;  %v5009_v9 = vrot.slane %v5008_v37, 1  ;;  %v5024_v12 = vmax.f32 %v5022_v42, %v5023_v57  ;;  %v4999_v29 = vmax.f32 %v8975_v26, %v4998_v31 }
 0x226   : > { %v6152_v10 = vsel %vm6138_vm5, %v8907_v39, %v8932_v58  ;;  %7913 = vmatmul.mubr.msk.bf16.gmra.mrb[152].mxu1 %vm3159_vm3, %v3094_v52  ;;  %v4641_v18 = vmax.f32 %v3739_v41, 0.0  ;;  %v4992_v25 = vmax.f32 %v8987_v44, %v4991_v1  ;;  %v2357_v26 = vadd.f32 %v8991_v53, %v8465_v3 }
 0x227   : > { %v5034_v13 = vrot.slane %v5033_v2, 2  ;;  %v6153_v21 = vsel %vm6140_vm6, %v8965_v4, %v6152_v10  ;;  %v5025_v24 = vrot.slane %v5024_v12, 2  ;;  %v5000_v27 = vrot.slane %v4999_v29, 1 }
 0x228   : > { %v6154_v59 = vsel %vm6142_vm7, %v4965_v55, %v6153_v21  ;;  %v9059_v31 = vpop.f32.mrb[52].mxu1  ;;  %v3750_v58 = vadd.f32 %v8993_v54, %v8755_v34  ;;  %v2349_v44 = vadd.f32 %v8995_v60, %v8465_v3  ;;  %v9070_v11 = vmax.f32 %v5008_v37, %v5009_v9 }
 0x229   : > { %v9061_v30 = vmax.f32 %v5033_v2, %v5034_v13  ;;  %v6155_v39 = vsel %vm6144_vm8, %v4974_v56, %v6154_v59  ;;  %v9068_v4 = vpop.f32.mrb[53].mxu1  ;;  %v9072_v32 = vmax.f32 %v5024_v12, %v5025_v24  ;;  %v5001_v35 = vmax.f32 %v4999_v29, %v5000_v27 }
 0x22a   : > { %v6156_v53 = vsel %vm6146_vm9, %v4983_v45, %v6155_v39  ;;  %v9075_v36 = vpop.f32.mrb[160].mxu0  ;;  %v9077_v23 = vpop.f32.mrb[54].mxu1  ;;  %v5038_v16 = vsel %vm4857_vm4, %v4641_v18, -inf  ;;  %v2917_v28 = vmax.f32 %v2357_v26, 0.0  ;;  %v4644_v49 = vmax.f32 %v3750_v58, 0.0 }
 0x22b   : > { %v6157_v54 = vsel %vm6148_vm10, %v4992_v25, %v6156_v53  ;;  %v9081_v60 = vpop.f32.mrb[161].mxu0  ;;  %v9083_v22 = vpop.f32.mrb[55].mxu1  ;;  %v5036_v48 = vrot.slane %v9061_v30, 1  ;;  %v3742_v8 = vadd.f32 %v8997_v63, %v8755_v34  ;;  %v2360_v42 = vadd.f32 %v9001_v7, %v8465_v3 }
 0x22c   : > { %v6158_v40 = vsel %vm6150_vm11, %v5001_v35, %v6157_v54  ;;  %v9091_v52 = vpop.f32.mrb[162].mxu0  ;;  %v5048_v61 = vsel %vm4857_vm4, %v4644_v49, -inf  ;;  %v2915_v43 = vmax.f32 %v2349_v44, 0.0  ;;  %v2352_v38 = vadd.f32 %v9006_v19, %v8465_v3 }
 0x22d   : > { %6274 = vxpose.xlu0.b32.cont [2/16] (narrow) %v6158_v40, 32  ;;  %v3763_v37 = vadd.f32 %v9014_v51, %v8755_v34  ;;  %v9098_v14 = vpop.f32.mrb[163].mxu0  ;;  %v5027_v41 = vrot.slane %v9072_v32, 1  ;;  %v5049_v63 = vmax.f32 %v5047_v5, %v5048_v61  ;;  %v4642_v55 = vmax.f32 %v3742_v8, 0.0 }
 0x22e   : > { %v2918_v56 = vmax.f32 %v2360_v42, 0.0  ;;  %v2916_v7 = vmax.f32 %v2352_v38, 0.0  ;;  %v3755_v1 = vadd.f32 %v9017_v62, %v8755_v34  ;;  %v2373_v2 = vadd.f32 %v9019_v46, %v8465_v3 }
 0x22f   : > { %v4647_v57 = vmax.f32 %v3763_v37, 0.0  ;;  %v5050_v45 = vrot.slane %v5049_v63, 4  ;;  %v5039_v19 = vsel %vm4857_vm4, %v4642_v55, -inf  ;;  %v3766_v51 = vadd.f32 %v9021_v47, %v8755_v34 }
 0x230   : > { %v3096_v9 = vpack.c.bf16 %v2918_v56, %v2917_v28  ;;  %v9108_v12 = vpop.f32.mrb[56].mxu1  ;;  %v5040_v5 = vmax.f32 %v5038_v16, %v5039_v19  ;;  %v3095_v29 = vpack.c.bf16 %v2916_v7, %v2915_v43  ;;  %v4645_v13 = vmax.f32 %v3755_v1, 0.0 }
 0x231   : > { %v5065_v10 = vsel %vm4857_vm4, %v4647_v57, -inf  ;;  %v9111_v18 = vpop.f32.mrb[57].mxu1  ;;  %v5051_v62 = vmax.f32 %v5049_v63, %v5050_v45  ;;  %v2921_v25 = vmax.f32 %v2373_v2, 0.0  ;;  %v4648_v21 = vmax.f32 %v3766_v51, 0.0 }
 0x232   : > { %v2365_v46 = vadd.f32 %v9024_v20, %v8465_v3  ;;  %v9115_v24 = vpop.f32.mrb[164].mxu0  ;;  %v9117_v27 = vpop.f32.mrb[58].mxu1  ;;  %v5041_v47 = vrot.slane %v5040_v5, 4  ;;  %v5056_v59 = vsel %vm4857_vm4, %v4645_v13, -inf  ;;  %v3758_v26 = vadd.f32 %v9026_v33, %v8755_v34  ;;  %7916 = vmatprep.mubr.msk.bf16.mxu1 %vm3159_vm3, %v3095_v29 }
 0x233   : > { %v2376_v39 = vadd.f32 %v9036_v0, %v8465_v3  ;;  %v9125_v58 = vpop.f32.mrb[165].mxu0  ;;  %v9127_v44 = vpop.f32.mrb[59].mxu1  ;;  %v5052_v20 = vrot.slane %v5051_v62, 2  ;;  %v5066_v35 = vsel %vm4857_vm4, %v4648_v21, -inf  ;;  %v2368_v16 = vadd.f32 %v9044_v6, %v8465_v3  ;;  %7917 = vmatmul.mubr.msk.bf16.gmra.mrb[156].mxu1 %vm3159_vm3, %v3096_v9 }
 0x234   : > { %v2919_v53 = vmax.f32 %v2365_v46, 0.0  ;;  %v9133_v54 = vpop.f32.mrb[166].mxu0  ;;  %v5042_v33 = vmax.f32 %v5040_v5, %v5041_v47  ;;  %v5067_v28 = vmax.f32 %v5065_v10, %v5066_v35  ;;  %v4646_v0 = vmax.f32 %v3758_v26, 0.0 }
 0x235   : > { %v2922_v49 = vmax.f32 %v2376_v39, 0.0  ;;  %v9135_v40 = vpop.f32.mrb[167].mxu0  ;;  %v9137_v8 = vmax.f32 %v5051_v62, %v5052_v20  ;;  %v2920_v42 = vmax.f32 %v2368_v16, 0.0  ;;  %v3779_v61 = vadd.f32 %v9059_v31, %v8755_v34 }
 0x236   : > { %v3771_v43 = vadd.f32 %v9068_v4, %v8755_v34  ;;  %v5043_v6 = vrot.slane %v5042_v33, 2  ;;  %v5068_v38 = vrot.slane %v5067_v28, 4  ;;  %v5057_v37 = vsel %vm4857_vm4, %v4646_v0, -inf }
 0x237   : > { %v3098_v63 = vpack.c.bf16 %v2922_v49, %v2921_v25  ;;  %v9145_v55 = vmax.f32 %v9061_v30, %v5036_v48  ;;  %v5058_v56 = vmax.f32 %v5056_v59, %v5057_v37  ;;  %v3097_v7 = vpack.c.bf16 %v2920_v42, %v2919_v53 }
 0x238   : > { %v4651_v57 = vmax.f32 %v3779_v61, 0.0  ;;  %v9147_v1 = vpop.f32.mrb[60].mxu1  ;;  %v9149_v2 = vmax.f32 %v5042_v33, %v5043_v6  ;;  %v9151_v45 = vmax.f32 %v5067_v28, %v5068_v38  ;;  %v4649_v31 = vmax.f32 %v3771_v43, 0.0 }
 0x239   : > { %v2389_v4 = vadd.f32 %v9075_v36, %v8465_v3  ;;  %v9155_v19 = vpop.f32.mrb[61].mxu1  ;;  %v5054_v9 = vrot.slane %v9137_v8, 1  ;;  %v5059_v51 = vrot.slane %v5058_v56, 4  ;;  %v3782_v30 = vadd.f32 %v9077_v23, %v8755_v34  ;;  %7920 = vmatprep.mubr.msk.bf16.mxu1 %vm3159_vm3, %v3097_v7 }
 0x23a   : > { %v2381_v48 = vadd.f32 %v9081_v60, %v8465_v3  ;;  %v9163_v5 = vpop.f32.mrb[168].mxu0  ;;  %v9165_v29 = vpop.f32.mrb[62].mxu1  ;;  %v5045_v10 = vrot.slane %v9149_v2, 1  ;;  %v5070_v36 = vrot.slane %v9151_v45, 2  ;;  %v5083_v13 = vsel %vm4857_vm4, %v4651_v57, -inf }
 0x23b   : > { %v5074_v62 = vsel %vm4857_vm4, %v4649_v31, -inf  ;;  %v9171_v25 = vpop.f32.mrb[169].mxu0  ;;  %v9173_v23 = vpop.f32.mrb[63].mxu1  ;;  %v5060_v21 = vmax.f32 %v5058_v56, %v5059_v51  ;;  %v2925_v60 = vmax.f32 %v2389_v4, 0.0  ;;  %v4652_v46 = vmax.f32 %v3782_v30, 0.0  ;;  %7921 = vmatmul.mubr.msk.bf16.gmra.mrb[160].mxu1 %vm3159_vm3, %v3098_v63 }
 0x23c   : > { %v3774_v47 = vadd.f32 %v9083_v22, %v8755_v34  ;;  %v9178_v59 = vpop.f32.mrb[170].mxu0  ;;  %v2923_v26 = vmax.f32 %v2381_v48, 0.0  ;;  %v2392_v39 = vadd.f32 %v9091_v52, %v8465_v3  ;;  %v2384_v20 = vadd.f32 %v9098_v14, %v8465_v3 }
 0x23d   : > { %v3795_v35 = vadd.f32 %v9108_v12, %v8755_v34  ;;  %v9186_v53 = vpop.f32.mrb[171].mxu0  ;;  %v5061_v16 = vrot.slane %v5060_v21, 2  ;;  %v5084_v33 = vsel %vm4857_vm4, %v4652_v46, -inf  ;;  %v3787_v28 = vadd.f32 %v9111_v18, %v8755_v34 }
 0x23e   : > { %v4650_v22 = vmax.f32 %v3774_v47, 0.0  ;;  %v5085_v0 = vmax.f32 %v5083_v13, %v5084_v33  ;;  %v2926_v49 = vmax.f32 %v2392_v39, 0.0  ;;  %v2924_v42 = vmax.f32 %v2384_v20, 0.0 }
 0x23f   : > { %v4655_v61 = vmax.f32 %v3795_v35, 0.0  ;;  %v9191_v52 = vmax.f32 %v5060_v21, %v5061_v16  ;;  %v4653_v43 = vmax.f32 %v3787_v28, 0.0  ;;  %v2405_v12 = vadd.f32 %v9115_v24, %v8465_v3 }
 0x240   : > { %v5075_v14 = vsel %vm4857_vm4, %v4650_v22, -inf  ;;  %v9196_v6 = vpop.f32.mrb[64].mxu1  ;;  %v5086_v38 = vrot.slane %v5085_v0, 4  ;;  %v3100_v63 = vpack.c.bf16 %v2926_v49, %v2925_v60  ;;  %v3099_v56 = vpack.c.bf16 %v2924_v42, %v2923_v26 }
 0x241   : > { %v5076_v37 = vmax.f32 %v5074_v62, %v5075_v14  ;;  %v9198_v7 = vpop.f32.mrb[65].mxu1  ;;  %v5101_v18 = vsel %vm4857_vm4, %v4655_v61, -inf  ;;  %v5092_v57 = vsel %vm4857_vm4, %v4653_v43, -inf  ;;  %v2929_v31 = vmax.f32 %v2405_v12, 0.0 }
 0x242   : > { %v3798_v4 = vadd.f32 %v9117_v27, %v8755_v34  ;;  %v9204_v51 = vpop.f32.mrb[172].mxu0  ;;  %v9206_v30 = vpop.f32.mrb[66].mxu1  ;;  %v5087_v24 = vmax.f32 %v5085_v0, %v5086_v38  ;;  %v2397_v13 = vadd.f32 %v9125_v58, %v8465_v3  ;;  %v3790_v62 = vadd.f32 %v9127_v44, %v8755_v34  ;;  %7924 = vmatprep.mubr.msk.bf16.mxu1 %vm3159_vm3, %v3099_v56 }
 0x243   : > { %v5077_v48 = vrot.slane %v5076_v37, 4  ;;  %v9213_v21 = vpop.f32.mrb[173].mxu0  ;;  %v9215_v60 = vpop.f32.mrb[67].mxu1  ;;  %v2408_v27 = vadd.f32 %v9133_v54, %v8465_v3  ;;  %v2400_v47 = vadd.f32 %v9135_v40, %v8465_v3  ;;  %7925 = vmatmul.mubr.msk.bf16.gmra.mrb[164].mxu1 %vm3159_vm3, %v3100_v63  ;;  %v3811_v58 = vadd.f32 %v9147_v1, %v8755_v34 }
 0x244   : > { %v4656_v46 = vmax.f32 %v3798_v4, 0.0  ;;  %v9224_v26 = vpop.f32.mrb[174].mxu0  ;;  %v5088_v44 = vrot.slane %v5087_v24, 2  ;;  %v2927_v20 = vmax.f32 %v2397_v13, 0.0  ;;  %v4654_v35 = vmax.f32 %v3790_v62, 0.0 }
 0x245   : > { %v5078_v39 = vmax.f32 %v5076_v37, %v5077_v48  ;;  %v9226_v16 = vpop.f32.mrb[175].mxu0  ;;  %v2930_v22 = vmax.f32 %v2408_v27, 0.0  ;;  %v2928_v54 = vmax.f32 %v2400_v47, 0.0  ;;  %v4659_v28 = vmax.f32 %v3811_v58, 0.0 }
 0x246   : > { %v5102_v33 = vsel %vm4857_vm4, %v4656_v46, -inf  ;;  %v5089_v0 = vmax.f32 %v5087_v24, %v5088_v44  ;;  %v5093_v42 = vsel %vm4857_vm4, %v4654_v35, -inf  ;;  %v5028_v1 = vmax.f32 %v9072_v32, %v5027_v41 }
 0x247   : > { %v5079_v40 = vrot.slane %v5078_v39, 2  ;;  %v5103_v49 = vmax.f32 %v5101_v18, %v5102_v33  ;;  %v5094_v61 = vmax.f32 %v5092_v57, %v5093_v42  ;;  %v3102_v14 = vpack.c.bf16 %v2930_v22, %v2929_v31 }
 0x248   : > { %v3101_v43 = vpack.c.bf16 %v2928_v54, %v2927_v20  ;;  %v9233_v12 = vpop.f32.mrb[68].mxu1  ;;  %v5090_v38 = vrot.slane %v5089_v0, 1  ;;  %v3803_v56 = vadd.f32 %v9155_v19, %v8755_v34  ;;  %v5046_v18 = vmax.f32 %v9149_v2, %v5045_v10 }
 0x249   : > { %v5080_v37 = vmax.f32 %v5078_v39, %v5079_v40  ;;  %v5104_v63 = vrot.slane %v5103_v49, 4  ;;  %v9237_v4 = vpop.f32.mrb[69].mxu1  ;;  %v5095_v24 = vrot.slane %v5094_v61, 4  ;;  %v5063_v32 = vrot.slane %v9191_v52, 1 }
 0x24a   : > { %v5071_v41 = vmax.f32 %v9151_v45, %v5070_v36  ;;  %7928 = vmatprep.mubr.msk.bf16.mxu1 %vm3159_vm3, %v3101_v43  ;;  %v9247_v57 = vpop.f32.mrb[176].mxu0  ;;  %v9249_v31 = vpop.f32.mrb[70].mxu1  ;;  %v5119_v13 = vsel %vm4857_vm4, %v4659_v28, -inf  ;;  %v5055_v2 = vmax.f32 %v9137_v8, %v5054_v9  ;;  %v9259_v46 = vmax.f32 %v5089_v0, %v5090_v38 }
 0x24b   : > { %v5081_v19 = vrot.slane %v5080_v37, 1  ;;  %v5105_v48 = vmax.f32 %v5103_v49, %v5104_v63  ;;  %v9255_v10 = vpop.f32.mrb[177].mxu0  ;;  %v9257_v62 = vpop.f32.mrb[71].mxu1  ;;  %v5096_v45 = vmax.f32 %v5094_v61, %v5095_v24  ;;  %v6159_v27 = vsel %vm6138_vm5, %v9038_v50, %v9070_v11  ;;  %7929 = vmatmul.mubr.msk.bf16.gmra.mrb[168].mxu1 %vm3159_vm3, %v3102_v14 }
 0x24c   : > { %v5072_v36 = vrot.slane %v5071_v41, 1  ;;  %v9265_v47 = vpop.f32.mrb[178].mxu0  ;;  %v4657_v44 = vmax.f32 %v3803_v56, 0.0  ;;  %v5064_v8 = vmax.f32 %v9191_v52, %v5063_v32  ;;  %v6160_v9 = vsel %vm6140_vm6, %v5028_v1, %v6159_v27 }
 0x24d   : > { %v5106_v58 = vrot.slane %v5105_v48, 2  ;;  %v9269_v39 = vpop.f32.mrb[179].mxu0  ;;  %v9271_v20 = vmax.f32 %v5080_v37, %v5081_v19  ;;  %v5097_v35 = vrot.slane %v5096_v45, 2  ;;  %v6161_v33 = vsel %vm6142_vm7, %v9145_v55, %v6160_v9 }
 0x24e   : > { %v2421_v50 = vadd.f32 %v9163_v5, %v8465_v3  ;;  %v6162_v22 = vsel %vm6144_vm8, %v5046_v18, %v6161_v33  ;;  %v3814_v52 = vadd.f32 %v9165_v29, %v8755_v34  ;;  %v2413_v54 = vadd.f32 %v9171_v25, %v8465_v3 }
 0x24f   : > { %v9277_v11 = vmax.f32 %v5105_v48, %v5106_v58  ;;  %v9284_v28 = vmax.f32 %v5096_v45, %v5097_v35  ;;  %v5073_v0 = vmax.f32 %v5071_v41, %v5072_v36  ;;  %v6163_v40 = vsel %vm6146_vm9, %v5055_v2, %v6162_v22 }
 0x250   : > { %v3806_v55 = vadd.f32 %v9173_v23, %v8755_v34  ;;  %v9289_v49 = vpop.f32.mrb[72].mxu1  ;;  %v5110_v5 = vsel %vm4857_vm4, %v4657_v44, -inf  ;;  %v6164_v42 = vsel %vm6148_vm10, %v5064_v8, %v6163_v40  ;;  %v2933_v1 = vmax.f32 %v2421_v50, 0.0 }
 0x251   : > { %v4660_v61 = vmax.f32 %v3814_v52, 0.0  ;;  %v9293_v29 = vpop.f32.mrb[73].mxu1  ;;  %v5108_v25 = vrot.slane %v9277_v11, 1  ;;  %v6165_v14 = vsel %vm6150_vm11, %v5073_v0, %v6164_v42  ;;  %v2424_v38 = vadd.f32 %v9178_v59, %v8465_v3 }
 0x252   : > { %v4658_v43 = vmax.f32 %v3806_v55, 0.0  ;;  %v9299_v37 = vpop.f32.mrb[180].mxu0  ;;  %v9301_v23 = vpop.f32.mrb[74].mxu1  ;;  %6275 = vxpose.xlu0.b32.cont [3/16] (narrow) %v6165_v14, 32  ;;  %v2931_v56 = vmax.f32 %v2413_v54, 0.0  ;;  %v2416_v18 = vadd.f32 %v9186_v53, %v8465_v3  ;;  %v3827_v24 = vadd.f32 %v9196_v6, %v8755_v34 }
 0x253   : > { %v5120_v63 = vsel %vm4857_vm4, %v4660_v61, -inf  ;;  %v9308_v32 = vpop.f32.mrb[181].mxu0  ;;  %v9310_v41 = vpop.f32.mrb[75].mxu1  ;;  %v5099_v59 = vrot.slane %v9284_v28, 1  ;;  %v2934_v2 = vmax.f32 %v2424_v38, 0.0  ;;  %v3819_v53 = vadd.f32 %v9198_v7, %v8755_v34 }
 0x254   : > { %v5121_v19 = vmax.f32 %v5119_v13, %v5120_v63  ;;  %v5111_v48 = vsel %vm4857_vm4, %v4658_v43, -inf  ;;  %v9314_v45 = vpop.f32.mrb[182].mxu0  ;;  %v2932_v27 = vmax.f32 %v2416_v18, 0.0  ;;  %v4663_v58 = vmax.f32 %v3827_v24, 0.0 }
 0x255   : > { %v5112_v36 = vmax.f32 %v5110_v5, %v5111_v48  ;;  %v9318_v44 = vpop.f32.mrb[183].mxu0  ;;  %v3104_v8 = vpack.c.bf16 %v2934_v2, %v2933_v1  ;;  %v2437_v9 = vadd.f32 %v9204_v51, %v8465_v3  ;;  %v3830_v13 = vadd.f32 %v9206_v30, %v8755_v34 }
 0x256   : > { %v5122_v6 = vrot.slane %v5121_v19, 4  ;;  %v3103_v33 = vpack.c.bf16 %v2932_v27, %v2931_v56  ;;  %v5137_v50 = vsel %vm4857_vm4, %v4663_v58, -inf  ;;  %v4661_v22 = vmax.f32 %v3819_v53, 0.0 }
 0x257   : > { %v5113_v35 = vrot.slane %v5112_v36, 4  ;;  %v2937_v54 = vmax.f32 %v2437_v9, 0.0  ;;  %v4664_v0 = vmax.f32 %v3830_v13, 0.0  ;;  %v2429_v7 = vadd.f32 %v9213_v21, %v8465_v3 }
 0x258   : > { %v5123_v52 = vmax.f32 %v5121_v19, %v5122_v6  ;;  %v9327_v40 = vpop.f32.mrb[76].mxu1  ;;  %v5128_v5 = vsel %vm4857_vm4, %v4661_v22, -inf  ;;  %v3822_v51 = vadd.f32 %v9215_v60, %v8755_v34  ;;  %v2440_v30 = vadd.f32 %v9224_v26, %v8465_v3  ;;  %7932 = vmatprep.mubr.msk.bf16.mxu1 %vm3159_vm3, %v3103_v33 }
 0x259   : > { %v5114_v55 = vmax.f32 %v5112_v36, %v5113_v35  ;;  %v9335_v42 = vpop.f32.mrb[77].mxu1  ;;  %v5138_v61 = vsel %vm4857_vm4, %v4664_v0, -inf  ;;  %v2935_v14 = vmax.f32 %v2429_v7, 0.0  ;;  %v2432_v21 = vadd.f32 %v9226_v16, %v8465_v3  ;;  %7933 = vmatmul.mubr.msk.bf16.gmra.mrb[172].mxu1 %vm3159_vm3, %v3104_v8 }
 0x25a   : > { %v5124_v1 = vrot.slane %v5123_v52, 2  ;;  %v9341_v43 = vpop.f32.mrb[184].mxu0  ;;  %v9343_v38 = vpop.f32.mrb[78].mxu1  ;;  %v5139_v63 = vmax.f32 %v5137_v50, %v5138_v61  ;;  %v4662_v26 = vmax.f32 %v3822_v51, 0.0  ;;  %v2938_v56 = vmax.f32 %v2440_v30, 0.0 }
 0x25b   : > { %v5115_v60 = vrot.slane %v5114_v55, 2  ;;  %v9345_v18 = vpop.f32.mrb[185].mxu0  ;;  %v9347_v24 = vpop.f32.mrb[79].mxu1  ;;  %v2936_v48 = vmax.f32 %v2432_v21, 0.0  ;;  %v3843_v16 = vadd.f32 %v9233_v12, %v8755_v34  ;;  %v3835_v2 = vadd.f32 %v9237_v4, %v8755_v34 }
 0x25c   : > { %v9349_v19 = vmax.f32 %v5123_v52, %v5124_v1  ;;  %v9355_v36 = vpop.f32.mrb[186].mxu0  ;;  %v5140_v58 = vrot.slane %v5139_v63, 4  ;;  %v5129_v53 = vsel %vm4857_vm4, %v4662_v26, -inf  ;;  %v3106_v6 = vpack.c.bf16 %v2938_v56, %v2937_v54 }
 0x25d   : > { %v9357_v27 = vmax.f32 %v5114_v55, %v5115_v60  ;;  %v9360_v8 = vpop.f32.mrb[187].mxu0  ;;  %v9365_v9 = vmax.f32 %v9277_v11, %v5108_v25  ;;  %v5130_v13 = vmax.f32 %v5128_v5, %v5129_v53  ;;  %v3105_v12 = vpack.c.bf16 %v2936_v48, %v2935_v14 }
 0x25e   : > { %v4667_v35 = vmax.f32 %v3843_v16, 0.0  ;;  %v5126_v4 = vrot.slane %v9349_v19, 1  ;;  %v9368_v33 = vmax.f32 %v5139_v63, %v5140_v58  ;;  %v4665_v50 = vmax.f32 %v3835_v2, 0.0 }
 0x25f   : > { %v2453_v22 = vadd.f32 %v9247_v57, %v8465_v3  ;;  %v5117_v52 = vrot.slane %v9357_v27, 1  ;;  %v5131_v54 = vrot.slane %v5130_v13, 4  ;;  %v3846_v0 = vadd.f32 %v9249_v31, %v8755_v34  ;;  %7936 = vmatprep.mubr.msk.bf16.mxu1 %vm3159_vm3, %v3105_v12 }
 0x260   : > { %v2445_v11 = vadd.f32 %v9255_v10, %v8465_v3  ;;  %v9378_v25 = vpop.f32.mrb[80].mxu1  ;;  %v5142_v7 = vrot.slane %v9368_v33, 2  ;;  %v5155_v55 = vsel %vm4857_vm4, %v4667_v35, -inf  ;;  %v5146_v5 = vsel %vm4857_vm4, %v4665_v50, -inf }
 0x261   : > { %v2941_v57 = vmax.f32 %v2453_v22, 0.0  ;;  %v9383_v51 = vpop.f32.mrb[81].mxu1  ;;  %v5132_v30 = vmax.f32 %v5130_v13, %v5131_v54  ;;  %v4668_v1 = vmax.f32 %v3846_v0, 0.0  ;;  %v3838_v31 = vadd.f32 %v9257_v62, %v8755_v34  ;;  %7937 = vmatmul.mubr.msk.bf16.gmra.mrb[176].mxu1 %vm3159_vm3, %v3106_v6 }
 0x262   : > { %v2939_v61 = vmax.f32 %v2445_v11, 0.0  ;;  %v9388_v10 = vpop.f32.mrb[188].mxu0  ;;  %v9390_v14 = vpop.f32.mrb[82].mxu1  ;;  %v2456_v21 = vadd.f32 %v9265_v47, %v8465_v3  ;;  %v2448_v60 = vadd.f32 %v9269_v39, %v8465_v3  ;;  %v3859_v63 = vadd.f32 %v9289_v49, %v8755_v34 }
 0x263   : > { %v3851_v26 = vadd.f32 %v9293_v29, %v8755_v34  ;;  %v9400_v56 = vpop.f32.mrb[189].mxu0  ;;  %v9402_v62 = vpop.f32.mrb[83].mxu1  ;;  %v5133_v48 = vrot.slane %v5132_v30, 2  ;;  %v5156_v16 = vsel %vm4857_vm4, %v4668_v1, -inf  ;;  %v4666_v2 = vmax.f32 %v3838_v31, 0.0 }
 0x264   : > { %v2469_v47 = vadd.f32 %v9299_v37, %v8465_v3  ;;  %v9407_v58 = vpop.f32.mrb[190].mxu0  ;;  %v5157_v39 = vmax.f32 %v5155_v55, %v5156_v16  ;;  %v2942_v53 = vmax.f32 %v2456_v21, 0.0  ;;  %v2940_v6 = vmax.f32 %v2448_v60, 0.0 }
 0x265   : > { %v4671_v49 = vmax.f32 %v3859_v63, 0.0  ;;  %v9409_v13 = vpop.f32.mrb[191].mxu0  ;;  %v9411_v29 = vmax.f32 %v5132_v30, %v5133_v48  ;;  %v5147_v12 = vsel %vm4857_vm4, %v4666_v2, -inf  ;;  %v4669_v35 = vmax.f32 %v3851_v26, 0.0 }
 0x266   : > { %v2945_v50 = vmax.f32 %v2469_v47, 0.0  ;;  %v5158_v22 = vrot.slane %v5157_v39, 4  ;;  %v5148_v54 = vmax.f32 %v5146_v5, %v5147_v12  ;;  %v3108_v0 = vpack.c.bf16 %v2942_v53, %v2941_v57 }
 0x267   : > { %v3107_v11 = vpack.c.bf16 %v2940_v6, %v2939_v61  ;;  %v5173_v37 = vsel %vm4857_vm4, %v4671_v49, -inf  ;;  %v5164_v1 = vsel %vm4857_vm4, %v4669_v35, -inf  ;;  %v3862_v55 = vadd.f32 %v9301_v23, %v8755_v34 }
 0x268   : > { %v2461_v31 = vadd.f32 %v9308_v32, %v8465_v3  ;;  %v9420_v30 = vpop.f32.mrb[84].mxu1  ;;  %v5159_v21 = vmax.f32 %v5157_v39, %v5158_v22  ;;  %v5149_v60 = vrot.slane %v5148_v54, 4  ;;  %v3854_v63 = vadd.f32 %v9310_v41, %v8755_v34 }
 0x269   : > { %v2472_v5 = vadd.f32 %v9314_v45, %v8465_v3  ;;  %7940 = vmatprep.mubr.msk.bf16.mxu1 %vm3159_vm3, %v3107_v11  ;;  %v9427_v57 = vpop.f32.mrb[85].mxu1  ;;  %v4672_v61 = vmax.f32 %v3862_v55, 0.0  ;;  %v2464_v23 = vadd.f32 %v9318_v44, %v8465_v3  ;;  %v3875_v32 = vadd.f32 %v9327_v40, %v8755_v34 }
 0x26a   : > { %v2943_v26 = vmax.f32 %v2461_v31, 0.0  ;;  %7941 = vmatmul.mubr.msk.bf16.gmra.mrb[180].mxu1 %vm3159_vm3, %v3108_v0  ;;  %v9434_v48 = vpop.f32.mrb[192].mxu0  ;;  %v9436_v41 = vpop.f32.mrb[86].mxu1  ;;  %v5160_v16 = vrot.slane %v5159_v21, 2  ;;  %v5150_v45 = vmax.f32 %v5148_v54, %v5149_v60  ;;  %v4670_v2 = vmax.f32 %v3854_v63, 0.0 }
 0x26b   : > { %v2946_v47 = vmax.f32 %v2472_v5, 0.0  ;;  %v9438_v39 = vpop.f32.mrb[193].mxu0  ;;  %v9440_v53 = vpop.f32.mrb[87].mxu1  ;;  %v5174_v6 = vsel %vm4857_vm4, %v4672_v61, -inf  ;;  %v2944_v44 = vmax.f32 %v2464_v23, 0.0  ;;  %v4675_v49 = vmax.f32 %v3875_v32, 0.0 }
 0x26c   : > { %v3867_v12 = vadd.f32 %v9335_v42, %v8755_v34  ;;  %v9445_v40 = vpop.f32.mrb[194].mxu0  ;;  %v5161_v35 = vmax.f32 %v5159_v21, %v5160_v16  ;;  %v5151_v22 = vrot.slane %v5150_v45, 2  ;;  %v5175_v0 = vmax.f32 %v5173_v37, %v5174_v6 }
 0x26d   : > { %v5165_v54 = vsel %vm4857_vm4, %v4670_v2, -inf  ;;  %v9448_v11 = vpop.f32.mrb[195].mxu0  ;;  %v5100_v55 = vmax.f32 %v9284_v28, %v5099_v59  ;;  %v3110_v60 = vpack.c.bf16 %v2946_v47, %v2945_v50  ;;  %v3109_v63 = vpack.c.bf16 %v2944_v44, %v2943_v26 }
 0x26e   : > { %v5166_v31 = vmax.f32 %v5164_v1, %v5165_v54  ;;  %v5118_v42 = vmax.f32 %v9357_v27, %v5117_v52  ;;  %v5162_v5 = vrot.slane %v5161_v35, 1  ;;  %v5152_v61 = vmax.f32 %v5150_v45, %v5151_v22 }
 0x26f   : > { %v5176_v21 = vrot.slane %v5175_v0, 4  ;;  %v4673_v37 = vmax.f32 %v3867_v12, 0.0  ;;  %v5135_v32 = vrot.slane %v9411_v29, 1  ;;  %v5143_v16 = vmax.f32 %v9368_v33, %v5142_v7  ;;  %7944 = vmatprep.mubr.msk.bf16.mxu1 %vm3159_vm3, %v3109_v63 }
 0x270   : > { %v5167_v23 = vrot.slane %v5166_v31, 4  ;;  %v9461_v28 = vpop.f32.mrb[88].mxu1  ;;  %v9463_v59 = vmax.f32 %v5161_v35, %v5162_v5  ;;  %v5191_v27 = vsel %vm4857_vm4, %v4675_v49, -inf  ;;  %v5127_v52 = vmax.f32 %v9349_v19, %v5126_v4 }
 0x271   : > { %v5177_v50 = vmax.f32 %v5175_v0, %v5176_v21  ;;  %v9469_v1 = vpop.f32.mrb[89].mxu1  ;;  %v5153_v26 = vrot.slane %v5152_v61, 1  ;;  %v5144_v2 = vrot.slane %v5143_v16, 1  ;;  %v6166_v33 = vsel %vm6138_vm5, %v9259_v46, %v9271_v20 }
 0x272   : > { %v5168_v45 = vmax.f32 %v5166_v31, %v5167_v23  ;;  %7945 = vmatmul.mubr.msk.bf16.gmra.mrb[184].mxu1 %vm3159_vm3, %v3110_v60  ;;  %v9475_v7 = vpop.f32.mrb[196].mxu0  ;;  %v9477_v47 = vpop.f32.mrb[90].mxu1  ;;  %v5136_v44 = vmax.f32 %v9411_v29, %v5135_v32  ;;  %v6167_v19 = vsel %vm6140_vm6, %v5100_v55, %v6166_v33  ;;  %v2485_v4 = vadd.f32 %v9341_v43, %v8465_v3 }
 0x273   : > { %v5178_v6 = vrot.slane %v5177_v50, 2  ;;  %v9483_v49 = vpop.f32.mrb[197].mxu0  ;;  %v9485_v12 = vpop.f32.mrb[91].mxu1  ;;  %v5182_v46 = vsel %vm4857_vm4, %v4673_v37, -inf  ;;  %v6168_v20 = vsel %vm6142_vm7, %v9365_v9, %v6167_v19  ;;  %v3878_v22 = vadd.f32 %v9343_v38, %v8755_v34 }
 0x274   : > { %v5169_v35 = vrot.slane %v5168_v45, 2  ;;  %v9492_v0 = vpop.f32.mrb[198].mxu0  ;;  %v5145_v54 = vmax.f32 %v5143_v16, %v5144_v2  ;;  %v6169_v55 = vsel %vm6144_vm8, %v5118_v42, %v6168_v20  ;;  %v2477_v43 = vadd.f32 %v9345_v18, %v8465_v3 }
 0x275   : > { %v5179_v29 = vmax.f32 %v5177_v50, %v5178_v6  ;;  %v9497_v31 = vpop.f32.mrb[199].mxu0  ;;  %v6170_v63 = vsel %vm6146_vm9, %v5127_v52, %v6169_v55  ;;  %v4676_v5 = vmax.f32 %v3878_v22, 0.0  ;;  %v3870_v9 = vadd.f32 %v9347_v24, %v8755_v34 }
 0x276   : > { %v9499_v60 = vmax.f32 %v5168_v45, %v5169_v35  ;;  %v9504_v38 = vmax.f32 %v5152_v61, %v5153_v26  ;;  %v6171_v21 = vsel %vm6148_vm10, %v5136_v44, %v6170_v63  ;;  %v2949_v23 = vmax.f32 %v2485_v4, 0.0 }
 0x277   : > { %v2488_v42 = vadd.f32 %v9355_v36, %v8465_v3  ;;  %v5180_v37 = vrot.slane %v5179_v29, 1  ;;  %v6172_v18 = vsel %vm6150_vm11, %v5145_v54, %v6171_v21  ;;  %v5192_v32 = vsel %vm4857_vm4, %v4676_v5, -inf }
 0x278   : > { %v4674_v16 = vmax.f32 %v3870_v9, 0.0  ;;  %v9511_v50 = vpop.f32.mrb[92].mxu1  ;;  %6276 = vxpose.xlu0.b32.cont [4/16] (narrow) %v6172_v18, 32  ;;  %v5193_v52 = vmax.f32 %v5191_v27, %v5192_v32  ;;  %v2947_v45 = vmax.f32 %v2477_v43, 0.0  ;;  %v2480_v61 = vadd.f32 %v9360_v8, %v8465_v3 }
 0x279   : > { %v2950_v24 = vmax.f32 %v2488_v42, 0.0  ;;  %v9515_v26 = vpop.f32.mrb[93].mxu1  ;;  %v3891_v33 = vadd.f32 %v9378_v25, %v8755_v34  ;;  %v3883_v6 = vadd.f32 %v9383_v51, %v8755_v34  ;;  %v9531_v54 = vmax.f32 %v5179_v29, %v5180_v37 }
 0x27a   : > { %v5183_v36 = vsel %vm4857_vm4, %v4674_v16, -inf  ;;  %v9523_v44 = vpop.f32.mrb[200].mxu0  ;;  %v9525_v27 = vpop.f32.mrb[94].mxu1  ;;  %v5194_v19 = vrot.slane %v5193_v52, 4  ;;  %v2948_v8 = vmax.f32 %v2480_v61, 0.0  ;;  %v2501_v25 = vadd.f32 %v9388_v10, %v8465_v3 }
 0x27b   : > { %v5184_v4 = vmax.f32 %v5182_v46, %v5183_v36  ;;  %v3112_v35 = vpack.c.bf16 %v2950_v24, %v2949_v23  ;;  %v9527_v20 = vpop.f32.mrb[201].mxu0  ;;  %v9529_v22 = vpop.f32.mrb[95].mxu1  ;;  %v4679_v55 = vmax.f32 %v3891_v33, 0.0  ;;  %v3894_v51 = vadd.f32 %v9390_v14, %v8755_v34 }
 0x27c   : > { %v9537_v43 = vpop.f32.mrb[202].mxu0  ;;  %v5195_v63 = vmax.f32 %v5193_v52, %v5194_v19  ;;  %v3111_v46 = vpack.c.bf16 %v2948_v8, %v2947_v45  ;;  %v2493_v9 = vadd.f32 %v9400_v56, %v8465_v3  ;;  %v4677_v23 = vmax.f32 %v3883_v6, 0.0 }
 0x27d   : > { %v5185_v5 = vrot.slane %v5184_v4, 4  ;;  %v9541_v21 = vpop.f32.mrb[203].mxu0  ;;  %v5209_v29 = vsel %vm4857_vm4, %v4679_v55, -inf  ;;  %v2953_v42 = vmax.f32 %v2501_v25, 0.0  ;;  %v4680_v37 = vmax.f32 %v3894_v51, 0.0 }
 0x27e   : > { %v5196_v18 = vrot.slane %v5195_v63, 2  ;;  %v2951_v32 = vmax.f32 %v2493_v9, 0.0  ;;  %v3886_v14 = vadd.f32 %v9402_v62, %v8755_v34  ;;  %7948 = vmatprep.mubr.msk.bf16.mxu1 %vm3159_vm3, %v3111_v46  ;;  %v2504_v56 = vadd.f32 %v9407_v58, %v8465_v3 }
 0x27f   : > { %v5186_v10 = vmax.f32 %v5184_v4, %v5185_v5  ;;  %v5210_v16 = vsel %vm4857_vm4, %v4680_v37, -inf  ;;  %v2496_v52 = vadd.f32 %v9409_v13, %v8465_v3  ;;  %7949 = vmatmul.mubr.msk.bf16.gmra.mrb[188].mxu1 %vm3159_vm3, %v3112_v35  ;;  %v3907_v45 = vadd.f32 %v9420_v30, %v8755_v34 }
 0x280   : > { %v9555_v24 = vpop.f32.mrb[96].mxu1  ;;  %v9557_v61 = vmax.f32 %v5195_v63, %v5196_v18  ;;  %v5211_v36 = vmax.f32 %v5209_v29, %v5210_v16  ;;  %v4678_v33 = vmax.f32 %v3886_v14, 0.0  ;;  %v2954_v19 = vmax.f32 %v2504_v56, 0.0 }
 0x281   : > { %v5187_v62 = vrot.slane %v5186_v10, 2  ;;  %v9559_v6 = vpop.f32.mrb[97].mxu1  ;;  %v2952_v4 = vmax.f32 %v2496_v52, 0.0  ;;  %v4683_v58 = vmax.f32 %v3907_v45, 0.0  ;;  %v3899_v13 = vadd.f32 %v9427_v57, %v8755_v34 }
 0x282   : > { %v9563_v8 = vpop.f32.mrb[204].mxu0  ;;  %v9565_v35 = vpop.f32.mrb[98].mxu1  ;;  %v5200_v55 = vsel %vm4857_vm4, %v4677_v23, -inf  ;;  %v5212_v25 = vrot.slane %v5211_v36, 4  ;;  %v5201_v51 = vsel %vm4857_vm4, %v4678_v33, -inf  ;;  %v3114_v29 = vpack.c.bf16 %v2954_v19, %v2953_v42 }
 0x283   : > { %v9567_v30 = vmax.f32 %v5186_v10, %v5187_v62  ;;  %v9571_v63 = vpop.f32.mrb[205].mxu0  ;;  %v9573_v5 = vpop.f32.mrb[99].mxu1  ;;  %v5202_v9 = vmax.f32 %v5200_v55, %v5201_v51  ;;  %v3113_v57 = vpack.c.bf16 %v2952_v4, %v2951_v32  ;;  %v5227_v10 = vsel %vm4857_vm4, %v4683_v58, -inf }
 0x284   : > { %v9576_v37 = vpop.f32.mrb[206].mxu0  ;;  %v9578_v18 = vmax.f32 %v5211_v36, %v5212_v25  ;;  %v4681_v14 = vmax.f32 %v3899_v13, 0.0  ;;  %v2517_v23 = vadd.f32 %v9434_v48, %v8465_v3  ;;  %v3910_v52 = vadd.f32 %v9436_v41, %v8755_v34 }
 0x285   : > { %v9583_v16 = vpop.f32.mrb[207].mxu0  ;;  %v5203_v56 = vrot.slane %v5202_v9, 4  ;;  %v2509_v42 = vadd.f32 %v9438_v39, %v8465_v3  ;;  %v3902_v32 = vadd.f32 %v9440_v53, %v8755_v34  ;;  %7952 = vmatprep.mubr.msk.bf16.mxu1 %vm3159_vm3, %v3113_v57  ;;  %v2520_v39 = vadd.f32 %v9445_v40, %v8465_v3 }
 0x286   : > { %v5218_v48 = vsel %vm4857_vm4, %v4681_v14, -inf  ;;  %v2957_v36 = vmax.f32 %v2517_v23, 0.0  ;;  %v4684_v19 = vmax.f32 %v3910_v52, 0.0  ;;  %v2512_v53 = vadd.f32 %v9448_v11, %v8465_v3 }
 0x287   : > { %v5204_v33 = vmax.f32 %v5202_v9, %v5203_v56  ;;  %v2955_v4 = vmax.f32 %v2509_v42, 0.0  ;;  %v4682_v58 = vmax.f32 %v3902_v32, 0.0  ;;  %7953 = vmatmul.mubr.msk.bf16.gmra.mrb[192].mxu1 %vm3159_vm3, %v3114_v29  ;;  %v3923_v13 = vadd.f32 %v9461_v28, %v8755_v34 }
 0x288   : > { %v9596_v41 = vpop.f32.mrb[100].mxu1  ;;  %v3915_v55 = vadd.f32 %v9469_v1, %v8755_v34  ;;  %v5228_v9 = vsel %vm4857_vm4, %v4684_v19, -inf  ;;  %v2533_v57 = vadd.f32 %v9475_v7, %v8465_v3  ;;  %v2958_v28 = vmax.f32 %v2520_v39, 0.0 }
 0x289   : > { %v9606_v25 = vpop.f32.mrb[101].mxu1  ;;  %v5205_v51 = vrot.slane %v5204_v33, 2  ;;  %v5219_v29 = vsel %vm4857_vm4, %v4682_v58, -inf  ;;  %v5229_v11 = vmax.f32 %v5227_v10, %v5228_v9  ;;  %v2956_v56 = vmax.f32 %v2512_v53, 0.0 }
 0x28a   : > { %v9612_v40 = vpop.f32.mrb[208].mxu0  ;;  %v9614_v14 = vpop.f32.mrb[102].mxu1  ;;  %v5220_v23 = vmax.f32 %v5218_v48, %v5219_v29  ;;  %v4687_v32 = vmax.f32 %v3923_v13, 0.0  ;;  %v4685_v19 = vmax.f32 %v3915_v55, 0.0  ;;  %v2961_v46 = vmax.f32 %v2533_v57, 0.0 }
 0x28b   : > { %v9616_v52 = vpop.f32.mrb[209].mxu0  ;;  %v9618_v1 = vpop.f32.mrb[103].mxu1  ;;  %v5206_v42 = vmax.f32 %v5204_v33, %v5205_v51  ;;  %v5230_v62 = vrot.slane %v5229_v11, 4  ;;  %v3116_v45 = vpack.c.bf16 %v2958_v28, %v2957_v36  ;;  %v3115_v2 = vpack.c.bf16 %v2956_v56, %v2955_v4 }
 0x28c   : > { %v9620_v58 = vpop.f32.mrb[210].mxu0  ;;  %v5221_v7 = vrot.slane %v5220_v23, 4  ;;  %v5245_v10 = vsel %vm4857_vm4, %v4687_v32, -inf  ;;  %v5236_v48 = vsel %vm4857_vm4, %v4685_v19, -inf  ;;  %v3926_v39 = vadd.f32 %v9477_v47, %v8755_v34 }
 0x28d   : > { %v9622_v15 = vpop.f32.mrb[211].mxu0  ;;  %v2525_v33 = vadd.f32 %v9483_v49, %v8465_v3  ;;  %v5231_v53 = vmax.f32 %v5229_v11, %v5230_v62  ;;  %v3918_v55 = vadd.f32 %v9485_v12, %v8755_v34  ;;  %v2536_v36 = vadd.f32 %v9492_v0, %v8465_v3  ;;  %7956 = vmatprep.mubr.msk.bf16.mxu1 %vm3159_vm3, %v3115_v2 }
 0x28e   : > { %v5222_v13 = vmax.f32 %v5220_v23, %v5221_v7  ;;  %v4688_v4 = vmax.f32 %v3926_v39, 0.0  ;;  %v2528_v9 = vadd.f32 %v9497_v31, %v8465_v3  ;;  %v3939_v47 = vadd.f32 %v9511_v50, %v8755_v34 }
 0x28f   : > { %v2959_v51 = vmax.f32 %v2525_v33, 0.0  ;;  %7957 = vmatmul.mubr.msk.bf16.gmra.mrb[196].mxu1 %vm3159_vm3, %v3116_v45  ;;  %v5232_v62 = vrot.slane %v5231_v53, 2  ;;  %v4686_v12 = vmax.f32 %v3918_v55, 0.0  ;;  %v2962_v57 = vmax.f32 %v2536_v36, 0.0 }
 0x290   : > { %v9640_v49 = vpop.f32.mrb[104].mxu1  ;;  %v5223_v29 = vrot.slane %v5222_v13, 2  ;;  %v5246_v0 = vsel %vm4857_vm4, %v4688_v4, -inf  ;;  %v2960_v2 = vmax.f32 %v2528_v9, 0.0  ;;  %v4691_v23 = vmax.f32 %v3939_v47, 0.0 }
 0x291   : > { %v9642_v11 = vpop.f32.mrb[105].mxu1  ;;  %v3931_v31 = vadd.f32 %v9515_v26, %v8755_v34  ;;  %v5233_v50 = vmax.f32 %v5231_v53, %v5232_v62  ;;  %v5247_v32 = vmax.f32 %v5245_v10, %v5246_v0  ;;  %v5237_v19 = vsel %vm4857_vm4, %v4686_v12, -inf }
 0x292   : > { %v9647_v28 = vpop.f32.mrb[212].mxu0  ;;  %v9649_v45 = vpop.f32.mrb[106].mxu1  ;;  %v5224_v56 = vmax.f32 %v5222_v13, %v5223_v29  ;;  %v10800_v33 = vrot.slane %v9499_v60, 1  ;;  %v5238_v36 = vmax.f32 %v5236_v48, %v5237_v19  ;;  %v3118_v4 = vpack.c.bf16 %v2962_v57, %v2961_v46 }
 0x293   : > { %v9652_v7 = vpop.f32.mrb[213].mxu0  ;;  %v9654_v39 = vpop.f32.mrb[107].mxu1  ;;  %v3117_v26 = vpack.c.bf16 %v2960_v2, %v2959_v51  ;;  %v10801_v47 = vrot.slane %v9567_v30, 1  ;;  %v5234_v10 = vrot.slane %v5233_v50, 1  ;;  %v5248_v13 = vrot.slane %v5247_v32, 4 }
 0x294   : > { %v5172_v55 = vmax.f32 %v9499_v60, %v10800_v33  ;;  %v9659_v9 = vpop.f32.mrb[214].mxu0  ;;  %v5263_v62 = vsel %vm4857_vm4, %v4691_v23, -inf  ;;  %v5225_v12 = vrot.slane %v5224_v56, 1  ;;  %v5239_v0 = vrot.slane %v5238_v36, 4 }
 0x295   : > { %v5190_v53 = vmax.f32 %v9567_v30, %v10801_v47  ;;  %v9665_v29 = vpop.f32.mrb[215].mxu0  ;;  %v5207_v17 = vrot.slane %v5206_v42, 1  ;;  %v10802_v60 = vrot.slane %v9578_v18, 2  ;;  %7960 = vmatprep.mubr.msk.bf16.mxu1 %vm3159_vm3, %v3117_v26  ;;  %v9671_v48 = vmax.f32 %v5233_v50, %v5234_v10 }
 0x296   : > { %v5249_v51 = vmax.f32 %v5247_v32, %v5248_v13  ;;  %v4689_v57 = vmax.f32 %v3931_v31, 0.0  ;;  %v10803_v30 = vrot.slane %v9557_v61, 1  ;;  %v5240_v23 = vmax.f32 %v5238_v36, %v5239_v0 }
 0x297   : > { %v5215_v46 = vmax.f32 %v9578_v18, %v10802_v60  ;;  %v5208_v19 = vmax.f32 %v5206_v42, %v5207_v17  ;;  %v6173_v47 = vsel %vm6138_vm5, %v9463_v59, %v9504_v38  ;;  %7961 = vmatmul.mubr.msk.bf16.gmra.mrb[200].mxu1 %vm3159_vm3, %v3118_v4  ;;  %v2549_v31 = vadd.f32 %v9523_v44, %v8465_v3 }
 0x298   : > { %v5199_v2 = vmax.f32 %v9557_v61, %v10803_v30  ;;  %v9680_v18 = vpop.f32.mrb[108].mxu1  ;;  %v5250_v26 = vrot.slane %v5249_v51, 2  ;;  %v6174_v50 = vsel %vm6140_vm6, %v5172_v55, %v6173_v47  ;;  %v3942_v61 = vadd.f32 %v9525_v27, %v8755_v34 }
 0x299   : > { %v5216_v33 = vrot.slane %v5215_v46, 1  ;;  %v9687_v32 = vpop.f32.mrb[109].mxu1  ;;  %v9689_v17 = vmax.f32 %v5224_v56, %v5225_v12  ;;  %v5241_v42 = vrot.slane %v5240_v23, 2  ;;  %v6175_v59 = vsel %vm6142_vm7, %v9531_v54, %v6174_v50 }
 0x29a   : > { %v2541_v38 = vadd.f32 %v9527_v20, %v8465_v3  ;;  %v9695_v36 = vpop.f32.mrb[216].mxu0  ;;  %v9697_v55 = vpop.f32.mrb[110].mxu1  ;;  %v5251_v4 = vmax.f32 %v5249_v51, %v5250_v26  ;;  %v5254_v44 = vsel %vm4857_vm4, %v4689_v57, -inf  ;;  %v6176_v27 = vsel %vm6144_vm8, %v5190_v53, %v6175_v59 }
 0x29b   : > { %v4692_v10 = vmax.f32 %v3942_v61, 0.0  ;;  %v9701_v13 = vpop.f32.mrb[217].mxu0  ;;  %v9703_v56 = vpop.f32.mrb[111].mxu1  ;;  %v9705_v12 = vmax.f32 %v5240_v23, %v5241_v42  ;;  %v5217_v54 = vmax.f32 %v5215_v46, %v5216_v33  ;;  %v6177_v0 = vsel %vm6146_vm9, %v5199_v2, %v6176_v27 }
 0x29c   : > { %v3934_v20 = vadd.f32 %v9529_v22, %v8755_v34  ;;  %v9710_v60 = vpop.f32.mrb[218].mxu0  ;;  %v6178_v51 = vsel %vm6148_vm10, %v5208_v19, %v6177_v0  ;;  %v2965_v57 = vmax.f32 %v2549_v31, 0.0  ;;  %v2552_v30 = vadd.f32 %v9537_v43, %v8465_v3 }
 0x29d   : > { %v5264_v53 = vsel %vm4857_vm4, %v4692_v10, -inf  ;;  %v9716_v47 = vpop.f32.mrb[219].mxu0  ;;  %v6179_v23 = vsel %vm6150_vm11, %v5217_v54, %v6178_v51  ;;  %v2963_v33 = vmax.f32 %v2541_v38, 0.0  ;;  %v5252_v26 = vrot.slane %v5251_v4, 1 }
 0x29e   : > { %v5265_v46 = vmax.f32 %v5263_v62, %v5264_v53  ;;  %v4690_v2 = vmax.f32 %v3934_v20, 0.0  ;;  %6277 = vxpose.xlu0.b32.cont [5/16] (narrow) %v6179_v23, 32  ;;  %v2966_v22 = vmax.f32 %v2552_v30, 0.0  ;;  %v2544_v50 = vadd.f32 %v9541_v21, %v8465_v3 }
 0x29f   : > { %v3955_v19 = vadd.f32 %v9555_v24, %v8755_v34  ;;  %v3947_v42 = vadd.f32 %v9559_v6, %v8755_v34  ;;  %v2565_v24 = vadd.f32 %v9563_v8, %v8465_v3  ;;  %v3958_v20 = vadd.f32 %v9565_v35, %v8755_v34 }
 0x2a0   : > { %v5266_v61 = vrot.slane %v5265_v46, 4  ;;  %v5255_v43 = vsel %vm4857_vm4, %v4690_v2, -inf  ;;  %v9727_v62 = vpop.f32.mrb[112].mxu1  ;;  %v3120_v38 = vpack.c.bf16 %v2966_v22, %v2965_v57  ;;  %v2964_v27 = vmax.f32 %v2544_v50, 0.0 }
 0x2a1   : > { %v5256_v59 = vmax.f32 %v5254_v44, %v5255_v43  ;;  %v4695_v10 = vmax.f32 %v3955_v19, 0.0  ;;  %v9729_v54 = vpop.f32.mrb[113].mxu1  ;;  %v4693_v0 = vmax.f32 %v3947_v42, 0.0  ;;  %v9739_v6 = vmax.f32 %v5251_v4, %v5252_v26 }
 0x2a2   : > { %v5267_v21 = vmax.f32 %v5265_v46, %v5266_v61  ;;  %v9735_v51 = vpop.f32.mrb[220].mxu0  ;;  %v9737_v53 = vpop.f32.mrb[114].mxu1  ;;  %v3119_v57 = vpack.c.bf16 %v2964_v27, %v2963_v33  ;;  %v4696_v22 = vmax.f32 %v3958_v20, 0.0  ;;  %v2557_v35 = vadd.f32 %v9571_v63, %v8465_v3 }
 0x2a3   : > { %v5257_v44 = vrot.slane %v5256_v59, 4  ;;  %v5281_v30 = vsel %vm4857_vm4, %v4695_v10, -inf  ;;  %v9742_v23 = vpop.f32.mrb[221].mxu0  ;;  %v9744_v46 = vpop.f32.mrb[115].mxu1  ;;  %v5272_v8 = vsel %vm4857_vm4, %v4693_v0, -inf  ;;  %v2969_v4 = vmax.f32 %v2565_v24, 0.0 }
 0x2a4   : > { %v5268_v2 = vrot.slane %v5267_v21, 2  ;;  %v9749_v50 = vpop.f32.mrb[222].mxu0  ;;  %v3950_v33 = vadd.f32 %v9573_v5, %v8755_v34  ;;  %v2568_v26 = vadd.f32 %v9576_v37, %v8465_v3  ;;  %7964 = vmatprep.mubr.msk.bf16.mxu1 %vm3159_vm3, %v3119_v57  ;;  %v5282_v42 = vsel %vm4857_vm4, %v4696_v22, -inf }
 0x2a5   : > { %v5258_v19 = vmax.f32 %v5256_v59, %v5257_v44  ;;  %v9756_v61 = vpop.f32.mrb[223].mxu0  ;;  %v2560_v63 = vadd.f32 %v9583_v16, %v8465_v3  ;;  %7965 = vmatmul.mubr.msk.bf16.gmra.mrb[204].mxu1 %vm3159_vm3, %v3120_v38  ;;  %v3971_v59 = vadd.f32 %v9596_v41, %v8755_v34  ;;  %v5283_v27 = vmax.f32 %v5281_v30, %v5282_v42 }
 0x2a6   : > { %v9758_v43 = vmax.f32 %v5267_v21, %v5268_v2  ;;  %v4694_v10 = vmax.f32 %v3950_v33, 0.0  ;;  %v2970_v37 = vmax.f32 %v2568_v26, 0.0  ;;  %v2967_v0 = vmax.f32 %v2557_v35, 0.0 }
 0x2a7   : > { %v5259_v5 = vrot.slane %v5258_v19, 2  ;;  %v2968_v24 = vmax.f32 %v2560_v63, 0.0  ;;  %v4699_v20 = vmax.f32 %v3971_v59, 0.0  ;;  %v3963_v21 = vadd.f32 %v9606_v25, %v8755_v34 }
 0x2a8   : > { %v9768_v44 = vpop.f32.mrb[116].mxu1  ;;  %v5284_v16 = vrot.slane %v5283_v27, 4  ;;  %v5273_v38 = vsel %vm4857_vm4, %v4694_v10, -inf  ;;  %v3122_v2 = vpack.c.bf16 %v2970_v37, %v2969_v4  ;;  %v2581_v63 = vadd.f32 %v9612_v40, %v8465_v3 }
 0x2a9   : > { %v9770_v57 = vmax.f32 %v5258_v19, %v5259_v5  ;;  %v9773_v22 = vpop.f32.mrb[117].mxu1  ;;  %v5274_v30 = vmax.f32 %v5272_v8, %v5273_v38  ;;  %v3121_v33 = vpack.c.bf16 %v2968_v24, %v2967_v0  ;;  %v4697_v35 = vmax.f32 %v3963_v21, 0.0 }
 0x2aa   : > { %v9776_v26 = vpop.f32.mrb[224].mxu0  ;;  %v9778_v42 = vpop.f32.mrb[118].mxu1  ;;  %v9780_v25 = vmax.f32 %v5283_v27, %v5284_v16  ;;  %v5299_v19 = vsel %vm4857_vm4, %v4699_v20, -inf  ;;  %v3974_v4 = vadd.f32 %v9614_v14, %v8755_v34  ;;  %v2573_v37 = vadd.f32 %v9616_v52, %v8465_v3 }
 0x2ab   : > { %v9787_v59 = vpop.f32.mrb[225].mxu0  ;;  %v9789_v5 = vpop.f32.mrb[119].mxu1  ;;  %v5275_v10 = vrot.slane %v5274_v30, 4  ;;  %v3966_v27 = vadd.f32 %v9618_v1, %v8755_v34  ;;  %7968 = vmatprep.mubr.msk.bf16.mxu1 %vm3159_vm3, %v3121_v33  ;;  %v5290_v14 = vsel %vm4857_vm4, %v4697_v35, -inf  ;;  %v2973_v24 = vmax.f32 %v2581_v63, 0.0 }
 0x2ac   : > { %v9797_v0 = vpop.f32.mrb[226].mxu0  ;;  %v4700_v20 = vmax.f32 %v3974_v4, 0.0  ;;  %v2971_v38 = vmax.f32 %v2573_v37, 0.0  ;;  %v2584_v52 = vadd.f32 %v9620_v58, %v8465_v3  ;;  %v2576_v33 = vadd.f32 %v9622_v15, %v8465_v3 }
 0x2ad   : > { %v9801_v21 = vpop.f32.mrb[227].mxu0  ;;  %v5276_v16 = vmax.f32 %v5274_v30, %v5275_v10  ;;  %v4698_v41 = vmax.f32 %v3966_v27, 0.0  ;;  %7969 = vmatmul.mubr.msk.bf16.gmra.mrb[208].mxu1 %vm3159_vm3, %v3122_v2  ;;  %v3987_v35 = vadd.f32 %v9640_v49, %v8755_v34  ;;  %v3979_v63 = vadd.f32 %v9642_v11, %v8755_v34 }
 0x2ae   : > { %10804 = vst [vmem:[#allocation4_spill] sm:$0xff] %v9801_v21  ;;  %v5300_v1 = vsel %vm4857_vm4, %v4700_v20, -inf  ;;  %v2974_v37 = vmax.f32 %v2584_v52, 0.0  ;;  %v2972_v58 = vmax.f32 %v2576_v33, 0.0  ;;  %v2597_v49 = vadd.f32 %v9647_v28, %v8465_v3 }
 0x2af   : > { %v5277_v4 = vrot.slane %v5276_v16, 2  ;;  %v5301_v30 = vmax.f32 %v5299_v19, %v5300_v1  ;;  %v5291_v10 = vsel %vm4857_vm4, %v4698_v41, -inf  ;;  %v4703_v40 = vmax.f32 %v3987_v35, 0.0 }
 0x2b0   : > { %v5292_v27 = vmax.f32 %v5290_v14, %v5291_v10  ;;  %v4701_v2 = vmax.f32 %v3979_v63, 0.0  ;;  %v3124_v31 = vpack.c.bf16 %v2974_v37, %v2973_v24  ;;  %v3123_v41 = vpack.c.bf16 %v2972_v58, %v2971_v38 }
 0x2b1   : > { %v9814_v8 = vpop.f32.mrb[120].mxu1  ;;  %v9816_v20 = vmax.f32 %v5276_v16, %v5277_v4  ;;  %v5302_v15 = vrot.slane %v5301_v30, 4  ;;  %v5317_v14 = vsel %vm4857_vm4, %v4703_v40, -inf  ;;  %v2977_v35 = vmax.f32 %v2597_v49, 0.0 }
 0x2b2   : > { %v9820_v21 = vpop.f32.mrb[121].mxu1  ;;  %v9822_v11 = vpop.f32.mrb[228].mxu0  ;;  %v5293_v19 = vrot.slane %v5292_v27, 4  ;;  %v5308_v52 = vsel %vm4857_vm4, %v4701_v2, -inf  ;;  %v3990_v24 = vadd.f32 %v9649_v45, %v8755_v34  ;;  %v2589_v28 = vadd.f32 %v9652_v7, %v8465_v3  ;;  %7972 = vmatprep.mubr.msk.bf16.mxu1 %vm3159_vm3, %v3123_v41 }
 0x2b3   : > { %v9826_v1 = vpop.f32.mrb[122].mxu1  ;;  %v9828_v33 = vpop.f32.mrb[229].mxu0  ;;  %v5303_v16 = vmax.f32 %v5301_v30, %v5302_v15  ;;  %v3982_v40 = vadd.f32 %v9654_v39, %v8755_v34  ;;  %v2600_v10 = vadd.f32 %v9659_v9, %v8465_v3  ;;  %v2592_v30 = vadd.f32 %v9665_v29, %v8465_v3 }
 0x2b4   : > { %v9834_v63 = vpop.f32.mrb[123].mxu1  ;;  %v9836_v4 = vpop.f32.mrb[230].mxu0  ;;  %v5294_v38 = vmax.f32 %v5292_v27, %v5293_v19  ;;  %v4704_v7 = vmax.f32 %v3990_v24, 0.0  ;;  %v2975_v58 = vmax.f32 %v2589_v28, 0.0  ;;  %v4003_v27 = vadd.f32 %v9680_v18, %v8755_v34 }
 0x2b5   : > { %10805 = vst [vmem:[#allocation5_spill] sm:$0xff] %v9834_v63  ;;  %10806 = vst [vmem:[#allocation6_spill] sm:$0xff] %v9836_v4  ;;  %v9845_v45 = vpop.f32.mrb[231].mxu0  ;;  %v5304_v37 = vrot.slane %v5303_v16, 2  ;;  %7973 = vmatmul.mubr.msk.bf16.gmra.mrb[212].mxu1 %vm3159_vm3, %v3124_v31  ;;  %v4702_v39 = vmax.f32 %v3982_v40, 0.0  ;;  %v2978_v15 = vmax.f32 %v2600_v10, 0.0  ;;  %v3995_v29 = vadd.f32 %v9687_v32, %v8755_v34 }
 0x2b6   : > { %10807 = vst [vmem:[#allocation7_spill] sm:$0xff] %v9845_v45  ;;  %v5295_v2 = vrot.slane %v5294_v38, 2  ;;  %v2976_v49 = vmax.f32 %v2592_v30, 0.0  ;;  %v5318_v19 = vsel %vm4857_vm4, %v4704_v7, -inf  ;;  %v4707_v41 = vmax.f32 %v4003_v27, 0.0 }
 0x2b7   : > { %v5305_v9 = vmax.f32 %v5303_v16, %v5304_v37  ;;  %v5319_v4 = vmax.f32 %v5317_v14, %v5318_v19  ;;  %v5309_v24 = vsel %vm4857_vm4, %v4702_v39, -inf  ;;  %v3126_v28 = vpack.c.bf16 %v2978_v15, %v2977_v35 }
 0x2b8   : > { %v5296_v45 = vmax.f32 %v5294_v38, %v5295_v2  ;;  %v10808_v31 = vrot.slane %v9705_v12, 1  ;;  %v5310_v40 = vmax.f32 %v5308_v52, %v5309_v24  ;;  %v3125_v10 = vpack.c.bf16 %v2976_v49, %v2975_v58 }
 0x2b9   : > { %v5306_v63 = vrot.slane %v5305_v9, 1  ;;  %v10809_v16 = vrot.slane %v9770_v57, 1  ;;  %v5320_v32 = vrot.slane %v5319_v4, 4  ;;  %v5335_v14 = vsel %vm4857_vm4, %v4707_v41, -inf }
 0x2ba   : > { %v5244_v18 = vmax.f32 %v9705_v12, %v10808_v31  ;;  %v9857_v30 = vpop.f32.mrb[232].mxu0  ;;  %v5297_v7 = vrot.slane %v5296_v45, 1  ;;  %v9863_v38 = vpop.f32.mrb[124].mxu1  ;;  %v5311_v27 = vrot.slane %v5310_v40, 4  ;;  %v4705_v2 = vmax.f32 %v3995_v29, 0.0  ;;  %7976 = vmatprep.mubr.msk.bf16.mxu1 %vm3159_vm3, %v3125_v10 }
 0x2bb   : > { %v5262_v37 = vmax.f32 %v9770_v57, %v10809_v16  ;;  %v9865_v35 = vpop.f32.mrb[233].mxu0  ;;  %v5279_v12 = vrot.slane %v9816_v20, 1  ;;  %v10810_v52 = vrot.slane %v9780_v25, 2  ;;  %v9872_v39 = vpop.f32.mrb[125].mxu1  ;;  %v9876_v15 = vmax.f32 %v5305_v9, %v5306_v63 }
 0x2bc   : > { %v9874_v57 = vpop.f32.mrb[234].mxu0  ;;  %v5321_v49 = vmax.f32 %v5319_v4, %v5320_v32  ;;  %v10811_v19 = vrot.slane %v9758_v43, 1  ;;  %v6180_v29 = vsel %vm6138_vm5, %v9671_v48, %v9689_v17  ;;  %v9884_v24 = vpop.f32.mrb[126].mxu1  ;;  %v5312_v31 = vmax.f32 %v5310_v40, %v5311_v27 }
 0x2bd   : > { %v5287_v58 = vmax.f32 %v9780_v25, %v10810_v52  ;;  %v9886_v25 = vpop.f32.mrb[235].mxu0  ;;  %v5280_v10 = vmax.f32 %v9816_v20, %v5279_v12  ;;  %v6181_v63 = vsel %vm6140_vm6, %v5244_v18, %v6180_v29  ;;  %7977 = vmatmul.mubr.msk.bf16.gmra.mrb[216].mxu1 %vm3159_vm3, %v3126_v28  ;;  %v9891_v4 = vpop.f32.mrb[127].mxu1  ;;  %v2613_v48 = vadd.f32 %v9695_v36, %v8465_v3 }
 0x2be   : > { %v5271_v41 = vmax.f32 %v9758_v43, %v10811_v19  ;;  %v5322_v9 = vrot.slane %v5321_v49, 2  ;;  %v6182_v43 = vsel %vm6142_vm7, %v9739_v6, %v6181_v63  ;;  %v4006_v17 = vadd.f32 %v9697_v55, %v8755_v34 }
 0x2bf   : > { %v5288_v16 = vrot.slane %v5287_v58, 1  ;;  %v9899_v40 = vmax.f32 %v5296_v45, %v5297_v7  ;;  %v5313_v20 = vrot.slane %v5312_v31, 2  ;;  %v6183_v32 = vsel %vm6144_vm8, %v5262_v37, %v6182_v43 }
 0x2c0   : > { %v2605_v28 = vadd.f32 %v9701_v13, %v8465_v3  ;;  %v5323_v18 = vmax.f32 %v5321_v49, %v5322_v9  ;;  %v6184_v12 = vsel %vm6146_vm9, %v5271_v41, %v6183_v32  ;;  %v4708_v52 = vmax.f32 %v4006_v17, 0.0 }
 0x2c1   : > { %v5289_v27 = vmax.f32 %v5287_v58, %v5288_v16  ;;  %v9905_v6 = vmax.f32 %v5312_v31, %v5313_v20  ;;  %v5326_v36 = vsel %vm4857_vm4, %v4705_v2, -inf  ;;  %v6185_v19 = vsel %vm6148_vm10, %v5280_v10, %v6184_v12 }
 0x2c2   : > { %v3998_v55 = vadd.f32 %v9703_v56, %v8755_v34  ;;  %v9911_v45 = vpop.f32.mrb[236].mxu0  ;;  %v2981_v7 = vmax.f32 %v2613_v48, 0.0  ;;  %v5336_v13 = vsel %vm4857_vm4, %v4708_v52, -inf  ;;  %v2616_v58 = vadd.f32 %v9710_v60, %v8465_v3  ;;  %v9917_v49 = vpop.f32.mrb[128].mxu1 }
 0x2c3   : > { %v6186_v37 = vsel %vm6150_vm11, %v5289_v27, %v6185_v19  ;;  %v9919_v41 = vpop.f32.mrb[237].mxu0  ;;  %v5337_v2 = vmax.f32 %v5335_v14, %v5336_v13  ;;  %v2979_v29 = vmax.f32 %v2605_v28, 0.0  ;;  %v2608_v56 = vadd.f32 %v9716_v47, %v8465_v3  ;;  %v9923_v10 = vpop.f32.mrb[129].mxu1 }
 0x2c4   : > { %6278 = vxpose.xlu0.b32.cont [6/16] (narrow) %v6186_v37, 32  ;;  %v4706_v31 = vmax.f32 %v3998_v55, 0.0  ;;  %v9925_v16 = vpop.f32.mrb[238].mxu0  ;;  %v5324_v63 = vrot.slane %v5323_v18, 1  ;;  %v2982_v9 = vmax.f32 %v2616_v58, 0.0  ;;  %v4019_v60 = vadd.f32 %v9727_v62, %v8755_v34  ;;  %v9931_v48 = vpop.f32.mrb[130].mxu1 }
 0x2c5   : > { %v4011_v43 = vadd.f32 %v9729_v54, %v8755_v34  ;;  %v9933_v14 = vpop.f32.mrb[239].mxu0  ;;  %v5338_v20 = vrot.slane %v5337_v2, 4  ;;  %v2980_v32 = vmax.f32 %v2608_v56, 0.0  ;;  %v9937_v28 = vpop.f32.mrb[131].mxu1  ;;  %v2629_v54 = vadd.f32 %v9735_v51, %v8465_v3 }
 0x2c6   : > { %v5327_v47 = vsel %vm4857_vm4, %v4706_v31, -inf  ;;  %v3128_v12 = vpack.c.bf16 %v2982_v9, %v2981_v7  ;;  %v4711_v52 = vmax.f32 %v4019_v60, 0.0  ;;  %v4022_v37 = vadd.f32 %v9737_v53, %v8755_v34 }
 0x2c7   : > { %v5328_v27 = vmax.f32 %v5326_v36, %v5327_v47  ;;  %v4709_v19 = vmax.f32 %v4011_v43, 0.0  ;;  %v5339_v62 = vmax.f32 %v5337_v2, %v5338_v20  ;;  %v3127_v55 = vpack.c.bf16 %v2980_v32, %v2979_v29 }
 0x2c8   : > { %v9943_v13 = vmax.f32 %v5323_v18, %v5324_v63  ;;  %v5353_v31 = vsel %vm4857_vm4, %v4711_v52, -inf  ;;  %v4712_v36 = vmax.f32 %v4022_v37, 0.0  ;;  %v2621_v7 = vadd.f32 %v9742_v23, %v8465_v3 }
 0x2c9   : > { %v5329_v58 = vrot.slane %v5328_v27, 4  ;;  %v5344_v56 = vsel %vm4857_vm4, %v4709_v19, -inf  ;;  %v5340_v17 = vrot.slane %v5339_v62, 2  ;;  %v4014_v2 = vadd.f32 %v9744_v46, %v8755_v34  ;;  %7980 = vmatprep.mubr.msk.bf16.mxu1 %vm3159_vm3, %v3127_v55 }
 0x2ca   : > { %v9952_v51 = vpop.f32.mrb[240].mxu0  ;;  %v2985_v18 = vmax.f32 %v2629_v54, 0.0  ;;  %v2632_v29 = vadd.f32 %v9749_v50, %v8465_v3  ;;  %v2624_v63 = vadd.f32 %v9756_v61, %v8465_v3  ;;  %7981 = vmatmul.mubr.msk.bf16.gmra.mrb[220].mxu1 %vm3159_vm3, %v3128_v12  ;;  %v5354_v46 = vsel %vm4857_vm4, %v4712_v36, -inf }
 0x2cb   : > { %v5330_v53 = vmax.f32 %v5328_v27, %v5329_v58  ;;  %v9959_v9 = vpop.f32.mrb[241].mxu0  ;;  %v9961_v23 = vmax.f32 %v5339_v62, %v5340_v17  ;;  %v4710_v60 = vmax.f32 %v4014_v2, 0.0  ;;  %v4035_v43 = vadd.f32 %v9768_v44, %v8755_v34  ;;  %v9966_v20 = vpop.f32.mrb[132].mxu1 }
 0x2cc   : > { %v9968_v47 = vpop.f32.mrb[242].mxu0  ;;  %v5355_v32 = vmax.f32 %v5353_v31, %v5354_v46  ;;  %v2986_v27 = vmax.f32 %v2632_v29, 0.0  ;;  %v2984_v61 = vmax.f32 %v2624_v63, 0.0  ;;  %v9970_v52 = vpop.f32.mrb[133].mxu1  ;;  %v2983_v17 = vmax.f32 %v2621_v7, 0.0 }
 0x2cd   : > { %v5331_v50 = vrot.slane %v5330_v53, 2  ;;  %v9972_v12 = vpop.f32.mrb[243].mxu0  ;;  %v5345_v19 = vsel %vm4857_vm4, %v4710_v60, -inf  ;;  %v4715_v62 = vmax.f32 %v4035_v43, 0.0  ;;  %v4027_v55 = vadd.f32 %v9773_v22, %v8755_v34  ;;  %v9977_v44 = vpop.f32.mrb[134].mxu1 }
 0x2ce   : > { %v5356_v37 = vrot.slane %v5355_v32, 4  ;;  %v5346_v58 = vmax.f32 %v5344_v56, %v5345_v19  ;;  %v3130_v31 = vpack.c.bf16 %v2986_v27, %v2985_v18  ;;  %v9981_v36 = vpop.f32.mrb[135].mxu1  ;;  %v3129_v29 = vpack.c.bf16 %v2984_v61, %v2983_v17 }
 0x2cf   : > { %v9979_v54 = vmax.f32 %v5330_v53, %v5331_v50  ;;  %v4713_v63 = vmax.f32 %v4027_v55, 0.0  ;;  %v2645_v7 = vadd.f32 %v9776_v26, %v8465_v3  ;;  %v5371_v22 = vsel %vm4857_vm4, %v4715_v62, -inf }
 0x2d0   : > { %v9986_v46 = vmax.f32 %v5355_v32, %v5356_v37  ;;  %v5347_v60 = vrot.slane %v5346_v58, 4  ;;  %v4038_v53 = vadd.f32 %v9778_v42, %v8755_v34  ;;  %v2637_v43 = vadd.f32 %v9787_v59, %v8465_v3  ;;  %7984 = vmatprep.mubr.msk.bf16.mxu1 %vm3159_vm3, %v3129_v29 }
 0x2d1   : > { %v5362_v18 = vsel %vm4857_vm4, %v4713_v63, -inf  ;;  %v4030_v50 = vadd.f32 %v9789_v5, %v8755_v34  ;;  %v2989_v61 = vmax.f32 %v2645_v7, 0.0  ;;  %v2648_v59 = vadd.f32 %v9797_v0, %v8465_v3  ;;  %v10814_v5 = vld [vmem:[#allocation4_spill] sm:$0xff] }
 0x2d2   : > { %v9998_v26 = vpop.f32.mrb[244].mxu0  ;;  %v5348_v27 = vmax.f32 %v5346_v58, %v5347_v60  ;;  %v4716_v17 = vmax.f32 %v4038_v53, 0.0  ;;  %7985 = vmatmul.mubr.msk.bf16.gmra.mrb[224].mxu1 %vm3159_vm3, %v3130_v31  ;;  %v2987_v19 = vmax.f32 %v2637_v43, 0.0  ;;  %v2640_v55 = vadd.f32 %v10814_v5, %v8465_v3 }
 0x2d3   : > { %10812 = vst [vmem:[#allocation8_spill] sm:$0xff] %v9998_v26  ;;  %v10002_v42 = vpop.f32.mrb[245].mxu0  ;;  %v4714_v62 = vmax.f32 %v4030_v50, 0.0  ;;  %v10008_v37 = vpop.f32.mrb[136].mxu1  ;;  %v4051_v31 = vadd.f32 %v9814_v8, %v8755_v34  ;;  %v4043_v7 = vadd.f32 %v9820_v21, %v8755_v34  ;;  %v2990_v50 = vmax.f32 %v2648_v59, 0.0 }
 0x2d4   : > { %10813 = vst [vmem:[#allocation9_spill] sm:$0xff] %v10002_v42  ;;  %v10010_v29 = vpop.f32.mrb[246].mxu0  ;;  %v5349_v63 = vrot.slane %v5348_v27, 2  ;;  %v5372_v58 = vsel %vm4857_vm4, %v4716_v17, -inf  ;;  %v10017_v60 = vpop.f32.mrb[137].mxu1  ;;  %v2988_v5 = vmax.f32 %v2640_v55, 0.0 }
 0x2d5   : > { %10815 = vst [vmem:[#allocation4_spill] sm:$0xff] %v10010_v29  ;;  %v10019_v53 = vpop.f32.mrb[247].mxu0  ;;  %v5373_v0 = vmax.f32 %v5371_v22, %v5372_v58  ;;  %v5363_v43 = vsel %vm4857_vm4, %v4714_v62, -inf  ;;  %v10022_v32 = vpop.f32.mrb[138].mxu1  ;;  %v4719_v56 = vmax.f32 %v4051_v31, 0.0  ;;  %v4717_v29 = vmax.f32 %v4043_v7, 0.0 }
 0x2d6   : > { %10816 = vst [vmem:[#allocation10_spill] sm:$0xff] %v10019_v53  ;;  %10817 = vst [vmem:[#allocation11_spill] sm:$0xff] %v10022_v32  ;;  %v10024_v2 = vmax.f32 %v5348_v27, %v5349_v63  ;;  %v5364_v17 = vmax.f32 %v5362_v18, %v5363_v43  ;;  %v10026_v8 = vpop.f32.mrb[139].mxu1  ;;  %v3132_v21 = vpack.c.bf16 %v2990_v50, %v2989_v61  ;;  %v10819_v58 = vld [vmem:[#allocation5_spill] sm:$0xff]  ;;  %v10822_v7 = vld [vmem:[#allocation7_spill] sm:$0xff] }
 0x2d7   : > { %10818 = vst [vmem:[#allocation12_spill] sm:$0xff] %v10026_v8  ;;  %v5374_v42 = vrot.slane %v5373_v0, 4  ;;  %v3131_v26 = vpack.c.bf16 %v2988_v5, %v2987_v19  ;;  %v2661_v53 = vadd.f32 %v9822_v11, %v8465_v3  ;;  %v5389_v62 = vsel %vm4857_vm4, %v4719_v56, -inf  ;;  %v10821_v56 = vld [vmem:[#allocation6_spill] sm:$0xff] }
 0x2d8   : > { %v5365_v22 = vrot.slane %v5364_v17, 4  ;;  %v5380_v59 = vsel %vm4857_vm4, %v4717_v29, -inf  ;;  %v4054_v27 = vadd.f32 %v9826_v1, %v8755_v34  ;;  %v2653_v63 = vadd.f32 %v9828_v33, %v8465_v3 }
 0x2d9   : > { %v5375_v55 = vmax.f32 %v5373_v0, %v5374_v42  ;;  %v2993_v18 = vmax.f32 %v2661_v53, 0.0  ;;  %v4046_v61 = vadd.f32 %v10819_v58, %v8755_v34  ;;  %7988 = vmatprep.mubr.msk.bf16.mxu1 %vm3159_vm3, %v3131_v26  ;;  %v2664_v29 = vadd.f32 %v10821_v56, %v8465_v3 }
 0x2da   : > { %v10039_v19 = vpop.f32.mrb[248].mxu0  ;;  %v5366_v11 = vmax.f32 %v5364_v17, %v5365_v22  ;;  %v4720_v31 = vmax.f32 %v4054_v27, 0.0  ;;  %v2656_v1 = vadd.f32 %v10822_v7, %v8465_v3  ;;  %7989 = vmatmul.mubr.msk.bf16.gmra.mrb[228].mxu1 %vm3159_vm3, %v3132_v21  ;;  %v2991_v53 = vmax.f32 %v2653_v63, 0.0 }
 0x2db   : > { %10820 = vst [vmem:[#allocation5_spill] sm:$0xff] %v10039_v19  ;;  %v10046_v42 = vpop.f32.mrb[249].mxu0  ;;  %v5376_v33 = vrot.slane %v5375_v55, 2  ;;  %v4718_v0 = vmax.f32 %v4046_v61, 0.0  ;;  %v4067_v26 = vadd.f32 %v9863_v38, %v8755_v34  ;;  %v2994_v17 = vmax.f32 %v2664_v29, 0.0 }
 0x2dc   : > { %10823 = vst [vmem:[#allocation6_spill] sm:$0xff] %v10046_v42  ;;  %v10050_v43 = vpop.f32.mrb[250].mxu0  ;;  %v5367_v50 = vrot.slane %v5366_v11, 2  ;;  %v5390_v5 = vsel %vm4857_vm4, %v4720_v31, -inf  ;;  %v2992_v22 = vmax.f32 %v2656_v1, 0.0  ;;  %v10825_v38 = vrot.slane %v9905_v6, 1 }
 0x2dd   : > { %10824 = vst [vmem:[#allocation7_spill] sm:$0xff] %v10050_v43  ;;  %v10053_v27 = vpop.f32.mrb[251].mxu0  ;;  %v5377_v58 = vmax.f32 %v5375_v55, %v5376_v33  ;;  %v5391_v56 = vmax.f32 %v5389_v62, %v5390_v5  ;;  %v5381_v21 = vsel %vm4857_vm4, %v4718_v0, -inf  ;;  %v4723_v7 = vmax.f32 %v4067_v26, 0.0 }
 0x2de   : > { %v5368_v42 = vmax.f32 %v5366_v11, %v5367_v50  ;;  %v5382_v63 = vmax.f32 %v5380_v59, %v5381_v21  ;;  %v3134_v61 = vpack.c.bf16 %v2994_v17, %v2993_v18  ;;  %v3133_v19 = vpack.c.bf16 %v2992_v22, %v2991_v53 }
 0x2df   : > { %v5316_v43 = vmax.f32 %v9905_v6, %v10825_v38  ;;  %v5378_v8 = vrot.slane %v5377_v58, 1  ;;  %v5392_v32 = vrot.slane %v5391_v56, 4  ;;  %v4059_v31 = vadd.f32 %v9872_v39, %v8755_v34 }
 0x2e0   : > { %v10826_v29 = vrot.slane %v9979_v54, 1  ;;  %v5383_v55 = vrot.slane %v5382_v63, 4  ;;  %v5407_v1 = vsel %vm4857_vm4, %v4723_v7, -inf  ;;  %v5351_v59 = vrot.slane %v10024_v2, 1  ;;  %7992 = vmatprep.mubr.msk.bf16.mxu1 %vm3159_vm3, %v3133_v19 }
 0x2e1   : > { %v10067_v18 = vpop.f32.mrb[140].mxu1  ;;  %v5369_v11 = vrot.slane %v5368_v42, 1  ;;  %v5393_v6 = vmax.f32 %v5391_v56, %v5392_v32  ;;  %v10827_v33 = vrot.slane %v9961_v23, 1  ;;  %v10828_v39 = vrot.slane %v9986_v46, 2 }
 0x2e2   : > { %v5334_v62 = vmax.f32 %v9979_v54, %v10826_v29  ;;  %v10075_v54 = vpop.f32.mrb[141].mxu1  ;;  %v10077_v26 = vmax.f32 %v5377_v58, %v5378_v8  ;;  %v5384_v50 = vmax.f32 %v5382_v63, %v5383_v55  ;;  %v4721_v5 = vmax.f32 %v4059_v31, 0.0  ;;  %7993 = vmatmul.mubr.msk.bf16.gmra.mrb[232].mxu1 %vm3159_vm3, %v3134_v61 }
 0x2e3   : > { %v5343_v53 = vmax.f32 %v9961_v23, %v10827_v33  ;;  %v5359_v0 = vmax.f32 %v9986_v46, %v10828_v39  ;;  %v6187_v19 = vsel %vm6138_vm5, %v9876_v15, %v9899_v40  ;;  %v10083_v32 = vpop.f32.mrb[142].mxu1  ;;  %v5394_v17 = vrot.slane %v5393_v6, 2 }
 0x2e4   : > { %v5352_v23 = vmax.f32 %v10024_v2, %v5351_v59  ;;  %v6188_v46 = vsel %vm6140_vm6, %v5316_v43, %v6187_v19  ;;  %v10087_v56 = vpop.f32.mrb[143].mxu1  ;;  %v5385_v8 = vrot.slane %v5384_v50, 2  ;;  %v2677_v21 = vadd.f32 %v9857_v30, %v8465_v3 }
 0x2e5   : > { %v5360_v22 = vrot.slane %v5359_v0, 1  ;;  %v6189_v58 = vsel %vm6142_vm7, %v9943_v13, %v6188_v46  ;;  %v4070_v15 = vadd.f32 %v9884_v24, %v8755_v34  ;;  %v10095_v40 = vmax.f32 %v5368_v42, %v5369_v11 }
 0x2e6   : > { %v10097_v7 = vmax.f32 %v5393_v6, %v5394_v17  ;;  %v6190_v63 = vsel %vm6144_vm8, %v5334_v62, %v6189_v58  ;;  %v5386_v43 = vmax.f32 %v5384_v50, %v5385_v8  ;;  %v2669_v13 = vadd.f32 %v9865_v35, %v8465_v3 }
 0x2e7   : > { %v5361_v2 = vmax.f32 %v5359_v0, %v5360_v22  ;;  %v6191_v61 = vsel %vm6146_vm9, %v5343_v53, %v6190_v63  ;;  %v4724_v38 = vmax.f32 %v4070_v15, 0.0  ;;  %v5398_v31 = vsel %vm4857_vm4, %v4721_v5, -inf }
 0x2e8   : > { %v6192_v30 = vsel %vm6148_vm10, %v5352_v23, %v6191_v61  ;;  %v2997_v29 = vmax.f32 %v2677_v21, 0.0  ;;  %v4062_v24 = vadd.f32 %v9891_v4, %v8755_v34  ;;  %v5387_v42 = vrot.slane %v5386_v43, 1 }
 0x2e9   : > { %v6193_v55 = vsel %vm6150_vm11, %v5361_v2, %v6192_v30  ;;  %v5408_v62 = vsel %vm4857_vm4, %v4724_v38, -inf  ;;  %v2680_v59 = vadd.f32 %v9874_v57, %v8465_v3  ;;  %v10111_v11 = vpop.f32.mrb[144].mxu1  ;;  %v5396_v35 = vrot.slane %v10097_v7, 1 }
 0x2ea   : > { %6279 = vxpose.xlu0.b32.cont [7/16] (narrow) %v6193_v55, 32  ;;  %v5409_v6 = vmax.f32 %v5407_v1, %v5408_v62  ;;  %v4722_v33 = vmax.f32 %v4062_v24, 0.0  ;;  %v2672_v53 = vadd.f32 %v9886_v25, %v8465_v3  ;;  %v10116_v39 = vpop.f32.mrb[145].mxu1  ;;  %v2995_v4 = vmax.f32 %v2669_v13, 0.0 }
 0x2eb   : > { %v2998_v0 = vmax.f32 %v2680_v59, 0.0  ;;  %v4083_v50 = vadd.f32 %v9917_v49, %v8755_v34  ;;  %v4075_v57 = vadd.f32 %v9923_v10, %v8755_v34  ;;  %v10122_v5 = vpop.f32.mrb[146].mxu1  ;;  %v2693_v23 = vadd.f32 %v9911_v45, %v8465_v3 }
 0x2ec   : > { %v5410_v19 = vrot.slane %v5409_v6, 4  ;;  %v5399_v17 = vsel %vm4857_vm4, %v4722_v33, -inf  ;;  %v2996_v1 = vmax.f32 %v2672_v53, 0.0  ;;  %v10127_v25 = vpop.f32.mrb[147].mxu1  ;;  %v10129_v22 = vmax.f32 %v5386_v43, %v5387_v42 }
 0x2ed   : > { %v5400_v46 = vmax.f32 %v5398_v31, %v5399_v17  ;;  %v3136_v8 = vpack.c.bf16 %v2998_v0, %v2997_v29  ;;  %v4727_v58 = vmax.f32 %v4083_v50, 0.0  ;;  %v4725_v15 = vmax.f32 %v4075_v57, 0.0 }
 0x2ee   : > { %v5411_v49 = vmax.f32 %v5409_v6, %v5410_v19  ;;  %v3135_v21 = vpack.c.bf16 %v2996_v1, %v2995_v4  ;;  %v4086_v10 = vadd.f32 %v9931_v48, %v8755_v34  ;;  %v3001_v61 = vmax.f32 %v2693_v23, 0.0 }
 0x2ef   : > { %v5401_v2 = vrot.slane %v5400_v46, 4  ;;  %v5425_v63 = vsel %vm4857_vm4, %v4727_v58, -inf  ;;  %v2685_v45 = vadd.f32 %v9919_v41, %v8465_v3  ;;  %v4078_v43 = vadd.f32 %v9937_v28, %v8755_v34 }
 0x2f0   : > { %v5412_v38 = vrot.slane %v5411_v49, 2  ;;  %v4728_v13 = vmax.f32 %v4086_v10, 0.0  ;;  %v2696_v31 = vadd.f32 %v9925_v16, %v8465_v3  ;;  %7996 = vmatprep.mubr.msk.bf16.mxu1 %vm3159_vm3, %v3135_v21  ;;  %v2688_v48 = vadd.f32 %v9933_v14, %v8465_v3 }
 0x2f1   : > { %v5402_v30 = vmax.f32 %v5400_v46, %v5401_v2  ;;  %v2999_v29 = vmax.f32 %v2685_v45, 0.0  ;;  %7997 = vmatmul.mubr.msk.bf16.gmra.mrb[236].mxu1 %vm3159_vm3, %v3136_v8  ;;  %v4099_v41 = vadd.f32 %v9966_v20, %v8755_v34  ;;  %v10146_v24 = vpop.f32.mrb[148].mxu1  ;;  %v4726_v55 = vmax.f32 %v4078_v43, 0.0 }
 0x2f2   : > { %v10148_v42 = vmax.f32 %v5411_v49, %v5412_v38  ;;  %v5426_v28 = vsel %vm4857_vm4, %v4728_v13, -inf  ;;  %v3002_v16 = vmax.f32 %v2696_v31, 0.0  ;;  %v10151_v62 = vpop.f32.mrb[149].mxu1  ;;  %v3000_v33 = vmax.f32 %v2688_v48, 0.0 }
 0x2f3   : > { %v5403_v59 = vrot.slane %v5402_v30, 2  ;;  %v5427_v6 = vmax.f32 %v5425_v63, %v5426_v28  ;;  %v4731_v53 = vmax.f32 %v4099_v41, 0.0  ;;  %v10153_v14 = vpop.f32.mrb[150].mxu1  ;;  %v5416_v4 = vsel %vm4857_vm4, %v4725_v15, -inf }
 0x2f4   : > { %v5417_v20 = vsel %vm4857_vm4, %v4726_v55, -inf  ;;  %v3138_v0 = vpack.c.bf16 %v3002_v16, %v3001_v61  ;;  %v4091_v50 = vadd.f32 %v9970_v52, %v8755_v34  ;;  %v10159_v57 = vpop.f32.mrb[151].mxu1  ;;  %v3137_v23 = vpack.c.bf16 %v3000_v33, %v2999_v29 }
 0x2f5   : > { %v10161_v19 = vmax.f32 %v5402_v30, %v5403_v59  ;;  %v5428_v17 = vrot.slane %v5427_v6, 4  ;;  %v5418_v1 = vmax.f32 %v5416_v4, %v5417_v20  ;;  %v5414_v46 = vrot.slane %v10148_v42, 1 }
 0x2f6   : > { %v4729_v8 = vmax.f32 %v4091_v50, 0.0  ;;  %v2709_v58 = vadd.f32 %v9952_v51, %v8465_v3  ;;  %v4102_v49 = vadd.f32 %v9977_v44, %v8755_v34  ;;  %v5443_v52 = vsel %vm4857_vm4, %v4731_v53, -inf  ;;  %8000 = vmatprep.mubr.msk.bf16.mxu1 %vm3159_vm3, %v3137_v23 }
 0x2f7   : > { %v10168_v21 = vmax.f32 %v5427_v6, %v5428_v17  ;;  %v5419_v15 = vrot.slane %v5418_v1, 4  ;;  %v2701_v10 = vadd.f32 %v9959_v9, %v8465_v3  ;;  %v5405_v2 = vrot.slane %v10161_v19, 1 }
 0x2f8   : > { %v5434_v63 = vsel %vm4857_vm4, %v4729_v8, -inf  ;;  %v4732_v61 = vmax.f32 %v4102_v49, 0.0  ;;  %v4094_v51 = vadd.f32 %v9981_v36, %v8755_v34  ;;  %v3005_v38 = vmax.f32 %v2709_v58, 0.0  ;;  %v10830_v49 = vld [vmem:[#allocation11_spill] sm:$0xff] }
 0x2f9   : > { %v5430_v44 = vrot.slane %v10168_v21, 2  ;;  %v5420_v45 = vmax.f32 %v5418_v1, %v5419_v15  ;;  %v3003_v13 = vmax.f32 %v2701_v10, 0.0  ;;  %8001 = vmatmul.mubr.msk.bf16.gmra.mrb[240].mxu1 %vm3159_vm3, %v3138_v0  ;;  %v10180_v43 = vpop.f32.mrb[152].mxu1  ;;  %v2712_v30 = vadd.f32 %v9968_v47, %v8465_v3  ;;  %v10829_v47 = vld [vmem:[#allocation8_spill] sm:$0xff]  ;;  %v10831_v10 = vld [vmem:[#allocation9_spill] sm:$0xff] }
 0x2fa   : > { %v5444_v9 = vsel %vm4857_vm4, %v4732_v61, -inf  ;;  %v4730_v31 = vmax.f32 %v4094_v51, 0.0  ;;  %v2704_v29 = vadd.f32 %v9972_v12, %v8465_v3  ;;  %v10187_v48 = vpop.f32.mrb[153].mxu1  ;;  %v4115_v28 = vadd.f32 %v10008_v37, %v8755_v34  ;;  %v10832_v51 = vld [vmem:[#allocation12_spill] sm:$0xff] }
 0x2fb   : > { %v5421_v36 = vrot.slane %v5420_v45, 2  ;;  %v5445_v41 = vmax.f32 %v5443_v52, %v5444_v9  ;;  %v4107_v55 = vadd.f32 %v10017_v60, %v8755_v34  ;;  %v10193_v16 = vpop.f32.mrb[154].mxu1  ;;  %v3006_v6 = vmax.f32 %v2712_v30, 0.0  ;;  %v10834_v30 = vld [vmem:[#allocation10_spill] sm:$0xff] }
 0x2fc   : > { %v5435_v59 = vsel %vm4857_vm4, %v4730_v31, -inf  ;;  %v3004_v33 = vmax.f32 %v2704_v29, 0.0  ;;  %v2725_v53 = vadd.f32 %v10829_v47, %v8465_v3  ;;  %v10198_v12 = vpop.f32.mrb[155].mxu1  ;;  %v4735_v50 = vmax.f32 %v4115_v28, 0.0 }
 0x2fd   : > { %v5422_v4 = vmax.f32 %v5420_v45, %v5421_v36  ;;  %v5446_v20 = vrot.slane %v5445_v41, 4  ;;  %v5436_v0 = vmax.f32 %v5434_v63, %v5435_v59  ;;  %v3140_v17 = vpack.c.bf16 %v3006_v6, %v3005_v38  ;;  %v10833_v45 = vld [vmem:[#allocation4_spill] sm:$0xff] }
 0x2fe   : > { %v3139_v37 = vpack.c.bf16 %v3004_v33, %v3003_v13  ;;  %v4733_v1 = vmax.f32 %v4107_v55, 0.0  ;;  %v3009_v23 = vmax.f32 %v2725_v53, 0.0  ;;  %v5461_v58 = vsel %vm4857_vm4, %v4735_v50, -inf }
 0x2ff   : > { %v5447_v60 = vmax.f32 %v5445_v41, %v5446_v20  ;;  %v5437_v8 = vrot.slane %v5436_v0, 4  ;;  %v4118_v15 = vadd.f32 %v10830_v49, %v8755_v34  ;;  %v2717_v61 = vadd.f32 %v10831_v10, %v8465_v3 }
 0x300   : > { %v5452_v52 = vsel %vm4857_vm4, %v4733_v1, -inf  ;;  %v4110_v63 = vadd.f32 %v10832_v51, %v8755_v34  ;;  %v2728_v38 = vadd.f32 %v10833_v45, %v8465_v3  ;;  %8004 = vmatprep.mubr.msk.bf16.mxu1 %vm3159_vm3, %v3139_v37  ;;  %v2720_v29 = vadd.f32 %v10834_v30, %v8465_v3 }
 0x301   : > { %v5448_v13 = vrot.slane %v5447_v60, 2  ;;  %v5438_v9 = vmax.f32 %v5436_v0, %v5437_v8  ;;  %v4736_v31 = vmax.f32 %v4118_v15, 0.0  ;;  %8005 = vmatmul.mubr.msk.bf16.gmra.mrb[244].mxu1 %vm3159_vm3, %v3140_v17  ;;  %v3007_v36 = vmax.f32 %v2717_v61, 0.0 }
 0x302   : > { %v4734_v41 = vmax.f32 %v4110_v63, 0.0  ;;  %v3010_v28 = vmax.f32 %v2728_v38, 0.0  ;;  %v4131_v55 = vadd.f32 %v10067_v18, %v8755_v34  ;;  %v3008_v47 = vmax.f32 %v2720_v29, 0.0 }
 0x303   : > { %v5449_v59 = vmax.f32 %v5447_v60, %v5448_v13  ;;  %v5439_v6 = vrot.slane %v5438_v9, 2  ;;  %v5462_v33 = vsel %vm4857_vm4, %v4736_v31, -inf  ;;  %v5397_v49 = vmax.f32 %v10097_v7, %v5396_v35  ;;  %v10835_v31 = vld [vmem:[#allocation5_spill] sm:$0xff] }
 0x304   : > { %v5463_v53 = vmax.f32 %v5461_v58, %v5462_v33  ;;  %v5453_v20 = vsel %vm4857_vm4, %v4734_v41, -inf  ;;  %v3142_v0 = vpack.c.bf16 %v3010_v28, %v3009_v23  ;;  %v4739_v50 = vmax.f32 %v4131_v55, 0.0  ;;  %v10836_v41 = vld [vmem:[#allocation6_spill] sm:$0xff] }
 0x305   : > { %v5450_v37 = vrot.slane %v5449_v59, 1  ;;  %v5440_v1 = vmax.f32 %v5438_v9, %v5439_v6  ;;  %v5454_v8 = vmax.f32 %v5452_v52, %v5453_v20  ;;  %v3141_v17 = vpack.c.bf16 %v3008_v47, %v3007_v36 }
 0x306   : > { %v5406_v18 = vmax.f32 %v10161_v19, %v5405_v2  ;;  %v5464_v60 = vrot.slane %v5463_v53, 4  ;;  %v4123_v58 = vadd.f32 %v10075_v54, %v8755_v34  ;;  %v5479_v23 = vsel %vm4857_vm4, %v4739_v50, -inf  ;;  %v10231_v61 = vpop.f32.mrb[156].mxu1 }
 0x307   : > { %v5455_v15 = vrot.slane %v5454_v8, 4  ;;  %v5415_v52 = vmax.f32 %v10148_v42, %v5414_v46  ;;  %v5423_v10 = vrot.slane %v5422_v4, 1  ;;  %8008 = vmatprep.mubr.msk.bf16.mxu1 %vm3159_vm3, %v3141_v17  ;;  %v10233_v7 = vmax.f32 %v5449_v59, %v5450_v37  ;;  %v10241_v2 = vpop.f32.mrb[157].mxu1  ;;  %v10837_v37 = vld [vmem:[#allocation7_spill] sm:$0xff] }
 0x308   : > { %v5465_v35 = vmax.f32 %v5463_v53, %v5464_v60  ;;  %v5431_v19 = vmax.f32 %v10168_v21, %v5430_v44  ;;  %v6194_v54 = vsel %vm6138_vm5, %v10077_v26, %v10095_v40  ;;  %v5441_v51 = vrot.slane %v5440_v1, 1  ;;  %v10246_v45 = vpop.f32.mrb[158].mxu1 }
 0x309   : > { %v5456_v42 = vmax.f32 %v5454_v8, %v5455_v15  ;;  %v5424_v46 = vmax.f32 %v5422_v4, %v5423_v10  ;;  %v6195_v63 = vsel %vm6140_vm6, %v10129_v22, %v6194_v54  ;;  %8009 = vmatmul.mubr.msk.bf16.gmra.mrb[248].mxu1 %vm3159_vm3, %v3142_v0  ;;  %v4737_v13 = vmax.f32 %v4123_v58, 0.0  ;;  %v10249_v44 = vpop.f32.mrb[159].mxu1 }
 0x30a   : > { %v5466_v38 = vrot.slane %v5465_v35, 2  ;;  %v5432_v9 = vrot.slane %v5431_v19, 1  ;;  %v6196_v21 = vsel %vm6142_vm7, %v5397_v49, %v6195_v63  ;;  %v2741_v4 = vadd.f32 %v10835_v31, %v8465_v3 }
 0x30b   : > { %v5457_v26 = vrot.slane %v5456_v42, 2  ;;  %v6197_v40 = vsel %vm6144_vm8, %v5406_v18, %v6196_v21  ;;  %v4134_v22 = vadd.f32 %v10083_v32, %v8755_v34  ;;  %v2733_v28 = vadd.f32 %v10836_v41, %v8465_v3  ;;  %v10838_v41 = vld [vmem:[#allocation3_spill] sm:$0xff] }
 0x30c   : > { %v5467_v30 = vmax.f32 %v5465_v35, %v5466_v38  ;;  %v5433_v29 = vmax.f32 %v5431_v19, %v5432_v9  ;;  %v6198_v36 = vsel %vm6146_vm9, %v5415_v52, %v6197_v40  ;;  %v10259_v55 = vmax.f32 %v5440_v1, %v5441_v51 }
 0x30d   : > { %v5458_v59 = vmax.f32 %v5456_v42, %v5457_v26  ;;  %v6199_v6 = vsel %vm6148_vm10, %v5424_v46, %v6198_v36  ;;  %v4740_v33 = vmax.f32 %v4134_v22, 0.0  ;;  %v5470_v47 = vsel %vm4857_vm4, %v4737_v13, -inf }
 0x30e   : > { %v6200_v53 = vsel %vm6150_vm11, %v5433_v29, %v6199_v6  ;;  %v3013_v20 = vmax.f32 %v2741_v4, 0.0  ;;  %v4126_v32 = vadd.f32 %v10087_v56, %v8755_v34  ;;  %v5468_v0 = vrot.slane %v5467_v30, 1  ;;  %v10271_v17 = vpop.f32.mrb[160].mxu1 }
 0x30f   : > { %6280 = vxpose.xlu0.b32.cont [8/16] (narrow) %v6200_v53, 32  ;;  %v5480_v50 = vsel %vm4857_vm4, %v4740_v33, -inf  ;;  %v2744_v1 = vadd.f32 %v10837_v37, %v8465_v3  ;;  %v2736_v8 = vadd.f32 %v10053_v27, %v8465_v3  ;;  %v3011_v18 = vmax.f32 %v2733_v28, 0.0  ;;  %v10275_v15 = vpop.f32.mrb[161].mxu1 }
 0x310   : > { %v5481_v49 = vmax.f32 %v5479_v23, %v5480_v50  ;;  %v4738_v60 = vmax.f32 %v4126_v32, 0.0  ;;  %v4147_v58 = vadd.f32 %v10111_v11, %v8755_v34  ;;  %v5459_v56 = vrot.slane %v5458_v59, 1  ;;  %v10279_v19 = vpop.f32.mrb[162].mxu1 }
 0x311   : > { %v3014_v52 = vmax.f32 %v2744_v1, 0.0  ;;  %v3012_v10 = vmax.f32 %v2736_v8, 0.0  ;;  %v4139_v35 = vadd.f32 %v10116_v39, %v8755_v34  ;;  %v4150_v23 = vadd.f32 %v10122_v5, %v8755_v34  ;;  %v10284_v51 = vpop.f32.mrb[163].mxu1 }
 0x312   : > { %v5482_v54 = vrot.slane %v5481_v49, 4  ;;  %v5471_v3 = vsel %vm4857_vm4, %v4738_v60, -inf  ;;  %v4743_v27 = vmax.f32 %v4147_v58, 0.0  ;;  %v10286_v38 = vmax.f32 %v5467_v30, %v5468_v0 }
 0x313   : > { %v5472_v11 = vmax.f32 %v5470_v47, %v5471_v3  ;;  %v3144_v42 = vpack.c.bf16 %v3014_v52, %v3013_v20  ;;  %v3143_v46 = vpack.c.bf16 %v3012_v10, %v3011_v18  ;;  %v4741_v63 = vmax.f32 %v4139_v35, 0.0 }
 0x314   : > { %v5483_v13 = vmax.f32 %v5481_v49, %v5482_v54  ;;  %v4744_v9 = vmax.f32 %v4150_v23, 0.0  ;;  %v4142_v39 = vadd.f32 %v10127_v25, %v8755_v34  ;;  %v5497_v26 = vsel %vm4857_vm4, %v4743_v27, -inf }
 0x315   : > { %v5473_v21 = vrot.slane %v5472_v11, 4  ;;  %8012 = vmatprep.mubr.msk.bf16.mxu1 %vm3159_vm3, %v3143_v46  ;;  %v4163_v5 = vadd.f32 %v10146_v24, %v8755_v34  ;;  %v4155_v40 = vadd.f32 %v10151_v62, %v8755_v34  ;;  %v4166_v25 = vadd.f32 %v10153_v14, %v8755_v34 }
 0x316   : > { %v5484_v31 = vrot.slane %v5483_v13, 2  ;;  %v5498_v4 = vsel %vm4857_vm4, %v4744_v9, -inf  ;;  %v4742_v22 = vmax.f32 %v4142_v39, 0.0  ;;  %8013 = vmatmul.mubr.msk.bf16.gmra.mrb[252].mxu1 %vm3159_vm3, %v3144_v42  ;;  %v5488_v29 = vsel %vm4857_vm4, %v4741_v63, -inf  ;;  %v10303_v28 = vpop.f32.mrb[164].mxu1  ;;  %v10839_v42 = vld [vmem:[#allocation2_spill] sm:$0xff] }
 0x317   : > { %v5474_v30 = vmax.f32 %v5472_v11, %v5473_v21  ;;  %v5499_v36 = vmax.f32 %v5497_v26, %v5498_v4  ;;  %8016 = vmatprep.mubr.msk.bf16.mxu1 %vm3159_vm3, %v10838_v41  ;;  %v4747_v24 = vmax.f32 %v4163_v5, 0.0  ;;  %v4745_v6 = vmax.f32 %v4155_v40, 0.0  ;;  %v10308_v53 = vpop.f32.mrb[165].mxu1 }
 0x318   : > { %v5489_v62 = vsel %vm4857_vm4, %v4742_v22, -inf  ;;  %v4748_v33 = vmax.f32 %v4166_v25, 0.0  ;;  %v4158_v47 = vadd.f32 %v10159_v57, %v8755_v34  ;;  %v5485_v14 = vmax.f32 %v5483_v13, %v5484_v31  ;;  %v10310_v50 = vpop.f32.mrb[166].mxu1 }
 0x319   : > { %v5475_v20 = vrot.slane %v5474_v30, 2  ;;  %v5500_v32 = vrot.slane %v5499_v36, 4  ;;  %v5490_v0 = vmax.f32 %v5488_v29, %v5489_v62  ;;  %v10312_v37 = vmax.f32 %v5458_v59, %v5459_v56  ;;  %v10316_v18 = vpop.f32.mrb[167].mxu1 }
 0x31a   : > { %v5515_v1 = vsel %vm4857_vm4, %v4747_v24, -inf  ;;  %v5516_v8 = vsel %vm4857_vm4, %v4748_v33, -inf  ;;  %v4746_v49 = vmax.f32 %v4158_v47, 0.0  ;;  %v4179_v35 = vadd.f32 %v10180_v43, %v8755_v34 }
 0x31b   : > { %v5476_v60 = vmax.f32 %v5474_v30, %v5475_v20  ;;  %v5501_v58 = vmax.f32 %v5499_v36, %v5500_v32  ;;  %v5491_v57 = vrot.slane %v5490_v0, 4  ;;  %v5517_v52 = vmax.f32 %v5515_v1, %v5516_v8 }
 0x31c   : > { %v5507_v10 = vsel %vm4857_vm4, %v4746_v49, -inf  ;;  %v4171_v59 = vadd.f32 %v10187_v48, %v8755_v34  ;;  %v4182_v56 = vadd.f32 %v10193_v16, %v8755_v34  ;;  %v5486_v54 = vrot.slane %v5485_v14, 1 }
 0x31d   : > { %v5492_v3 = vmax.f32 %v5490_v0, %v5491_v57  ;;  %v5506_v27 = vsel %vm4857_vm4, %v4745_v6, -inf  ;;  %v5518_v23 = vrot.slane %v5517_v52, 4  ;;  %v4751_v46 = vmax.f32 %v4179_v35, 0.0 }
 0x31e   : > { %v5508_v11 = vmax.f32 %v5506_v27, %v5507_v10  ;;  %8017 = vmatmul.mubr.msk.bf16.gmra.mrb[0].mxu1 %vm3159_vm3, %v10839_v42  ;;  %v4749_v63 = vmax.f32 %v4171_v59, 0.0  ;;  %v4752_v13 = vmax.f32 %v4182_v56, 0.0  ;;  %v5477_v9 = vrot.slane %v5476_v60, 1  ;;  %v10330_v21 = vpop.f32.mrb[168].mxu1 }
 0x31f   : > { %v5493_v43 = vrot.slane %v5492_v3, 2  ;;  %v5519_v39 = vmax.f32 %v5517_v52, %v5518_v23  ;;  %v4174_v48 = vadd.f32 %v10198_v12, %v8755_v34  ;;  %v5502_v16 = vrot.slane %v5501_v58, 2  ;;  %v10334_v31 = vpop.f32.mrb[169].mxu1 }
 0x320   : > { %v5509_v26 = vrot.slane %v5508_v11, 4  ;;  %v5533_v5 = vsel %vm4857_vm4, %v4751_v46, -inf  ;;  %v5534_v40 = vsel %vm4857_vm4, %v4752_v13, -inf  ;;  %v10336_v29 = vpop.f32.mrb[170].mxu1  ;;  %v5524_v41 = vsel %vm4857_vm4, %v4749_v63, -inf }
 0x321   : > { %v5494_v4 = vmax.f32 %v5492_v3, %v5493_v43  ;;  %v5520_v22 = vrot.slane %v5519_v39, 2  ;;  %v5535_v25 = vmax.f32 %v5533_v5, %v5534_v40  ;;  %v4750_v30 = vmax.f32 %v4174_v48, 0.0  ;;  %v10343_v62 = vpop.f32.mrb[171].mxu1 }
 0x322   : > { %v5510_v36 = vmax.f32 %v5508_v11, %v5509_v26  ;;  %v4195_v12 = vadd.f32 %v10231_v61, %v8755_v34  ;;  %v4187_v24 = vadd.f32 %v10241_v2, %v8755_v34  ;;  %v5478_v49 = vmax.f32 %v5476_v60, %v5477_v9 }
 0x323   : > { %v5521_v6 = vmax.f32 %v5519_v39, %v5520_v22  ;;  %v5536_v33 = vrot.slane %v5535_v25, 4  ;;  %v5525_v47 = vsel %vm4857_vm4, %v4750_v30, -inf  ;;  %v5495_v20 = vrot.slane %v5494_v4, 1 }
 0x324   : > { %v5511_v32 = vrot.slane %v5510_v36, 2  ;;  %v5526_v0 = vmax.f32 %v5524_v41, %v5525_v47  ;;  %v4755_v1 = vmax.f32 %v4195_v12, 0.0  ;;  %v4753_v8 = vmax.f32 %v4187_v24, 0.0 }
 0x325   : > { %v5537_v57 = vmax.f32 %v5535_v25, %v5536_v33  ;;  %v5487_v52 = vmax.f32 %v5485_v14, %v5486_v54  ;;  %v5503_v10 = vmax.f32 %v5501_v58, %v5502_v16  ;;  %v5522_v35 = vrot.slane %v5521_v6, 1 }
 0x326   : > { %v5512_v61 = vmax.f32 %v5510_v36, %v5511_v32  ;;  %v5527_v59 = vrot.slane %v5526_v0, 4  ;;  %v5496_v56 = vmax.f32 %v5494_v4, %v5495_v20  ;;  %v5551_v3 = vsel %vm4857_vm4, %v4755_v1, -inf }
 0x327   : > { %v5538_v2 = vrot.slane %v5537_v57, 2  ;;  %v5504_v27 = vrot.slane %v5503_v10, 1  ;;  %v6201_v23 = vsel %vm6138_vm5, %v10233_v7, %v10259_v55  ;;  %v5542_v42 = vsel %vm4857_vm4, %v4753_v8, -inf }
 0x328   : > { %v5528_v11 = vmax.f32 %v5526_v0, %v5527_v59  ;;  %v6202_v60 = vsel %vm6140_vm6, %v10312_v37, %v6201_v23  ;;  %v4198_v14 = vadd.f32 %v10246_v45, %v8755_v34  ;;  %v5513_v58 = vrot.slane %v5512_v61, 1 }
 0x329   : > { %v5539_v54 = vmax.f32 %v5537_v57, %v5538_v2  ;;  %v6203_v46 = vsel %vm6142_vm7, %v10286_v38, %v6202_v60  ;;  %v4190_v63 = vadd.f32 %v10249_v44, %v8755_v34  ;;  %v5505_v9 = vmax.f32 %v5503_v10, %v5504_v27 }
 0x32a   : > { %v5529_v13 = vrot.slane %v5528_v11, 2  ;;  %v6204_v7 = vsel %vm6144_vm8, %v5478_v49, %v6203_v46  ;;  %v4756_v55 = vmax.f32 %v4198_v14, 0.0  ;;  %v4211_v45 = vadd.f32 %v10271_v17, %v8755_v34 }
 0x32b   : > { %v5540_v43 = vrot.slane %v5539_v54, 1  ;;  %v6205_v39 = vsel %vm6146_vm9, %v5487_v52, %v6204_v7  ;;  %v4754_v37 = vmax.f32 %v4190_v63, 0.0  ;;  %v4203_v44 = vadd.f32 %v10275_v15, %v8755_v34 }
 0x32c   : > { %v5530_v48 = vmax.f32 %v5528_v11, %v5529_v13  ;;  %v6206_v16 = vsel %vm6148_vm10, %v5496_v56, %v6205_v39  ;;  %v5552_v38 = vsel %vm4857_vm4, %v4756_v55, -inf  ;;  %v10367_v26 = vmax.f32 %v5521_v6, %v5522_v35  ;;  %v10371_v22 = vpop.f32.mrb[172].mxu1 }
 0x32d   : > { %v6207_v5 = vsel %vm6150_vm11, %v5505_v9, %v6206_v16  ;;  %v5553_v40 = vmax.f32 %v5551_v3, %v5552_v38  ;;  %v5543_v4 = vsel %vm4857_vm4, %v4754_v37, -inf  ;;  %v10373_v25 = vmax.f32 %v5512_v61, %v5513_v58  ;;  %v4250_v41 = vpop.f32.mrb[173].mxu1 }
 0x32e   : > { %6281 = vxpose.xlu0.b32.cont [9/16] (narrow) %v6207_v5, 32  ;;  %v5544_v17 = vmax.f32 %v5542_v42, %v5543_v4  ;;  %v4759_v30 = vmax.f32 %v4211_v45, 0.0  ;;  %v4757_v36 = vmax.f32 %v4203_v44, 0.0  ;;  %v4214_v15 = vadd.f32 %v10279_v19, %v8755_v34  ;;  %v10381_v33 = vpop.f32.mrb[174].mxu1 }
 0x32f   : > { %v5554_v12 = vrot.slane %v5553_v40, 4  ;;  %v4206_v24 = vadd.f32 %v10284_v51, %v8755_v34  ;;  %v4227_v6 = vadd.f32 %v10303_v28, %v8755_v34  ;;  %v10383_v47 = vmax.f32 %v5539_v54, %v5540_v43  ;;  %v10386_v1 = vpop.f32.mrb[175].mxu1 }
 0x330   : > { %v5531_v20 = vrot.slane %v5530_v48, 1  ;;  %v5545_v32 = vrot.slane %v5544_v17, 4  ;;  %v5569_v0 = vsel %vm4857_vm4, %v4759_v30, -inf  ;;  %v5560_v49 = vsel %vm4857_vm4, %v4757_v36, -inf }
 0x331   : > { %v5555_v8 = vmax.f32 %v5553_v40, %v5554_v12  ;;  %v4760_v19 = vmax.f32 %v4214_v15, 0.0  ;;  %v4758_v57 = vmax.f32 %v4206_v24, 0.0  ;;  %v4219_v51 = vadd.f32 %v10308_v53, %v8755_v34 }
 0x332   : > { %v5546_v52 = vmax.f32 %v5544_v17, %v5545_v32  ;;  %v4230_v28 = vadd.f32 %v10310_v50, %v8755_v34  ;;  %v4222_v10 = vadd.f32 %v10316_v18, %v8755_v34  ;;  %v4763_v56 = vmax.f32 %v4227_v6, 0.0 }
 0x333   : > { %v5556_v35 = vrot.slane %v5555_v8, 2  ;;  %v5570_v61 = vsel %vm4857_vm4, %v4760_v19, -inf  ;;  %v5561_v59 = vsel %vm4857_vm4, %v4758_v57, -inf  ;;  %v4761_v23 = vmax.f32 %v4219_v51, 0.0 }
 0x334   : > { %v5547_v2 = vrot.slane %v5546_v52, 2  ;;  %v5571_v3 = vmax.f32 %v5569_v0, %v5570_v61  ;;  %v5562_v27 = vmax.f32 %v5560_v49, %v5561_v59  ;;  %v4764_v42 = vmax.f32 %v4230_v28, 0.0  ;;  %v10399_v50 = vpop.f32.mrb[176].mxu1 }
 0x335   : > { %v5557_v11 = vmax.f32 %v5555_v8, %v5556_v35  ;;  %v4762_v60 = vmax.f32 %v4222_v10, 0.0  ;;  %v4243_v53 = vadd.f32 %v10330_v21, %v8755_v34  ;;  %v5532_v14 = vmax.f32 %v5530_v48, %v5531_v20  ;;  %v10401_v46 = vpop.f32.mrb[177].mxu1 }
 0x336   : > { %v5548_v18 = vmax.f32 %v5546_v52, %v5547_v2  ;;  %v5572_v58 = vrot.slane %v5571_v3, 4  ;;  %v5563_v54 = vrot.slane %v5562_v27, 4  ;;  %v5587_v63 = vsel %vm4857_vm4, %v4763_v56, -inf  ;;  %v10406_v55 = vpop.f32.mrb[178].mxu1 }
 0x337   : > { %v5588_v13 = vsel %vm4857_vm4, %v4764_v42, -inf  ;;  %v5579_v9 = vsel %vm4857_vm4, %v4762_v60, -inf  ;;  %v4767_v7 = vmax.f32 %v4243_v53, 0.0  ;;  %v5558_v43 = vrot.slane %v5557_v11, 1  ;;  %v10409_v45 = vpop.f32.mrb[179].mxu1 }
 0x338   : > { %v5564_v39 = vmax.f32 %v5562_v27, %v5563_v54  ;;  %v5578_v21 = vsel %vm4857_vm4, %v4761_v23, -inf  ;;  %v5589_v37 = vmax.f32 %v5587_v63, %v5588_v13  ;;  %v5573_v48 = vmax.f32 %v5571_v3, %v5572_v58 }
 0x339   : > { %v5580_v16 = vmax.f32 %v5578_v21, %v5579_v9  ;;  %v4235_v38 = vadd.f32 %v10334_v31, %v8755_v34  ;;  %v4246_v44 = vadd.f32 %v10336_v29, %v8755_v34  ;;  %v5549_v5 = vrot.slane %v5548_v18, 1 }
 0x33a   : > { %v5565_v40 = vrot.slane %v5564_v39, 2  ;;  %v5590_v4 = vrot.slane %v5589_v37, 4  ;;  %v5605_v17 = vsel %vm4857_vm4, %v4767_v7, -inf  ;;  %v4238_v15 = vadd.f32 %v10343_v62, %v8755_v34 }
 0x33b   : > { %v5581_v30 = vrot.slane %v5580_v16, 4  ;;  %v4765_v36 = vmax.f32 %v4235_v38, 0.0  ;;  %v4768_v12 = vmax.f32 %v4246_v44, 0.0  ;;  %v4259_v20 = vadd.f32 %v10371_v22, %v8755_v34 }
 0x33c   : > { %v5566_v24 = vmax.f32 %v5564_v39, %v5565_v40  ;;  %v5591_v6 = vmax.f32 %v5589_v37, %v5590_v4  ;;  %v4251_v31 = vadd.f32 %v4250_v41, %v8755_v34  ;;  %v5574_v32 = vrot.slane %v5573_v48, 2 }
 0x33d   : > { %v5582_v29 = vmax.f32 %v5580_v16, %v5581_v30  ;;  %v5606_v0 = vsel %vm4857_vm4, %v4768_v12, -inf  ;;  %v4766_v8 = vmax.f32 %v4238_v15, 0.0  ;;  %v10422_v49 = vpop.f32.mrb[180].mxu1  ;;  %v4771_v52 = vmax.f32 %v4259_v20, 0.0 }
 0x33e   : > { %v5592_v19 = vrot.slane %v5591_v6, 2  ;;  %v5607_v57 = vmax.f32 %v5605_v17, %v5606_v0  ;;  %v4769_v51 = vmax.f32 %v4251_v31, 0.0  ;;  %v10424_v28 = vpop.f32.mrb[181].mxu1  ;;  %v5596_v10 = vsel %vm4857_vm4, %v4765_v36, -inf }
 0x33f   : > { %v5583_v62 = vrot.slane %v5582_v29, 2  ;;  %v5597_v22 = vsel %vm4857_vm4, %v4766_v8, -inf  ;;  %v5567_v35 = vrot.slane %v5566_v24, 1  ;;  %v7943_v41 = vpop.f32.mrb[182].mxu1  ;;  %v5550_v61 = vmax.f32 %v5548_v18, %v5549_v5 }
 0x340   : > { %v5593_v59 = vmax.f32 %v5591_v6, %v5592_v19  ;;  %v5608_v56 = vrot.slane %v5607_v57, 4  ;;  %v5598_v2 = vmax.f32 %v5596_v10, %v5597_v22  ;;  %v10428_v3 = vpop.f32.mrb[183].mxu1  ;;  %v5623_v23 = vsel %vm4857_vm4, %v4771_v52, -inf }
 0x341   : > { %v5584_v27 = vmax.f32 %v5582_v29, %v5583_v62  ;;  %v5559_v42 = vmax.f32 %v5557_v11, %v5558_v43  ;;  %v5575_v60 = vmax.f32 %v5573_v48, %v5574_v32  ;;  %v5614_v54 = vsel %vm4857_vm4, %v4769_v51, -inf }
 0x342   : > { %v5609_v53 = vmax.f32 %v5607_v57, %v5608_v56  ;;  %v5599_v58 = vrot.slane %v5598_v2, 4  ;;  %v6208_v63 = vsel %vm6138_vm5, %v10367_v26, %v10373_v25  ;;  %v5568_v13 = vmax.f32 %v5566_v24, %v5567_v35 }
 0x343   : > { %v5576_v18 = vrot.slane %v5575_v60, 1  ;;  %v6209_v9 = vsel %vm6140_vm6, %v5532_v14, %v6208_v63  ;;  %v4262_v7 = vadd.f32 %v10381_v33, %v8755_v34  ;;  %v5594_v39 = vrot.slane %v5593_v59, 1 }
 0x344   : > { %v5610_v21 = vrot.slane %v5609_v53, 2  ;;  %v5600_v37 = vmax.f32 %v5598_v2, %v5599_v58  ;;  %v6210_v11 = vsel %vm6142_vm7, %v10383_v47, %v6209_v9  ;;  %v5585_v43 = vrot.slane %v5584_v27, 1 }
 0x345   : > { %v5577_v48 = vmax.f32 %v5575_v60, %v5576_v18  ;;  %v6211_v16 = vsel %vm6144_vm8, %v5550_v61, %v6210_v11  ;;  %v4772_v38 = vmax.f32 %v4262_v7, 0.0  ;;  %v7946_v44 = vpop.f32.mrb[184].mxu1  ;;  %v4254_v14 = vadd.f32 %v10386_v1, %v8755_v34 }
 0x346   : > { %v5611_v26 = vmax.f32 %v5609_v53, %v5610_v21  ;;  %v5601_v25 = vrot.slane %v5600_v37, 2  ;;  %v6212_v5 = vsel %vm6146_vm9, %v5559_v42, %v6211_v16  ;;  %v4298_v33 = vpop.f32.mrb[185].mxu1  ;;  %v4275_v47 = vadd.f32 %v10399_v50, %v8755_v34 }
 0x347   : > { %v6213_v40 = vsel %vm6148_vm10, %v5568_v13, %v6212_v5  ;;  %v5624_v4 = vsel %vm4857_vm4, %v4772_v38, -inf  ;;  %v4267_v17 = vadd.f32 %v10401_v46, %v8755_v34  ;;  %v7947_v30 = vpop.f32.mrb[186].mxu1  ;;  %v10450_v36 = vmax.f32 %v5593_v59, %v5594_v39 }
 0x348   : > { %v5602_v12 = vmax.f32 %v5600_v37, %v5601_v25  ;;  %v6214_v15 = vsel %vm6150_vm11, %v5577_v48, %v6213_v40  ;;  %v5625_v24 = vmax.f32 %v5623_v23, %v5624_v4  ;;  %v10453_v6 = vpop.f32.mrb[187].mxu1  ;;  %v4770_v1 = vmax.f32 %v4254_v14, 0.0 }
 0x349   : > { %6282 = vxpose.xlu0.b32.cont [10/16] (narrow) %v6214_v15, 32  ;;  %v4775_v20 = vmax.f32 %v4275_v47, 0.0  ;;  %v4773_v31 = vmax.f32 %v4267_v17, 0.0  ;;  %v4278_v32 = vadd.f32 %v10406_v55, %v8755_v34  ;;  %v10457_v50 = vmax.f32 %v5584_v27, %v5585_v43 }
 0x34a   : > { %v5612_v29 = vrot.slane %v5611_v26, 1  ;;  %v5626_v46 = vrot.slane %v5625_v24, 4  ;;  %v4270_v0 = vadd.f32 %v10409_v45, %v8755_v34  ;;  %v5603_v8 = vrot.slane %v5602_v12, 1 }
 0x34b   : > { %v5615_v19 = vsel %vm4857_vm4, %v4770_v1, -inf  ;;  %v5641_v57 = vsel %vm4857_vm4, %v4775_v20, -inf  ;;  %v4776_v52 = vmax.f32 %v4278_v32, 0.0  ;;  %v5632_v10 = vsel %vm4857_vm4, %v4773_v31, -inf }
 0x34c   : > { %v5627_v51 = vmax.f32 %v5625_v24, %v5626_v46  ;;  %v5616_v62 = vmax.f32 %v5614_v54, %v5615_v19  ;;  %v4774_v22 = vmax.f32 %v4270_v0, 0.0  ;;  %v4291_v35 = vadd.f32 %v10422_v49, %v8755_v34 }
 0x34d   : > { %v5642_v55 = vsel %vm4857_vm4, %v4776_v52, -inf  ;;  %v4283_v61 = vadd.f32 %v10424_v28, %v8755_v34  ;;  %v4294_v45 = vadd.f32 %v7943_v41, %v8755_v34  ;;  %v10471_v23 = vmax.f32 %v5611_v26, %v5612_v29 }
 0x34e   : > { %v5628_v59 = vrot.slane %v5627_v51, 2  ;;  %v5617_v56 = vrot.slane %v5616_v62, 4  ;;  %v5643_v2 = vmax.f32 %v5641_v57, %v5642_v55  ;;  %v5633_v27 = vsel %vm4857_vm4, %v4774_v22, -inf }
 0x34f   : > { %v5634_v42 = vmax.f32 %v5632_v10, %v5633_v27  ;;  %v4779_v60 = vmax.f32 %v4291_v35, 0.0  ;;  %v4780_v53 = vmax.f32 %v4294_v45, 0.0  ;;  %v4777_v63 = vmax.f32 %v4283_v61, 0.0 }
 0x350   : > { %v5618_v58 = vmax.f32 %v5616_v62, %v5617_v56  ;;  %v5644_v54 = vrot.slane %v5643_v2, 4  ;;  %v4286_v49 = vadd.f32 %v10428_v3, %v8755_v34  ;;  %v5629_v13 = vmax.f32 %v5627_v51, %v5628_v59 }
 0x351   : > { %v5635_v28 = vrot.slane %v5634_v42, 4  ;;  %v5659_v41 = vsel %vm4857_vm4, %v4779_v60, -inf  ;;  %v5660_v18 = vsel %vm4857_vm4, %v4780_v53, -inf  ;;  %v10477_v9 = vmax.f32 %v5602_v12, %v5603_v8 }
 0x352   : > { %v5619_v7 = vrot.slane %v5618_v58, 2  ;;  %v5645_v39 = vmax.f32 %v5643_v2, %v5644_v54  ;;  %v5661_v21 = vmax.f32 %v5659_v41, %v5660_v18  ;;  %v4778_v11 = vmax.f32 %v4286_v49, 0.0  ;;  %v7950_v16 = vpop.f32.mrb[188].mxu1 }
 0x353   : > { %v5636_v37 = vmax.f32 %v5634_v42, %v5635_v28  ;;  %v4307_v43 = vadd.f32 %v7946_v44, %v8755_v34  ;;  %v4299_v48 = vadd.f32 %v4298_v33, %v8755_v34  ;;  %v5650_v3 = vsel %vm4857_vm4, %v4777_v63, -inf  ;;  %v4314_v5 = vpop.f32.mrb[189].mxu1 }
 0x354   : > { %v5620_v38 = vmax.f32 %v5618_v58, %v5619_v7  ;;  %v5662_v26 = vrot.slane %v5661_v21, 4  ;;  %v4310_v25 = vadd.f32 %v7947_v30, %v8755_v34  ;;  %v5630_v14 = vrot.slane %v5629_v13, 1  ;;  %v7951_v17 = vpop.f32.mrb[190].mxu1 }
 0x355   : > { %v5637_v40 = vrot.slane %v5636_v37, 2  ;;  %v5651_v4 = vsel %vm4857_vm4, %v4778_v11, -inf  ;;  %v4783_v47 = vmax.f32 %v4307_v43, 0.0  ;;  %v4781_v24 = vmax.f32 %v4299_v48, 0.0  ;;  %v4317_v1 = vpop.f32.mrb[191].mxu1 }
 0x356   : > { %v5663_v12 = vmax.f32 %v5661_v21, %v5662_v26  ;;  %v5652_v15 = vmax.f32 %v5650_v3, %v5651_v4  ;;  %v4784_v44 = vmax.f32 %v4310_v25, 0.0  ;;  %v5621_v33 = vrot.slane %v5620_v38, 1 }
 0x357   : > { %v5646_v20 = vrot.slane %v5645_v39, 2  ;;  %v5638_v31 = vmax.f32 %v5636_v37, %v5637_v40  ;;  %v4302_v32 = vadd.f32 %v10453_v6, %v8755_v34  ;;  %v5677_v46 = vsel %vm4857_vm4, %v4783_v47, -inf }
 0x358   : > { %v5664_v29 = vrot.slane %v5663_v12, 2  ;;  %v5653_v30 = vrot.slane %v5652_v15, 4  ;;  %v5678_v0 = vsel %vm4857_vm4, %v4784_v44, -inf  ;;  %v4323_v57 = vadd.f32 %v7950_v16, %v8755_v34 }
 0x359   : > { %v5679_v8 = vmax.f32 %v5677_v46, %v5678_v0  ;;  %v4782_v19 = vmax.f32 %v4302_v32, 0.0  ;;  %v4315_v52 = vadd.f32 %v4314_v5, %v8755_v34  ;;  %v5668_v10 = vsel %vm4857_vm4, %v4781_v24, -inf }
 0x35a   : > { %v5665_v51 = vmax.f32 %v5663_v12, %v5664_v29  ;;  %v5654_v62 = vmax.f32 %v5652_v15, %v5653_v30  ;;  %v5639_v22 = vrot.slane %v5638_v31, 1  ;;  %v5622_v55 = vmax.f32 %v5620_v38, %v5621_v33  ;;  %v7954_v45 = vpop.f32.mrb[192].mxu1 }
 0x35b   : > { %v5680_v35 = vrot.slane %v5679_v8, 4  ;;  %v5669_v6 = vsel %vm4857_vm4, %v4782_v19, -inf  ;;  %v4787_v61 = vmax.f32 %v4323_v57, 0.0  ;;  %v4785_v2 = vmax.f32 %v4315_v52, 0.0  ;;  %v4330_v42 = vpop.f32.mrb[193].mxu1 }
 0x35c   : > { %v5655_v59 = vrot.slane %v5654_v62, 2  ;;  %v5670_v56 = vmax.f32 %v5668_v10, %v5669_v6  ;;  %v5631_v27 = vmax.f32 %v5629_v13, %v5630_v14  ;;  %v5666_v60 = vrot.slane %v5665_v51, 1  ;;  %v7955_v63 = vpop.f32.mrb[194].mxu1 }
 0x35d   : > { %v5681_v53 = vmax.f32 %v5679_v8, %v5680_v35  ;;  %v5640_v58 = vmax.f32 %v5638_v31, %v5639_v22  ;;  %v5647_v54 = vmax.f32 %v5645_v39, %v5646_v20  ;;  %v5695_v41 = vsel %vm4857_vm4, %v4787_v61, -inf  ;;  %v4333_v7 = vpop.f32.mrb[195].mxu1 }
 0x35e   : > { %v5656_v49 = vmax.f32 %v5654_v62, %v5655_v59  ;;  %v5671_v28 = vrot.slane %v5670_v56, 4  ;;  %v6215_v18 = vsel %vm6138_vm5, %v10450_v36, %v10457_v50  ;;  %v4326_v11 = vadd.f32 %v7951_v17, %v8755_v34 }
 0x35f   : > { %v5682_v21 = vrot.slane %v5681_v53, 2  ;;  %v5648_v37 = vrot.slane %v5647_v54, 1  ;;  %v6216_v13 = vsel %vm6140_vm6, %v10477_v9, %v6215_v18  ;;  %v5686_v39 = vsel %vm4857_vm4, %v4785_v2, -inf }
 0x360   : > { %v5672_v43 = vmax.f32 %v5670_v56, %v5671_v28  ;;  %v6217_v48 = vsel %vm6142_vm7, %v10471_v23, %v6216_v13  ;;  %v4318_v16 = vadd.f32 %v4317_v1, %v8755_v34  ;;  %v5657_v38 = vrot.slane %v5656_v49, 1 }
 0x361   : > { %v5683_v3 = vmax.f32 %v5681_v53, %v5682_v21  ;;  %v6218_v36 = vsel %vm6144_vm8, %v5622_v55, %v6217_v48  ;;  %v4788_v50 = vmax.f32 %v4326_v11, 0.0  ;;  %v5649_v25 = vmax.f32 %v5647_v54, %v5648_v37 }
 0x362   : > { %v5673_v26 = vrot.slane %v5672_v43, 2  ;;  %v6219_v5 = vsel %vm6146_vm9, %v5631_v27, %v6218_v36  ;;  %v4786_v9 = vmax.f32 %v4318_v16, 0.0  ;;  %v10505_v14 = vmax.f32 %v5665_v51, %v5666_v60  ;;  %v7958_v47 = vpop.f32.mrb[196].mxu1 }
 0x363   : > { %v6220_v40 = vsel %vm6148_vm10, %v5640_v58, %v6219_v5  ;;  %v5696_v4 = vsel %vm4857_vm4, %v4788_v50, -inf  ;;  %v4339_v23 = vadd.f32 %v7954_v45, %v8755_v34  ;;  %v4346_v44 = vpop.f32.mrb[197].mxu1  ;;  %v10512_v1 = vmax.f32 %v5656_v49, %v5657_v38 }
 0x364   : > { %v5674_v17 = vmax.f32 %v5672_v43, %v5673_v26  ;;  %v6221_v12 = vsel %vm6150_vm11, %v5649_v25, %v6220_v40  ;;  %v5697_v15 = vmax.f32 %v5695_v41, %v5696_v4  ;;  %v5687_v24 = vsel %vm4857_vm4, %v4786_v9, -inf  ;;  %v7959_v32 = vpop.f32.mrb[198].mxu1 }
 0x365   : > { %6283 = vxpose.xlu0.b32.cont [11/16] (narrow) %v6221_v12, 32  ;;  %v5688_v33 = vmax.f32 %v5686_v39, %v5687_v24  ;;  %v4791_v20 = vmax.f32 %v4339_v23, 0.0  ;;  %v4331_v31 = vadd.f32 %v4330_v42, %v8755_v34  ;;  %v5684_v29 = vrot.slane %v5683_v3, 1  ;;  %v4349_v8 = vpop.f32.mrb[199].mxu1 }
 0x366   : > { %v5698_v30 = vrot.slane %v5697_v15, 4  ;;  %v4342_v46 = vadd.f32 %v7955_v63, %v8755_v34  ;;  %v4334_v0 = vadd.f32 %v4333_v7, %v8755_v34  ;;  %v5675_v19 = vrot.slane %v5674_v17, 1 }
 0x367   : > { %v5689_v57 = vrot.slane %v5688_v33, 4  ;;  %v4789_v52 = vmax.f32 %v4331_v31, 0.0  ;;  %v4355_v51 = vadd.f32 %v7958_v47, %v8755_v34  ;;  %v5713_v10 = vsel %vm4857_vm4, %v4791_v20, -inf }
 0x368   : > { %v5699_v62 = vmax.f32 %v5697_v15, %v5698_v30  ;;  %v4792_v22 = vmax.f32 %v4342_v46, 0.0  ;;  %v4790_v55 = vmax.f32 %v4334_v0, 0.0  ;;  %v4347_v45 = vadd.f32 %v4346_v44, %v8755_v34 }
 0x369   : > { %v5690_v35 = vmax.f32 %v5688_v33, %v5689_v57  ;;  %v5704_v6 = vsel %vm4857_vm4, %v4789_v52, -inf  ;;  %v4795_v61 = vmax.f32 %v4355_v51, 0.0  ;;  %v4358_v27 = vadd.f32 %v7959_v32, %v8755_v34 }
 0x36a   : > { %v5700_v59 = vrot.slane %v5699_v62, 2  ;;  %v5714_v56 = vsel %vm4857_vm4, %v4792_v22, -inf  ;;  %v5705_v2 = vsel %vm4857_vm4, %v4790_v55, -inf  ;;  %v10524_v42 = vmax.f32 %v5683_v3, %v5684_v29  ;;  %v7962_v54 = vpop.f32.mrb[200].mxu1 }
 0x36b   : > { %v5691_v60 = vrot.slane %v5690_v35, 2  ;;  %v5715_v53 = vmax.f32 %v5713_v10, %v5714_v56  ;;  %v5706_v58 = vmax.f32 %v5704_v6, %v5705_v2  ;;  %v5676_v63 = vmax.f32 %v5674_v17, %v5675_v19  ;;  %v4362_v18 = vpop.f32.mrb[201].mxu1 }
 0x36c   : > { %v4793_v49 = vmax.f32 %v4347_v45, 0.0  ;;  %v4796_v28 = vmax.f32 %v4358_v27, 0.0  ;;  %v4350_v41 = vadd.f32 %v4349_v8, %v8755_v34  ;;  %v4371_v13 = vadd.f32 %v7962_v54, %v8755_v34  ;;  %v7963_v11 = vpop.f32.mrb[202].mxu1 }
 0x36d   : > { %v5692_v7 = vmax.f32 %v5690_v35, %v5691_v60  ;;  %v5716_v21 = vrot.slane %v5715_v53, 4  ;;  %v5707_v37 = vrot.slane %v5706_v58, 4  ;;  %v5701_v43 = vmax.f32 %v5699_v62, %v5700_v59  ;;  %v4365_v38 = vpop.f32.mrb[203].mxu1 }
 0x36e   : > { %v5731_v39 = vsel %vm4857_vm4, %v4795_v61, -inf  ;;  %v5732_v48 = vsel %vm4857_vm4, %v4796_v28, -inf  ;;  %v4794_v16 = vmax.f32 %v4350_v41, 0.0  ;;  %v4799_v5 = vmax.f32 %v4371_v13, 0.0 }
 0x36f   : > { %v5693_v3 = vrot.slane %v5692_v7, 1  ;;  %v5717_v36 = vmax.f32 %v5715_v53, %v5716_v21  ;;  %v5708_v50 = vmax.f32 %v5706_v58, %v5707_v37  ;;  %v5733_v26 = vmax.f32 %v5731_v39, %v5732_v48 }
 0x370   : > { %v5723_v25 = vsel %vm4857_vm4, %v4794_v16, -inf  ;;  %v4363_v9 = vadd.f32 %v4362_v18, %v8755_v34  ;;  %v4374_v40 = vadd.f32 %v7963_v11, %v8755_v34  ;;  %v5722_v47 = vsel %vm4857_vm4, %v4793_v49, -inf }
 0x371   : > { %v5718_v4 = vrot.slane %v5717_v36, 2  ;;  %v5709_v23 = vrot.slane %v5708_v50, 2  ;;  %v5734_v17 = vrot.slane %v5733_v26, 4  ;;  %v5702_v12 = vrot.slane %v5701_v43, 1 }
 0x372   : > { %v5694_v15 = vmax.f32 %v5692_v7, %v5693_v3  ;;  %v5724_v24 = vmax.f32 %v5722_v47, %v5723_v25  ;;  %v4800_v44 = vmax.f32 %v4374_v40, 0.0  ;;  %v4797_v31 = vmax.f32 %v4363_v9, 0.0 }
 0x373   : > { %v5710_v33 = vmax.f32 %v5708_v50, %v5709_v23  ;;  %v5735_v20 = vmax.f32 %v5733_v26, %v5734_v17  ;;  %v4366_v32 = vadd.f32 %v4365_v38, %v8755_v34  ;;  %v5749_v30 = vsel %vm4857_vm4, %v4799_v5, -inf }
 0x374   : > { %v5725_v29 = vrot.slane %v5724_v24, 4  ;;  %v5750_v46 = vsel %vm4857_vm4, %v4800_v44, -inf  ;;  %v5719_v0 = vmax.f32 %v5717_v36, %v5718_v4  ;;  %v5703_v62 = vmax.f32 %v5701_v43, %v5702_v12 }
 0x375   : > { %v5736_v8 = vrot.slane %v5735_v20, 2  ;;  %v5751_v19 = vmax.f32 %v5749_v30, %v5750_v46  ;;  %v4798_v57 = vmax.f32 %v4366_v32, 0.0  ;;  %v5711_v52 = vrot.slane %v5710_v33, 1 }
 0x376   : > { %v5726_v51 = vmax.f32 %v5724_v24, %v5725_v29  ;;  %v5720_v10 = vrot.slane %v5719_v0, 1  ;;  %v6222_v22 = vsel %vm6138_vm5, %v10505_v14, %v10512_v1  ;;  %v5740_v35 = vsel %vm4857_vm4, %v4797_v31, -inf }
 0x377   : > { %v5737_v55 = vmax.f32 %v5735_v20, %v5736_v8  ;;  %v5752_v6 = vrot.slane %v5751_v19, 4  ;;  %v5741_v61 = vsel %vm4857_vm4, %v4798_v57, -inf  ;;  %v5712_v56 = vmax.f32 %v5710_v33, %v5711_v52 }
 0x378   : > { %v5727_v45 = vrot.slane %v5726_v51, 2  ;;  %v5742_v59 = vmax.f32 %v5740_v35, %v5741_v61  ;;  %v6223_v2 = vsel %vm6140_vm6, %v5676_v63, %v6222_v22  ;;  %v7966_v53 = vpop.f32.mrb[204].mxu1  ;;  %v5721_v58 = vmax.f32 %v5719_v0, %v5720_v10 }
 0x379   : > { %v5738_v27 = vrot.slane %v5737_v55, 1  ;;  %v5753_v60 = vmax.f32 %v5751_v19, %v5752_v6  ;;  %v6224_v54 = vsel %vm6142_vm7, %v10524_v42, %v6223_v2  ;;  %v4387_v1 = vadd.f32 %v7966_v53, %v8755_v34  ;;  %v4378_v28 = vpop.f32.mrb[205].mxu1 }
 0x37a   : > { %v5728_v49 = vmax.f32 %v5726_v51, %v5727_v45  ;;  %v5743_v14 = vrot.slane %v5742_v59, 4  ;;  %v6225_v41 = vsel %vm6144_vm8, %v5694_v15, %v6224_v54  ;;  %v4379_v21 = vadd.f32 %v4378_v28, %v8755_v34  ;;  %v7967_v37 = vpop.f32.mrb[206].mxu1 }
 0x37b   : > { %v5739_v18 = vmax.f32 %v5737_v55, %v5738_v27  ;;  %v5754_v7 = vrot.slane %v5753_v60, 2  ;;  %v6226_v63 = vsel %vm6146_vm9, %v5703_v62, %v6225_v41  ;;  %v4803_v43 = vmax.f32 %v4387_v1, 0.0  ;;  %v4381_v42 = vpop.f32.mrb[207].mxu1 }
 0x37c   : > { %v5729_v13 = vrot.slane %v5728_v49, 1  ;;  %v5744_v11 = vmax.f32 %v5742_v59, %v5743_v14  ;;  %v6227_v39 = vsel %vm6148_vm10, %v5712_v56, %v6226_v63  ;;  %v4801_v16 = vmax.f32 %v4379_v21, 0.0 }
 0x37d   : > { %v5755_v48 = vmax.f32 %v5753_v60, %v5754_v7  ;;  %v6228_v38 = vsel %vm6150_vm11, %v5721_v58, %v6227_v39  ;;  %v4390_v3 = vadd.f32 %v7967_v37, %v8755_v34  ;;  %v4382_v26 = vadd.f32 %v4381_v42, %v8755_v34 }
 0x37e   : > { %v5730_v36 = vmax.f32 %v5728_v49, %v5729_v13  ;;  %v5745_v50 = vrot.slane %v5744_v11, 2  ;;  %6284 = vxpose.xlu0.b32.cont [12/16] (narrow) %v6228_v38, 32  ;;  %v5767_v23 = vsel %vm4857_vm4, %v4803_v43, -inf  ;;  %v5758_v47 = vsel %vm4857_vm4, %v4801_v16, -inf  ;;  %v6307_v43 = vld [vmem:[%s388_s28] sm:$0xf] }
 0x37f   : > { %v4804_v25 = vmax.f32 %v4390_v3, 0.0  ;;  %v4802_v9 = vmax.f32 %v4382_v26, 0.0  ;;  %v5756_v4 = vrot.slane %v5755_v48, 1  ;;  %8064 = vmatprep.subr.msk.bf16.mxu0 %vm1699_vm0, %v6307_v43 }
 0x380   : > { %v5746_v5 = vmax.f32 %v5744_v11, %v5745_v50  ;;  %v6229_v40 = vsel %vm6138_vm5, %v5739_v18, %v5730_v36  ;;  %v7970_v12 = vpop.f32.mrb[208].mxu1 }
 0x381   : > { %v5768_v17 = vsel %vm4857_vm4, %v4804_v25, -inf  ;;  %v5759_v44 = vsel %vm4857_vm4, %v4802_v9, -inf  ;;  %v4403_v33 = vadd.f32 %v7970_v12, %v8755_v34  ;;  %v4394_v20 = vpop.f32.mrb[209].mxu1  ;;  %v5757_v57 = vmax.f32 %v5755_v48, %v5756_v4 }
 0x382   : > { %v5747_v15 = vrot.slane %v5746_v5, 1  ;;  %v5769_v24 = vmax.f32 %v5767_v23, %v5768_v17  ;;  %v5760_v31 = vmax.f32 %v5758_v47, %v5759_v44  ;;  %v4395_v32 = vadd.f32 %v4394_v20, %v8755_v34  ;;  %v7971_v29 = vpop.f32.mrb[210].mxu1 }
 0x383   : > { %v4807_v0 = vmax.f32 %v4403_v33, 0.0  ;;  %v4406_v8 = vadd.f32 %v7971_v29, %v8755_v34  ;;  %v4397_v19 = vpop.f32.mrb[211].mxu1  ;;  %v6358_v23 = vsel %vm1699_vm0, %v6307_v43, 0 }
 0x384   : > { %v5748_v30 = vmax.f32 %v5746_v5, %v5747_v15  ;;  %v5770_v46 = vrot.slane %v5769_v24, 4  ;;  %v5761_v52 = vrot.slane %v5760_v31, 4  ;;  %v4805_v51 = vmax.f32 %v4395_v32, 0.0  ;;  %8021 = vmatpush3.bf16.msra.mxu0 %v6358_v23 }
 0x385   : > { %v4398_v62 = vadd.f32 %v4397_v19, %v8755_v34  ;;  %v4808_v22 = vmax.f32 %v4406_v8, 0.0  ;;  %v5785_v59 = vsel %vm4857_vm4, %v4807_v0, -inf }
 0x386   : > { %v5771_v10 = vmax.f32 %v5769_v24, %v5770_v46  ;;  %v6230_v55 = vsel %vm6140_vm6, %v5748_v30, %v6229_v40  ;;  %v5762_v35 = vmax.f32 %v5760_v31, %v5761_v52  ;;  %v5776_v27 = vsel %vm4857_vm4, %v4805_v51, -inf }
 0x387   : > { %v4806_v6 = vmax.f32 %v4398_v62, 0.0  ;;  %v6231_v61 = vsel %vm6142_vm7, %v5757_v57, %v6230_v55  ;;  %v5786_v56 = vsel %vm4857_vm4, %v4808_v22, -inf }
 0x388   : > { %v5772_v45 = vrot.slane %v5771_v10, 2  ;;  %v5763_v2 = vrot.slane %v5762_v35, 2  ;;  %v5787_v60 = vmax.f32 %v5785_v59, %v5786_v56  ;;  %v7974_v58 = vpop.f32.mrb[212].mxu1 }
 0x389   : > { %v5777_v53 = vsel %vm4857_vm4, %v4806_v6, -inf  ;;  %v4419_v14 = vadd.f32 %v7974_v58, %v8755_v34  ;;  %v4410_v1 = vpop.f32.mrb[213].mxu1 }
 0x38a   : > { %v5773_v54 = vmax.f32 %v5771_v10, %v5772_v45  ;;  %v5778_v49 = vmax.f32 %v5776_v27, %v5777_v53  ;;  %v5764_v28 = vmax.f32 %v5762_v35, %v5763_v2  ;;  %v5788_v41 = vrot.slane %v5787_v60, 4  ;;  %v7975_v7 = vpop.f32.mrb[214].mxu1 }
 0x38b   : > { %v4411_v18 = vadd.f32 %v4410_v1, %v8755_v34  ;;  %v4811_v37 = vmax.f32 %v4419_v14, 0.0  ;;  %v4422_v13 = vadd.f32 %v7975_v7, %v8755_v34  ;;  %v4413_v11 = vpop.f32.mrb[215].mxu1 }
 0x38c   : > { %v5774_v21 = vrot.slane %v5773_v54, 1  ;;  %v5779_v63 = vrot.slane %v5778_v49, 4  ;;  %v5765_v39 = vrot.slane %v5764_v28, 1  ;;  %v5789_v42 = vmax.f32 %v5787_v60, %v5788_v41 }
 0x38d   : > { %v4809_v48 = vmax.f32 %v4411_v18, 0.0  ;;  %v4414_v16 = vadd.f32 %v4413_v11, %v8755_v34  ;;  %v5803_v3 = vsel %vm4857_vm4, %v4811_v37, -inf  ;;  %v4812_v36 = vmax.f32 %v4422_v13, 0.0 }
 0x38e   : > { %v5780_v38 = vmax.f32 %v5778_v49, %v5779_v63  ;;  %v5766_v50 = vmax.f32 %v5764_v28, %v5765_v39  ;;  %v5790_v26 = vrot.slane %v5789_v42, 2  ;;  %v5775_v5 = vmax.f32 %v5773_v54, %v5774_v21 }
 0x38f   : > { %v4810_v25 = vmax.f32 %v4414_v16, 0.0  ;;  %v5794_v40 = vsel %vm4857_vm4, %v4809_v48, -inf  ;;  %v5804_v4 = vsel %vm4857_vm4, %v4812_v36, -inf }
 0x390   : > { %v5781_v9 = vrot.slane %v5780_v38, 2  ;;  %v5805_v47 = vmax.f32 %v5803_v3, %v5804_v4  ;;  %v7978_v12 = vpop.f32.mrb[216].mxu1  ;;  %v5791_v15 = vmax.f32 %v5789_v42, %v5790_v26  ;;  %v6232_v24 = vsel %vm6144_vm8, %v5766_v50, %v6231_v61 }
 0x391   : > { %v5795_v17 = vsel %vm4857_vm4, %v4810_v25, -inf  ;;  %v4435_v20 = vadd.f32 %v7978_v12, %v8755_v34  ;;  %v4426_v31 = vpop.f32.mrb[217].mxu1  ;;  %v6233_v32 = vsel %vm6146_vm9, %v5775_v5, %v6232_v24 }
 0x392   : > { %v5782_v44 = vmax.f32 %v5780_v38, %v5781_v9  ;;  %v5796_v33 = vmax.f32 %v5794_v40, %v5795_v17  ;;  %v5806_v29 = vrot.slane %v5805_v47, 4  ;;  %v4427_v30 = vadd.f32 %v4426_v31, %v8755_v34  ;;  %v7979_v46 = vpop.f32.mrb[218].mxu1 }
 0x393   : > { %v5792_v0 = vrot.slane %v5791_v15, 1  ;;  %v4815_v19 = vmax.f32 %v4435_v20, 0.0  ;;  %v4438_v57 = vadd.f32 %v7979_v46, %v8755_v34  ;;  %v4429_v52 = vpop.f32.mrb[219].mxu1 }
 0x394   : > { %v5797_v8 = vrot.slane %v5796_v33, 4  ;;  %v5783_v51 = vrot.slane %v5782_v44, 1  ;;  %v5807_v62 = vmax.f32 %v5805_v47, %v5806_v29  ;;  %v4813_v10 = vmax.f32 %v4427_v30, 0.0 }
 0x395   : > { %v4430_v22 = vadd.f32 %v4429_v52, %v8755_v34  ;;  %v4816_v35 = vmax.f32 %v4438_v57, 0.0  ;;  %v5821_v45 = vsel %vm4857_vm4, %v4815_v19, -inf  ;;  %v5793_v56 = vmax.f32 %v5791_v15, %v5792_v0 }
 0x396   : > { %v5798_v55 = vmax.f32 %v5796_v33, %v5797_v8  ;;  %v5784_v6 = vmax.f32 %v5782_v44, %v5783_v51  ;;  %v5808_v61 = vrot.slane %v5807_v62, 2  ;;  %v5812_v27 = vsel %vm4857_vm4, %v4813_v10, -inf }
 0x397   : > { %v4814_v59 = vmax.f32 %v4430_v22, 0.0  ;;  %v5822_v60 = vsel %vm4857_vm4, %v4816_v35, -inf }
 0x398   : > { %v5799_v2 = vrot.slane %v5798_v55, 2  ;;  %v6234_v53 = vsel %vm6148_vm10, %v5784_v6, %v6233_v32  ;;  %v5809_v58 = vmax.f32 %v5807_v62, %v5808_v61  ;;  %v5823_v54 = vmax.f32 %v5821_v45, %v5822_v60 }
 0x399   : > { %v5813_v49 = vsel %vm4857_vm4, %v4814_v59, -inf  ;;  %v6235_v14 = vsel %vm6150_vm11, %v5793_v56, %v6234_v53 }
 0x39a   : > { %v5800_v1 = vmax.f32 %v5798_v55, %v5799_v2  ;;  %v5814_v28 = vmax.f32 %v5812_v27, %v5813_v49  ;;  %6285 = vxpose.xlu0.b32.cont [13/16] (narrow) %v6235_v14, 32  ;;  %v5810_v41 = vrot.slane %v5809_v58, 1  ;;  %v5824_v18 = vrot.slane %v5823_v54, 4 }
 0x39c   : > { %v5801_v7 = vrot.slane %v5800_v1, 1  ;;  %v5815_v21 = vrot.slane %v5814_v28, 4  ;;  %v5811_v63 = vmax.f32 %v5809_v58, %v5810_v41  ;;  %v5825_v37 = vmax.f32 %v5823_v54, %v5824_v18 }
 0x39d   : > { %v7982_v43 = vpop.f32.mrb[220].mxu1 }
 0x39e   : > { %v5802_v13 = vmax.f32 %v5800_v1, %v5801_v7  ;;  %v5816_v11 = vmax.f32 %v5814_v28, %v5815_v21  ;;  %v5826_v39 = vrot.slane %v5825_v37, 2  ;;  %v4451_v42 = vadd.f32 %v7982_v43, %v8755_v34  ;;  %v4442_v48 = vpop.f32.mrb[221].mxu1 }
 0x39f   : > { %v4443_v38 = vadd.f32 %v4442_v48, %v8755_v34  ;;  %v7983_v3 = vpop.f32.mrb[222].mxu1 }
 0x3a0   : > { %v5817_v16 = vrot.slane %v5816_v11, 2  ;;  %v6236_v36 = vsel %vm6138_vm5, %v5811_v63, %v5802_v13  ;;  %v5827_v50 = vmax.f32 %v5825_v37, %v5826_v39  ;;  %v4819_v26 = vmax.f32 %v4451_v42, 0.0  ;;  %v4445_v5 = vpop.f32.mrb[223].mxu1 }
 0x3a1   : > { %v4454_v25 = vadd.f32 %v7983_v3, %v8755_v34  ;;  %v4817_v40 = vmax.f32 %v4443_v38, 0.0  ;;  %v4446_v4 = vadd.f32 %v4445_v5, %v8755_v34 }
 0x3a2   : > { %v5818_v9 = vmax.f32 %v5816_v11, %v5817_v16  ;;  %v5828_v23 = vrot.slane %v5827_v50, 1  ;;  %v5839_v15 = vsel %vm4857_vm4, %v4819_v26, -inf }
 0x3a3   : > { %v4820_v47 = vmax.f32 %v4454_v25, 0.0  ;;  %v4818_v12 = vmax.f32 %v4446_v4, 0.0  ;;  %v5830_v33 = vsel %vm4857_vm4, %v4817_v40, -inf }
 0x3a4   : > { %v5819_v17 = vrot.slane %v5818_v9, 1  ;;  %v5829_v29 = vmax.f32 %v5827_v50, %v5828_v23 }
 0x3a5   : > { %v5840_v24 = vsel %vm4857_vm4, %v4820_v47, -inf  ;;  %v5831_v31 = vsel %vm4857_vm4, %v4818_v12, -inf  ;;  %v7986_v32 = vpop.f32.mrb[224].mxu1 }
 0x3a6   : > { %v5820_v44 = vmax.f32 %v5818_v9, %v5819_v17  ;;  %v5841_v20 = vmax.f32 %v5839_v15, %v5840_v24  ;;  %v5832_v30 = vmax.f32 %v5830_v33, %v5831_v31  ;;  %v4467_v46 = vadd.f32 %v7986_v32, %v8755_v34  ;;  %v4458_v0 = vpop.f32.mrb[225].mxu1 }
 0x3a7   : > { %v4459_v19 = vadd.f32 %v4458_v0, %v8755_v34  ;;  %v7987_v57 = vpop.f32.mrb[226].mxu1 }
 0x3a8   : > { %v5842_v8 = vrot.slane %v5841_v20, 4  ;;  %v6237_v52 = vsel %vm6140_vm6, %v5820_v44, %v6236_v36  ;;  %v5833_v51 = vrot.slane %v5832_v30, 4  ;;  %v4823_v62 = vmax.f32 %v4467_v46, 0.0  ;;  %v4461_v22 = vpop.f32.mrb[227].mxu1 }
 0x3a9   : > { %v4470_v10 = vadd.f32 %v7987_v57, %v8755_v34  ;;  %v6238_v55 = vsel %vm6142_vm7, %v5829_v29, %v6237_v52  ;;  %v4821_v6 = vmax.f32 %v4459_v19, 0.0  ;;  %v4462_v61 = vadd.f32 %v4461_v22, %v8755_v34 }
 0x3aa   : > { %v5843_v35 = vmax.f32 %v5841_v20, %v5842_v8  ;;  %v5834_v45 = vmax.f32 %v5832_v30, %v5833_v51  ;;  %v5857_v60 = vsel %vm4857_vm4, %v4823_v62, -inf }
 0x3ab   : > { %v4824_v59 = vmax.f32 %v4470_v10, 0.0  ;;  %v4822_v2 = vmax.f32 %v4462_v61, 0.0  ;;  %v5848_v54 = vsel %vm4857_vm4, %v4821_v6, -inf }
 0x3ac   : > { %v5844_v56 = vrot.slane %v5843_v35, 2  ;;  %v5835_v27 = vrot.slane %v5834_v45, 2 }
 0x3ad   : > { %v5858_v53 = vsel %vm4857_vm4, %v4824_v59, -inf  ;;  %v5849_v14 = vsel %vm4857_vm4, %v4822_v2, -inf  ;;  %v7990_v1 = vpop.f32.mrb[228].mxu1 }
 0x3ae   : > { %v5845_v58 = vmax.f32 %v5843_v35, %v5844_v56  ;;  %v5859_v49 = vmax.f32 %v5857_v60, %v5858_v53  ;;  %v5836_v28 = vmax.f32 %v5834_v45, %v5835_v27  ;;  %v5850_v41 = vmax.f32 %v5848_v54, %v5849_v14  ;;  %v4474_v7 = vpop.f32.mrb[229].mxu1 }
 0x3af   : > { %v4483_v18 = vadd.f32 %v7990_v1, %v8755_v34  ;;  %v4475_v37 = vadd.f32 %v4474_v7, %v8755_v34  ;;  %v7991_v13 = vpop.f32.mrb[230].mxu1 }
 0x3b0   : > { %v5846_v21 = vrot.slane %v5845_v58, 1  ;;  %v5860_v63 = vrot.slane %v5859_v49, 4  ;;  %v5837_v11 = vrot.slane %v5836_v28, 1  ;;  %v5851_v43 = vrot.slane %v5850_v41, 4  ;;  %v4477_v48 = vpop.f32.mrb[231].mxu1 }
 0x3b1   : > { %v4827_v39 = vmax.f32 %v4483_v18, 0.0  ;;  %v4486_v42 = vadd.f32 %v7991_v13, %v8755_v34  ;;  %v4825_v38 = vmax.f32 %v4475_v37, 0.0  ;;  %v4478_v3 = vadd.f32 %v4477_v48, %v8755_v34 }
 0x3b2   : > { %v5861_v16 = vmax.f32 %v5859_v49, %v5860_v63  ;;  %v5838_v36 = vmax.f32 %v5836_v28, %v5837_v11  ;;  %v5852_v50 = vmax.f32 %v5850_v41, %v5851_v43  ;;  %v5847_v40 = vmax.f32 %v5845_v58, %v5846_v21 }
 0x3b3   : > { %v4828_v26 = vmax.f32 %v4486_v42, 0.0  ;;  %v5875_v5 = vsel %vm4857_vm4, %v4827_v39, -inf  ;;  %v4826_v9 = vmax.f32 %v4478_v3, 0.0  ;;  %v5866_v23 = vsel %vm4857_vm4, %v4825_v38, -inf }
 0x3b4   : > { %v5862_v25 = vrot.slane %v5861_v16, 2  ;;  %v5853_v4 = vrot.slane %v5852_v50, 2  ;;  %v6239_v17 = vsel %vm6144_vm8, %v5838_v36, %v6238_v55 }
 0x3b5   : > { %v5876_v47 = vsel %vm4857_vm4, %v4828_v26, -inf  ;;  %v5867_v15 = vsel %vm4857_vm4, %v4826_v9, -inf  ;;  %v7994_v24 = vpop.f32.mrb[232].mxu1  ;;  %v6240_v33 = vsel %vm6146_vm9, %v5847_v40, %v6239_v17 }
 0x3b6   : > { %v5877_v12 = vmax.f32 %v5875_v5, %v5876_v47  ;;  %v5863_v44 = vmax.f32 %v5861_v16, %v5862_v25  ;;  %v5854_v20 = vmax.f32 %v5852_v50, %v5853_v4  ;;  %v5868_v31 = vmax.f32 %v5866_v23, %v5867_v15  ;;  %v4490_v29 = vpop.f32.mrb[233].mxu1 }
 0x3b7   : > { %v4499_v32 = vadd.f32 %v7994_v24, %v8755_v34  ;;  %v4491_v46 = vadd.f32 %v4490_v29, %v8755_v34  ;;  %v7995_v0 = vpop.f32.mrb[234].mxu1 }
 0x3b8   : > { %v5878_v30 = vrot.slane %v5877_v12, 4  ;;  %v5864_v8 = vrot.slane %v5863_v44, 1  ;;  %v5869_v19 = vrot.slane %v5868_v31, 4  ;;  %v4502_v52 = vadd.f32 %v7995_v0, %v8755_v34  ;;  %v4493_v51 = vpop.f32.mrb[235].mxu1 }
 0x3b9   : > { %v4831_v57 = vmax.f32 %v4499_v32, 0.0  ;;  %v5855_v62 = vrot.slane %v5854_v20, 1  ;;  %v4829_v22 = vmax.f32 %v4491_v46, 0.0  ;;  %v4494_v55 = vadd.f32 %v4493_v51, %v8755_v34 }
 0x3ba   : > { %v5879_v10 = vmax.f32 %v5877_v12, %v5878_v30  ;;  %v5870_v35 = vmax.f32 %v5868_v31, %v5869_v19  ;;  %v4832_v6 = vmax.f32 %v4502_v52, 0.0  ;;  %v5865_v2 = vmax.f32 %v5863_v44, %v5864_v8 }
 0x3bb   : > { %v5856_v61 = vmax.f32 %v5854_v20, %v5855_v62  ;;  %v5893_v59 = vsel %vm4857_vm4, %v4831_v57, -inf  ;;  %v4830_v56 = vmax.f32 %v4494_v55, 0.0  ;;  %v5884_v60 = vsel %vm4857_vm4, %v4829_v22, -inf  ;;  %v8226_v22 = vld [vmem:[%s10794_s6 + $0x8] sm:$0xff]  }
 0x3bc   : > { %v5880_v45 = vrot.slane %v5879_v10, 2  ;;  %v5871_v27 = vrot.slane %v5870_v35, 2  ;;  %v5894_v53 = vsel %vm4857_vm4, %v4832_v6, -inf }
 0x3bd   : > { %v6241_v58 = vsel %vm6148_vm10, %v5856_v61, %v6240_v33  ;;  %v5895_v49 = vmax.f32 %v5893_v59, %v5894_v53  ;;  %v5885_v14 = vsel %vm4857_vm4, %v4830_v56, -inf }
 0x3be   : > { %v5881_v54 = vmax.f32 %v5879_v10, %v5880_v45  ;;  %v6242_v1 = vsel %vm6150_vm11, %v5865_v2, %v6241_v58  ;;  %v5872_v28 = vmax.f32 %v5870_v35, %v5871_v27  ;;  %v5886_v41 = vmax.f32 %v5884_v60, %v5885_v14  ;;  %v8225_v10 = vld [vmem:[%s10794_s6] sm:$0xff]  }
 0x3bf   : > { %6286 = vxpose.xlu0.b32.cont [14/16] (narrow) %v6242_v1, 32  ;;  %v5896_v7 = vrot.slane %v5895_v49, 4  ;;  %8022 = vmatprep.mubr.msk.bf16.mxu0 %vm6344_vm12, %v8225_v10 }
 0x3c0   : > { %v5882_v18 = vrot.slane %v5881_v54, 1  ;;  %v5873_v21 = vrot.slane %v5872_v28, 1  ;;  %v5887_v63 = vrot.slane %v5886_v41, 4  ;;  %8023 = vmatmul.mubr.msk.bf16.vlgmr.msra.gmra.mrb[252].mxu0 %vm6344_vm12, %v8226_v22 }
 0x3c1   : > { %v5897_v13 = vmax.f32 %v5895_v49, %v5896_v7 }
 0x3c2   : > { %v5883_v37 = vmax.f32 %v5881_v54, %v5882_v18  ;;  %v5874_v11 = vmax.f32 %v5872_v28, %v5873_v21  ;;  %v5888_v43 = vmax.f32 %v5886_v41, %v5887_v63 }
 0x3c3   : > { %v5898_v39 = vrot.slane %v5897_v13, 2 }
 0x3c4   : > { %v7998_v42 = vpop.f32.mrb[236].mxu1  ;;  %v5889_v48 = vrot.slane %v5888_v43, 2  ;;  %v6243_v3 = vsel %vm6138_vm5, %v5883_v37, %v5874_v11 }
 0x3c5   : > { %v4515_v16 = vadd.f32 %v7998_v42, %v8755_v34  ;;  %v4506_v38 = vpop.f32.mrb[237].mxu1  ;;  %v5899_v36 = vmax.f32 %v5897_v13, %v5898_v39  ;;  %v8227_v42 = vld [vmem:[%s10794_s6 + $0x10] sm:$0xff]  }
 0x3c6   : > { %v4507_v50 = vadd.f32 %v4506_v38, %v8755_v34  ;;  %v7999_v26 = vpop.f32.mrb[238].mxu1  ;;  %v5890_v25 = vmax.f32 %v5888_v43, %v5889_v48  ;;  %v8228_v48 = vld [vmem:[%s10794_s6 + $0x18] sm:$0xff]   ;;  %8026 = vmatprep.mubr.msk.bf16.mxu0 %vm6344_vm12, %v8227_v42 }
 0x3c7   : > { %v4835_v5 = vmax.f32 %v4515_v16, 0.0  ;;  %v4518_v9 = vadd.f32 %v7999_v26, %v8755_v34  ;;  %v4509_v40 = vpop.f32.mrb[239].mxu1  ;;  %v5900_v4 = vrot.slane %v5899_v36, 1 }
 0x3c8   : > { %v4833_v23 = vmax.f32 %v4507_v50, 0.0  ;;  %v4510_v47 = vadd.f32 %v4509_v40, %v8755_v34  ;;  %v5891_v17 = vrot.slane %v5890_v25, 1  ;;  %8027 = vmatmul.mubr.msk.bf16.gmra.mrb[0].mxu0 %vm6344_vm12, %v8228_v48 }
 0x3c9   : > { %v4836_v12 = vmax.f32 %v4518_v9, 0.0  ;;  %v5911_v44 = vsel %vm4857_vm4, %v4835_v5, -inf  ;;  %v5901_v20 = vmax.f32 %v5899_v36, %v5900_v4 }
 0x3ca   : > { %v4834_v15 = vmax.f32 %v4510_v47, 0.0  ;;  %v5892_v24 = vmax.f32 %v5890_v25, %v5891_v17  ;;  %v5902_v31 = vsel %vm4857_vm4, %v4833_v23, -inf }
 0x3cb   : > { %v5912_v33 = vsel %vm4857_vm4, %v4836_v12, -inf }
 0x3cc   : > { %v5913_v32 = vmax.f32 %v5911_v44, %v5912_v33  ;;  %v5903_v29 = vsel %vm4857_vm4, %v4834_v15, -inf  ;;  %v8002_v30 = vpop.f32.mrb[240].mxu1  ;;  %v6244_v19 = vsel %vm6140_vm6, %v5892_v24, %v6243_v3 }
 0x3cd   : > { %v5904_v46 = vmax.f32 %v5902_v31, %v5903_v29  ;;  %v4531_v0 = vadd.f32 %v8002_v30, %v8755_v34  ;;  %v4522_v8 = vpop.f32.mrb[241].mxu1  ;;  %v6245_v62 = vsel %vm6142_vm7, %v5901_v20, %v6244_v19 }
 0x3ce   : > { %v5914_v57 = vrot.slane %v5913_v32, 4  ;;  %v4523_v52 = vadd.f32 %v4522_v8, %v8755_v34  ;;  %v8003_v51 = vpop.f32.mrb[242].mxu1 }
 0x3cf   : > { %v5905_v55 = vrot.slane %v5904_v46, 4  ;;  %v4839_v35 = vmax.f32 %v4531_v0, 0.0  ;;  %v4534_v6 = vadd.f32 %v8003_v51, %v8755_v34  ;;  %v4525_v61 = vpop.f32.mrb[243].mxu1 }
 0x3d0   : > { %v5915_v45 = vmax.f32 %v5913_v32, %v5914_v57  ;;  %v4837_v59 = vmax.f32 %v4523_v52, 0.0  ;;  %v4526_v56 = vadd.f32 %v4525_v61, %v8755_v34 }
 0x3d1   : > { %v5906_v2 = vmax.f32 %v5904_v46, %v5905_v55  ;;  %v4840_v27 = vmax.f32 %v4534_v6, 0.0  ;;  %v5929_v54 = vsel %vm4857_vm4, %v4839_v35, -inf }
 0x3d2   : > { %v5916_v60 = vrot.slane %v5915_v45, 2  ;;  %v4838_v53 = vmax.f32 %v4526_v56, 0.0  ;;  %v5920_v1 = vsel %vm4857_vm4, %v4837_v59, -inf }
 0x3d3   : > { %v5907_v58 = vrot.slane %v5906_v2, 2  ;;  %v5930_v49 = vsel %vm4857_vm4, %v4840_v27, -inf }
 0x3d4   : > { %v5917_v14 = vmax.f32 %v5915_v45, %v5916_v60  ;;  %v5931_v28 = vmax.f32 %v5929_v54, %v5930_v49  ;;  %v5921_v41 = vsel %vm4857_vm4, %v4838_v53, -inf  ;;  %v8006_v18 = vpop.f32.mrb[244].mxu1 }
 0x3d5   : > { %v5908_v7 = vmax.f32 %v5906_v2, %v5907_v58  ;;  %v5922_v21 = vmax.f32 %v5920_v1, %v5921_v41  ;;  %v4547_v63 = vadd.f32 %v8006_v18, %v8755_v34  ;;  %v4538_v37 = vpop.f32.mrb[245].mxu1 }
 0x3d6   : > { %v5918_v13 = vrot.slane %v5917_v14, 1  ;;  %v5932_v11 = vrot.slane %v5931_v28, 4  ;;  %v4539_v43 = vadd.f32 %v4538_v37, %v8755_v34  ;;  %v8007_v39 = vpop.f32.mrb[246].mxu1 }
 0x3d7   : > { %v5909_v16 = vrot.slane %v5908_v7, 1  ;;  %v5923_v38 = vrot.slane %v5922_v21, 4  ;;  %v4843_v3 = vmax.f32 %v4547_v63, 0.0  ;;  %v4550_v36 = vadd.f32 %v8007_v39, %v8755_v34  ;;  %v4541_v50 = vpop.f32.mrb[247].mxu1 }
 0x3d8   : > { %v5933_v26 = vmax.f32 %v5931_v28, %v5932_v11  ;;  %v4841_v25 = vmax.f32 %v4539_v43, 0.0  ;;  %v4542_v5 = vadd.f32 %v4541_v50, %v8755_v34  ;;  %v5919_v12 = vmax.f32 %v5917_v14, %v5918_v13  ;;  %v10695_v50 = vld [vmem:[%s10796_s8] sm:$0xff] }
 0x3d9   : > { %v5910_v9 = vmax.f32 %v5908_v7, %v5909_v16  ;;  %v5924_v40 = vmax.f32 %v5922_v21, %v5923_v38  ;;  %v4844_v4 = vmax.f32 %v4550_v36, 0.0  ;;  %v5947_v47 = vsel %vm4857_vm4, %v4843_v3, -inf }
 0x3da   : > { %v5934_v23 = vrot.slane %v5933_v26, 2  ;;  %v4842_v17 = vmax.f32 %v4542_v5, 0.0  ;;  %v5938_v24 = vsel %vm4857_vm4, %v4841_v25, -inf }
 0x3db   : > { %v5925_v15 = vrot.slane %v5924_v40, 2  ;;  %v5948_v44 = vsel %vm4857_vm4, %v4844_v4, -inf  ;;  %v6246_v33 = vsel %vm6144_vm8, %v5910_v9, %v6245_v62  ;;  %v8229_v62 = vld [vmem:[%s10793_s5] sm:$0xff]   ;;  %v8261_v9 = vmov 0  }
 0x3dc   : > { %v5949_v20 = vmax.f32 %v5947_v47, %v5948_v44  ;;  %v5939_v31 = vsel %vm4857_vm4, %v4842_v17, -inf  ;;  %v8010_v32 = vpop.f32.mrb[248].mxu1  ;;  %v5935_v29 = vmax.f32 %v5933_v26, %v5934_v23  ;;  %v6247_v30 = vsel %vm6146_vm9, %v5919_v12, %v6246_v33  ;;  %8034 = vmatprep.mubr.msk.bf16.mxu0 %vm4857_vm4, %v8229_v62  ;;  %8092 = vset.pattern.permute.xlu1 %v8261_v9  ;;  %v10705_v44 = vld [vmem:[%s10796_s8 + $0x8] sm:$0xff] }
 0x3dd   : > { %v5926_v46 = vmax.f32 %v5924_v40, %v5925_v15  ;;  %v5940_v0 = vmax.f32 %v5938_v24, %v5939_v31  ;;  %v4563_v8 = vadd.f32 %v8010_v32, %v8755_v34  ;;  %v4554_v19 = vpop.f32.mrb[249].mxu1  ;;  %6524 = vperm.xlu1 %8092, %v10695_v50  }
 0x3de   : > { %v5950_v57 = vrot.slane %v5949_v20, 4  ;;  %v4555_v52 = vadd.f32 %v4554_v19, %v8755_v34  ;;  %v8011_v51 = vpop.f32.mrb[250].mxu1  ;;  %v5936_v10 = vrot.slane %v5935_v29, 1  ;;  %v10714_v19 = vld [vmem:[%s10796_s8 + $0x10] sm:$0xff] }
 0x3df   : > { %v5941_v22 = vrot.slane %v5940_v0, 4  ;;  %v4847_v55 = vmax.f32 %v4563_v8, 0.0  ;;  %v4566_v35 = vadd.f32 %v8011_v51, %v8755_v34  ;;  %v4557_v6 = vpop.f32.mrb[251].mxu1  ;;  %v5927_v61 = vrot.slane %v5926_v46, 1 }
 0x3e0   : > { %v5951_v45 = vmax.f32 %v5949_v20, %v5950_v57  ;;  %v4845_v59 = vmax.f32 %v4555_v52, 0.0  ;;  %v4558_v56 = vadd.f32 %v4557_v6, %v8755_v34  ;;  %v5937_v49 = vmax.f32 %v5935_v29, %v5936_v10 }
 0x3e1   : > { %v5942_v2 = vmax.f32 %v5940_v0, %v5941_v22  ;;  %v4848_v27 = vmax.f32 %v4566_v35, 0.0  ;;  %v5928_v60 = vmax.f32 %v5926_v46, %v5927_v61  ;;  %v5965_v58 = vsel %vm4857_vm4, %v4847_v55, -inf  ;;  %6529 = vperm.xlu1 %8092, %v10705_v44  }
 0x3e2   : > { %v5952_v53 = vrot.slane %v5951_v45, 2  ;;  %v4846_v54 = vmax.f32 %v4558_v56, 0.0  ;;  %v5956_v1 = vsel %vm4857_vm4, %v4845_v59, -inf }
 0x3e3   : > { %v5943_v14 = vrot.slane %v5942_v2, 2  ;;  %v5966_v28 = vsel %vm4857_vm4, %v4848_v27, -inf  ;;  %v6248_v41 = vsel %vm6148_vm10, %v5928_v60, %v6247_v30 }
 0x3e4   : > { %v5953_v18 = vmax.f32 %v5951_v45, %v5952_v53  ;;  %v5967_v7 = vmax.f32 %v5965_v58, %v5966_v28  ;;  %v5957_v21 = vsel %vm4857_vm4, %v4846_v54, -inf  ;;  %v6249_v63 = vsel %vm6150_vm11, %v5937_v49, %v6248_v41  ;;  %v10727_v54 = vld [vmem:[%s10796_s8 + $0x18] sm:$0xff] }
 0x3e5   : > { %v5944_v37 = vmax.f32 %v5942_v2, %v5943_v14  ;;  %v5958_v13 = vmax.f32 %v5956_v1, %v5957_v21  ;;  %6287 = vxpose.xlu0.b32.cont [15/16] (narrow) %v6249_v63, 32  ;;  %6534 = vperm.xlu1 %8092, %v10714_v19  }
 0x3e6   : > { %v5954_v11 = vrot.slane %v5953_v18, 1  ;;  %v5968_v43 = vrot.slane %v5967_v7, 4 }
 0x3e7   : > { %v5945_v39 = vrot.slane %v5944_v37, 1  ;;  %v5959_v42 = vrot.slane %v5958_v13, 4 }
 0x3e8   : > { %v5955_v48 = vmax.f32 %v5953_v18, %v5954_v11  ;;  %v5969_v16 = vmax.f32 %v5967_v7, %v5968_v43 }
 0x3e9   : > { %v5946_v38 = vmax.f32 %v5944_v37, %v5945_v39  ;;  %v5960_v3 = vmax.f32 %v5958_v13, %v5959_v42  ;;  %v8014_v36 = vpop.f32.mrb[252].mxu1  ;;  %6539 = vperm.xlu1 %8092, %v10727_v54   ;;  %v403_v13 = vld [vmem:[%s10796_s8 + $0x20] sm:$0xff] }
 0x3ea   : > { %v5970_v26 = vrot.slane %v5969_v16, 2  ;;  %v4579_v25 = vadd.f32 %v8014_v36, %v8755_v34  ;;  %v4570_v5 = vpop.f32.mrb[253].mxu1 }
 0x3eb   : > { %v5961_v40 = vrot.slane %v5960_v3, 2  ;;  %v4571_v4 = vadd.f32 %v4570_v5, %v8755_v34  ;;  %v8015_v23 = vpop.f32.mrb[254].mxu1  ;;  %v6250_v47 = vsel %vm6138_vm5, %v5955_v48, %v5946_v38 }
 0x3ec   : > { %v5971_v17 = vmax.f32 %v5969_v16, %v5970_v26  ;;  %v4851_v12 = vmax.f32 %v4579_v25, 0.0  ;;  %v4582_v15 = vadd.f32 %v8015_v23, %v8755_v34  ;;  %v4573_v24 = vpop.f32.mrb[255].mxu1  ;;  %v404_v26 = vld [vmem:[%s10796_s8 + $0x28] sm:$0xff] }
 0x3ed   : > { %v5962_v33 = vmax.f32 %v5960_v3, %v5961_v40  ;;  %v4849_v20 = vmax.f32 %v4571_v4, 0.0  ;;  %v4574_v31 = vadd.f32 %v4573_v24, %v8755_v34  ;;  %6544 = vperm.xlu1 %8092, %v403_v13  }
 0x3ee   : > { %v5972_v32 = vrot.slane %v5971_v17, 1  ;;  %v4852_v29 = vmax.f32 %v4582_v15, 0.0  ;;  %v5983_v0 = vsel %vm4857_vm4, %v4851_v12, -inf }
 0x3ef   : > { %v5963_v30 = vrot.slane %v5962_v33, 1  ;;  %v4850_v46 = vmax.f32 %v4574_v31, 0.0  ;;  %v5974_v52 = vsel %vm4857_vm4, %v4849_v20, -inf  ;;  %v406_v31 = vld [vmem:[%s10796_s8 + $0x38] sm:$0xff] }
 0x3f0   : > { %v5984_v8 = vsel %vm4857_vm4, %v4852_v29, -inf  ;;  %v5973_v22 = vmax.f32 %v5971_v17, %v5972_v32  ;;  %v405_v17 = vld [vmem:[%s10796_s8 + $0x30] sm:$0xff] }
 0x3f1   : > { %v5964_v57 = vmax.f32 %v5962_v33, %v5963_v30  ;;  %v5985_v51 = vmax.f32 %v5983_v0, %v5984_v8  ;;  %v5975_v10 = vsel %vm4857_vm4, %v4850_v46, -inf  ;;  %v8018_v62 = vpop.f32.mrb[0].mxu1  ;;  %6549 = vperm.xlu1 %8092, %v404_v26  }
 0x3f2   : > { %v5976_v55 = vmax.f32 %v5974_v52, %v5975_v10  ;;  %v4595_v35 = vadd.f32 %v8018_v62, %v8755_v34  ;;  %v4586_v6 = vpop.f32.mrb[1].mxu1  ;;  %v8230_v62 = vld [vmem:[%s10793_s5 + $0x8] sm:$0xff]  }
 0x3f3   : > { %v5986_v61 = vrot.slane %v5985_v51, 4  ;;  %v4587_v45 = vadd.f32 %v4586_v6, %v8755_v34  ;;  %v8019_v59 = vpop.f32.mrb[2].mxu1  ;;  %v6251_v56 = vsel %vm6140_vm6, %v5964_v57, %v6250_v47  ;;  %v8262_v6 = vmov 1  }
 0x3f4   : > { %v5977_v2 = vrot.slane %v5976_v55, 4  ;;  %v4855_v27 = vmax.f32 %v4595_v35, 0.0  ;;  %v4598_v60 = vadd.f32 %v8019_v59, %v8755_v34  ;;  %v4589_v53 = vpop.f32.mrb[3].mxu1  ;;  %v6252_v58 = vsel %vm6142_vm7, %v5973_v22, %v6251_v56  ;;  %v8231_v22 = vld [vmem:[%s10793_s5 + $0x10] sm:$0xff]   ;;  %v8233_v35 = vld [vmem:[%s10795_s7] sm:$0xff]  }
 0x3f5   : > { %v5987_v49 = vmax.f32 %v5985_v51, %v5986_v61  ;;  %v4853_v14 = vmax.f32 %v4587_v45, 0.0  ;;  %v4590_v1 = vadd.f32 %v4589_v53, %v8755_v34  ;;  %6554 = vperm.xlu1 %8092, %v405_v17   ;;  %8050 = vmatprep.mubr.msk.bf16.mxu1 %vm6612_vm13, %v8233_v35 }
 0x3f6   : > { %v5978_v28 = vmax.f32 %v5976_v55, %v5977_v2  ;;  %v4856_v41 = vmax.f32 %v4598_v60, 0.0  ;;  %v6001_v63 = vsel %vm4857_vm4, %v4855_v27, -inf  ;;  %v8232_v55 = vld [vmem:[%s10793_s5 + $0x18] sm:$0xff]  }
 0x3f7   : > { %v5988_v18 = vrot.slane %v5987_v49, 2  ;;  %v4854_v7 = vmax.f32 %v4590_v1, 0.0  ;;  %v5992_v43 = vsel %vm4857_vm4, %v4853_v14, -inf }
 0x3f8   : > { %v5979_v21 = vrot.slane %v5978_v28, 2  ;;  %v6002_v37 = vsel %vm4857_vm4, %v4856_v41, -inf }
 0x3f9   : > { %v5989_v11 = vmax.f32 %v5987_v49, %v5988_v18  ;;  %v6003_v39 = vmax.f32 %v6001_v63, %v6002_v37  ;;  %v5993_v34 = vsel %vm4857_vm4, %v4854_v7, -inf  ;;  %6559 = vperm.xlu1 %8092, %v406_v31  }
 0x3fa   : > { %v5980_v42 = vmax.f32 %v5978_v28, %v5979_v21  ;;  %v5994_v48 = vmax.f32 %v5992_v43, %v5993_v34 }
 0x3fb   : > { %v5990_v16 = vrot.slane %v5989_v11, 1  ;;  %v6004_v38 = vrot.slane %v6003_v39, 4 }
 0x3fc   : > { %v5981_v3 = vrot.slane %v5980_v42, 1  ;;  %v5995_v36 = vrot.slane %v5994_v48, 4 }
 0x3fd   : > { %v6005_v25 = vmax.f32 %v6003_v39, %v6004_v38  ;;  %v5991_v4 = vmax.f32 %v5989_v11, %v5990_v16  ;;  %8093 = vset.pattern.permute.xlu1 %v8262_v6 }
 0x3fe   : > { %v5982_v5 = vmax.f32 %v5980_v42, %v5981_v3  ;;  %v5996_v9 = vmax.f32 %v5994_v48, %v5995_v36  ;;  %6587 = vperm.xlu1 %8093, %v10695_v50  }
 0x3ff   : > { %v6006_v40 = vrot.slane %v6005_v25, 2 }
 0x400   : > { %v5997_v23 = vrot.slane %v5996_v9, 2  ;;  %v6253_v47 = vsel %vm6144_vm8, %v5982_v5, %v6252_v58  ;;  %v8234_v5 = vld [vmem:[%s10795_s7 + $0x8] sm:$0xff]  }
 0x401   : > { %v6007_v12 = vmax.f32 %v6005_v25, %v6006_v40  ;;  %v6254_v15 = vsel %vm6146_vm9, %v5991_v4, %v6253_v47 }
 0x402   : > { %v5998_v24 = vmax.f32 %v5996_v9, %v5997_v23  ;;  %6591 = vperm.xlu1 %8093, %v10705_v44  }
 0x403   : > { %v6008_v33 = vrot.slane %v6007_v12, 1 }
 0x404   : > { %v5999_v20 = vrot.slane %v5998_v24, 1 }
 0x405   : > { %v6009_v29 = vmax.f32 %v6007_v12, %v6008_v33 }
 0x406   : > { %v6000_v32 = vmax.f32 %v5998_v24, %v5999_v20  ;;  %6595 = vperm.xlu1 %8093, %v10714_v19  }
 0x408   : > { %v6255_v30 = vsel %vm6148_vm10, %v6000_v32, %v6254_v15 }
 0x409   : > { %v6256_v46 = vsel %vm6150_vm11, %v6009_v29, %v6255_v30 }
 0x40a   : > { %6288 = vxpose.xlu0.b32.end [16/16] (narrow) %v6256_v46, 32  ;;  %6599 = vperm.xlu1 %8093, %v10727_v54  }
 0x433   : > { %8094 = vset.pattern.permute.xlu0 %v8262_v6 }
 0x44e   : > { %v6289_v0 = vpop.trf.xlu0 }
 0x452   : > { %v6290_v8 = vpop.trf.xlu0 }
 0x453   : > { %v6305_v57 = vpack.c.bf16 %v6290_v8, %v6289_v0 }
 0x455   : > { %8030 = vmatprep.subr.bf16.mxu0 %v6305_v57 }
 0x456   : > { %8031 = vmatpush3.bf16.msra.mxu0 %v6305_v57  ;;  %v6291_v52 = vpop.trf.xlu0 }
 0x45a   : > { %v6292_v51 = vpop.trf.xlu0 }
 0x45b   : > { %v6306_v10 = vpack.c.bf16 %v6292_v51, %v6291_v52 }
 0x45c   : > { %v6525_v61 = vpop.permute.xlu1 %6524 }
 0x45d   : > { %8032 = vmatprep.subr.bf16.mxu0 %v6306_v10 }
 0x45e   : > { %8033 = vmatpush3.bf16.msra.mxu0 %v6306_v10 }
 0x460   : > { %v6530_v45 = vpop.permute.xlu1 %6529 }
 0x461   : > { %8035 = vmatmul.mubr.msk.bf16.vlgmr.msra.gmra.mrb[252].mxu0 %vm4857_vm4, %v8230_v62 }
 0x462   : > { %8038 = vmatprep.mubr.msk.bf16.mxu0 %vm4857_vm4, %v8231_v22 }
 0x464   : > { %v6535_v59 = vpop.permute.xlu1 %6534 }
 0x468   : > { %v6540_v56 = vpop.permute.xlu1 %6539 }
 0x469   : > { %8039 = vmatmul.mubr.msk.bf16.gmra.mrb[0].mxu0 %vm4857_vm4, %v8232_v55 }
 0x46c   : > { %v6545_v2 = vpop.permute.xlu1 %6544 }
 0x470   : > { %v6550_v27 = vpop.permute.xlu1 %6549 }
 0x474   : > { %v6555_v50 = vpop.permute.xlu1 %6554 }
 0x478   : > { %v6560_v11 = vpop.permute.xlu1 %6559 }
 0x47d   : > { %v6588_v9 = vpop.permute.xlu1 %6587 }
 0x481   : > { %v6592_v40 = vpop.permute.xlu1 %6591 }
 0x485   : > { %v6596_v4 = vpop.permute.xlu1 %6595 }
 0x489   : > { %v6600_v24 = vpop.permute.xlu1 %6599 }
 0x534   : > { %v8036_v60 = vpop.f32.mrb[252].mxu0 }
 0x535   : > { %v6564_v53 = vadd.f32 %v8036_v60, %v6535_v59  ;;  %v6491_v58 = vpop.f32.mrb[253].mxu0 }
 0x536   : > { %v6562_v49 = vadd.f32 %v6525_v61, %v6491_v58  ;;  %v8037_v14 = vpop.f32.mrb[254].mxu0 }
 0x537   : > { %v6565_v1 = vadd.f32 %v8037_v14, %v6540_v56  ;;  %v6494_v28 = vpop.f32.mrb[255].mxu0  ;;  %v6572_v44 = vmax.f32 %v6564_v53, 0.0 }
 0x538   : > { %v6563_v41 = vadd.f32 %v6530_v45, %v6494_v28  ;;  %v6570_v19 = vmax.f32 %v6562_v49, 0.0 }
 0x539   : > { %v6573_v18 = vmax.f32 %v6565_v1, 0.0 }
 0x53a   : > { %v6571_v7 = vmax.f32 %v6563_v41, 0.0 }
 0x53b   : > { %v6583_v54 = vpack.c.bf16 %v6573_v18, %v6572_v44 }
 0x53c   : > { %v6582_v21 = vpack.c.bf16 %v6571_v7, %v6570_v19  ;;  %v8040_v63 = vpop.f32.mrb[0].mxu0 }
 0x53d   : > { %v6568_v37 = vadd.f32 %v8040_v63, %v6555_v50  ;;  %v6507_v13 = vpop.f32.mrb[1].mxu0 }
 0x53e   : > { %v6566_v43 = vadd.f32 %v6545_v2, %v6507_v13  ;;  %v8041_v39 = vpop.f32.mrb[2].mxu0  ;;  %8042 = vmatprep.subr.bf16.mxu1 %v6582_v21 }
 0x53f   : > { %v6569_v34 = vadd.f32 %v8041_v39, %v6560_v11  ;;  %v6510_v42 = vpop.f32.mrb[3].mxu0  ;;  %8043 = vmatpush3.bf16.msra.mxu1 %v6582_v21  ;;  %v6576_v16 = vmax.f32 %v6568_v37, 0.0 }
 0x540   : > { %v6567_v48 = vadd.f32 %v6550_v27, %v6510_v42  ;;  %8044 = vmatprep.subr.bf16.mxu1 %v6583_v54  ;;  %v6574_v3 = vmax.f32 %v6566_v43, 0.0 }
 0x541   : > { %v6577_v38 = vmax.f32 %v6569_v34, 0.0 }
 0x542   : > { %v6575_v36 = vmax.f32 %v6567_v48, 0.0 }
 0x543   : > { %v6585_v26 = vpack.c.bf16 %v6577_v38, %v6576_v16  ;;  %8045 = vmatpush3.bf16.msra.mxu1 %v6583_v54 }
 0x544   : > { %v6584_v25 = vpack.c.bf16 %v6575_v36, %v6574_v3 }
 0x546   : > { %8046 = vmatprep.subr.bf16.mxu1 %v6584_v25 }
 0x547   : > { %8047 = vmatpush3.bf16.msra.mxu1 %v6584_v25 }
 0x548   : > { %8048 = vmatprep.subr.bf16.mxu1 %v6585_v26 }
 0x54b   : > { %8049 = vmatpush3.bf16.msra.mxu1 %v6585_v26 }
 0x54e   : > { %8051 = vmatmul.mubr.msk.bf16.vlgmr.msra.gmra.mrb[4].mxu1 %vm6612_vm13, %v8234_v5 }
 0x621   : > { %v8052_v23 = vpop.f32.mrb[4].mxu1 }
 0x622   : > { %v6662_v47 = vadd.f32 %v8052_v23, %v6596_v4  ;;  %v6653_v17 = vpop.f32.mrb[5].mxu1 }
 0x623   : > { %v6654_v12 = vadd.f32 %v6653_v17, %v6588_v9  ;;  %v8053_v15 = vpop.f32.mrb[6].mxu1 }
 0x624   : > { %v6665_v33 = vadd.f32 %v8053_v15, %v6600_v24  ;;  %v6656_v20 = vpop.f32.mrb[7].mxu1  ;;  %v6670_v32 = vmax.f32 %v6662_v47, 0.0 }
 0x625   : > { %v6657_v31 = vadd.f32 %v6656_v20, %v6592_v40  ;;  %v6668_v30 = vmax.f32 %v6654_v12, 0.0 }
 0x626   : > { %v6671_v29 = vmax.f32 %v6665_v33, 0.0 }
 0x627   : > { %v6669_v46 = vmax.f32 %v6657_v31, 0.0 }
 0x628   : > { %v7226_v0 = vpack.c.bf16 %v6671_v29, %v6670_v32 }
 0x629   : > { %v7221_v8 = vpack.c.bf16 %v6669_v46, %v6668_v30 }
 0x62a   : > { %7228 = vst [vmem:[%s396_s17 + $0x8] sm:$0xff] %v7226_v0  }
 0x62b   : > { %7222 = vst [vmem:[%s396_s17] sm:$0xff] %v7221_v8  }
 0x62c PF: > { %s19_s11 = sadd.s32 1, %s8258_s11   ;;  %s10840_s30 = smov %s8254_s10 }
 0x62d   : > { %p16_p5 = scmp.ge.s32.totalorder %s19_s11, 4   ;;  %s10841_s10 = smov %s10843_s12 }
 0x62f   :  { %18 = sbr.rel (!%p16_p5) target bundleno = 2 (0x2), region = 89 }

</bundles_post_ra>
